<compile_context>
chip_gen: v6e
topology: v6e:2x2x1
jax: 0.10.0
libtpu: 0.0.40
codegen_flags: <defaults>
</compile_context>

<pallas_src>
import functools

import jax
import jax.numpy as jnp
from jax import lax
from jax.experimental import pallas as pl
from jax.experimental.pallas import tpu as pltpu

EPS = 1e-5          # InstanceNorm3d default (affine=False, biased variance)
NEG_SLOPE = 1.0     # nn.LeakyReLU(True): negative_slope == float(True) == 1.0


def _round_up(x, m):
    return (x + m - 1) // m * m


def _conv_in_layer(x_ext, w, b, mask, offsets, win, inv_n):
    """Fused Conv3d(3, pad=1) + InstanceNorm3d (+ identity LeakyReLU).

    x_ext : (Cin_p, ext) f32 -- flattened zero-padded volume placed at lane
            offset `margin` inside an extended buffer (zeros elsewhere).
    w     : (Cout_p, 27*Cin_p) f32, column index = tap*Cin_p + cin
    b     : (Cout_p, 1) f32
    mask  : (1, win) f32, 1.0 on interior voxels, 0.0 on halo / tail padding
    Returns (Cout_p, win) f32 with zeros outside the interior voxels.
    """
    # im2col: each 3x3x3 tap is a contiguous lane window of the extended
    # buffer (pure lane-offset copies; no strided multi-dim slices/reshapes).
    taps = [x_ext[:, off:off + win] for off in offsets]      # 27 x (Cin_p, win)
    patches = jnp.concatenate(taps, axis=0)                  # (27*Cin_p, win)

    # Single deep MXU matmul + bias.
    acc = jnp.dot(w, patches, preferred_element_type=jnp.float32) + b
    acc = acc * mask                                         # zero halo/tail

    # InstanceNorm3d over the D*H*W interior voxels (biased variance).
    mean = jnp.sum(acc, axis=1, keepdims=True) * inv_n
    cen = (acc - mean) * mask
    var = jnp.sum(cen * cen, axis=1, keepdims=True) * inv_n
    y = cen * lax.rsqrt(var + EPS)
    # LeakyReLU(negative_slope=NEG_SLOPE=1.0) is the identity -> skipped.
    return y


def _pub_kernel(x_ref, mask_ref, w1_ref, b1_ref, w2_ref, b2_ref, o_ref,
                *, offsets, win, margin, ext, inv_n):
    mask = mask_ref[...]                                     # (1, win)
    x_ext = x_ref[0]                                         # (Cin_p, ext)

    y1 = _conv_in_layer(x_ext, w1_ref[...], b1_ref[...], mask,
                        offsets, win, inv_n)                 # (C1_p, win)

    # Re-embed the intermediate into the margin-extended frame (aligned lane
    # concat) so the second conv reuses the same lane-window im2col; the
    # intermediate never leaves VMEM.
    c1p = y1.shape[0]
    y1_ext = jnp.concatenate(
        [jnp.zeros((c1p, margin), jnp.float32),
         y1,
         jnp.zeros((c1p, ext - margin - win), jnp.float32)], axis=1)

    y2 = _conv_in_layer(y1_ext, w2_ref[...], b2_ref[...], mask,
                        offsets, win, inv_n)                 # (C2_p, win)

    o_ref[0] = y2.astype(o_ref.dtype)


def _prep_weight(w, b, cin_p, cout_p):
    """(Cout,Cin,3,3,3) PyTorch weight -> (Cout_p, 27*Cin_p); bias -> (Cout_p,1)."""
    cout, cin = w.shape[0], w.shape[1]
    wt = jnp.transpose(w, (0, 2, 3, 4, 1))                   # (Cout,3,3,3,Cin)
    wt = jnp.pad(wt, ((0, cout_p - cout), (0, 0), (0, 0), (0, 0),
                      (0, cin_p - cin)))
    wt = wt.reshape(cout_p, 27 * cin_p)
    bb = jnp.pad(b, (0, cout_p - cout)).reshape(cout_p, 1)
    return wt.astype(jnp.float32), bb.astype(jnp.float32)


def pub_forward(x_ncdhw, params):
    """Forward pass matching pub(in_channels, out_channels, batch_norm=True)."""
    w1, b1, w2, b2 = params
    N, Cin, D, H, W = x_ncdhw.shape
    C1 = w1.shape[0]
    C2 = w2.shape[0]

    Dp, Hp, Wp = D + 2, H + 2, W + 2
    P = Dp * Hp * Wp                            # flattened padded spatial size
    win = _round_up(P, 128)                     # lane-dense working width
    margin = _round_up(Hp * Wp + Wp + 1, 128)   # >= max |tap offset|, aligned
    ext = 2 * margin + win

    cin_p = _round_up(Cin, 8)
    c1_p = _round_up(C1, 8)
    c2_p = _round_up(C2, 8)

    # Static lane offsets of the 27 taps inside the extended buffer
    # (tap order kd, kh, kw matches the weight reshape below).
    offsets = tuple(
        margin + (kd - 1) * Hp * Wp + (kh - 1) * Wp + (kw - 1)
        for kd in range(3) for kh in range(3) for kw in range(3))

    # NCDHW already has channels on sublanes / spatial on lanes: no transpose.
    xp = jnp.pad(x_ncdhw.astype(jnp.float32),
                 ((0, 0), (0, cin_p - Cin), (1, 1), (1, 1), (1, 1)))
    x_ext = jnp.pad(xp.reshape(N, cin_p, P),
                    ((0, 0), (0, 0), (margin, ext - margin - P)))

    # Interior-voxel mask over the working window.
    m3 = jnp.zeros((Dp, Hp, Wp), jnp.float32)
    m3 = m3.at[1:-1, 1:-1, 1:-1].set(1.0)
    mask = jnp.pad(m3.reshape(1, P), ((0, 0), (0, win - P)))

    w1p, b1p = _prep_weight(w1, b1, cin_p, c1_p)
    w2p, b2p = _prep_weight(w2, b2, c1_p, c2_p)

    kernel = functools.partial(
        _pub_kernel, offsets=offsets, win=win, margin=margin, ext=ext,
        inv_n=1.0 / float(D * H * W))

    out = pl.pallas_call(
        kernel,
        out_shape=jax.ShapeDtypeStruct((N, c2_p, win), jnp.float32),
        grid_spec=pltpu.PrefetchScalarGridSpec(
            num_scalar_prefetch=0,
            grid=(N,),
            in_specs=[
                pl.BlockSpec((1, cin_p, ext), lambda n: (n, 0, 0)),
                pl.BlockSpec((1, win), lambda n: (0, 0)),
                pl.BlockSpec((c1_p, 27 * cin_p), lambda n: (0, 0)),
                pl.BlockSpec((c1_p, 1), lambda n: (0, 0)),
                pl.BlockSpec((c2_p, 27 * c1_p), lambda n: (0, 0)),
                pl.BlockSpec((c2_p, 1), lambda n: (0, 0)),
            ],
            out_specs=pl.BlockSpec((1, c2_p, win), lambda n: (n, 0, 0)),
        ),
        compiler_params=pltpu.CompilerParams(
            dimension_semantics=("parallel",)),
    )(x_ext, mask, w1p, b1p, w2p, b2p)

    # Extract valid channels and interior voxels (halo/tail columns are zero).
    out = out[:, :C2, :P].reshape(N, C2, Dp, Hp, Wp)
    return out[:, :, 1:-1, 1:-1, 1:-1]


def init_pub_params(key, in_channels, out_channels):
    inter = out_channels if in_channels > out_channels else out_channels // 2
    k1, k2, k3, k4 = jax.random.split(key, 4)

    def conv_init(kw, kb, cin, cout):
        fan_in = cin * 27
        bound = 1.0 / (fan_in ** 0.5)
        w = jax.random.uniform(kw, (cout, cin, 3, 3, 3), jnp.float32, -bound, bound)
        bb = jax.random.uniform(kb, (cout,), jnp.float32, -bound, bound)
        return w, bb

    w1, b1 = conv_init(k1, k2, in_channels, inter)
    w2, b2 = conv_init(k3, k4, inter, out_channels)
    return (w1, b1, w2, b2)


# -------- pure-JAX reference (correctness check) --------
def _ref_layer(x_ncdhw, w, b):
    y = lax.conv_general_dilated(
        x_ncdhw, w, window_strides=(1, 1, 1), padding=[(1, 1)] * 3,
        dimension_numbers=("NCDHW", "OIDHW", "NCDHW"))
    y = y + b[None, :, None, None, None]
    mean = jnp.mean(y, axis=(2, 3, 4), keepdims=True)
    var = jnp.mean((y - mean) ** 2, axis=(2, 3, 4), keepdims=True)
    y = (y - mean) * lax.rsqrt(var + EPS)
    return jnp.where(y >= 0, y, NEG_SLOPE * y)   # identity for slope 1.0


def pub_reference(x_ncdhw, params):
    w1, b1, w2, b2 = params
    return _ref_layer(_ref_layer(x_ncdhw, w1, b1), w2, b2)


if __name__ == "__main__":
    in_channels, out_channels = 4, 8          # inter_channels = 8 // 2 = 4
    N, D, H, W = 2, 8, 8, 8

    key = jax.random.PRNGKey(0)
    kx, kp = jax.random.split(key)
    x = jax.random.normal(kx, (N, in_channels, D, H, W), jnp.float32)
    params = init_pub_params(kp, in_channels, out_channels)

    out = jax.block_until_ready(pub_forward(x, params))
    assert out.shape == (N, out_channels, D, H, W)

    ref = pub_reference(x, params)
    max_err = float(jnp.max(jnp.abs(out - ref)))
    assert jnp.allclose(out, ref, rtol=1e-3, atol=1e-3), (
        f"mismatch vs reference, max err {max_err}")

    print("KERNEL_OK")
</pallas_src>

<mosaic_0001>
module attributes {stable_mosaic.version = 11 : i64} {
  func.func @_pub_kernel(%arg0: i32, %arg1: memref<1x8x1280xf32, #tpu.memory_space<vmem>>, %arg2: memref<1x1024xf32, #tpu.memory_space<vmem>>, %arg3: memref<8x216xf32, #tpu.memory_space<vmem>>, %arg4: memref<8x1xf32, #tpu.memory_space<vmem>>, %arg5: memref<8x216xf32, #tpu.memory_space<vmem>>, %arg6: memref<8x1xf32, #tpu.memory_space<vmem>>, %arg7: memref<1x8x1024xf32, #tpu.memory_space<vmem>>) attributes {dimension_semantics = [#tpu.dimension_semantics<parallel>], iteration_bounds = array<i64: 2>, scalar_prefetch = 0 : i64, scratch_operands = 0 : i64, tpu.core_type = #tpu.core_type<tc>, window_params = [{transform_indices = @transform_0, window_bounds = array<i64: 1, 8, 1280>}, {pipeline_mode = #tpu.pipeline_mode<synchronous>, transform_indices = @transform_1, window_bounds = array<i64: 1, 1024>}, {pipeline_mode = #tpu.pipeline_mode<synchronous>, transform_indices = @transform_2, window_bounds = array<i64: 8, 216>}, {pipeline_mode = #tpu.pipeline_mode<synchronous>, transform_indices = @transform_3, window_bounds = array<i64: 8, 1>}, {pipeline_mode = #tpu.pipeline_mode<synchronous>, transform_indices = @transform_4, window_bounds = array<i64: 8, 216>}, {pipeline_mode = #tpu.pipeline_mode<synchronous>, transform_indices = @transform_5, window_bounds = array<i64: 8, 1>}, {transform_indices = @transform_6, window_bounds = array<i64: 1, 8, 1024>}]} {
    %c0 = arith.constant 0 : index
    %c0_0 = arith.constant 0 : index
    %0 = vector.load %arg2[%c0, %c0_0] : memref<1x1024xf32, #tpu.memory_space<vmem>>, vector<1x1024xf32>
    %c0_1 = arith.constant 0 : index
    %c0_2 = arith.constant 0 : index
    %c0_3 = arith.constant 0 : index
    %1 = vector.load %arg1[%c0_1, %c0_2, %c0_3] : memref<1x8x1280xf32, #tpu.memory_space<vmem>>, vector<1x8x1280xf32>
    %2 = vector.shape_cast %1 : vector<1x8x1280xf32> to vector<8x1280xf32>
    %c0_4 = arith.constant 0 : index
    %c0_5 = arith.constant 0 : index
    %3 = vector.load %arg3[%c0_4, %c0_5] : memref<8x216xf32, #tpu.memory_space<vmem>>, vector<8x216xf32>
    %c0_6 = arith.constant 0 : index
    %c0_7 = arith.constant 0 : index
    %4 = vector.load %arg4[%c0_6, %c0_7] : memref<8x1xf32, #tpu.memory_space<vmem>>, vector<8x1xf32>
    %5 = vector.extract_strided_slice %2 {offsets = [0, 17], sizes = [8, 1024], strides = [1, 1]} : vector<8x1280xf32> to vector<8x1024xf32>
    %6 = vector.extract_strided_slice %2 {offsets = [0, 18], sizes = [8, 1024], strides = [1, 1]} : vector<8x1280xf32> to vector<8x1024xf32>
    %7 = vector.extract_strided_slice %2 {offsets = [0, 19], sizes = [8, 1024], strides = [1, 1]} : vector<8x1280xf32> to vector<8x1024xf32>
    %8 = vector.extract_strided_slice %2 {offsets = [0, 27], sizes = [8, 1024], strides = [1, 1]} : vector<8x1280xf32> to vector<8x1024xf32>
    %9 = vector.extract_strided_slice %2 {offsets = [0, 28], sizes = [8, 1024], strides = [1, 1]} : vector<8x1280xf32> to vector<8x1024xf32>
    %10 = vector.extract_strided_slice %2 {offsets = [0, 29], sizes = [8, 1024], strides = [1, 1]} : vector<8x1280xf32> to vector<8x1024xf32>
    %11 = vector.extract_strided_slice %2 {offsets = [0, 37], sizes = [8, 1024], strides = [1, 1]} : vector<8x1280xf32> to vector<8x1024xf32>
    %12 = vector.extract_strided_slice %2 {offsets = [0, 38], sizes = [8, 1024], strides = [1, 1]} : vector<8x1280xf32> to vector<8x1024xf32>
    %13 = vector.extract_strided_slice %2 {offsets = [0, 39], sizes = [8, 1024], strides = [1, 1]} : vector<8x1280xf32> to vector<8x1024xf32>
    %14 = vector.extract_strided_slice %2 {offsets = [0, 117], sizes = [8, 1024], strides = [1, 1]} : vector<8x1280xf32> to vector<8x1024xf32>
    %15 = vector.extract_strided_slice %2 {offsets = [0, 118], sizes = [8, 1024], strides = [1, 1]} : vector<8x1280xf32> to vector<8x1024xf32>
    %16 = vector.extract_strided_slice %2 {offsets = [0, 119], sizes = [8, 1024], strides = [1, 1]} : vector<8x1280xf32> to vector<8x1024xf32>
    %17 = vector.extract_strided_slice %2 {offsets = [0, 127], sizes = [8, 1024], strides = [1, 1]} : vector<8x1280xf32> to vector<8x1024xf32>
    %18 = vector.extract_strided_slice %2 {offsets = [0, 128], sizes = [8, 1024], strides = [1, 1]} : vector<8x1280xf32> to vector<8x1024xf32>
    %19 = vector.extract_strided_slice %2 {offsets = [0, 129], sizes = [8, 1024], strides = [1, 1]} : vector<8x1280xf32> to vector<8x1024xf32>
    %20 = vector.extract_strided_slice %2 {offsets = [0, 137], sizes = [8, 1024], strides = [1, 1]} : vector<8x1280xf32> to vector<8x1024xf32>
    %21 = vector.extract_strided_slice %2 {offsets = [0, 138], sizes = [8, 1024], strides = [1, 1]} : vector<8x1280xf32> to vector<8x1024xf32>
    %22 = vector.extract_strided_slice %2 {offsets = [0, 139], sizes = [8, 1024], strides = [1, 1]} : vector<8x1280xf32> to vector<8x1024xf32>
    %23 = vector.extract_strided_slice %2 {offsets = [0, 217], sizes = [8, 1024], strides = [1, 1]} : vector<8x1280xf32> to vector<8x1024xf32>
    %24 = vector.extract_strided_slice %2 {offsets = [0, 218], sizes = [8, 1024], strides = [1, 1]} : vector<8x1280xf32> to vector<8x1024xf32>
    %25 = vector.extract_strided_slice %2 {offsets = [0, 219], sizes = [8, 1024], strides = [1, 1]} : vector<8x1280xf32> to vector<8x1024xf32>
    %26 = vector.extract_strided_slice %2 {offsets = [0, 227], sizes = [8, 1024], strides = [1, 1]} : vector<8x1280xf32> to vector<8x1024xf32>
    %27 = vector.extract_strided_slice %2 {offsets = [0, 228], sizes = [8, 1024], strides = [1, 1]} : vector<8x1280xf32> to vector<8x1024xf32>
    %28 = vector.extract_strided_slice %2 {offsets = [0, 229], sizes = [8, 1024], strides = [1, 1]} : vector<8x1280xf32> to vector<8x1024xf32>
    %29 = vector.extract_strided_slice %2 {offsets = [0, 237], sizes = [8, 1024], strides = [1, 1]} : vector<8x1280xf32> to vector<8x1024xf32>
    %30 = vector.extract_strided_slice %2 {offsets = [0, 238], sizes = [8, 1024], strides = [1, 1]} : vector<8x1280xf32> to vector<8x1024xf32>
    %31 = vector.extract_strided_slice %2 {offsets = [0, 239], sizes = [8, 1024], strides = [1, 1]} : vector<8x1280xf32> to vector<8x1024xf32>
    %32 = tpu.concatenate %5, %6, %7, %8, %9, %10, %11, %12, %13, %14, %15, %16, %17, %18, %19, %20 in 0 : vector<8x1024xf32>, vector<8x1024xf32>, vector<8x1024xf32>, vector<8x1024xf32>, vector<8x1024xf32>, vector<8x1024xf32>, vector<8x1024xf32>, vector<8x1024xf32>, vector<8x1024xf32>, vector<8x1024xf32>, vector<8x1024xf32>, vector<8x1024xf32>, vector<8x1024xf32>, vector<8x1024xf32>, vector<8x1024xf32>, vector<8x1024xf32> -> vector<128x1024xf32>
    %33 = tpu.concatenate %21, %22, %23, %24, %25, %26, %27, %28, %29, %30, %31 in 0 : vector<8x1024xf32>, vector<8x1024xf32>, vector<8x1024xf32>, vector<8x1024xf32>, vector<8x1024xf32>, vector<8x1024xf32>, vector<8x1024xf32>, vector<8x1024xf32>, vector<8x1024xf32>, vector<8x1024xf32>, vector<8x1024xf32> -> vector<88x1024xf32>
    %34 = tpu.concatenate %32, %33 in 0 : vector<128x1024xf32>, vector<88x1024xf32> -> vector<216x1024xf32>
    %cst = arith.constant dense<0.000000e+00> : vector<8x1024xf32>
    %35 = tpu.matmul %3, %34, %cst {dimension_numbers = #tpu.dot_dimension_numbers<[1], [0], [0], [1], [0, 0, 1, 1], [], []>} : vector<8x216xf32>, vector<216x1024xf32>, vector<8x1024xf32> -> vector<8x1024xf32>
    %36 = vector.broadcast %4 : vector<8x1xf32> to vector<8x1024xf32>
    %37 = arith.addf %35, %36 : vector<8x1024xf32>
    %38 = vector.broadcast %0 : vector<1x1024xf32> to vector<8x1024xf32>
    %39 = arith.mulf %37, %38 : vector<8x1024xf32>
    %cst_8 = arith.constant dense<0.000000e+00> : vector<8xf32>
    %40 = vector.multi_reduction <add>, %39, %cst_8 [1] : vector<8x1024xf32> to vector<8xf32>
    %41 = vector.shape_cast %40 : vector<8xf32> to vector<8x1xf32>
    %cst_9 = arith.constant 0.001953125 : f32
    %42 = vector.broadcast %cst_9 : f32 to vector<8x1xf32>
    %43 = arith.mulf %41, %42 : vector<8x1xf32>
    %44 = vector.broadcast %43 : vector<8x1xf32> to vector<8x1024xf32>
    %45 = arith.subf %39, %44 : vector<8x1024xf32>
    %46 = vector.broadcast %0 : vector<1x1024xf32> to vector<8x1024xf32>
    %47 = arith.mulf %45, %46 : vector<8x1024xf32>
    %48 = arith.mulf %47, %47 : vector<8x1024xf32>
    %cst_10 = arith.constant dense<0.000000e+00> : vector<8xf32>
    %49 = vector.multi_reduction <add>, %48, %cst_10 [1] : vector<8x1024xf32> to vector<8xf32>
    %50 = vector.shape_cast %49 : vector<8xf32> to vector<8x1xf32>
    %cst_11 = arith.constant 0.001953125 : f32
    %51 = vector.broadcast %cst_11 : f32 to vector<8x1xf32>
    %52 = arith.mulf %50, %51 : vector<8x1xf32>
    %cst_12 = arith.constant 9.99999974E-6 : f32
    %53 = vector.broadcast %cst_12 : f32 to vector<8x1xf32>
    %54 = arith.addf %52, %53 : vector<8x1xf32>
    %55 = math.rsqrt %54 : vector<8x1xf32>
    %56 = vector.broadcast %55 : vector<8x1xf32> to vector<8x1024xf32>
    %57 = arith.mulf %47, %56 : vector<8x1024xf32>
    %cst_13 = arith.constant 0.000000e+00 : f32
    %58 = vector.broadcast %cst_13 : f32 to vector<8x128xf32>
    %cst_14 = arith.constant 0.000000e+00 : f32
    %59 = vector.broadcast %cst_14 : f32 to vector<8x128xf32>
    %60 = tpu.concatenate %58, %57, %59 in 1 : vector<8x128xf32>, vector<8x1024xf32>, vector<8x128xf32> -> vector<8x1280xf32>
    %c0_15 = arith.constant 0 : index
    %c0_16 = arith.constant 0 : index
    %61 = vector.load %arg5[%c0_15, %c0_16] : memref<8x216xf32, #tpu.memory_space<vmem>>, vector<8x216xf32>
    %c0_17 = arith.constant 0 : index
    %c0_18 = arith.constant 0 : index
    %62 = vector.load %arg6[%c0_17, %c0_18] : memref<8x1xf32, #tpu.memory_space<vmem>>, vector<8x1xf32>
    %63 = vector.extract_strided_slice %60 {offsets = [0, 17], sizes = [8, 1024], strides = [1, 1]} : vector<8x1280xf32> to vector<8x1024xf32>
    %64 = vector.extract_strided_slice %60 {offsets = [0, 18], sizes = [8, 1024], strides = [1, 1]} : vector<8x1280xf32> to vector<8x1024xf32>
    %65 = vector.extract_strided_slice %60 {offsets = [0, 19], sizes = [8, 1024], strides = [1, 1]} : vector<8x1280xf32> to vector<8x1024xf32>
    %66 = vector.extract_strided_slice %60 {offsets = [0, 27], sizes = [8, 1024], strides = [1, 1]} : vector<8x1280xf32> to vector<8x1024xf32>
    %67 = vector.extract_strided_slice %60 {offsets = [0, 28], sizes = [8, 1024], strides = [1, 1]} : vector<8x1280xf32> to vector<8x1024xf32>
    %68 = vector.extract_strided_slice %60 {offsets = [0, 29], sizes = [8, 1024], strides = [1, 1]} : vector<8x1280xf32> to vector<8x1024xf32>
    %69 = vector.extract_strided_slice %60 {offsets = [0, 37], sizes = [8, 1024], strides = [1, 1]} : vector<8x1280xf32> to vector<8x1024xf32>
    %70 = vector.extract_strided_slice %60 {offsets = [0, 38], sizes = [8, 1024], strides = [1, 1]} : vector<8x1280xf32> to vector<8x1024xf32>
    %71 = vector.extract_strided_slice %60 {offsets = [0, 39], sizes = [8, 1024], strides = [1, 1]} : vector<8x1280xf32> to vector<8x1024xf32>
    %72 = vector.extract_strided_slice %60 {offsets = [0, 117], sizes = [8, 1024], strides = [1, 1]} : vector<8x1280xf32> to vector<8x1024xf32>
    %73 = vector.extract_strided_slice %60 {offsets = [0, 118], sizes = [8, 1024], strides = [1, 1]} : vector<8x1280xf32> to vector<8x1024xf32>
    %74 = vector.extract_strided_slice %60 {offsets = [0, 119], sizes = [8, 1024], strides = [1, 1]} : vector<8x1280xf32> to vector<8x1024xf32>
    %75 = vector.extract_strided_slice %60 {offsets = [0, 127], sizes = [8, 1024], strides = [1, 1]} : vector<8x1280xf32> to vector<8x1024xf32>
    %76 = vector.extract_strided_slice %60 {offsets = [0, 128], sizes = [8, 1024], strides = [1, 1]} : vector<8x1280xf32> to vector<8x1024xf32>
    %77 = vector.extract_strided_slice %60 {offsets = [0, 129], sizes = [8, 1024], strides = [1, 1]} : vector<8x1280xf32> to vector<8x1024xf32>
    %78 = vector.extract_strided_slice %60 {offsets = [0, 137], sizes = [8, 1024], strides = [1, 1]} : vector<8x1280xf32> to vector<8x1024xf32>
    %79 = vector.extract_strided_slice %60 {offsets = [0, 138], sizes = [8, 1024], strides = [1, 1]} : vector<8x1280xf32> to vector<8x1024xf32>
    %80 = vector.extract_strided_slice %60 {offsets = [0, 139], sizes = [8, 1024], strides = [1, 1]} : vector<8x1280xf32> to vector<8x1024xf32>
    %81 = vector.extract_strided_slice %60 {offsets = [0, 217], sizes = [8, 1024], strides = [1, 1]} : vector<8x1280xf32> to vector<8x1024xf32>
    %82 = vector.extract_strided_slice %60 {offsets = [0, 218], sizes = [8, 1024], strides = [1, 1]} : vector<8x1280xf32> to vector<8x1024xf32>
    %83 = vector.extract_strided_slice %60 {offsets = [0, 219], sizes = [8, 1024], strides = [1, 1]} : vector<8x1280xf32> to vector<8x1024xf32>
    %84 = vector.extract_strided_slice %60 {offsets = [0, 227], sizes = [8, 1024], strides = [1, 1]} : vector<8x1280xf32> to vector<8x1024xf32>
    %85 = vector.extract_strided_slice %60 {offsets = [0, 228], sizes = [8, 1024], strides = [1, 1]} : vector<8x1280xf32> to vector<8x1024xf32>
    %86 = vector.extract_strided_slice %60 {offsets = [0, 229], sizes = [8, 1024], strides = [1, 1]} : vector<8x1280xf32> to vector<8x1024xf32>
    %87 = vector.extract_strided_slice %60 {offsets = [0, 237], sizes = [8, 1024], strides = [1, 1]} : vector<8x1280xf32> to vector<8x1024xf32>
    %88 = vector.extract_strided_slice %60 {offsets = [0, 238], sizes = [8, 1024], strides = [1, 1]} : vector<8x1280xf32> to vector<8x1024xf32>
    %89 = vector.extract_strided_slice %60 {offsets = [0, 239], sizes = [8, 1024], strides = [1, 1]} : vector<8x1280xf32> to vector<8x1024xf32>
    %90 = tpu.concatenate %63, %64, %65, %66, %67, %68, %69, %70, %71, %72, %73, %74, %75, %76, %77, %78 in 0 : vector<8x1024xf32>, vector<8x1024xf32>, vector<8x1024xf32>, vector<8x1024xf32>, vector<8x1024xf32>, vector<8x1024xf32>, vector<8x1024xf32>, vector<8x1024xf32>, vector<8x1024xf32>, vector<8x1024xf32>, vector<8x1024xf32>, vector<8x1024xf32>, vector<8x1024xf32>, vector<8x1024xf32>, vector<8x1024xf32>, vector<8x1024xf32> -> vector<128x1024xf32>
    %91 = tpu.concatenate %79, %80, %81, %82, %83, %84, %85, %86, %87, %88, %89 in 0 : vector<8x1024xf32>, vector<8x1024xf32>, vector<8x1024xf32>, vector<8x1024xf32>, vector<8x1024xf32>, vector<8x1024xf32>, vector<8x1024xf32>, vector<8x1024xf32>, vector<8x1024xf32>, vector<8x1024xf32>, vector<8x1024xf32> -> vector<88x1024xf32>
    %92 = tpu.concatenate %90, %91 in 0 : vector<128x1024xf32>, vector<88x1024xf32> -> vector<216x1024xf32>
    %cst_19 = arith.constant dense<0.000000e+00> : vector<8x1024xf32>
    %93 = tpu.matmul %61, %92, %cst_19 {dimension_numbers = #tpu.dot_dimension_numbers<[1], [0], [0], [1], [0, 0, 1, 1], [], []>} : vector<8x216xf32>, vector<216x1024xf32>, vector<8x1024xf32> -> vector<8x1024xf32>
    %94 = vector.broadcast %62 : vector<8x1xf32> to vector<8x1024xf32>
    %95 = arith.addf %93, %94 : vector<8x1024xf32>
    %96 = vector.broadcast %0 : vector<1x1024xf32> to vector<8x1024xf32>
    %97 = arith.mulf %95, %96 : vector<8x1024xf32>
    %cst_20 = arith.constant dense<0.000000e+00> : vector<8xf32>
    %98 = vector.multi_reduction <add>, %97, %cst_20 [1] : vector<8x1024xf32> to vector<8xf32>
    %99 = vector.shape_cast %98 : vector<8xf32> to vector<8x1xf32>
    %cst_21 = arith.constant 0.001953125 : f32
    %100 = vector.broadcast %cst_21 : f32 to vector<8x1xf32>
    %101 = arith.mulf %99, %100 : vector<8x1xf32>
    %102 = vector.broadcast %101 : vector<8x1xf32> to vector<8x1024xf32>
    %103 = arith.subf %97, %102 : vector<8x1024xf32>
    %104 = vector.broadcast %0 : vector<1x1024xf32> to vector<8x1024xf32>
    %105 = arith.mulf %103, %104 : vector<8x1024xf32>
    %106 = arith.mulf %105, %105 : vector<8x1024xf32>
    %cst_22 = arith.constant dense<0.000000e+00> : vector<8xf32>
    %107 = vector.multi_reduction <add>, %106, %cst_22 [1] : vector<8x1024xf32> to vector<8xf32>
    %108 = vector.shape_cast %107 : vector<8xf32> to vector<8x1xf32>
    %cst_23 = arith.constant 0.001953125 : f32
    %109 = vector.broadcast %cst_23 : f32 to vector<8x1xf32>
    %110 = arith.mulf %108, %109 : vector<8x1xf32>
    %cst_24 = arith.constant 9.99999974E-6 : f32
    %111 = vector.broadcast %cst_24 : f32 to vector<8x1xf32>
    %112 = arith.addf %110, %111 : vector<8x1xf32>
    %113 = math.rsqrt %112 : vector<8x1xf32>
    %114 = vector.broadcast %113 : vector<8x1xf32> to vector<8x1024xf32>
    %115 = arith.mulf %105, %114 : vector<8x1024xf32>
    %c0_25 = arith.constant 0 : index
    %c0_26 = arith.constant 0 : index
    %c0_27 = arith.constant 0 : index
    %116 = vector.load %arg7[%c0_25, %c0_26, %c0_27] : memref<1x8x1024xf32, #tpu.memory_space<vmem>>, vector<1x8x1024xf32>
    %117 = vector.shape_cast %116 : vector<1x8x1024xf32> to vector<8x1024xf32>
    %118 = vector.shape_cast %115 : vector<8x1024xf32> to vector<1x8x1024xf32>
    tpu.vector_store %arg7[%c0_25, %c0_26, %c0_27], %118 {strides = array<i32>} : memref<1x8x1024xf32, #tpu.memory_space<vmem>>, vector<1x8x1024xf32>,
    return
  }
  func.func @transform_0(%arg0: i32) -> (i32, i32, i32) {
    %c0_i32 = arith.constant 0 : i32
    %c0_i32_0 = arith.constant 0 : i32
    %c0_i32_1 = arith.constant 0 : i32
    return %arg0, %c0_i32, %c0_i32_0 : i32, i32, i32
  }
  func.func @transform_1(%arg0: i32) -> (i32, i32) {
    %c0_i32 = arith.constant 0 : i32
    %c0_i32_0 = arith.constant 0 : i32
    %c0_i32_1 = arith.constant 0 : i32
    return %c0_i32, %c0_i32_0 : i32, i32
  }
  func.func @transform_2(%arg0: i32) -> (i32, i32) {
    %c0_i32 = arith.constant 0 : i32
    %c0_i32_0 = arith.constant 0 : i32
    %c0_i32_1 = arith.constant 0 : i32
    return %c0_i32, %c0_i32_0 : i32, i32
  }
  func.func @transform_3(%arg0: i32) -> (i32, i32) {
    %c0_i32 = arith.constant 0 : i32
    %c0_i32_0 = arith.constant 0 : i32
    %c0_i32_1 = arith.constant 0 : i32
    return %c0_i32, %c0_i32_0 : i32, i32
  }
  func.func @transform_4(%arg0: i32) -> (i32, i32) {
    %c0_i32 = arith.constant 0 : i32
    %c0_i32_0 = arith.constant 0 : i32
    %c0_i32_1 = arith.constant 0 : i32
    return %c0_i32, %c0_i32_0 : i32, i32
  }
  func.func @transform_5(%arg0: i32) -> (i32, i32) {
    %c0_i32 = arith.constant 0 : i32
    %c0_i32_0 = arith.constant 0 : i32
    %c0_i32_1 = arith.constant 0 : i32
    return %c0_i32, %c0_i32_0 : i32, i32
  }
  func.func @transform_6(%arg0: i32) -> (i32, i32, i32) {
    %c0_i32 = arith.constant 0 : i32
    %c0_i32_0 = arith.constant 0 : i32
    %c0_i32_1 = arith.constant 0 : i32
    return %arg0, %c0_i32, %c0_i32_0 : i32, i32, i32
  }
}

</mosaic_0001>

<bundles_post_ra>
// kernel: tpu_custom_call.1
= control target key start
LH: loop header
LB: loop body
LE: loop exit
PB: predicated region body
PF: predicated region fallthrough
CT: control target
= control target key end

     0   :  { %s11420_s0 = inlined_call_operand.hbm [shape: f32[2,8,1280], index: 0, kind: input, shape index: {}]   ;;  %s11421_s1 = inlined_call_operand.hbm [shape: f32[1,1024], index: 1, kind: input, shape index: {}]   ;;  %s11422_s2 = inlined_call_operand.vmem [shape: f32[8,216], index: 2, kind: input, shape index: {}]   ;;  %s11423_s3 = inlined_call_operand.vmem [shape: f32[8,1], index: 3, kind: input, shape index: {}]   ;;  %s11424_s4 = inlined_call_operand.hbm [shape: f32[8,216], index: 4, kind: input, shape index: {}]   ;;  %s11425_s5 = inlined_call_operand.vmem [shape: f32[8,1], index: 5, kind: input, shape index: {}]   ;;  %s11426_s6 = inlined_call_operand.hbm [shape: f32[2,8,1024], index: 6, kind: output, shape index: {}]  }
   0x1   :  { %11900 = sst [smem:[#allocation175_spill]] %s11421_s1 }
   0x2   :  { %11 = vsyncpa [#allocation3], 0 }
   0x3   :  { %13 = vsyncpa [#allocation3 + $0x1], 0 }
   0x4   :  { %14 = vsyncpa [#allocation6], 0 }
   0x5   :  { %15 = vsyncpa [#allocation4], 0 }
   0x6   :  { %17 = vsyncpa [#allocation4 + $0x1], 0  ;;  %s5148_s21 = smov 0   ;;  %s5150_s22 = smov 0  }
   0x7   :  { %s5152_s23 = smov 0   ;;  %s5154_s24 = smov 0  }
   0x8 LB: > { %s5169_s25 = sadd.s32 4294967295, %s5081_s24   ;;  %s4773_s26 = sadd.s32 4294967294, %s5081_s24   ;;  %s5081_s24 = sphi %s5154_s24, %s12985_s24   ;;  %s5077_s23 = sphi %s5152_s23, %s12984_s23   ;;  %s5073_s22 = sphi %s5150_s22, %s12983_s22   ;;  %s5069_s21 = sphi %s5148_s21, %s12982_s21  }
   0x9   : > { %p43_p0 = scmp.ne.s32.totalorder %s5073_s22, %s5069_s21  ;;  %p11427_p1 = scmp.eq.s32.totalorder %s5169_s25, 0 }
   0xa   : > { %p178_p3 = scmp.eq.s32.totalorder %s4773_s26, 1  ;;  %p4774_p5 = scmp.ge.s32.totalorder %s5081_s24, 1 }
   0xb   : > { %p5178_p4 = por %p11427_p1, %p43_p0  ;;  %p185_p7 = scmp.lt.s32.totalorder %s5081_s24, 3 }
   0xc   : > { %p5183_p6 = por %p178_p3, %p43_p0  ;;  %s5083_s30 = smov [#allocation5]  }
   0xd   : > { %s11901_s27 = scalar_select %p5178_p4, 1, 0 }
   0xe   : > { %s11902_s28 = scalar_select %p5183_p6, 1, 0 }
   0xf   : > { %p5188_p8 = pnand %p4774_p5, %p185_p7  ;;  %s198_s7 = sshll.u32 %s5083_s30, 4  ;;  %s199_s7 = int_to_ptr.vmem [resolvable:$true] %s198_s7 }
  0x10   : > { %s5084_s8 = smov [#allocation7]   ;;  %s5202_s11 = sadd.s32 1, %s5081_s24  }
  0x11   : > { %s11903_s29 = scalar_select %p5188_p8, 1, 0 }
  0x12   : > { %p4812_p10 = pneg %p5188_p8  ;;  %s215_s9 = sshll.u32 %s5084_s8, 4  ;;  %s216_s9 = int_to_ptr.vmem [resolvable:$true] %s215_s9 }
  0x13   : > { %s27_s12 = ssub.s32 %s5081_s24, %s5202_s11  ;;  %s4944_s13 = scalar_lea.vmem %s199_s7, 128 }
  0x14   : > { %p5197_p11 = pnand %p4812_p10, %p11427_p1  ;;  %p4945_p13 = scmp.ne.s32.totalorder %s199_s7, %s4944_s13 }
  0x15   : > { %p4952_p5 = scmp.lt.s32.totalorder %s199_s7, %s199_s7  ;;  %p4953_p7 = scmp.lt.s32.totalorder %s4944_s13, %s4944_s13 }
  0x16   : > { %p4935_p12 = pneg %p5197_p11 }
  0x17   : > { %p4954_p10 = por %p4953_p7, %p4952_p5 }
  0x18   : > { %p4947_p0 = pnand %p4945_p13, %p4935_p12 }
  0x1a   : > { %p4948_p3 = pneg %p4947_p0 }
  0x1c   : > { %p4955_p9 = pnand %p4954_p10, %p4948_p3 }
  0x1e   : > { %4958 = shalt.err (!%p4955_p9)
}
  0x1f   : > { %s11905_s1 = sld [smem:[#allocation175_spill]]  ;;  %s4970_s16 = scalar_lea.vmem %s216_s9, 256 }
  0x20   : > { %p4971_p1 = scmp.ne.s32.totalorder %s216_s9, %s4970_s16  ;;  %p4978_p13 = scmp.lt.s32.totalorder %s216_s9, %s216_s9 }
  0x21   : > { %p4979_p0 = scmp.lt.s32.totalorder %s4970_s16, %s4970_s16 }
  0x22   : > { %p4973_p2 = pnand %p4971_p1, %p4935_p12 }
  0x23   : > { %p4980_p4 = por %p4979_p0, %p4978_p13 }
  0x24   : > { %p4974_p6 = pneg %p4973_p2 }
  0x25   : > { %4815 = dma.hbm_to_vmem [thread:$0]  (!%p5197_p11), %s11905_s1, 128, %s199_s7, [#allocation6]  }
  0x26   : > { %p4981_p8 = pnand %p4980_p4, %p4974_p6 }
  0x28   : > { %4984 = shalt.err (!%p4981_p8)
}
  0x29   : > { %4818 = dma.hbm_to_vmem [thread:$0]  (!%p5197_p11), %s11424_s4, 256, %s216_s9, [#allocation6]  }
  0x2a   : > { %p28_p1 = scmp.eq.s32.totalorder %s27_s12, 0  ;;  %s30_s19 = sadd.s32 1, %s5077_s23 }
  0x2b   : > { %p37_p2 = scmp.ne.s32.totalorder %s5077_s23, %s5073_s22  ;;  %p38_p4 = scmp.eq.s32.totalorder %s5081_s24, 0 }
  0x2c   : > { %s5229_s20 = scalar_select %p28_p1, %s5077_s23, %s30_s19  }
  0x2d   : > { %p39_p6 = por %p38_p4, %p37_p2  ;;  %p11906_p8 = scmp.eq.s32.totalorder %s5169_s25, 1 }
  0x2e   : > { %p4829_p12 = scmp.lt.s32.totalorder %s5081_s24, 2  ;;  %s229_s30 = sand.u32 1, %s5077_s23  }
  0x2f   : > { %p5233_p9 = por %p11906_p8, %p37_p2  ;;  %s4797_s7 = smul.u32 80, %s229_s30 }
  0x30   : > { %s4798_s8 = smul.u32 1280, %s5081_s24  ;;  %p5240_p3 = pnand %p4829_p12, %p39_p6 }
  0x31   : > { %s11907_s26 = scalar_select %p5233_p9, 1, 0 }
  0x32   : > { %s5247_s13 = scalar_lea.hbm %s11420_s0, %s4798_s8  ;;  %s233_s14 = scalar_lea.vmem [#allocation2], %s4797_s7 }
  0x33   : > { %s241_s15 = sshll.u32 %s233_s14, 4  ;;  %s230_s16 = scalar_lea.sflag [#allocation3], %s229_s30  ;;  %s242_s15 = int_to_ptr.vmem [resolvable:$true] %s241_s15 }
  0x34   : > { %s4985_s17 = scalar_lea.hbm %s5247_s13, 1280  ;;  %p4987_p5 = pneg %p5240_p3 }
  0x35   : > { %p4986_p11 = scmp.ne.s32.totalorder %s5247_s13, %s4985_s17  ;;  %s4990_s9 = scalar_lea.hbm %s11420_s0, 2560 }
  0x36   : > { %p4991_p13 = scmp.lt.s32.totalorder %s5247_s13, %s11420_s0  ;;  %p4992_p0 = scmp.lt.s32.totalorder %s4990_s9, %s4985_s17 }
  0x37   : > { %p4988_p7 = pnand %p4987_p5, %p4986_p11 }
  0x38   : > { %p4993_p1 = por %p4992_p0, %p4991_p13 }
  0x39   : > { %p4989_p10 = pneg %p4988_p7 }
  0x3b   : > { %p4994_p2 = pnand %p4993_p1, %p4989_p10 }
  0x3d   : > { %4997 = shalt.err (!%p4994_p2)
}
  0x3e   : > { %s4998_s7 = scalar_lea.vmem %s242_s15, 1280  ;;  %s5085_s30 = smov [#allocation2]  }
  0x3f   : > { %p4999_p4 = scmp.ne.s32.totalorder %s242_s15, %s4998_s7  ;;  %s5003_s14 = sshll.u32 %s5085_s30, 4  ;;  %s5004_s14 = int_to_ptr.vmem [resolvable:$false] %s5003_s14 }
  0x40   : > { %s5005_s1 = scalar_lea.vmem %s5004_s14, 2560  ;;  %p5006_p12 = scmp.lt.s32.totalorder %s242_s15, %s5004_s14 }
  0x41   : > { %p5001_p6 = pnand %p4999_p4, %p4987_p5  ;;  %p5007_p11 = scmp.lt.s32.totalorder %s5005_s1, %s4998_s7 }
  0x43   : > { %p5002_p8 = pneg %p5001_p6  ;;  %p5008_p7 = por %p5007_p11, %p5006_p12 }
  0x45   : > { %p5009_p9 = pnand %p5008_p7, %p5002_p8 }
  0x47   : > { %5012 = shalt.err (!%p5009_p9)
}
  0x48   : > { %4822 = dma.hbm_to_vmem [thread:$0]  (!%p5240_p3), %s5247_s13, 1280, %s242_s15, %s230_s16  }
  0x49   : > { %p11909_p10 = scmp.ne.s32.totalorder %s11903_s29, 0 }
  0x4b   : > { %250 = sbr.rel (%p11909_p10) target bundleno = 3591 (0xe07), region = 44 }
  0x50   : > { %s5266_s17 = sand.u32 1, %s5073_s22   ;;  %p11910_p5 = scmp.ne.s32.totalorder %s11901_s27, 0 }
  0x51   : > { %s4799_s18 = smul.u32 80, %s5266_s17  ;;  %s253_s19 = scalar_lea.sflag [#allocation3], %s5266_s17 }
  0x53   : > { %s5270_s9 = scalar_lea.vmem [#allocation2], %s4799_s18 }
  0x54   : > { %5056 = dma.done.wait (%p11910_p5), %s253_s19, 1280  }
  0x55   : > { %5058 = vsyncadd (%p11910_p5), %s253_s19, 4294966016  ;;  %p11911_p9 = scmp.eq.s32.totalorder %s5169_s25, 0 }
  0x57   : > { %5060 = dma.done.wait (%p11911_p9), [#allocation6], 384   ;;  %p11912_p3 = pmov %p11911_p9 }
  0x58   : > { %v5281_v0 = vld [vmem:[%s5270_s9 + $0x10] sm:$0xff]  ;;  %v5284_v1 = vld [vmem:[%s5270_s9] sm:$0xff]  ;;  %s5086_s1 = smov 127   ;;  %v5291_v2 = vld [vmem:[%s5270_s9 + $0x18] sm:$0xff]  ;;  %s5087_s27 = smov 126   ;;  %vm334_vm0 = vcmask 1039360  }
  0x59   : > { %5062 = vsyncadd (%p11912_p3), [#allocation6], 4294966912  ;;  %320 = vrot.lane.b32.xlu1 %v5281_v0, %s5086_s1  ;;  %316 = vrot.lane.b32.xlu0 %v5284_v1, %s5086_s1  ;;  %v5294_v3 = vld [vmem:[%s5270_s9 + $0x8] sm:$0xff]  ;;  %v5304_v5 = vld [vmem:[%s5270_s9 + $0x20] sm:$0xff]  ;;  %s5088_s29 = smov 118   ;;  %s5089_s10 = smov 117  }
  0x5a   : > { %v5301_v4 = vld [vmem:[%s5270_s9 + $0x28] sm:$0xff]  ;;  %v5311_v6 = vld [vmem:[%s5270_s9 + $0x38] sm:$0xff]  ;;  %v5314_v7 = vld [vmem:[%s5270_s9 + $0x30] sm:$0xff]  ;;  %s5090_s13 = smov 116   ;;  %s5091_s15 = smov 108   ;;  %vm740_vm1 = vcmask 400384  }
  0x5b   : > { %v5321_v8 = vld [vmem:[%s5270_s9 + $0x40] sm:$0xff]  ;;  %s5092_s16 = smov 107   ;;  %s5093_s12 = smov 106   ;;  %vm767_vm2 = vcmask 392192   ;;  %vm794_vm3 = vcmask 384000   ;;  %vm821_vm4 = vcmask 318464  }
  0x5c   : > { %s5094_s8 = smov 28   ;;  %s5095_s7 = smov 27   ;;  %vm848_vm5 = vcmask 310272   ;;  %vm875_vm6 = vcmask 302080   ;;  %vm902_vm7 = vcmask 236544   ;;  %vm550_vm8 = vcmask 228352  }
  0x5d   : > { %322 = vrot.lane.b32.xlu1 %v5291_v2, %s5086_s1  ;;  %318 = vrot.lane.b32.xlu0 %v5294_v3, %s5086_s1  ;;  %s11559_s30 = smov 26   ;;  %s11553_s14 = smov 18   ;;  %vm577_vm9 = vcmask 220160   ;;  %vm11610_vm10 = vcmask 1031168   ;;  %vm11619_vm11 = vcmask 965632   ;;  %vm11624_vm12 = vcmask 957440  }
  0x5e   : > { %s11442_s18 = smov 17   ;;  %s11454_s19 = smov 16   ;;  %vm11635_vm13 = vcmask 949248   ;;  %vm11642_vm14 = vcmask 883712   ;;  %vm11652_vm15 = vcmask 875520  }
  0x5f   : > { %p12979_p0 = scmp.ne.s32.totalorder %s11907_s26, 0 }
  0x61   : > { %326 = vrot.lane.b32.xlu1 %v5301_v4, %s5086_s1  ;;  %324 = vrot.lane.b32.xlu0 %v5304_v5, %s5086_s1 }
  0x65   : > { %330 = vrot.lane.b32.xlu1 %v5311_v6, %s5086_s1  ;;  %328 = vrot.lane.b32.xlu0 %v5314_v7, %s5086_s1 }
  0x69   : > { %343 = vrot.lane.b32.xlu1 %v5284_v1, %s5087_s27  ;;  %332 = vrot.lane.b32.xlu0 %v5321_v8, %s5086_s1 }
  0x6d   : > { %347 = vrot.lane.b32.xlu1 %v5281_v0, %s5087_s27  ;;  %345 = vrot.lane.b32.xlu0 %v5294_v3, %s5087_s27 }
  0x71   : > { %351 = vrot.lane.b32.xlu1 %v5304_v5, %s5087_s27  ;;  %349 = vrot.lane.b32.xlu0 %v5291_v2, %s5087_s27 }
  0x75   : > { %355 = vrot.lane.b32.xlu1 %v5314_v7, %s5087_s27  ;;  %353 = vrot.lane.b32.xlu0 %v5301_v4, %s5087_s27 }
  0x79   : > { %359 = vrot.lane.b32.xlu1 %v5321_v8, %s5087_s27  ;;  %357 = vrot.lane.b32.xlu0 %v5311_v6, %s5087_s27 }
  0x7d   : > { %372 = vrot.lane.b32.xlu1 %v5294_v3, %s5088_s29  ;;  %370 = vrot.lane.b32.xlu0 %v5284_v1, %s5088_s29 }
  0x81   : > { %376 = vrot.lane.b32.xlu1 %v5291_v2, %s5088_s29  ;;  %374 = vrot.lane.b32.xlu0 %v5281_v0, %s5088_s29 }
  0x85   : > { %380 = vrot.lane.b32.xlu1 %v5301_v4, %s5088_s29  ;;  %378 = vrot.lane.b32.xlu0 %v5304_v5, %s5088_s29 }
  0x89   : > { %384 = vrot.lane.b32.xlu1 %v5311_v6, %s5088_s29  ;;  %382 = vrot.lane.b32.xlu0 %v5314_v7, %s5088_s29 }
  0x8d   : > { %397 = vrot.lane.b32.xlu1 %v5284_v1, %s5089_s10  ;;  %386 = vrot.lane.b32.xlu0 %v5321_v8, %s5088_s29 }
  0x91   : > { %401 = vrot.lane.b32.xlu1 %v5281_v0, %s5089_s10  ;;  %399 = vrot.lane.b32.xlu0 %v5294_v3, %s5089_s10 }
  0x95   : > { %405 = vrot.lane.b32.xlu1 %v5304_v5, %s5089_s10  ;;  %403 = vrot.lane.b32.xlu0 %v5291_v2, %s5089_s10 }
  0x99   : > { %409 = vrot.lane.b32.xlu1 %v5314_v7, %s5089_s10  ;;  %407 = vrot.lane.b32.xlu0 %v5301_v4, %s5089_s10 }
  0x9d   : > { %413 = vrot.lane.b32.xlu1 %v5321_v8, %s5089_s10  ;;  %411 = vrot.lane.b32.xlu0 %v5311_v6, %s5089_s10 }
  0xa1   : > { %426 = vrot.lane.b32.xlu1 %v5294_v3, %s5090_s13  ;;  %424 = vrot.lane.b32.xlu0 %v5284_v1, %s5090_s13 }
  0xa5   : > { %430 = vrot.lane.b32.xlu1 %v5291_v2, %s5090_s13  ;;  %428 = vrot.lane.b32.xlu0 %v5281_v0, %s5090_s13 }
  0xa9   : > { %434 = vrot.lane.b32.xlu1 %v5301_v4, %s5090_s13  ;;  %432 = vrot.lane.b32.xlu0 %v5304_v5, %s5090_s13 }
  0xad   : > { %438 = vrot.lane.b32.xlu1 %v5311_v6, %s5090_s13  ;;  %436 = vrot.lane.b32.xlu0 %v5314_v7, %s5090_s13 }
  0xb1   : > { %451 = vrot.lane.b32.xlu1 %v5284_v1, %s5091_s15  ;;  %440 = vrot.lane.b32.xlu0 %v5321_v8, %s5090_s13 }
  0xb5   : > { %455 = vrot.lane.b32.xlu1 %v5281_v0, %s5091_s15  ;;  %453 = vrot.lane.b32.xlu0 %v5294_v3, %s5091_s15 }
  0xb9   : > { %459 = vrot.lane.b32.xlu1 %v5304_v5, %s5091_s15  ;;  %457 = vrot.lane.b32.xlu0 %v5291_v2, %s5091_s15 }
  0xbd   : > { %463 = vrot.lane.b32.xlu1 %v5314_v7, %s5091_s15  ;;  %461 = vrot.lane.b32.xlu0 %v5301_v4, %s5091_s15 }
  0xc1   : > { %467 = vrot.lane.b32.xlu1 %v5321_v8, %s5091_s15  ;;  %465 = vrot.lane.b32.xlu0 %v5311_v6, %s5091_s15 }
  0xc5   : > { %480 = vrot.lane.b32.xlu1 %v5294_v3, %s5092_s16  ;;  %478 = vrot.lane.b32.xlu0 %v5284_v1, %s5092_s16 }
  0xc9   : > { %484 = vrot.lane.b32.xlu1 %v5291_v2, %s5092_s16  ;;  %482 = vrot.lane.b32.xlu0 %v5281_v0, %s5092_s16 }
  0xcb   : > { %v5423_v9 = vpop.permute.xlu1 %320  ;;  %v5425_v10 = vpop.permute.xlu0 %316 }
  0xcd   : > { %488 = vrot.lane.b32.xlu1 %v5301_v4, %s5092_s16  ;;  %486 = vrot.lane.b32.xlu0 %v5304_v5, %s5092_s16 }
  0xcf   : > { %v5431_v11 = vpop.permute.xlu1 %322  ;;  %v5433_v12 = vpop.permute.xlu0 %318 }
  0xd1   : > { %492 = vrot.lane.b32.xlu1 %v5311_v6, %s5092_s16  ;;  %490 = vrot.lane.b32.xlu0 %v5314_v7, %s5092_s16 }
  0xd3   : > { %v5439_v13 = vpop.permute.xlu1 %326  ;;  %v5441_v14 = vpop.permute.xlu0 %324 }
  0xd5   : > { %505 = vrot.lane.b32.xlu1 %v5284_v1, %s5093_s12  ;;  %494 = vrot.lane.b32.xlu0 %v5321_v8, %s5092_s16 }
  0xd7   : > { %v5447_v15 = vpop.permute.xlu1 %330  ;;  %v5449_v16 = vpop.permute.xlu0 %328 }
  0xd9   : > { %509 = vrot.lane.b32.xlu1 %v5281_v0, %s5093_s12  ;;  %507 = vrot.lane.b32.xlu0 %v5294_v3, %s5093_s12 }
  0xdb   : > { %v5455_v17 = vpop.permute.xlu1 %343  ;;  %v5457_v18 = vpop.permute.xlu0 %332 }
  0xdd   : > { %513 = vrot.lane.b32.xlu1 %v5304_v5, %s5093_s12  ;;  %511 = vrot.lane.b32.xlu0 %v5291_v2, %s5093_s12 }
  0xdf   : > { %v5463_v19 = vpop.permute.xlu1 %347  ;;  %v5465_v20 = vpop.permute.xlu0 %345 }
  0xe1   : > { %517 = vrot.lane.b32.xlu1 %v5314_v7, %s5093_s12  ;;  %515 = vrot.lane.b32.xlu0 %v5301_v4, %s5093_s12 }
  0xe3   : > { %v5471_v21 = vpop.permute.xlu1 %351  ;;  %v5473_v22 = vpop.permute.xlu0 %349 }
  0xe5   : > { %521 = vrot.lane.b32.xlu1 %v5321_v8, %s5093_s12  ;;  %519 = vrot.lane.b32.xlu0 %v5311_v6, %s5093_s12 }
  0xe7   : > { %v5479_v23 = vpop.permute.xlu1 %355  ;;  %v5481_v24 = vpop.permute.xlu0 %353 }
  0xe8   : > { %11913 = vst [vmem:[#allocation12_spill] sm:$0xff] %v5479_v23  ;;  %11914 = vst [vmem:[#allocation13_spill] sm:$0xff] %v5481_v24 }
  0xe9   : > { %534 = vrot.lane.b32.xlu1 %v5294_v3, %s5094_s8  ;;  %532 = vrot.lane.b32.xlu0 %v5284_v1, %s5094_s8 }
  0xeb   : > { %v5487_v25 = vpop.permute.xlu1 %359  ;;  %v5489_v26 = vpop.permute.xlu0 %357 }
  0xec   : > { %11915 = vst [vmem:[#allocation14_spill] sm:$0xff] %v5487_v25  ;;  %11916 = vst [vmem:[#allocation15_spill] sm:$0xff] %v5489_v26 }
  0xed   : > { %538 = vrot.lane.b32.xlu1 %v5291_v2, %s5094_s8  ;;  %536 = vrot.lane.b32.xlu0 %v5281_v0, %s5094_s8 }
  0xef   : > { %v5495_v27 = vpop.permute.xlu1 %372  ;;  %v5497_v28 = vpop.permute.xlu0 %370 }
  0xf0   : > { %11917 = vst [vmem:[#allocation16_spill] sm:$0xff] %v5495_v27  ;;  %11918 = vst [vmem:[#allocation17_spill] sm:$0xff] %v5497_v28 }
  0xf1   : > { %542 = vrot.lane.b32.xlu1 %v5301_v4, %s5094_s8  ;;  %540 = vrot.lane.b32.xlu0 %v5304_v5, %s5094_s8 }
  0xf3   : > { %v5503_v29 = vpop.permute.xlu1 %376  ;;  %v5505_v30 = vpop.permute.xlu0 %374 }
  0xf4   : > { %11919 = vst [vmem:[#allocation18_spill] sm:$0xff] %v5503_v29  ;;  %11920 = vst [vmem:[#allocation19_spill] sm:$0xff] %v5505_v30  ;;  %v6078_v29 = vsel %vm334_vm0, %v5447_v15, %v5457_v18 }
  0xf5   : > { %546 = vrot.lane.b32.xlu1 %v5311_v6, %s5094_s8  ;;  %544 = vrot.lane.b32.xlu0 %v5314_v7, %s5094_s8 }
  0xf7   : > { %v5511_v31 = vpop.permute.xlu1 %380  ;;  %v5513_v32 = vpop.permute.xlu0 %378 }
  0xf8   : > { %11921 = vst [vmem:[#allocation20_spill] sm:$0xff] %v5511_v31  ;;  %11922 = vst [vmem:[#allocation21_spill] sm:$0xff] %v5513_v32  ;;  %v6060_v31 = vsel %vm334_vm0, %v5439_v13, %v5449_v16 }
  0xf9   : > { %559 = vrot.lane.b32.xlu1 %v5284_v1, %s5095_s7  ;;  %548 = vrot.lane.b32.xlu0 %v5321_v8, %s5094_s8 }
  0xfb   : > { %v5519_v33 = vpop.permute.xlu1 %384  ;;  %v5521_v34 = vpop.permute.xlu0 %382 }
  0xfc   : > { %11923 = vst [vmem:[#allocation22_spill] sm:$0xff] %v5519_v33  ;;  %11924 = vst [vmem:[#allocation23_spill] sm:$0xff] %v5521_v34  ;;  %v6047_v33 = vsel %vm334_vm0, %v5423_v9, %v5431_v11 }
  0xfd   : > { %563 = vrot.lane.b32.xlu1 %v5281_v0, %s5095_s7  ;;  %561 = vrot.lane.b32.xlu0 %v5294_v3, %s5095_s7 }
  0xff   : > { %v5527_v35 = vpop.permute.xlu1 %397  ;;  %v5529_v36 = vpop.permute.xlu0 %386 }
 0x100   : > { %11925 = vst [vmem:[#allocation24_spill] sm:$0xff] %v5527_v35  ;;  %11926 = vst [vmem:[#allocation25_spill] sm:$0xff] %v5529_v36 }
 0x101   : > { %567 = vrot.lane.b32.xlu1 %v5304_v5, %s5095_s7  ;;  %565 = vrot.lane.b32.xlu0 %v5291_v2, %s5095_s7 }
 0x103   : > { %v5535_v37 = vpop.permute.xlu1 %401  ;;  %v5537_v38 = vpop.permute.xlu0 %399 }
 0x104   : > { %11927 = vst [vmem:[#allocation26_spill] sm:$0xff] %v5535_v37  ;;  %11928 = vst [vmem:[#allocation27_spill] sm:$0xff] %v5537_v38 }
 0x105   : > { %571 = vrot.lane.b32.xlu1 %v5314_v7, %s5095_s7  ;;  %569 = vrot.lane.b32.xlu0 %v5301_v4, %s5095_s7 }
 0x107   : > { %v5543_v39 = vpop.permute.xlu1 %405  ;;  %v5545_v40 = vpop.permute.xlu0 %403 }
 0x108   : > { %11929 = vst [vmem:[#allocation28_spill] sm:$0xff] %v5543_v39  ;;  %11930 = vst [vmem:[#allocation29_spill] sm:$0xff] %v5545_v40 }
 0x109   : > { %575 = vrot.lane.b32.xlu1 %v5321_v8, %s5095_s7  ;;  %573 = vrot.lane.b32.xlu0 %v5311_v6, %s5095_s7 }
 0x10b   : > { %v5551_v41 = vpop.permute.xlu1 %409  ;;  %v5553_v42 = vpop.permute.xlu0 %407 }
 0x10c   : > { %11931 = vst [vmem:[#allocation30_spill] sm:$0xff] %v5551_v41  ;;  %11932 = vst [vmem:[#allocation31_spill] sm:$0xff] %v5553_v42 }
 0x10d   : > { %588 = vrot.lane.b32.xlu1 %v5294_v3, %s11559_s30  ;;  %586 = vrot.lane.b32.xlu0 %v5284_v1, %s11559_s30 }
 0x10f   : > { %v5559_v43 = vpop.permute.xlu1 %413  ;;  %v5561_v44 = vpop.permute.xlu0 %411 }
 0x110   : > { %11933 = vst [vmem:[#allocation32_spill] sm:$0xff] %v5559_v43  ;;  %11934 = vst [vmem:[#allocation33_spill] sm:$0xff] %v5561_v44 }
 0x111   : > { %592 = vrot.lane.b32.xlu1 %v5291_v2, %s11559_s30  ;;  %590 = vrot.lane.b32.xlu0 %v5281_v0, %s11559_s30 }
 0x113   : > { %v5567_v45 = vpop.permute.xlu1 %426  ;;  %v5569_v46 = vpop.permute.xlu0 %424 }
 0x114   : > { %11935 = vst [vmem:[#allocation34_spill] sm:$0xff] %v5567_v45  ;;  %11936 = vst [vmem:[#allocation35_spill] sm:$0xff] %v5569_v46 }
 0x115   : > { %596 = vrot.lane.b32.xlu1 %v5301_v4, %s11559_s30  ;;  %594 = vrot.lane.b32.xlu0 %v5304_v5, %s11559_s30 }
 0x117   : > { %v5575_v47 = vpop.permute.xlu1 %430  ;;  %v5577_v48 = vpop.permute.xlu0 %428 }
 0x118   : > { %11937 = vst [vmem:[#allocation36_spill] sm:$0xff] %v5575_v47  ;;  %11938 = vst [vmem:[#allocation37_spill] sm:$0xff] %v5577_v48 }
 0x119   : > { %600 = vrot.lane.b32.xlu1 %v5311_v6, %s11559_s30  ;;  %598 = vrot.lane.b32.xlu0 %v5314_v7, %s11559_s30 }
 0x11b   : > { %v5583_v49 = vpop.permute.xlu1 %434  ;;  %v5585_v50 = vpop.permute.xlu0 %432 }
 0x11c   : > { %11939 = vst [vmem:[#allocation38_spill] sm:$0xff] %v5583_v49  ;;  %11940 = vst [vmem:[#allocation39_spill] sm:$0xff] %v5585_v50 }
 0x11d   : > { %613 = vrot.lane.b32.xlu1 %v5284_v1, %s11553_s14  ;;  %602 = vrot.lane.b32.xlu0 %v5321_v8, %s11559_s30  ;;  %s5110_s30 = smov 111  }
 0x11f   : > { %v5591_v51 = vpop.permute.xlu1 %438  ;;  %v5593_v52 = vpop.permute.xlu0 %436 }
 0x120   : > { %11941 = vst [vmem:[#allocation40_spill] sm:$0xff] %v5591_v51  ;;  %11942 = vst [vmem:[#allocation41_spill] sm:$0xff] %v5593_v52 }
 0x121   : > { %617 = vrot.lane.b32.xlu1 %v5281_v0, %s11553_s14  ;;  %615 = vrot.lane.b32.xlu0 %v5294_v3, %s11553_s14 }
 0x123   : > { %v5599_v53 = vpop.permute.xlu1 %451  ;;  %v5601_v54 = vpop.permute.xlu0 %440 }
 0x124   : > { %11943 = vst [vmem:[#allocation42_spill] sm:$0xff] %v5599_v53  ;;  %11944 = vst [vmem:[#allocation43_spill] sm:$0xff] %v5601_v54 }
 0x125   : > { %621 = vrot.lane.b32.xlu1 %v5304_v5, %s11553_s14  ;;  %619 = vrot.lane.b32.xlu0 %v5291_v2, %s11553_s14 }
 0x127   : > { %v5607_v55 = vpop.permute.xlu1 %455  ;;  %v5609_v56 = vpop.permute.xlu0 %453 }
 0x128   : > { %11945 = vst [vmem:[#allocation44_spill] sm:$0xff] %v5607_v55  ;;  %11946 = vst [vmem:[#allocation45_spill] sm:$0xff] %v5609_v56 }
 0x129   : > { %625 = vrot.lane.b32.xlu1 %v5314_v7, %s11553_s14  ;;  %623 = vrot.lane.b32.xlu0 %v5301_v4, %s11553_s14 }
 0x12b   : > { %v5615_v57 = vpop.permute.xlu1 %459  ;;  %v5617_v58 = vpop.permute.xlu0 %457 }
 0x12c   : > { %11947 = vst [vmem:[#allocation46_spill] sm:$0xff] %v5615_v57  ;;  %11948 = vst [vmem:[#allocation47_spill] sm:$0xff] %v5617_v58 }
 0x12d   : > { %629 = vrot.lane.b32.xlu1 %v5321_v8, %s11553_s14  ;;  %627 = vrot.lane.b32.xlu0 %v5311_v6, %s11553_s14  ;;  %s12649_s14 = smov 37  }
 0x12f   : > { %v5623_v59 = vpop.permute.xlu1 %463  ;;  %v5625_v60 = vpop.permute.xlu0 %461 }
 0x130   : > { %11949 = vst [vmem:[#allocation48_spill] sm:$0xff] %v5623_v59  ;;  %11950 = vst [vmem:[#allocation49_spill] sm:$0xff] %v5625_v60 }
 0x131   : > { %642 = vrot.lane.b32.xlu1 %v5281_v0, %s11442_s18  ;;  %640 = vrot.lane.b32.xlu0 %v5294_v3, %s11442_s18 }
 0x133   : > { %v5631_v61 = vpop.permute.xlu1 %467  ;;  %v5633_v62 = vpop.permute.xlu0 %465 }
 0x134   : > { %11951 = vst [vmem:[#allocation50_spill] sm:$0xff] %v5631_v61  ;;  %11952 = vst [vmem:[#allocation51_spill] sm:$0xff] %v5633_v62 }
 0x135   : > { %646 = vrot.lane.b32.xlu1 %v5304_v5, %s11442_s18  ;;  %644 = vrot.lane.b32.xlu0 %v5291_v2, %s11442_s18 }
 0x137   : > { %v5639_v63 = vpop.permute.xlu1 %480  ;;  %v5641_v1 = vpop.permute.xlu0 %478 }
 0x138   : > { %11953 = vst [vmem:[#allocation52_spill] sm:$0xff] %v5639_v63  ;;  %11954 = vst [vmem:[#allocation53_spill] sm:$0xff] %v5641_v1 }
 0x139   : > { %650 = vrot.lane.b32.xlu1 %v5314_v7, %s11442_s18  ;;  %648 = vrot.lane.b32.xlu0 %v5301_v4, %s11442_s18 }
 0x13b   : > { %v5647_v60 = vpop.permute.xlu1 %484  ;;  %v5649_v61 = vpop.permute.xlu0 %482 }
 0x13c   : > { %11955 = vst [vmem:[#allocation54_spill] sm:$0xff] %v5647_v60  ;;  %11956 = vst [vmem:[#allocation55_spill] sm:$0xff] %v5649_v61 }
 0x13d   : > { %654 = vrot.lane.b32.xlu1 %v5321_v8, %s11442_s18  ;;  %652 = vrot.lane.b32.xlu0 %v5311_v6, %s11442_s18  ;;  %s11463_s18 = smov 8  }
 0x13f   : > { %v5655_v62 = vpop.permute.xlu1 %488  ;;  %v5657_v63 = vpop.permute.xlu0 %486 }
 0x140   : > { %11957 = vst [vmem:[#allocation56_spill] sm:$0xff] %v5655_v62  ;;  %11958 = vst [vmem:[#allocation57_spill] sm:$0xff] %v5657_v63 }
 0x141   : > { %667 = vrot.lane.b32.xlu1 %v5281_v0, %s11454_s19  ;;  %665 = vrot.lane.b32.xlu0 %v5294_v3, %s11454_s19 }
 0x143   : > { %v5663_v60 = vpop.permute.xlu1 %492  ;;  %v5665_v61 = vpop.permute.xlu0 %490 }
 0x144   : > { %11959 = vst [vmem:[#allocation58_spill] sm:$0xff] %v5663_v60  ;;  %11960 = vst [vmem:[#allocation59_spill] sm:$0xff] %v5665_v61  ;;  %v5688_v61 = vld [vmem:[%s5270_s9 + $0x48] sm:$0xff] }
 0x145   : > { %671 = vrot.lane.b32.xlu1 %v5304_v5, %s11454_s19  ;;  %669 = vrot.lane.b32.xlu0 %v5291_v2, %s11454_s19 }
 0x147   : > { %v5671_v62 = vpop.permute.xlu1 %505  ;;  %v5673_v63 = vpop.permute.xlu0 %494 }
 0x148   : > { %11961 = vst [vmem:[#allocation60_spill] sm:$0xff] %v5671_v62  ;;  %11962 = vst [vmem:[#allocation61_spill] sm:$0xff] %v5673_v63 }
 0x149   : > { %675 = vrot.lane.b32.xlu1 %v5314_v7, %s11454_s19  ;;  %673 = vrot.lane.b32.xlu0 %v5301_v4, %s11454_s19 }
 0x14b   : > { %v5679_v1 = vpop.permute.xlu1 %509  ;;  %v5681_v60 = vpop.permute.xlu0 %507 }
 0x14c   : > { %11963 = vst [vmem:[#allocation62_spill] sm:$0xff] %v5679_v1  ;;  %11964 = vst [vmem:[#allocation63_spill] sm:$0xff] %v5681_v60 }
 0x14d   : > { %679 = vrot.lane.b32.xlu1 %v5321_v8, %s11454_s19  ;;  %677 = vrot.lane.b32.xlu0 %v5311_v6, %s11454_s19 }
 0x14f   : > { %v5690_v62 = vpop.permute.xlu1 %513  ;;  %v5692_v63 = vpop.permute.xlu0 %511 }
 0x150   : > { %11965 = vst [vmem:[#allocation64_spill] sm:$0xff] %v5690_v62  ;;  %11966 = vst [vmem:[#allocation65_spill] sm:$0xff] %v5692_v63 }
 0x151   : > { %692 = vrot.lane.b32.xlu1 %v5294_v3, %s11463_s18  ;;  %681 = vrot.lane.b32.xlu0 %v5688_v61, %s11454_s19  ;;  %s11472_s19 = smov 49  }
 0x153   : > { %v5698_v60 = vpop.permute.xlu1 %517  ;;  %v5700_v1 = vpop.permute.xlu0 %515 }
 0x154   : > { %11967 = vst [vmem:[#allocation66_spill] sm:$0xff] %v5698_v60  ;;  %11968 = vst [vmem:[#allocation67_spill] sm:$0xff] %v5700_v1 }
 0x155   : > { %696 = vrot.lane.b32.xlu1 %v5291_v2, %s11463_s18  ;;  %694 = vrot.lane.b32.xlu0 %v5281_v0, %s11463_s18 }
 0x157   : > { %v5706_v62 = vpop.permute.xlu1 %521  ;;  %v5708_v63 = vpop.permute.xlu0 %519 }
 0x158   : > { %11969 = vst [vmem:[#allocation68_spill] sm:$0xff] %v5706_v62  ;;  %11970 = vst [vmem:[#allocation69_spill] sm:$0xff] %v5708_v63 }
 0x159   : > { %700 = vrot.lane.b32.xlu1 %v5301_v4, %s11463_s18  ;;  %698 = vrot.lane.b32.xlu0 %v5304_v5, %s11463_s18 }
 0x15b   : > { %v5714_v59 = vpop.permute.xlu1 %534  ;;  %v5716_v60 = vpop.permute.xlu0 %532 }
 0x15c   : > { %11971 = vst [vmem:[#allocation70_spill] sm:$0xff] %v5716_v60 }
 0x15d   : > { %704 = vrot.lane.b32.xlu1 %v5311_v6, %s11463_s18  ;;  %702 = vrot.lane.b32.xlu0 %v5314_v7, %s11463_s18 }
 0x15f   : > { %v5722_v1 = vpop.permute.xlu1 %538  ;;  %v5724_v62 = vpop.permute.xlu0 %536 }
 0x161   : > { %708 = vrot.lane.b32.xlu1 %v5688_v61, %s11463_s18  ;;  %706 = vrot.lane.b32.xlu0 %v5321_v8, %s11463_s18  ;;  %s11482_s18 = smov 48  }
 0x163   : > { %v5730_v63 = vpop.permute.xlu1 %542  ;;  %v5732_v58 = vpop.permute.xlu0 %540 }
 0x165   : > { %722 = vrot.lane.b32.xlu1 %v5294_v3, %s11472_s19  ;;  %719 = vrot.lane.b32.xlu0 %v5688_v61, %s5086_s1 }
 0x167   : > { %v5738_v60 = vpop.permute.xlu1 %546  ;;  %v5740_v57 = vpop.permute.xlu0 %544 }
 0x169   : > { %726 = vrot.lane.b32.xlu1 %v5291_v2, %s11472_s19  ;;  %724 = vrot.lane.b32.xlu0 %v5281_v0, %s11472_s19 }
 0x16b   : > { %v5746_v53 = vpop.permute.xlu1 %559  ;;  %v5748_v56 = vpop.permute.xlu0 %548 }
 0x16c   : > { %11972 = vst [vmem:[#allocation71_spill] sm:$0xff] %v5746_v53 }
 0x16d   : > { %730 = vrot.lane.b32.xlu1 %v5301_v4, %s11472_s19  ;;  %728 = vrot.lane.b32.xlu0 %v5304_v5, %s11472_s19 }
 0x16f   : > { %v5754_v55 = vpop.permute.xlu1 %563  ;;  %v5756_v54 = vpop.permute.xlu0 %561 }
 0x171   : > { %734 = vrot.lane.b32.xlu1 %v5311_v6, %s11472_s19  ;;  %732 = vrot.lane.b32.xlu0 %v5314_v7, %s11472_s19 }
 0x173   : > { %v5762_v52 = vpop.permute.xlu1 %567  ;;  %v5764_v53 = vpop.permute.xlu0 %565 }
 0x175   : > { %738 = vrot.lane.b32.xlu1 %v5688_v61, %s11472_s19  ;;  %736 = vrot.lane.b32.xlu0 %v5321_v8, %s11472_s19  ;;  %s11492_s19 = smov 47  }
 0x177   : > { %v5770_v51 = vpop.permute.xlu1 %571  ;;  %v5772_v50 = vpop.permute.xlu0 %569 }
 0x179   : > { %751 = vrot.lane.b32.xlu1 %v5281_v0, %s11482_s18  ;;  %749 = vrot.lane.b32.xlu0 %v5294_v3, %s11482_s18 }
 0x17b   : > { %v5778_v49 = vpop.permute.xlu1 %575  ;;  %v5780_v48 = vpop.permute.xlu0 %573 }
 0x17d   : > { %755 = vrot.lane.b32.xlu1 %v5304_v5, %s11482_s18  ;;  %753 = vrot.lane.b32.xlu0 %v5291_v2, %s11482_s18 }
 0x17f   : > { %v5786_v47 = vpop.permute.xlu1 %588  ;;  %v5788_v46 = vpop.permute.xlu0 %586 }
 0x180   : > { %11973 = vst [vmem:[#allocation72_spill] sm:$0xff] %v5786_v47  ;;  %11974 = vst [vmem:[#allocation73_spill] sm:$0xff] %v5788_v46 }
 0x181   : > { %759 = vrot.lane.b32.xlu1 %v5314_v7, %s11482_s18  ;;  %757 = vrot.lane.b32.xlu0 %v5301_v4, %s11482_s18 }
 0x183   : > { %v5794_v45 = vpop.permute.xlu1 %592  ;;  %v5796_v44 = vpop.permute.xlu0 %590 }
 0x184   : > { %11975 = vst [vmem:[#allocation74_spill] sm:$0xff] %v5794_v45  ;;  %11976 = vst [vmem:[#allocation75_spill] sm:$0xff] %v5796_v44 }
 0x185   : > { %763 = vrot.lane.b32.xlu1 %v5321_v8, %s11482_s18  ;;  %761 = vrot.lane.b32.xlu0 %v5311_v6, %s11482_s18 }
 0x187   : > { %v5802_v43 = vpop.permute.xlu1 %596  ;;  %v5804_v47 = vpop.permute.xlu0 %594 }
 0x188   : > { %11977 = vst [vmem:[#allocation76_spill] sm:$0xff] %v5802_v43  ;;  %11978 = vst [vmem:[#allocation77_spill] sm:$0xff] %v5804_v47 }
 0x189   : > { %776 = vrot.lane.b32.xlu1 %v5294_v3, %s11492_s19  ;;  %765 = vrot.lane.b32.xlu0 %v5688_v61, %s11482_s18  ;;  %s11504_s18 = smov 39  }
 0x18b   : > { %v5810_v45 = vpop.permute.xlu1 %600  ;;  %v5812_v44 = vpop.permute.xlu0 %598 }
 0x18c   : > { %11979 = vst [vmem:[#allocation78_spill] sm:$0xff] %v5810_v45  ;;  %11980 = vst [vmem:[#allocation79_spill] sm:$0xff] %v5812_v44 }
 0x18d   : > { %780 = vrot.lane.b32.xlu1 %v5291_v2, %s11492_s19  ;;  %778 = vrot.lane.b32.xlu0 %v5281_v0, %s11492_s19 }
 0x18f   : > { %v5818_v43 = vpop.permute.xlu1 %613  ;;  %v5820_v47 = vpop.permute.xlu0 %602 }
 0x190   : > { %11981 = vst [vmem:[#allocation80_spill] sm:$0xff] %v5818_v43  ;;  %11982 = vst [vmem:[#allocation81_spill] sm:$0xff] %v5820_v47 }
 0x191   : > { %784 = vrot.lane.b32.xlu1 %v5301_v4, %s11492_s19  ;;  %782 = vrot.lane.b32.xlu0 %v5304_v5, %s11492_s19 }
 0x193   : > { %v5826_v46 = vpop.permute.xlu1 %617  ;;  %v5828_v45 = vpop.permute.xlu0 %615 }
 0x194   : > { %11983 = vst [vmem:[#allocation82_spill] sm:$0xff] %v5826_v46  ;;  %11984 = vst [vmem:[#allocation83_spill] sm:$0xff] %v5828_v45 }
 0x195   : > { %788 = vrot.lane.b32.xlu1 %v5311_v6, %s11492_s19  ;;  %786 = vrot.lane.b32.xlu0 %v5314_v7, %s11492_s19 }
 0x197   : > { %v5834_v44 = vpop.permute.xlu1 %621  ;;  %v5836_v43 = vpop.permute.xlu0 %619 }
 0x198   : > { %11985 = vst [vmem:[#allocation84_spill] sm:$0xff] %v5834_v44  ;;  %11986 = vst [vmem:[#allocation85_spill] sm:$0xff] %v5836_v43 }
 0x199   : > { %792 = vrot.lane.b32.xlu1 %v5688_v61, %s11492_s19  ;;  %790 = vrot.lane.b32.xlu0 %v5321_v8, %s11492_s19  ;;  %s11513_s19 = smov 38  }
 0x19b   : > { %v5842_v47 = vpop.permute.xlu1 %625  ;;  %v5844_v46 = vpop.permute.xlu0 %623 }
 0x19c   : > { %11987 = vst [vmem:[#allocation86_spill] sm:$0xff] %v5842_v47  ;;  %11988 = vst [vmem:[#allocation87_spill] sm:$0xff] %v5844_v46 }
 0x19d   : > { %805 = vrot.lane.b32.xlu1 %v5281_v0, %s11504_s18  ;;  %803 = vrot.lane.b32.xlu0 %v5294_v3, %s11504_s18 }
 0x19f   : > { %v5850_v44 = vpop.permute.xlu1 %629  ;;  %v5852_v43 = vpop.permute.xlu0 %627 }
 0x1a0   : > { %11989 = vst [vmem:[#allocation88_spill] sm:$0xff] %v5850_v44  ;;  %11990 = vst [vmem:[#allocation89_spill] sm:$0xff] %v5852_v43 }
 0x1a1   : > { %809 = vrot.lane.b32.xlu1 %v5304_v5, %s11504_s18  ;;  %807 = vrot.lane.b32.xlu0 %v5291_v2, %s11504_s18 }
 0x1a3   : > { %v5858_v47 = vpop.permute.xlu1 %642  ;;  %v5860_v46 = vpop.permute.xlu0 %640 }
 0x1a4   : > { %11991 = vst [vmem:[#allocation90_spill] sm:$0xff] %v5858_v47  ;;  %11992 = vst [vmem:[#allocation91_spill] sm:$0xff] %v5860_v46 }
 0x1a5   : > { %813 = vrot.lane.b32.xlu1 %v5314_v7, %s11504_s18  ;;  %811 = vrot.lane.b32.xlu0 %v5301_v4, %s11504_s18 }
 0x1a7   : > { %v5866_v45 = vpop.permute.xlu1 %646  ;;  %v5868_v44 = vpop.permute.xlu0 %644 }
 0x1a8   : > { %11993 = vst [vmem:[#allocation92_spill] sm:$0xff] %v5866_v45  ;;  %11994 = vst [vmem:[#allocation93_spill] sm:$0xff] %v5868_v44 }
 0x1a9   : > { %817 = vrot.lane.b32.xlu1 %v5321_v8, %s11504_s18  ;;  %815 = vrot.lane.b32.xlu0 %v5311_v6, %s11504_s18 }
 0x1ab   : > { %v5874_v43 = vpop.permute.xlu1 %650  ;;  %v5876_v47 = vpop.permute.xlu0 %648 }
 0x1ac   : > { %11995 = vst [vmem:[#allocation94_spill] sm:$0xff] %v5874_v43  ;;  %11996 = vst [vmem:[#allocation95_spill] sm:$0xff] %v5876_v47 }
 0x1ad   : > { %830 = vrot.lane.b32.xlu1 %v5294_v3, %s11513_s19  ;;  %819 = vrot.lane.b32.xlu0 %v5688_v61, %s11504_s18  ;;  %s11525_s18 = smov 37  }
 0x1af   : > { %v5882_v45 = vpop.permute.xlu1 %654  ;;  %v5884_v44 = vpop.permute.xlu0 %652 }
 0x1b0   : > { %11997 = vst [vmem:[#allocation96_spill] sm:$0xff] %v5882_v45  ;;  %11998 = vst [vmem:[#allocation97_spill] sm:$0xff] %v5884_v44 }
 0x1b1   : > { %834 = vrot.lane.b32.xlu1 %v5291_v2, %s11513_s19  ;;  %832 = vrot.lane.b32.xlu0 %v5281_v0, %s11513_s19 }
 0x1b3   : > { %v5890_v43 = vpop.permute.xlu1 %667  ;;  %v5892_v47 = vpop.permute.xlu0 %665 }
 0x1b4   : > { %11999 = vst [vmem:[#allocation98_spill] sm:$0xff] %v5890_v43  ;;  %12000 = vst [vmem:[#allocation99_spill] sm:$0xff] %v5892_v47 }
 0x1b5   : > { %838 = vrot.lane.b32.xlu1 %v5301_v4, %s11513_s19  ;;  %836 = vrot.lane.b32.xlu0 %v5304_v5, %s11513_s19 }
 0x1b7   : > { %v5898_v46 = vpop.permute.xlu1 %671  ;;  %v5900_v45 = vpop.permute.xlu0 %669 }
 0x1b8   : > { %12001 = vst [vmem:[#allocation100_spill] sm:$0xff] %v5898_v46  ;;  %12002 = vst [vmem:[#allocation101_spill] sm:$0xff] %v5900_v45 }
 0x1b9   : > { %842 = vrot.lane.b32.xlu1 %v5311_v6, %s11513_s19  ;;  %840 = vrot.lane.b32.xlu0 %v5314_v7, %s11513_s19 }
 0x1bb   : > { %v5906_v44 = vpop.permute.xlu1 %675  ;;  %v5908_v43 = vpop.permute.xlu0 %673 }
 0x1bc   : > { %12003 = vst [vmem:[#allocation102_spill] sm:$0xff] %v5906_v44  ;;  %12004 = vst [vmem:[#allocation103_spill] sm:$0xff] %v5908_v43 }
 0x1bd   : > { %846 = vrot.lane.b32.xlu1 %v5688_v61, %s11513_s19  ;;  %844 = vrot.lane.b32.xlu0 %v5321_v8, %s11513_s19  ;;  %s11551_s19 = smov 29  }
 0x1bf   : > { %v5914_v47 = vpop.permute.xlu1 %679  ;;  %v5916_v46 = vpop.permute.xlu0 %677 }
 0x1c0   : > { %12005 = vst [vmem:[#allocation104_spill] sm:$0xff] %v5914_v47  ;;  %12006 = vst [vmem:[#allocation105_spill] sm:$0xff] %v5916_v46 }
 0x1c1   : > { %859 = vrot.lane.b32.xlu1 %v5281_v0, %s11525_s18  ;;  %857 = vrot.lane.b32.xlu0 %v5294_v3, %s11525_s18 }
 0x1c3   : > { %v5922_v44 = vpop.permute.xlu1 %692  ;;  %v5924_v43 = vpop.permute.xlu0 %681 }
 0x1c4   : > { %12007 = vst [vmem:[#allocation106_spill] sm:$0xff] %v5922_v44  ;;  %12008 = vst [vmem:[#allocation107_spill] sm:$0xff] %v5924_v43 }
 0x1c5   : > { %863 = vrot.lane.b32.xlu1 %v5304_v5, %s11525_s18  ;;  %861 = vrot.lane.b32.xlu0 %v5291_v2, %s11525_s18 }
 0x1c7   : > { %v5930_v47 = vpop.permute.xlu1 %696  ;;  %v5932_v46 = vpop.permute.xlu0 %694 }
 0x1c8   : > { %12009 = vst [vmem:[#allocation108_spill] sm:$0xff] %v5930_v47  ;;  %12010 = vst [vmem:[#allocation109_spill] sm:$0xff] %v5932_v46 }
 0x1c9   : > { %867 = vrot.lane.b32.xlu1 %v5314_v7, %s11525_s18  ;;  %865 = vrot.lane.b32.xlu0 %v5301_v4, %s11525_s18 }
 0x1cb   : > { %v5938_v45 = vpop.permute.xlu1 %700  ;;  %v5940_v44 = vpop.permute.xlu0 %698 }
 0x1cc   : > { %12011 = vst [vmem:[#allocation110_spill] sm:$0xff] %v5938_v45  ;;  %12012 = vst [vmem:[#allocation111_spill] sm:$0xff] %v5940_v44 }
 0x1cd   : > { %871 = vrot.lane.b32.xlu1 %v5321_v8, %s11525_s18  ;;  %869 = vrot.lane.b32.xlu0 %v5311_v6, %s11525_s18 }
 0x1cf   : > { %v5946_v43 = vpop.permute.xlu1 %704  ;;  %v5948_v47 = vpop.permute.xlu0 %702 }
 0x1d0   : > { %12013 = vst [vmem:[#allocation112_spill] sm:$0xff] %v5946_v43  ;;  %12014 = vst [vmem:[#allocation113_spill] sm:$0xff] %v5948_v47 }
 0x1d1   : > { %884 = vrot.lane.b32.xlu1 %v5294_v3, %s11551_s19  ;;  %873 = vrot.lane.b32.xlu0 %v5688_v61, %s11525_s18  ;;  %s5108_s18 = smov 7  }
 0x1d3   : > { %v5954_v45 = vpop.permute.xlu1 %708  ;;  %v5956_v44 = vpop.permute.xlu0 %706 }
 0x1d4   : > { %12015 = vst [vmem:[#allocation114_spill] sm:$0xff] %v5954_v45  ;;  %12016 = vst [vmem:[#allocation115_spill] sm:$0xff] %v5956_v44 }
 0x1d5   : > { %888 = vrot.lane.b32.xlu1 %v5291_v2, %s11551_s19  ;;  %886 = vrot.lane.b32.xlu0 %v5281_v0, %s11551_s19 }
 0x1d7   : > { %v5962_v43 = vpop.permute.xlu1 %722  ;;  %v720_v47 = vpop.permute.xlu0 %719 }
 0x1d8   : > { %v721_v27 = vsel %vm334_vm0, %v5457_v18, %v720_v47 }
 0x1d9   : > { %892 = vrot.lane.b32.xlu1 %v5301_v4, %s11551_s19  ;;  %890 = vrot.lane.b32.xlu0 %v5304_v5, %s11551_s19 }
 0x1db   : > { %v5968_v46 = vpop.permute.xlu1 %726  ;;  %v725_v45 = vpop.permute.xlu0 %724 }
 0x1dc   : > { %v742_v26 = vsel %vm740_vm1, %v725_v45, %v5968_v46  ;;  %v741_v25 = vsel %vm740_vm1, %v5962_v43, %v725_v45 }
 0x1dd   : > { %896 = vrot.lane.b32.xlu1 %v5311_v6, %s11551_s19  ;;  %894 = vrot.lane.b32.xlu0 %v5314_v7, %s11551_s19 }
 0x1df   : > { %v5974_v44 = vpop.permute.xlu1 %730  ;;  %v5976_v42 = vpop.permute.xlu0 %728 }
 0x1e0   : > { %v743_v23 = vsel %vm740_vm1, %v5968_v46, %v5976_v42 }
 0x1e1   : > { %900 = vrot.lane.b32.xlu1 %v5688_v61, %s11551_s19  ;;  %898 = vrot.lane.b32.xlu0 %v5321_v8, %s11551_s19  ;;  %s12656_s19 = smov 29  }
 0x1e3   : > { %v5982_v41 = vpop.permute.xlu1 %734  ;;  %v5984_v40 = vpop.permute.xlu0 %732 }
 0x1e4   : > { %v745_v45 = vsel %vm740_vm1, %v5974_v44, %v5984_v40 }
 0x1e5   : > { %914 = vrot.lane.b32.xlu1 %v5688_v61, %s5095_s7  ;;  %911 = vrot.lane.b32.xlu0 %v5688_v61, %s5094_s8 }
 0x1e7   : > { %v5990_v39 = vpop.permute.xlu1 %738  ;;  %v5992_v35 = vpop.permute.xlu0 %736 }
 0x1e9   : > { %919 = vrot.lane.b32.xlu1 %v5281_v0, %s5108_s18  ;;  %917 = vrot.lane.b32.xlu0 %v5294_v3, %s5108_s18 }
 0x1eb   : > { %v5998_v38 = vpop.permute.xlu1 %751  ;;  %v6000_v37 = vpop.permute.xlu0 %749 }
 0x1ed   : > { %923 = vrot.lane.b32.xlu1 %v5304_v5, %s5108_s18  ;;  %921 = vrot.lane.b32.xlu0 %v5291_v2, %s5108_s18 }
 0x1ef   : > { %v6006_v36 = vpop.permute.xlu1 %755  ;;  %v6008_v34 = vpop.permute.xlu0 %753 }
 0x1f1   : > { %927 = vrot.lane.b32.xlu1 %v5314_v7, %s5108_s18  ;;  %925 = vrot.lane.b32.xlu0 %v5301_v4, %s5108_s18  ;;  %v6029_v7 = vsel %vm334_vm0, %v5433_v12, %v5423_v9  ;;  %v6065_v9 = vsel %vm334_vm0, %v5441_v14, %v5439_v13  ;;  %v6083_v13 = vsel %vm334_vm0, %v5449_v16, %v5447_v15 }
 0x1f3   : > { %v6014_v0 = vpop.permute.xlu1 %759  ;;  %v6016_v3 = vpop.permute.xlu0 %757 }
 0x1f5   : > { %931 = vrot.lane.b32.xlu1 %v5321_v8, %s5108_s18  ;;  %929 = vrot.lane.b32.xlu0 %v5311_v6, %s5108_s18  ;;  %v6042_v6 = vsel %vm334_vm0, %v5431_v11, %v5441_v14 }
 0x1f7   : > { %v6022_v2 = vpop.permute.xlu1 %763  ;;  %v6024_v5 = vpop.permute.xlu0 %761 }
 0x1f9   : > { %935 = vrot.lane.b32.xlu1 %v6029_v7, %s5108_s18  ;;  %933 = vrot.lane.b32.xlu0 %v5688_v61, %s5108_s18 }
 0x1fb   : > { %v6035_v4 = vpop.permute.xlu1 %776  ;;  %v6037_v8 = vpop.permute.xlu0 %765 }
 0x1fd   : > { %939 = vrot.lane.b32.xlu1 %v6042_v6, %s5108_s18  ;;  %937 = vrot.lane.b32.xlu0 %v6047_v33, %s5108_s18 }
 0x1ff   : > { %v6053_v61 = vpop.permute.xlu1 %780  ;;  %v6055_v32 = vpop.permute.xlu0 %778 }
 0x201   : > { %943 = vrot.lane.b32.xlu1 %v6060_v31, %s5108_s18  ;;  %941 = vrot.lane.b32.xlu0 %v6065_v9, %s5108_s18 }
 0x203   : > { %v6071_v11 = vpop.permute.xlu1 %784  ;;  %v6073_v30 = vpop.permute.xlu0 %782 }
 0x205   : > { %947 = vrot.lane.b32.xlu1 %v6078_v29, %s5108_s18  ;;  %945 = vrot.lane.b32.xlu0 %v6083_v13, %s5108_s18 }
 0x207   : > { %v6089_v14 = vpop.permute.xlu1 %788  ;;  %v6091_v28 = vpop.permute.xlu0 %786 }
 0x209   : > { %949 = vrot.lane.b32.xlu0 %v721_v27, %s5108_s18  ;;  %951 = vrot.lane.b32.xlu1 %v720_v47, %s5108_s18  ;;  %v744_v47 = vsel %vm740_vm1, %v5976_v42, %v5974_v44 }
 0x20b   : > { %v6097_v15 = vpop.permute.xlu1 %792  ;;  %v6099_v16 = vpop.permute.xlu0 %790 }
 0x20d   : > { %955 = vrot.lane.b32.xlu1 %v742_v26, %s5108_s18  ;;  %953 = vrot.lane.b32.xlu0 %v741_v25, %s5108_s18  ;;  %v746_v25 = vsel %vm740_vm1, %v5984_v40, %v5982_v41 }
 0x20f   : > { %v6107_v24 = vpop.permute.xlu1 %805  ;;  %v6109_v27 = vpop.permute.xlu0 %803 }
 0x211   : > { %959 = vrot.lane.b32.xlu1 %v744_v47, %s5108_s18  ;;  %957 = vrot.lane.b32.xlu0 %v743_v23, %s5108_s18  ;;  %v748_v23 = vsel %vm740_vm1, %v5992_v35, %v5990_v39  ;;  %v747_v47 = vsel %vm740_vm1, %v5982_v41, %v5992_v35  ;;  %v770_v41 = vsel %vm767_vm2, %v6008_v34, %v6006_v36 }
 0x213   : > { %v6119_v43 = vpop.permute.xlu1 %809  ;;  %v6121_v26 = vpop.permute.xlu0 %807 }
 0x215   : > { %963 = vrot.lane.b32.xlu1 %v746_v25, %s5108_s18  ;;  %961 = vrot.lane.b32.xlu0 %v745_v45, %s5108_s18  ;;  %v768_v25 = vsel %vm767_vm2, %v6000_v37, %v5998_v38 }
 0x217   : > { %v6131_v42 = vpop.permute.xlu1 %813  ;;  %v6133_v46 = vpop.permute.xlu0 %811 }
 0x219   : > { %967 = vrot.lane.b32.xlu1 %v748_v23, %s5108_s18  ;;  %965 = vrot.lane.b32.xlu0 %v747_v47, %s5108_s18  ;;  %v769_v23 = vsel %vm767_vm2, %v5998_v38, %v6008_v34  ;;  %v772_v47 = vsel %vm767_vm2, %v6016_v3, %v6014_v0 }
 0x21b   : > { %v6143_v40 = vpop.permute.xlu1 %817  ;;  %v6145_v44 = vpop.permute.xlu0 %815 }
 0x21d   : > { %969 = vrot.lane.b32.xlu0 %v5990_v39, %s5108_s18  ;;  %971 = vrot.lane.b32.xlu1 %v768_v25, %s5108_s18  ;;  %v771_v25 = vsel %vm767_vm2, %v6006_v36, %v6016_v3 }
 0x21f   : > { %v6153_v45 = vpop.permute.xlu1 %830  ;;  %v6155_v35 = vpop.permute.xlu0 %819 }
 0x221   : > { %975 = vrot.lane.b32.xlu1 %v770_v41, %s5108_s18  ;;  %973 = vrot.lane.b32.xlu0 %v769_v23, %s5108_s18  ;;  %v774_v41 = vsel %vm767_vm2, %v6024_v5, %v6022_v2  ;;  %v773_v23 = vsel %vm767_vm2, %v6014_v0, %v6024_v5 }
 0x223   : > { %v6165_v37 = vpop.permute.xlu1 %834  ;;  %v6167_v39 = vpop.permute.xlu0 %832 }
 0x225   : > { %979 = vrot.lane.b32.xlu1 %v772_v47, %s5108_s18  ;;  %977 = vrot.lane.b32.xlu0 %v771_v25, %s5108_s18  ;;  %v775_v47 = vsel %vm767_vm2, %v6022_v2, %v6037_v8  ;;  %v5109_v25 = vmov 0   ;;  %v795_v2 = vsel %vm794_vm3, %v6035_v4, %v6055_v32 }
 0x226   : > { %4893 = vset.pattern.permute.xlu1 %v5109_v25  ;;  %4919 = vset.pattern.permute.xlu0 %v5109_v25  ;;  %v797_v25 = vsel %vm794_vm3, %v6053_v61, %v6073_v30 }
 0x227   : > { %v6177_v34 = vpop.permute.xlu1 %838  ;;  %v6179_v38 = vpop.permute.xlu0 %836 }
 0x229   : > { %983 = vrot.lane.b32.xlu1 %v774_v41, %s5108_s18  ;;  %981 = vrot.lane.b32.xlu0 %v773_v23, %s5108_s18  ;;  %v796_v41 = vsel %vm794_vm3, %v6055_v32, %v6053_v61 }
 0x22b   : > { %v6189_v36 = vpop.permute.xlu1 %842  ;;  %v6191_v3 = vpop.permute.xlu0 %840 }
 0x22d   : > { %985 = vrot.lane.b32.xlu0 %v775_v47, %s5108_s18  ;;  %987 = vrot.lane.b32.xlu1 %v6037_v8, %s5108_s18  ;;  %v798_v47 = vsel %vm794_vm3, %v6073_v30, %v6071_v11 }
 0x22f   : > { %v6199_v0 = vpop.permute.xlu1 %846  ;;  %v6201_v5 = vpop.permute.xlu0 %844 }
 0x231   : > { %991 = vrot.lane.b32.xlu1 %v796_v41, %s5108_s18  ;;  %989 = vrot.lane.b32.xlu0 %v795_v2, %s5108_s18  ;;  %v800_v41 = vsel %vm794_vm3, %v6091_v28, %v6089_v14  ;;  %v799_v2 = vsel %vm794_vm3, %v6071_v11, %v6091_v28 }
 0x233   : > { %v6211_v23 = vpop.permute.xlu1 %859  ;;  %v6213_v8 = vpop.permute.xlu0 %857 }
 0x235   : > { %995 = vrot.lane.b32.xlu1 %v798_v47, %s5108_s18  ;;  %993 = vrot.lane.b32.xlu0 %v797_v25, %s5108_s18  ;;  %v802_v47 = vsel %vm794_vm3, %v6099_v16, %v6097_v15  ;;  %v801_v25 = vsel %vm794_vm3, %v6089_v14, %v6099_v16  ;;  %v824_v16 = vsel %vm821_vm4, %v6121_v26, %v6119_v43 }
 0x237   : > { %v6223_v32 = vpop.permute.xlu1 %863  ;;  %v6225_v4 = vpop.permute.xlu0 %861 }
 0x239   : > { %999 = vrot.lane.b32.xlu1 %v800_v41, %s5108_s18  ;;  %997 = vrot.lane.b32.xlu0 %v799_v2, %s5108_s18  ;;  %v822_v41 = vsel %vm821_vm4, %v6109_v27, %v6107_v24 }
 0x23b   : > { %v6235_v30 = vpop.permute.xlu1 %867  ;;  %v6237_v61 = vpop.permute.xlu0 %865 }
 0x23d   : > { %1003 = vrot.lane.b32.xlu1 %v802_v47, %s5108_s18  ;;  %1001 = vrot.lane.b32.xlu0 %v801_v25, %s5108_s18  ;;  %v823_v47 = vsel %vm821_vm4, %v6107_v24, %v6121_v26  ;;  %v826_v25 = vsel %vm821_vm4, %v6133_v46, %v6131_v42 }
 0x23f   : > { %v6247_v28 = vpop.permute.xlu1 %871  ;;  %v6249_v11 = vpop.permute.xlu0 %869 }
 0x241   : > { %1005 = vrot.lane.b32.xlu0 %v6097_v15, %s5108_s18  ;;  %1007 = vrot.lane.b32.xlu1 %v822_v41, %s5108_s18  ;;  %v825_v41 = vsel %vm821_vm4, %v6119_v43, %v6133_v46 }
 0x243   : > { %v6257_v2 = vpop.permute.xlu1 %884  ;;  %v6259_v14 = vpop.permute.xlu0 %873 }
 0x245   : > { %1011 = vrot.lane.b32.xlu1 %v824_v16, %s5108_s18  ;;  %1009 = vrot.lane.b32.xlu0 %v823_v47, %s5108_s18  ;;  %v828_v16 = vsel %vm821_vm4, %v6145_v44, %v6143_v40  ;;  %v827_v47 = vsel %vm821_vm4, %v6131_v42, %v6145_v44  ;;  %v850_v44 = vsel %vm848_vm5, %v6167_v39, %v6165_v37 }
 0x247   : > { %v6269_v27 = vpop.permute.xlu1 %888  ;;  %v6271_v15 = vpop.permute.xlu0 %886 }
 0x249   : > { %1015 = vrot.lane.b32.xlu1 %v826_v25, %s5108_s18  ;;  %1013 = vrot.lane.b32.xlu0 %v825_v41, %s5108_s18  ;;  %v829_v25 = vsel %vm821_vm4, %v6143_v40, %v6155_v35 }
 0x24b   : > { %v6281_v24 = vpop.permute.xlu1 %892  ;;  %v6283_v26 = vpop.permute.xlu0 %890 }
 0x24d   : > { %1019 = vrot.lane.b32.xlu1 %v828_v16, %s5108_s18  ;;  %1017 = vrot.lane.b32.xlu0 %v827_v47, %s5108_s18  ;;  %v849_v16 = vsel %vm848_vm5, %v6153_v45, %v6167_v39  ;;  %v852_v47 = vsel %vm848_vm5, %v6179_v38, %v6177_v34 }
 0x24f   : > { %v6293_v43 = vpop.permute.xlu1 %896  ;;  %v6295_v46 = vpop.permute.xlu0 %894 }
 0x251   : > { %1021 = vrot.lane.b32.xlu0 %v829_v25, %s5108_s18  ;;  %1023 = vrot.lane.b32.xlu1 %v6155_v35, %s5108_s18  ;;  %v851_v25 = vsel %vm848_vm5, %v6165_v37, %v6179_v38 }
 0x253   : > { %v6303_v41 = vpop.permute.xlu1 %900  ;;  %v6305_v42 = vpop.permute.xlu0 %898 }
 0x255   : > { %1027 = vrot.lane.b32.xlu1 %v850_v44, %s5108_s18  ;;  %1025 = vrot.lane.b32.xlu0 %v849_v16, %s5108_s18  ;;  %v854_v44 = vsel %vm848_vm5, %v6191_v3, %v6189_v36  ;;  %v853_v16 = vsel %vm848_vm5, %v6177_v34, %v6191_v3 }
 0x257   : > { %v6315_v40 = vpop.permute.xlu1 %914  ;;  %v6317_v35 = vpop.permute.xlu0 %911 }
 0x259   : > { %1031 = vrot.lane.b32.xlu1 %v852_v47, %s5108_s18  ;;  %1029 = vrot.lane.b32.xlu0 %v851_v25, %s5108_s18  ;;  %v856_v47 = vsel %vm848_vm5, %v6201_v5, %v6199_v0  ;;  %v855_v25 = vsel %vm848_vm5, %v6189_v36, %v6201_v5  ;;  %v878_v5 = vsel %vm875_vm6, %v6225_v4, %v6223_v32 }
 0x25b   : > { %v6327_v45 = vpop.permute.xlu1 %919  ;;  %v6329_v39 = vpop.permute.xlu0 %917 }
 0x25d   : > { %1035 = vrot.lane.b32.xlu1 %v854_v44, %s5108_s18  ;;  %1033 = vrot.lane.b32.xlu0 %v853_v16, %s5108_s18  ;;  %v876_v44 = vsel %vm875_vm6, %v6213_v8, %v6211_v23 }
 0x25f   : > { %v6339_v37 = vpop.permute.xlu1 %923  ;;  %v6341_v38 = vpop.permute.xlu0 %921 }
 0x261   : > { %1039 = vrot.lane.b32.xlu1 %v856_v47, %s5108_s18  ;;  %1037 = vrot.lane.b32.xlu0 %v855_v25, %s5108_s18  ;;  %v877_v47 = vsel %vm875_vm6, %v6211_v23, %v6225_v4  ;;  %v880_v25 = vsel %vm875_vm6, %v6237_v61, %v6235_v30 }
 0x263   : > { %v6351_v34 = vpop.permute.xlu1 %927  ;;  %v6353_v3 = vpop.permute.xlu0 %925 }
 0x265   : > { %1041 = vrot.lane.b32.xlu0 %v6199_v0, %s5108_s18  ;;  %1043 = vrot.lane.b32.xlu1 %v876_v44, %s5108_s18  ;;  %v879_v44 = vsel %vm875_vm6, %v6223_v32, %v6237_v61 }
 0x267   : > { %v6361_v16 = vpop.permute.xlu1 %931  ;;  %v6363_v36 = vpop.permute.xlu0 %929 }
 0x269   : > { %1047 = vrot.lane.b32.xlu1 %v878_v5, %s5108_s18  ;;  %1045 = vrot.lane.b32.xlu0 %v877_v47, %s5108_s18  ;;  %v882_v5 = vsel %vm875_vm6, %v6249_v11, %v6247_v28  ;;  %v881_v47 = vsel %vm875_vm6, %v6235_v30, %v6249_v11  ;;  %v904_v11 = vsel %vm902_vm7, %v6271_v15, %v6269_v27 }
 0x26b   : > { %v6373_v8 = vpop.permute.xlu1 %935  ;;  %v6375_v0 = vpop.permute.xlu0 %933 }
 0x26d   : > { %1051 = vrot.lane.b32.xlu1 %v880_v25, %s5108_s18  ;;  %1049 = vrot.lane.b32.xlu0 %v879_v44, %s5108_s18  ;;  %v883_v25 = vsel %vm875_vm6, %v6247_v28, %v6259_v14 }
 0x26f   : > { %v6385_v23 = vpop.permute.xlu1 %939  ;;  %v6387_v4 = vpop.permute.xlu0 %937 }
 0x271   : > { %1055 = vrot.lane.b32.xlu1 %v882_v5, %s5108_s18  ;;  %1053 = vrot.lane.b32.xlu0 %v881_v47, %s5108_s18  ;;  %v903_v5 = vsel %vm902_vm7, %v6257_v2, %v6271_v15  ;;  %v906_v47 = vsel %vm902_vm7, %v6283_v26, %v6281_v24 }
 0x273   : > { %v6397_v32 = vpop.permute.xlu1 %943  ;;  %v6399_v61 = vpop.permute.xlu0 %941 }
 0x275   : > { %1057 = vrot.lane.b32.xlu0 %v883_v25, %s5108_s18  ;;  %1059 = vrot.lane.b32.xlu1 %v6259_v14, %s5108_s18  ;;  %v905_v25 = vsel %vm902_vm7, %v6269_v27, %v6283_v26 }
 0x277   : > { %v6407_v44 = vpop.permute.xlu1 %947  ;;  %v6409_v30 = vpop.permute.xlu0 %945 }
 0x279   : > { %1063 = vrot.lane.b32.xlu1 %v904_v11, %s5108_s18  ;;  %1061 = vrot.lane.b32.xlu0 %v903_v5, %s5108_s18  ;;  %v908_v11 = vsel %vm902_vm7, %v6295_v46, %v6293_v43  ;;  %v907_v5 = vsel %vm902_vm7, %v6281_v24, %v6295_v46 }
 0x27b   : > { %v6419_v28 = vpop.permute.xlu1 %951  ;;  %v6421_v14 = vpop.permute.xlu0 %949 }
 0x27d   : > { %1067 = vrot.lane.b32.xlu1 %v906_v47, %s5108_s18  ;;  %1065 = vrot.lane.b32.xlu0 %v905_v25, %s5108_s18  ;;  %v910_v47 = vsel %vm902_vm7, %v6305_v42, %v6303_v41  ;;  %v909_v25 = vsel %vm902_vm7, %v6293_v43, %v6305_v42 }
 0x27f   : > { %v6431_v2 = vpop.permute.xlu1 %955  ;;  %v6433_v15 = vpop.permute.xlu0 %953 }
 0x281   : > { %1071 = vrot.lane.b32.xlu1 %v908_v11, %s5108_s18  ;;  %1069 = vrot.lane.b32.xlu0 %v907_v5, %s5108_s18  ;;  %v6462_v11 = vsel %vm550_vm8, %v5714_v59, %v5724_v62  ;;  %v6475_v5 = vsel %vm550_vm8, %v5722_v1, %v5732_v58 }
 0x283   : > { %v6443_v27 = vpop.permute.xlu1 %959  ;;  %v6445_v26 = vpop.permute.xlu0 %957 }
 0x285   : > { %1075 = vrot.lane.b32.xlu1 %v910_v47, %s5108_s18  ;;  %1073 = vrot.lane.b32.xlu0 %v909_v25, %s5108_s18  ;;  %v6480_v47 = vsel %vm550_vm8, %v5724_v62, %v5722_v1  ;;  %v6498_v62 = vsel %vm550_vm8, %v5732_v58, %v5730_v63  ;;  %v6516_v58 = vsel %vm550_vm8, %v5740_v57, %v5738_v60 }
 0x287   : > { %v6455_v24 = vpop.permute.xlu1 %963  ;;  %v6457_v46 = vpop.permute.xlu0 %961 }
 0x288   : > { %12017 = vst [vmem:[#allocation116_spill] sm:$0xff] %v6455_v24  ;;  %12018 = vst [vmem:[#allocation117_spill] sm:$0xff] %v6457_v46  ;;  %v4925_v46 = vld [vmem:[%s5270_s9] sm:$0xff]  ;;  %v4930_v24 = vld [vmem:[%s5270_s9 + $0x38] sm:$0xff] }
 0x289   : > { %1079 = vrot.lane.b32.xlu1 %v6462_v11, %s5108_s18  ;;  %1077 = vrot.lane.b32.xlu0 %v6303_v41, %s5108_s18 }
 0x28b   : > { %v6468_v43 = vpop.permute.xlu1 %967  ;;  %v6470_v42 = vpop.permute.xlu0 %965 }
 0x28c   : > { %12019 = vst [vmem:[#allocation118_spill] sm:$0xff] %v6468_v43  ;;  %12020 = vst [vmem:[#allocation119_spill] sm:$0xff] %v6470_v42  ;;  %v6493_v42 = vsel %vm550_vm8, %v5730_v63, %v5740_v57 }
 0x28d   : > { %1083 = vrot.lane.b32.xlu1 %v6475_v5, %s5108_s18  ;;  %1081 = vrot.lane.b32.xlu0 %v6480_v47, %s5108_s18 }
 0x28f   : > { %v6486_v41 = vpop.permute.xlu1 %971  ;;  %v6488_v25 = vpop.permute.xlu0 %969 }
 0x290   : > { %12021 = vst [vmem:[#allocation120_spill] sm:$0xff] %v6486_v41  ;;  %12022 = vst [vmem:[#allocation121_spill] sm:$0xff] %v6488_v25  ;;  %v6511_v25 = vsel %vm550_vm8, %v5738_v60, %v5748_v56 }
 0x291   : > { %1087 = vrot.lane.b32.xlu1 %v6493_v42, %s5108_s18  ;;  %1085 = vrot.lane.b32.xlu0 %v6498_v62, %s5108_s18 }
 0x293   : > { %v6504_v1 = vpop.permute.xlu1 %975  ;;  %v6506_v41 = vpop.permute.xlu0 %973 }
 0x294   : > { %12023 = vst [vmem:[#allocation122_spill] sm:$0xff] %v6504_v1  ;;  %12024 = vst [vmem:[#allocation123_spill] sm:$0xff] %v6506_v41  ;;  %v913_v41 = vsel %vm550_vm8, %v5748_v56, %v6317_v35 }
 0x295   : > { %1091 = vrot.lane.b32.xlu1 %v6511_v25, %s5108_s18  ;;  %1089 = vrot.lane.b32.xlu0 %v6516_v58, %s5108_s18 }
 0x297   : > { %v6522_v63 = vpop.permute.xlu1 %979  ;;  %v6524_v1 = vpop.permute.xlu0 %977 }
 0x298   : > { %12025 = vst [vmem:[#allocation124_spill] sm:$0xff] %v6522_v63  ;;  %12026 = vst [vmem:[#allocation125_spill] sm:$0xff] %v6524_v1  ;;  %v6539_v63 = vsel %vm577_vm9, %v5756_v54, %v5754_v55  ;;  %v6544_v1 = vsel %vm577_vm9, %v5754_v55, %v5764_v53  ;;  %v6562_v55 = vsel %vm577_vm9, %v5762_v52, %v5772_v50 }
 0x299   : > { %1093 = vrot.lane.b32.xlu0 %v913_v41, %s5108_s18  ;;  %1095 = vrot.lane.b32.xlu1 %v6317_v35, %s5108_s18 }
 0x29b   : > { %v6532_v57 = vpop.permute.xlu1 %983  ;;  %v6534_v60 = vpop.permute.xlu0 %981 }
 0x29c   : > { %12027 = vst [vmem:[#allocation126_spill] sm:$0xff] %v6532_v57  ;;  %12028 = vst [vmem:[#allocation127_spill] sm:$0xff] %v6534_v60  ;;  %v6557_v60 = vsel %vm577_vm9, %v5764_v53, %v5762_v52  ;;  %v6575_v53 = vsel %vm577_vm9, %v5772_v50, %v5770_v51  ;;  %v6580_v52 = vsel %vm577_vm9, %v5770_v51, %v5780_v48 }
 0x29d   : > { %1097 = vrot.lane.b32.xlu0 %v6539_v63, %s5108_s18  ;;  %1099 = vrot.lane.b32.xlu1 %v6544_v1, %s5108_s18  ;;  %v6593_v50 = vsel %vm577_vm9, %v5780_v48, %v5778_v49  ;;  %v916_v51 = vsel %vm577_vm9, %v5778_v49, %v6315_v40 }
 0x29f   : > { %v6550_v35 = vpop.permute.xlu1 %987  ;;  %v6552_v41 = vpop.permute.xlu0 %985 }
 0x2a0   : > { %12029 = vst [vmem:[#allocation128_spill] sm:$0xff] %v6550_v35  ;;  %12030 = vst [vmem:[#allocation129_spill] sm:$0xff] %v6552_v41 }
 0x2a1   : > { %1101 = vrot.lane.b32.xlu0 %v6557_v60, %s5108_s18  ;;  %1103 = vrot.lane.b32.xlu1 %v6562_v55, %s5108_s18 }
 0x2a3   : > { %v6568_v57 = vpop.permute.xlu1 %991  ;;  %v6570_v35 = vpop.permute.xlu0 %989 }
 0x2a4   : > { %12031 = vst [vmem:[#allocation130_spill] sm:$0xff] %v6568_v57  ;;  %12032 = vst [vmem:[#allocation131_spill] sm:$0xff] %v6570_v35 }
 0x2a5   : > { %1105 = vrot.lane.b32.xlu0 %v6575_v53, %s5108_s18  ;;  %1107 = vrot.lane.b32.xlu1 %v6580_v52, %s5108_s18 }
 0x2a7   : > { %v6586_v57 = vpop.permute.xlu1 %995  ;;  %v6588_v35 = vpop.permute.xlu0 %993 }
 0x2a8   : > { %12033 = vst [vmem:[#allocation132_spill] sm:$0xff] %v6586_v57  ;;  %12034 = vst [vmem:[#allocation133_spill] sm:$0xff] %v6588_v35  ;;  %v306_v57 = vld [vmem:[%s11423_s3] sm:$0xff] }
 0x2a9   : > { %1109 = vrot.lane.b32.xlu0 %v6593_v50, %s5108_s18  ;;  %1111 = vrot.lane.b32.xlu1 %v916_v51, %s5108_s18  ;;  %v4924_v51 = vld [vmem:[%s5270_s9 + $0x8] sm:$0xff] }
 0x2ab   : > { %v6604_v35 = vpop.permute.xlu1 %999  ;;  %v6606_v41 = vpop.permute.xlu0 %997 }
 0x2ac   : > { %12035 = vst [vmem:[#allocation134_spill] sm:$0xff] %v6604_v35  ;;  %12036 = vst [vmem:[#allocation135_spill] sm:$0xff] %v6606_v41 }
 0x2ad   : > { %1206 = vperm.xlu1 %4893, %v306_v57   ;;  %1113 = vrot.lane.b32.xlu0 %v6315_v40, %s5108_s18  ;;  %v4926_v40 = vld [vmem:[%s5270_s9 + $0x18] sm:$0xff] }
 0x2af   : > { %v6610_v48 = vpop.permute.xlu1 %1003  ;;  %v6612_v43 = vpop.permute.xlu0 %1001 }
 0x2b0   : > { %12037 = vst [vmem:[#allocation136_spill] sm:$0xff] %v6610_v48  ;;  %12038 = vst [vmem:[#allocation137_spill] sm:$0xff] %v6612_v43  ;;  %v4927_v48 = vld [vmem:[%s5270_s9 + $0x10] sm:$0xff] }
 0x2b1   : > { %1211 = vrot.lane.b32.xlu1 %v4924_v51, %s5110_s30  ;;  %1209 = vrot.lane.b32.xlu0 %v4925_v46, %s5110_s30  ;;  %v4928_v51 = vld [vmem:[%s5270_s9 + $0x28] sm:$0xff]  ;;  %v4929_v46 = vld [vmem:[%s5270_s9 + $0x20] sm:$0xff] }
 0x2b3   : > { %v6618_v35 = vpop.permute.xlu1 %1007  ;;  %v6620_v57 = vpop.permute.xlu0 %1005 }
 0x2b4   : > { %12039 = vst [vmem:[#allocation138_spill] sm:$0xff] %v6618_v35  ;;  %12040 = vst [vmem:[#allocation139_spill] sm:$0xff] %v6620_v57 }
 0x2b5   : > { %1215 = vrot.lane.b32.xlu1 %v4926_v40, %s5110_s30  ;;  %1213 = vrot.lane.b32.xlu0 %v4927_v48, %s5110_s30  ;;  %v4931_v40 = vld [vmem:[%s5270_s9 + $0x30] sm:$0xff] }
 0x2b7   : > { %v6626_v43 = vpop.permute.xlu1 %1011  ;;  %v6628_v41 = vpop.permute.xlu0 %1009 }
 0x2b8   : > { %12041 = vst [vmem:[#allocation140_spill] sm:$0xff] %v6626_v43 }
 0x2b9   : > { %1219 = vrot.lane.b32.xlu1 %v4928_v51, %s5110_s30  ;;  %1217 = vrot.lane.b32.xlu0 %v4929_v46, %s5110_s30  ;;  %v335_v51 = vsel %vm334_vm0, %v5425_v10, %v5433_v12  ;;  %v4932_v46 = vld [vmem:[%s5270_s9 + $0x40] sm:$0xff] }
 0x2bb   : > { %v6634_v35 = vpop.permute.xlu1 %1015  ;;  %v6636_v57 = vpop.permute.xlu0 %1013 }
 0x2bc   : > { %12042 = vst [vmem:[#allocation141_spill] sm:$0xff] %v6634_v35  ;;  %12043 = vst [vmem:[#allocation142_spill] sm:$0xff] %v6636_v57 }
 0x2bd   : > { %1223 = vrot.lane.b32.xlu1 %v4930_v24, %s5110_s30  ;;  %1221 = vrot.lane.b32.xlu0 %v4931_v40, %s5110_s30 }
 0x2bf   : > { %v6642_v48 = vpop.permute.xlu1 %1019  ;;  %v6644_v43 = vpop.permute.xlu0 %1017 }
 0x2c1   : > { %1227 = vrot.lane.b32.xlu1 %v335_v51, %s5110_s30  ;;  %1225 = vrot.lane.b32.xlu0 %v4932_v46, %s5110_s30  ;;  %v365_v51 = vsel %vm11610_vm10, %v5473_v22, %v5471_v21  ;;  %v364_v46 = vsel %vm11610_vm10, %v5463_v19, %v5473_v22 }
 0x2c3   : > { %v6652_v57 = vpop.permute.xlu1 %1023  ;;  %v6654_v35 = vpop.permute.xlu0 %1021 }
 0x2c5   : > { %1231 = vrot.lane.b32.xlu1 %v6047_v33, %s5110_s30  ;;  %1229 = vrot.lane.b32.xlu0 %v6029_v7, %s5110_s30 }
 0x2c7   : > { %v6660_v24 = vpop.permute.xlu1 %1027  ;;  %v6662_v40 = vpop.permute.xlu0 %1025 }
 0x2c9   : > { %1235 = vrot.lane.b32.xlu1 %v6065_v9, %s5110_s30  ;;  %1233 = vrot.lane.b32.xlu0 %v6042_v6, %s5110_s30 }
 0x2cb   : > { %v6668_v10 = vpop.permute.xlu1 %1031  ;;  %v6670_v12 = vpop.permute.xlu0 %1029 }
 0x2cd   : > { %1239 = vrot.lane.b32.xlu1 %v6083_v13, %s5110_s30  ;;  %1237 = vrot.lane.b32.xlu0 %v6060_v31, %s5110_s30  ;;  %v363_v13 = vsel %vm11610_vm10, %v5465_v20, %v5463_v19  ;;  %v362_v31 = vsel %vm11610_vm10, %v5455_v17, %v5465_v20 }
 0x2cf   : > { %v6676_v33 = vpop.permute.xlu1 %1035  ;;  %v6678_v7 = vpop.permute.xlu0 %1033 }
 0x2d1   : > { %1243 = vrot.lane.b32.xlu1 %v5457_v18, %s5110_s30  ;;  %1241 = vrot.lane.b32.xlu0 %v6078_v29, %s5110_s30 }
 0x2d3   : > { %v6684_v6 = vpop.permute.xlu1 %1039  ;;  %v6686_v9 = vpop.permute.xlu0 %1037 }
 0x2d5   : > { %1247 = vrot.lane.b32.xlu1 %v363_v13, %s5110_s30  ;;  %1245 = vrot.lane.b32.xlu0 %v362_v31, %s5110_s30  ;;  %v12048_v13 = vld [vmem:[#allocation12_spill] sm:$0xff]  ;;  %v12049_v31 = vld [vmem:[#allocation13_spill] sm:$0xff] }
 0x2d7   : > { %v6696_v18 = vpop.permute.xlu1 %1043  ;;  %v6698_v29 = vpop.permute.xlu0 %1041 }
 0x2d8   : > { %12044 = vst [vmem:[#allocation143_spill] sm:$0xff] %v6696_v18  ;;  %12045 = vst [vmem:[#allocation144_spill] sm:$0xff] %v6698_v29  ;;  %v367_v18 = vsel %vm11610_vm10, %v12049_v31, %v12048_v13  ;;  %v366_v29 = vsel %vm11610_vm10, %v5471_v21, %v12049_v31  ;;  %v12057_v31 = vld [vmem:[#allocation17_spill] sm:$0xff] }
 0x2d9   : > { %1251 = vrot.lane.b32.xlu1 %v365_v51, %s5110_s30  ;;  %1249 = vrot.lane.b32.xlu0 %v364_v46, %s5110_s30  ;;  %v12052_v51 = vld [vmem:[#allocation14_spill] sm:$0xff]  ;;  %v12053_v46 = vld [vmem:[#allocation15_spill] sm:$0xff] }
 0x2db   : > { %v6708_v17 = vpop.permute.xlu1 %1047  ;;  %v6710_v20 = vpop.permute.xlu0 %1045 }
 0x2dc   : > { %12046 = vst [vmem:[#allocation145_spill] sm:$0xff] %v6708_v17  ;;  %12047 = vst [vmem:[#allocation146_spill] sm:$0xff] %v6710_v20  ;;  %v369_v20 = vsel %vm11610_vm10, %v12053_v46, %v12052_v51  ;;  %v368_v17 = vsel %vm11610_vm10, %v12048_v13, %v12053_v46  ;;  %v12061_v46 = vld [vmem:[#allocation19_spill] sm:$0xff]  ;;  %vm11660_vm10 = vcmask 867328  }
 0x2dd   : > { %1255 = vrot.lane.b32.xlu1 %v367_v18, %s5110_s30  ;;  %1253 = vrot.lane.b32.xlu0 %v366_v29, %s5110_s30  ;;  %v12056_v29 = vld [vmem:[#allocation16_spill] sm:$0xff] }
 0x2df   : > { %v6720_v19 = vpop.permute.xlu1 %1051  ;;  %v6722_v22 = vpop.permute.xlu0 %1049 }
 0x2e0   : > { %12050 = vst [vmem:[#allocation12_spill] sm:$0xff] %v6720_v19  ;;  %12051 = vst [vmem:[#allocation13_spill] sm:$0xff] %v6722_v22  ;;  %v389_v22 = vsel %vm11619_vm11, %v12057_v31, %v12056_v29 }
 0x2e1   : > { %1259 = vrot.lane.b32.xlu1 %v369_v20, %s5110_s30  ;;  %1257 = vrot.lane.b32.xlu0 %v368_v17, %s5110_s30  ;;  %v12060_v20 = vld [vmem:[#allocation18_spill] sm:$0xff] }
 0x2e2   : > { %v391_v17 = vsel %vm11619_vm11, %v12061_v46, %v12060_v20 }
 0x2e3   : > { %v6732_v21 = vpop.permute.xlu1 %1055  ;;  %v6734_v18 = vpop.permute.xlu0 %1053 }
 0x2e4   : > { %12054 = vst [vmem:[#allocation14_spill] sm:$0xff] %v6732_v21  ;;  %12055 = vst [vmem:[#allocation15_spill] sm:$0xff] %v6734_v18  ;;  %v390_v18 = vsel %vm11619_vm11, %v12056_v29, %v12061_v46 }
 0x2e5   : > { %1263 = vrot.lane.b32.xlu1 %v389_v22, %s5110_s30  ;;  %1261 = vrot.lane.b32.xlu0 %v12052_v51, %s5110_s30  ;;  %v12064_v51 = vld [vmem:[#allocation20_spill] sm:$0xff] }
 0x2e7   : > { %v6742_v19 = vpop.permute.xlu1 %1059  ;;  %v6744_v13 = vpop.permute.xlu0 %1057 }
 0x2e8   : > { %12058 = vst [vmem:[#allocation16_spill] sm:$0xff] %v6742_v19  ;;  %12059 = vst [vmem:[#allocation17_spill] sm:$0xff] %v6744_v13  ;;  %v12065_v19 = vld [vmem:[#allocation21_spill] sm:$0xff] }
 0x2e9   : > { %1267 = vrot.lane.b32.xlu1 %v391_v17, %s5110_s30  ;;  %1265 = vrot.lane.b32.xlu0 %v390_v18, %s5110_s30  ;;  %v393_v13 = vsel %vm11619_vm11, %v12065_v19, %v12064_v51  ;;  %v392_v21 = vsel %vm11619_vm11, %v12060_v20, %v12065_v19  ;;  %v12068_v18 = vld [vmem:[#allocation22_spill] sm:$0xff]  ;;  %v12069_v17 = vld [vmem:[#allocation23_spill] sm:$0xff] }
 0x2eb   : > { %v6754_v22 = vpop.permute.xlu1 %1063  ;;  %v6756_v31 = vpop.permute.xlu0 %1061 }
 0x2ec   : > { %12062 = vst [vmem:[#allocation18_spill] sm:$0xff] %v6754_v22  ;;  %12063 = vst [vmem:[#allocation19_spill] sm:$0xff] %v6756_v31  ;;  %v395_v31 = vsel %vm11619_vm11, %v12069_v17, %v12068_v18  ;;  %v394_v22 = vsel %vm11619_vm11, %v12064_v51, %v12069_v17 }
 0x2ed   : > { %1271 = vrot.lane.b32.xlu1 %v393_v13, %s5110_s30  ;;  %1269 = vrot.lane.b32.xlu0 %v392_v21, %s5110_s30  ;;  %v12072_v21 = vld [vmem:[#allocation25_spill] sm:$0xff] }
 0x2ee   : > { %v396_v20 = vsel %vm11619_vm11, %v12068_v18, %v12072_v21  ;;  %vm11683_vm11 = vcmask 211968  }
 0x2ef   : > { %v6766_v29 = vpop.permute.xlu1 %1067  ;;  %v6768_v46 = vpop.permute.xlu0 %1065 }
 0x2f0   : > { %12066 = vst [vmem:[#allocation20_spill] sm:$0xff] %v6766_v29  ;;  %12067 = vst [vmem:[#allocation21_spill] sm:$0xff] %v6768_v46 }
 0x2f1   : > { %1275 = vrot.lane.b32.xlu1 %v395_v31, %s5110_s30  ;;  %1273 = vrot.lane.b32.xlu0 %v394_v22, %s5110_s30  ;;  %v12075_v31 = vld [vmem:[#allocation26_spill] sm:$0xff]  ;;  %v12076_v22 = vld [vmem:[#allocation27_spill] sm:$0xff] }
 0x2f2   : > { %v417_v17 = vsel %vm11624_vm12, %v12076_v22, %v12075_v31 }
 0x2f3   : > { %v6778_v19 = vpop.permute.xlu1 %1071  ;;  %v6780_v13 = vpop.permute.xlu0 %1069 }
 0x2f4   : > { %12070 = vst [vmem:[#allocation22_spill] sm:$0xff] %v6778_v19  ;;  %12071 = vst [vmem:[#allocation23_spill] sm:$0xff] %v6780_v13  ;;  %v12077_v13 = vld [vmem:[#allocation24_spill] sm:$0xff] }
 0x2f5   : > { %1279 = vrot.lane.b32.xlu1 %v12072_v21, %s5110_s30  ;;  %1277 = vrot.lane.b32.xlu0 %v396_v20, %s5110_s30  ;;  %v416_v19 = vsel %vm11624_vm12, %v12077_v13, %v12076_v22  ;;  %v12080_v20 = vld [vmem:[#allocation28_spill] sm:$0xff] }
 0x2f7   : > { %v6788_v46 = vpop.permute.xlu1 %1075  ;;  %v6790_v51 = vpop.permute.xlu0 %1073 }
 0x2f8   : > { %12073 = vst [vmem:[#allocation25_spill] sm:$0xff] %v6788_v46  ;;  %12074 = vst [vmem:[#allocation147_spill] sm:$0xff] %v6790_v51  ;;  %v12081_v46 = vld [vmem:[#allocation29_spill] sm:$0xff] }
 0x2f9   : > { %1283 = vrot.lane.b32.xlu1 %v417_v17, %s5110_s30  ;;  %1281 = vrot.lane.b32.xlu0 %v416_v19, %s5110_s30  ;;  %v419_v51 = vsel %vm11624_vm12, %v12081_v46, %v12080_v20  ;;  %v418_v29 = vsel %vm11624_vm12, %v12075_v31, %v12081_v46  ;;  %v12084_v19 = vld [vmem:[#allocation30_spill] sm:$0xff]  ;;  %v12085_v17 = vld [vmem:[#allocation31_spill] sm:$0xff]  ;;  %v12089_v31 = vld [vmem:[#allocation33_spill] sm:$0xff] }
 0x2fb   : > { %v6800_v18 = vpop.permute.xlu1 %1079  ;;  %v6802_v21 = vpop.permute.xlu0 %1077 }
 0x2fc   : > { %12078 = vst [vmem:[#allocation26_spill] sm:$0xff] %v6800_v18  ;;  %12079 = vst [vmem:[#allocation27_spill] sm:$0xff] %v6802_v21  ;;  %v421_v18 = vsel %vm11624_vm12, %v12085_v17, %v12084_v19  ;;  %v420_v21 = vsel %vm11624_vm12, %v12080_v20, %v12085_v17  ;;  %v12092_v20 = vld [vmem:[#allocation34_spill] sm:$0xff]  ;;  %v12093_v17 = vld [vmem:[#allocation35_spill] sm:$0xff] }
 0x2fd   : > { %1287 = vrot.lane.b32.xlu1 %v419_v51, %s5110_s30  ;;  %1285 = vrot.lane.b32.xlu0 %v418_v29, %s5110_s30  ;;  %v12088_v29 = vld [vmem:[#allocation32_spill] sm:$0xff] }
 0x2ff   : > { %v6812_v13 = vpop.permute.xlu1 %1083  ;;  %v6814_v22 = vpop.permute.xlu0 %1081 }
 0x300   : > { %12082 = vst [vmem:[#allocation24_spill] sm:$0xff] %v6812_v13  ;;  %12083 = vst [vmem:[#allocation28_spill] sm:$0xff] %v6814_v22  ;;  %v423_v22 = vsel %vm11624_vm12, %v12089_v31, %v12088_v29  ;;  %v422_v13 = vsel %vm11624_vm12, %v12084_v19, %v12089_v31  ;;  %v12097_v31 = vld [vmem:[#allocation37_spill] sm:$0xff]  ;;  %vm11686_vm12 = vcmask 146432  }
 0x301   : > { %1291 = vrot.lane.b32.xlu1 %v421_v18, %s5110_s30  ;;  %1289 = vrot.lane.b32.xlu0 %v420_v21, %s5110_s30 }
 0x303   : > { %v6824_v46 = vpop.permute.xlu1 %1087  ;;  %v6826_v51 = vpop.permute.xlu0 %1085 }
 0x304   : > { %12086 = vst [vmem:[#allocation29_spill] sm:$0xff] %v6824_v46  ;;  %12087 = vst [vmem:[#allocation30_spill] sm:$0xff] %v6826_v51  ;;  %v443_v46 = vsel %vm11635_vm13, %v12093_v17, %v12092_v20  ;;  %v12099_v17 = vld [vmem:[#allocation38_spill] sm:$0xff] }
 0x305   : > { %1295 = vrot.lane.b32.xlu1 %v423_v22, %s5110_s30  ;;  %1293 = vrot.lane.b32.xlu0 %v422_v13, %s5110_s30  ;;  %v12096_v22 = vld [vmem:[#allocation36_spill] sm:$0xff] }
 0x306   : > { %v445_v13 = vsel %vm11635_vm13, %v12097_v31, %v12096_v22 }
 0x307   : > { %v6836_v18 = vpop.permute.xlu1 %1091  ;;  %v6838_v21 = vpop.permute.xlu0 %1089 }
 0x308   : > { %12090 = vst [vmem:[#allocation31_spill] sm:$0xff] %v6836_v18  ;;  %12091 = vst [vmem:[#allocation32_spill] sm:$0xff] %v6838_v21  ;;  %v444_v18 = vsel %vm11635_vm13, %v12092_v20, %v12097_v31  ;;  %v12103_v31 = vld [vmem:[#allocation40_spill] sm:$0xff] }
 0x309   : > { %1299 = vrot.lane.b32.xlu1 %v443_v46, %s5110_s30  ;;  %1297 = vrot.lane.b32.xlu0 %v12088_v29, %s5110_s30  ;;  %v12100_v29 = vld [vmem:[#allocation39_spill] sm:$0xff] }
 0x30b   : > { %v6846_v51 = vpop.permute.xlu0 %1093  ;;  %v6848_v19 = vpop.permute.xlu1 %1095 }
 0x30c   : > { %12094 = vst [vmem:[#allocation33_spill] sm:$0xff] %v6846_v51  ;;  %12095 = vst [vmem:[#allocation34_spill] sm:$0xff] %v6848_v19  ;;  %v447_v51 = vsel %vm11635_vm13, %v12100_v29, %v12099_v17  ;;  %v446_v19 = vsel %vm11635_vm13, %v12096_v22, %v12100_v29 }
 0x30d   : > { %1303 = vrot.lane.b32.xlu1 %v445_v13, %s5110_s30  ;;  %1301 = vrot.lane.b32.xlu0 %v444_v18, %s5110_s30  ;;  %v12104_v18 = vld [vmem:[#allocation41_spill] sm:$0xff] }
 0x30e   : > { %v449_v13 = vsel %vm11635_vm13, %v12104_v18, %v12103_v31 }
 0x30f   : > { %v6858_v46 = vpop.permute.xlu0 %1097  ;;  %v6868_v21 = vpop.permute.xlu1 %1099 }
 0x310   : > { %12098 = vst [vmem:[#allocation35_spill] sm:$0xff] %v6858_v46  ;;  %12101 = vst [vmem:[#allocation36_spill] sm:$0xff] %v6868_v21  ;;  %v448_v46 = vsel %vm11635_vm13, %v12099_v17, %v12104_v18  ;;  %v12109_v17 = vld [vmem:[#allocation44_spill] sm:$0xff]  ;;  %v12110_v18 = vld [vmem:[#allocation45_spill] sm:$0xff] }
 0x311   : > { %1307 = vrot.lane.b32.xlu1 %v447_v51, %s5110_s30  ;;  %1305 = vrot.lane.b32.xlu0 %v446_v19, %s5110_s30  ;;  %v12107_v19 = vld [vmem:[#allocation43_spill] sm:$0xff] }
 0x312   : > { %v450_v29 = vsel %vm11635_vm13, %v12103_v31, %v12107_v19  ;;  %vm656_vm13 = vcmask 138240  }
 0x313   : > { %v6870_v20 = vpop.permute.xlu0 %1101  ;;  %v6882_v51 = vpop.permute.xlu1 %1103 }
 0x314   : > { %12102 = vst [vmem:[#allocation37_spill] sm:$0xff] %v6870_v20  ;;  %12106 = vst [vmem:[#allocation39_spill] sm:$0xff] %v6882_v51  ;;  %v12115_v51 = vld [vmem:[#allocation47_spill] sm:$0xff] }
 0x315   : > { %1311 = vrot.lane.b32.xlu1 %v449_v13, %s5110_s30  ;;  %1309 = vrot.lane.b32.xlu0 %v448_v46, %s5110_s30  ;;  %v471_v46 = vsel %vm11642_vm14, %v12110_v18, %v12109_v17  ;;  %v12111_v13 = vld [vmem:[#allocation42_spill] sm:$0xff]  ;;  %v472_v21 = vsel %vm11642_vm14, %v12109_v17, %v12115_v51  ;;  %v12123_v17 = vld [vmem:[#allocation51_spill] sm:$0xff] }
 0x317   : > { %v6880_v22 = vpop.permute.xlu0 %1105  ;;  %v6900_v31 = vpop.permute.xlu1 %1107 }
 0x318   : > { %12105 = vst [vmem:[#allocation38_spill] sm:$0xff] %v6880_v22  ;;  %v470_v22 = vsel %vm11642_vm14, %v12111_v13, %v12110_v18  ;;  %12112 = vst [vmem:[#allocation41_spill] sm:$0xff] %v6900_v31  ;;  %v12119_v13 = vld [vmem:[#allocation49_spill] sm:$0xff] }
 0x319   : > { %1315 = vrot.lane.b32.xlu1 %v12107_v19, %s5110_s30  ;;  %1313 = vrot.lane.b32.xlu0 %v450_v29, %s5110_s30  ;;  %v12114_v29 = vld [vmem:[#allocation46_spill] sm:$0xff] }
 0x31a   : > { %v474_v31 = vsel %vm11642_vm14, %v12114_v29, %v12119_v13 }
 0x31b   : > { %v6890_v20 = vpop.permute.xlu0 %1109 }
 0x31c   : > { %12108 = vst [vmem:[#allocation40_spill] sm:$0xff] %v6890_v20  ;;  %v473_v20 = vsel %vm11642_vm14, %v12115_v51, %v12114_v29  ;;  %v12126_v29 = vld [vmem:[#allocation53_spill] sm:$0xff] }
 0x31d   : > { %1319 = vrot.lane.b32.xlu1 %v471_v46, %s5110_s30  ;;  %1317 = vrot.lane.b32.xlu0 %v470_v22, %s5110_s30  ;;  %v6914_v46 = vpop.permute.xlu1 %1111  ;;  %v12118_v22 = vld [vmem:[#allocation48_spill] sm:$0xff] }
 0x31e   : > { %12117 = vst [vmem:[#allocation45_spill] sm:$0xff] %v6914_v46 }
 0x31f   : > { %v6902_v19 = vpop.permute.xlu0 %1113 }
 0x320   : > { %12113 = vst [vmem:[#allocation43_spill] sm:$0xff] %v6902_v19  ;;  %v475_v19 = vsel %vm11642_vm14, %v12119_v13, %v12118_v22 }
 0x321   : > { %1323 = vrot.lane.b32.xlu1 %v473_v20, %s5110_s30  ;;  %1321 = vrot.lane.b32.xlu0 %v472_v21, %s5110_s30  ;;  %v12122_v21 = vld [vmem:[#allocation50_spill] sm:$0xff] }
 0x322   : > { %v477_v46 = vsel %vm11642_vm14, %v12123_v17, %v12122_v21 }
 0x323   : > { %v6912_v18 = vpop.permute.xlu0 %1209 }
 0x324   : > { %12116 = vst [vmem:[#allocation44_spill] sm:$0xff] %v6912_v18  ;;  %v476_v18 = vsel %vm11642_vm14, %v12118_v22, %v12123_v17  ;;  %v12131_v17 = vld [vmem:[#allocation55_spill] sm:$0xff]  ;;  %vm683_vm14 = vcmask 130048  }
 0x325   : > { %1327 = vrot.lane.b32.xlu1 %v475_v19, %s5110_s30  ;;  %1325 = vrot.lane.b32.xlu0 %v474_v31, %s5110_s30  ;;  %v12125_v31 = vld [vmem:[#allocation52_spill] sm:$0xff] }
 0x326   : > { %v497_v13 = vsel %vm11652_vm15, %v12126_v29, %v12125_v31 }
 0x327   : > { %v6924_v51 = vpop.permute.xlu0 %1213 }
 0x328   : > { %12120 = vst [vmem:[#allocation42_spill] sm:$0xff] %v6924_v51  ;;  %v6926_v20 = vpop.permute.xlu1 %1206 }
 0x329   : > { %12121 = vst [vmem:[#allocation46_spill] sm:$0xff] %v6926_v20  ;;  %1331 = vrot.lane.b32.xlu1 %v477_v46, %s5110_s30  ;;  %1329 = vrot.lane.b32.xlu0 %v476_v18, %s5110_s30  ;;  %v12130_v46 = vld [vmem:[#allocation54_spill] sm:$0xff] }
 0x32a   : > { %v499_v18 = vsel %vm11652_vm15, %v12131_v17, %v12130_v46 }
 0x32b   : > { %v6936_v19 = vpop.permute.xlu0 %1217 }
 0x32c   : > { %12124 = vst [vmem:[#allocation47_spill] sm:$0xff] %v6936_v19  ;;  %v6941_v20 = vpop.permute.xlu1 %1211  ;;  %v498_v19 = vsel %vm11652_vm15, %v12125_v31, %v12131_v17 }
 0x32d   : > { %12127 = vst [vmem:[#allocation48_spill] sm:$0xff] %v6941_v20  ;;  %1335 = vrot.lane.b32.xlu1 %v497_v13, %s5110_s30  ;;  %1333 = vrot.lane.b32.xlu0 %v12122_v21, %s5110_s30  ;;  %v12134_v21 = vld [vmem:[#allocation56_spill] sm:$0xff] }
 0x32f   : > { %v6946_v51 = vpop.permute.xlu0 %1221 }
 0x330   : > { %12128 = vst [vmem:[#allocation49_spill] sm:$0xff] %v6946_v51  ;;  %v6948_v22 = vpop.permute.xlu1 %1215  ;;  %v12135_v51 = vld [vmem:[#allocation57_spill] sm:$0xff] }
 0x331   : > { %12129 = vst [vmem:[#allocation50_spill] sm:$0xff] %v6948_v22  ;;  %1339 = vrot.lane.b32.xlu1 %v499_v18, %s5110_s30  ;;  %1337 = vrot.lane.b32.xlu0 %v498_v19, %s5110_s30  ;;  %v501_v22 = vsel %vm11652_vm15, %v12135_v51, %v12134_v21  ;;  %v500_v20 = vsel %vm11652_vm15, %v12130_v46, %v12135_v51  ;;  %v12138_v19 = vld [vmem:[#allocation58_spill] sm:$0xff]  ;;  %v12139_v18 = vld [vmem:[#allocation59_spill] sm:$0xff] }
 0x333   : > { %v6958_v29 = vpop.permute.xlu0 %1225 }
 0x334   : > { %12132 = vst [vmem:[#allocation51_spill] sm:$0xff] %v6958_v29  ;;  %v6960_v13 = vpop.permute.xlu1 %1219  ;;  %v503_v29 = vsel %vm11652_vm15, %v12139_v18, %v12138_v19 }
 0x335   : > { %12133 = vst [vmem:[#allocation52_spill] sm:$0xff] %v6960_v13  ;;  %1343 = vrot.lane.b32.xlu1 %v501_v22, %s5110_s30  ;;  %1341 = vrot.lane.b32.xlu0 %v500_v20, %s5110_s30  ;;  %v502_v13 = vsel %vm11652_vm15, %v12134_v21, %v12139_v18  ;;  %v12142_v20 = vld [vmem:[#allocation61_spill] sm:$0xff] }
 0x336   : > { %v504_v46 = vsel %vm11652_vm15, %v12138_v19, %v12142_v20  ;;  %vm710_vm15 = vcmask 64512  }
 0x337   : > { %v6970_v31 = vpop.permute.xlu0 %1229 }
 0x338   : > { %12136 = vst [vmem:[#allocation53_spill] sm:$0xff] %v6970_v31  ;;  %v6972_v17 = vpop.permute.xlu1 %1223 }
 0x339   : > { %12137 = vst [vmem:[#allocation54_spill] sm:$0xff] %v6972_v17  ;;  %1347 = vrot.lane.b32.xlu1 %v503_v29, %s5110_s30  ;;  %1345 = vrot.lane.b32.xlu0 %v502_v13, %s5110_s30  ;;  %v12145_v29 = vld [vmem:[#allocation62_spill] sm:$0xff]  ;;  %v12146_v13 = vld [vmem:[#allocation63_spill] sm:$0xff] }
 0x33a   : > { %v525_v18 = vsel %vm11660_vm10, %v12146_v13, %v12145_v29 }
 0x33b   : > { %v6982_v51 = vpop.permute.xlu0 %1233 }
 0x33c   : > { %12140 = vst [vmem:[#allocation55_spill] sm:$0xff] %v6982_v51  ;;  %v6984_v22 = vpop.permute.xlu1 %1227  ;;  %v12147_v51 = vld [vmem:[#allocation60_spill] sm:$0xff] }
 0x33d   : > { %12141 = vst [vmem:[#allocation56_spill] sm:$0xff] %v6984_v22  ;;  %1351 = vrot.lane.b32.xlu1 %v12142_v20, %s5110_s30  ;;  %1349 = vrot.lane.b32.xlu0 %v504_v46, %s5110_s30  ;;  %v524_v22 = vsel %vm11660_vm10, %v12147_v51, %v12146_v13  ;;  %v12150_v46 = vld [vmem:[#allocation64_spill] sm:$0xff] }
 0x33f   : > { %v6992_v17 = vpop.permute.xlu0 %1237 }
 0x340   : > { %12143 = vst [vmem:[#allocation57_spill] sm:$0xff] %v6992_v17  ;;  %v6994_v21 = vpop.permute.xlu1 %1231  ;;  %v12151_v17 = vld [vmem:[#allocation65_spill] sm:$0xff] }
 0x341   : > { %12144 = vst [vmem:[#allocation58_spill] sm:$0xff] %v6994_v21  ;;  %1355 = vrot.lane.b32.xlu1 %v525_v18, %s5110_s30  ;;  %1353 = vrot.lane.b32.xlu0 %v524_v22, %s5110_s30  ;;  %v527_v31 = vsel %vm11660_vm10, %v12151_v17, %v12150_v46  ;;  %v526_v21 = vsel %vm11660_vm10, %v12145_v29, %v12151_v17  ;;  %v12154_v22 = vld [vmem:[#allocation66_spill] sm:$0xff]  ;;  %v12155_v18 = vld [vmem:[#allocation67_spill] sm:$0xff]  ;;  %v12159_v29 = vld [vmem:[#allocation69_spill] sm:$0xff] }
 0x343   : > { %v7004_v19 = vpop.permute.xlu0 %1241 }
 0x344   : > { %12148 = vst [vmem:[#allocation59_spill] sm:$0xff] %v7004_v19  ;;  %v7006_v20 = vpop.permute.xlu1 %1235  ;;  %v529_v19 = vsel %vm11660_vm10, %v12155_v18, %v12154_v22 }
 0x345   : > { %12149 = vst [vmem:[#allocation61_spill] sm:$0xff] %v7006_v20  ;;  %1359 = vrot.lane.b32.xlu1 %v527_v31, %s5110_s30  ;;  %1357 = vrot.lane.b32.xlu0 %v526_v21, %s5110_s30  ;;  %v528_v20 = vsel %vm11660_vm10, %v12150_v46, %v12155_v18  ;;  %v12158_v21 = vld [vmem:[#allocation68_spill] sm:$0xff] }
 0x347   : > { %v7016_v51 = vpop.permute.xlu0 %1245 }
 0x348   : > { %12152 = vst [vmem:[#allocation62_spill] sm:$0xff] %v7016_v51  ;;  %v7018_v13 = vpop.permute.xlu1 %1239  ;;  %v530_v51 = vsel %vm11660_vm10, %v12154_v22, %v12159_v29 }
 0x349   : > { %12153 = vst [vmem:[#allocation63_spill] sm:$0xff] %v7018_v13  ;;  %1363 = vrot.lane.b32.xlu1 %v529_v19, %s5110_s30  ;;  %1361 = vrot.lane.b32.xlu0 %v528_v20, %s5110_s30  ;;  %v531_v13 = vsel %vm11660_vm10, %v12159_v29, %v12158_v21  ;;  %v12161_v19 = vld [vmem:[#allocation70_spill] sm:$0xff]  ;;  %v12173_v29 = vld [vmem:[#allocation71_spill] sm:$0xff]  ;;  %vm1115_vm10 = vcmask 56320  }
 0x34a   : > { %v551_v20 = vsel %vm550_vm8, %v12161_v19, %v5714_v59 }
 0x34b   : > { %v7028_v17 = vpop.permute.xlu0 %1249 }
 0x34c   : > { %12156 = vst [vmem:[#allocation60_spill] sm:$0xff] %v7028_v17  ;;  %v7030_v31 = vpop.permute.xlu1 %1243  ;;  %v12235_v17 = vld [vmem:[#allocation101_spill] sm:$0xff] }
 0x34d   : > { %12157 = vst [vmem:[#allocation64_spill] sm:$0xff] %v7030_v31  ;;  %1367 = vrot.lane.b32.xlu1 %v531_v13, %s5110_s30  ;;  %1365 = vrot.lane.b32.xlu0 %v530_v51, %s5110_s30 }
 0x34f   : > { %v7040_v46 = vpop.permute.xlu0 %1253 }
 0x350   : > { %12160 = vst [vmem:[#allocation65_spill] sm:$0xff] %v7040_v46  ;;  %v7045_v18 = vpop.permute.xlu1 %1247 }
 0x351   : > { %12162 = vst [vmem:[#allocation66_spill] sm:$0xff] %v7045_v18  ;;  %1371 = vrot.lane.b32.xlu1 %v551_v20, %s5110_s30  ;;  %1369 = vrot.lane.b32.xlu0 %v12158_v21, %s5110_s30  ;;  %v12182_v20 = vld [vmem:[#allocation73_spill] sm:$0xff] }
 0x353   : > { %v7050_v31 = vpop.permute.xlu0 %1257 }
 0x354   : > { %12163 = vst [vmem:[#allocation67_spill] sm:$0xff] %v7050_v31  ;;  %v7052_v22 = vpop.permute.xlu1 %1251 }
 0x355   : > { %12164 = vst [vmem:[#allocation68_spill] sm:$0xff] %v7052_v22  ;;  %1375 = vrot.lane.b32.xlu1 %v6480_v47, %s5110_s30  ;;  %1373 = vrot.lane.b32.xlu0 %v6462_v11, %s5110_s30 }
 0x357   : > { %v7058_v51 = vpop.permute.xlu0 %1261 }
 0x358   : > { %12165 = vst [vmem:[#allocation69_spill] sm:$0xff] %v7058_v51  ;;  %v7060_v59 = vpop.permute.xlu1 %1255 }
 0x359   : > { %12166 = vst [vmem:[#allocation70_spill] sm:$0xff] %v7060_v59  ;;  %1379 = vrot.lane.b32.xlu1 %v6498_v62, %s5110_s30  ;;  %1377 = vrot.lane.b32.xlu0 %v6475_v5, %s5110_s30 }
 0x35b   : > { %v7066_v13 = vpop.permute.xlu0 %1265 }
 0x35c   : > { %12167 = vst [vmem:[#allocation148_spill] sm:$0xff] %v7066_v13  ;;  %v7068_v21 = vpop.permute.xlu1 %1259 }
 0x35d   : > { %12168 = vst [vmem:[#allocation149_spill] sm:$0xff] %v7068_v21  ;;  %1383 = vrot.lane.b32.xlu1 %v6516_v58, %s5110_s30  ;;  %1381 = vrot.lane.b32.xlu0 %v6493_v42, %s5110_s30  ;;  %v578_v58 = vsel %vm577_vm9, %v12173_v29, %v5756_v54  ;;  %v12187_v21 = vld [vmem:[#allocation75_spill] sm:$0xff] }
 0x35f   : > { %v7074_v11 = vpop.permute.xlu0 %1269 }
 0x360   : > { %12169 = vst [vmem:[#allocation150_spill] sm:$0xff] %v7074_v11  ;;  %v7076_v47 = vpop.permute.xlu1 %1263 }
 0x361   : > { %12170 = vst [vmem:[#allocation151_spill] sm:$0xff] %v7076_v47  ;;  %1387 = vrot.lane.b32.xlu1 %v5748_v56, %s5110_s30  ;;  %1385 = vrot.lane.b32.xlu0 %v6511_v25, %s5110_s30 }
 0x363   : > { %v7082_v5 = vpop.permute.xlu0 %1273 }
 0x364   : > { %12171 = vst [vmem:[#allocation152_spill] sm:$0xff] %v7082_v5  ;;  %v7084_v62 = vpop.permute.xlu1 %1267  ;;  %v12203_v5 = vld [vmem:[#allocation80_spill] sm:$0xff] }
 0x365   : > { %12172 = vst [vmem:[#allocation153_spill] sm:$0xff] %v7084_v62  ;;  %1391 = vrot.lane.b32.xlu1 %v6539_v63, %s5110_s30  ;;  %1389 = vrot.lane.b32.xlu0 %v578_v58, %s5110_s30 }
 0x367   : > { %v7092_v42 = vpop.permute.xlu0 %1277 }
 0x368   : > { %12174 = vst [vmem:[#allocation71_spill] sm:$0xff] %v7092_v42  ;;  %v7094_v19 = vpop.permute.xlu1 %1271  ;;  %v12191_v42 = vld [vmem:[#allocation77_spill] sm:$0xff] }
 0x369   : > { %12175 = vst [vmem:[#allocation154_spill] sm:$0xff] %v7094_v19  ;;  %1395 = vrot.lane.b32.xlu1 %v6557_v60, %s5110_s30  ;;  %1393 = vrot.lane.b32.xlu0 %v6544_v1, %s5110_s30  ;;  %v12181_v60 = vld [vmem:[#allocation72_spill] sm:$0xff]  ;;  %v12222_v19 = vld [vmem:[#allocation95_spill] sm:$0xff] }
 0x36a   : > { %v606_v51 = vsel %vm11683_vm11, %v12181_v60, %v12187_v21 }
 0x36b   : > { %v7100_v56 = vpop.permute.xlu0 %1281 }
 0x36c   : > { %12176 = vst [vmem:[#allocation155_spill] sm:$0xff] %v7100_v56  ;;  %v7102_v25 = vpop.permute.xlu1 %1275  ;;  %v12250_v56 = vld [vmem:[#allocation110_spill] sm:$0xff] }
 0x36d   : > { %12177 = vst [vmem:[#allocation156_spill] sm:$0xff] %v7102_v25  ;;  %1399 = vrot.lane.b32.xlu1 %v6575_v53, %s5110_s30  ;;  %1397 = vrot.lane.b32.xlu0 %v6562_v55, %s5110_s30  ;;  %v605_v53 = vsel %vm11683_vm11, %v12182_v20, %v12181_v60 }
 0x36f   : > { %v7108_v54 = vpop.permute.xlu0 %1285 }
 0x370   : > { %12178 = vst [vmem:[#allocation157_spill] sm:$0xff] %v7108_v54  ;;  %v7110_v63 = vpop.permute.xlu1 %1279  ;;  %v12299_v54 = vld [vmem:[#allocation135_spill] sm:$0xff] }
 0x371   : > { %12179 = vst [vmem:[#allocation158_spill] sm:$0xff] %v7110_v63  ;;  %1403 = vrot.lane.b32.xlu1 %v6593_v50, %s5110_s30  ;;  %1401 = vrot.lane.b32.xlu0 %v6580_v52, %s5110_s30  ;;  %v12186_v50 = vld [vmem:[#allocation74_spill] sm:$0xff] }
 0x372   : > { %v607_v52 = vsel %vm11683_vm11, %v12187_v21, %v12186_v50  ;;  %v608_v59 = vsel %vm11683_vm11, %v12186_v50, %v12191_v42 }
 0x373   : > { %v7116_v1 = vpop.permute.xlu0 %1289 }
 0x374   : > { %12180 = vst [vmem:[#allocation159_spill] sm:$0xff] %v7116_v1  ;;  %v7121_v29 = vpop.permute.xlu1 %1283 }
 0x375   : > { %12183 = vst [vmem:[#allocation72_spill] sm:$0xff] %v7121_v29  ;;  %1407 = vrot.lane.b32.xlu1 %v605_v53, %s5110_s30  ;;  %1405 = vrot.lane.b32.xlu0 %v5778_v49, %s5110_s30  ;;  %v12190_v49 = vld [vmem:[#allocation76_spill] sm:$0xff] }
 0x376   : > { %v609_v63 = vsel %vm11683_vm11, %v12191_v42, %v12190_v49 }
 0x377   : > { %v7126_v55 = vpop.permute.xlu0 %1293 }
 0x378   : > { %12184 = vst [vmem:[#allocation73_spill] sm:$0xff] %v7126_v55  ;;  %v7128_v58 = vpop.permute.xlu1 %1287 }
 0x379   : > { %12185 = vst [vmem:[#allocation160_spill] sm:$0xff] %v7128_v58  ;;  %1411 = vrot.lane.b32.xlu1 %v607_v52, %s5110_s30  ;;  %1409 = vrot.lane.b32.xlu0 %v606_v51, %s5110_s30  ;;  %v12194_v51 = vld [vmem:[#allocation78_spill] sm:$0xff]  ;;  %v12195_v52 = vld [vmem:[#allocation79_spill] sm:$0xff] }
 0x37a   : > { %v610_v31 = vsel %vm11683_vm11, %v12190_v49, %v12195_v52 }
 0x37b   : > { %v7138_v20 = vpop.permute.xlu0 %1297 }
 0x37c   : > { %12188 = vst [vmem:[#allocation74_spill] sm:$0xff] %v7138_v20  ;;  %v7140_v53 = vpop.permute.xlu1 %1291  ;;  %v611_v20 = vsel %vm11683_vm11, %v12195_v52, %v12194_v51 }
 0x37d   : > { %12189 = vst [vmem:[#allocation75_spill] sm:$0xff] %v7140_v53  ;;  %1415 = vrot.lane.b32.xlu1 %v609_v63, %s5110_s30  ;;  %1413 = vrot.lane.b32.xlu0 %v608_v59, %s5110_s30  ;;  %v12198_v59 = vld [vmem:[#allocation81_spill] sm:$0xff] }
 0x37e   : > { %v612_v50 = vsel %vm11683_vm11, %v12194_v51, %v12198_v59  ;;  %v12207_v53 = vld [vmem:[#allocation85_spill] sm:$0xff]  ;;  %vm1695_vm11 = vcmask 908288  }
 0x37f   : > { %v7150_v21 = vpop.permute.xlu0 %1301 }
 0x380   : > { %12192 = vst [vmem:[#allocation76_spill] sm:$0xff] %v7150_v21  ;;  %v7152_v60 = vpop.permute.xlu1 %1295 }
 0x381   : > { %12193 = vst [vmem:[#allocation77_spill] sm:$0xff] %v7152_v60  ;;  %1419 = vrot.lane.b32.xlu1 %v611_v20, %s5110_s30  ;;  %1417 = vrot.lane.b32.xlu0 %v610_v31, %s5110_s30  ;;  %v12201_v20 = vld [vmem:[#allocation82_spill] sm:$0xff]  ;;  %v12202_v31 = vld [vmem:[#allocation83_spill] sm:$0xff] }
 0x382   : > { %v633_v52 = vsel %vm11686_vm12, %v12202_v31, %v12201_v20  ;;  %v632_v25 = vsel %vm11686_vm12, %v12203_v5, %v12202_v31 }
 0x383   : > { %v7162_v42 = vpop.permute.xlu0 %1305 }
 0x384   : > { %12196 = vst [vmem:[#allocation78_spill] sm:$0xff] %v7162_v42  ;;  %v7164_v63 = vpop.permute.xlu1 %1299 }
 0x385   : > { %12197 = vst [vmem:[#allocation79_spill] sm:$0xff] %v7164_v63  ;;  %1423 = vrot.lane.b32.xlu1 %v12198_v59, %s5110_s30  ;;  %1421 = vrot.lane.b32.xlu0 %v612_v50, %s5110_s30  ;;  %v12206_v50 = vld [vmem:[#allocation84_spill] sm:$0xff] }
 0x386   : > { %v635_v55 = vsel %vm11686_vm12, %v12207_v53, %v12206_v50 }
 0x387   : > { %v7172_v60 = vpop.permute.xlu0 %1309 }
 0x388   : > { %12199 = vst [vmem:[#allocation81_spill] sm:$0xff] %v7172_v60  ;;  %v7174_v49 = vpop.permute.xlu1 %1303  ;;  %v634_v60 = vsel %vm11686_vm12, %v12201_v20, %v12207_v53  ;;  %v12213_v20 = vld [vmem:[#allocation89_spill] sm:$0xff] }
 0x389   : > { %12200 = vst [vmem:[#allocation161_spill] sm:$0xff] %v7174_v49  ;;  %1427 = vrot.lane.b32.xlu1 %v633_v52, %s5110_s30  ;;  %1425 = vrot.lane.b32.xlu0 %v632_v25, %s5110_s30  ;;  %v12209_v25 = vld [vmem:[#allocation86_spill] sm:$0xff]  ;;  %v12210_v52 = vld [vmem:[#allocation87_spill] sm:$0xff] }
 0x38a   : > { %v636_v22 = vsel %vm11686_vm12, %v12206_v50, %v12210_v52  ;;  %v638_v46 = vsel %vm11686_vm12, %v12209_v25, %v12213_v20 }
 0x38b   : > { %v7184_v51 = vpop.permute.xlu0 %1313 }
 0x38c   : > { %12204 = vst [vmem:[#allocation82_spill] sm:$0xff] %v7184_v51  ;;  %v7186_v59 = vpop.permute.xlu1 %1307  ;;  %v637_v51 = vsel %vm11686_vm12, %v12210_v52, %v12209_v25  ;;  %v12218_v25 = vld [vmem:[#allocation93_spill] sm:$0xff] }
 0x38d   : > { %12205 = vst [vmem:[#allocation83_spill] sm:$0xff] %v7186_v59  ;;  %1431 = vrot.lane.b32.xlu1 %v635_v55, %s5110_s30  ;;  %1429 = vrot.lane.b32.xlu0 %v634_v60, %s5110_s30  ;;  %v12212_v60 = vld [vmem:[#allocation88_spill] sm:$0xff] }
 0x38f   : > { %v7196_v5 = vpop.permute.xlu0 %1317 }
 0x390   : > { %v7198_v31 = vpop.permute.xlu1 %1311 }
 0x391   : > { %12208 = vst [vmem:[#allocation80_spill] sm:$0xff] %v7198_v31  ;;  %1435 = vrot.lane.b32.xlu1 %v637_v51, %s5110_s30  ;;  %1433 = vrot.lane.b32.xlu0 %v636_v22, %s5110_s30  ;;  %v639_v31 = vsel %vm11686_vm12, %v12213_v20, %v12212_v60  ;;  %v12215_v22 = vld [vmem:[#allocation91_spill] sm:$0xff]  ;;  %v12219_v20 = vld [vmem:[#allocation90_spill] sm:$0xff]  ;;  %vm2128_vm12 = vcmask 719872  }
 0x393   : > { %v7208_v53 = vpop.permute.xlu0 %1321 }
 0x394   : > { %v7210_v55 = vpop.permute.xlu1 %1315 }
 0x395   : > { %12211 = vst [vmem:[#allocation84_spill] sm:$0xff] %v7210_v55  ;;  %1439 = vrot.lane.b32.xlu1 %v639_v31, %s5110_s30  ;;  %1437 = vrot.lane.b32.xlu0 %v638_v46, %s5110_s30  ;;  %v658_v31 = vsel %vm656_vm13, %v12219_v20, %v12218_v25  ;;  %v657_v46 = vsel %vm656_vm13, %v12215_v22, %v12219_v20 }
 0x397   : > { %v7220_v50 = vpop.permute.xlu0 %1325 }
 0x398   : > { %12214 = vst [vmem:[#allocation85_spill] sm:$0xff] %v7220_v50  ;;  %v7222_v51 = vpop.permute.xlu1 %1319 }
 0x399   : > { %1443 = vrot.lane.b32.xlu1 %v12215_v22, %s5110_s30  ;;  %1441 = vrot.lane.b32.xlu0 %v12212_v60, %s5110_s30 }
 0x39b   : > { %v7228_v52 = vpop.permute.xlu0 %1329 }
 0x39c   : > { %12216 = vst [vmem:[#allocation86_spill] sm:$0xff] %v7228_v52  ;;  %v7230_v55 = vpop.permute.xlu1 %1323  ;;  %v12223_v52 = vld [vmem:[#allocation92_spill] sm:$0xff] }
 0x39d   : > { %12217 = vst [vmem:[#allocation87_spill] sm:$0xff] %v7230_v55  ;;  %1447 = vrot.lane.b32.xlu1 %v658_v31, %s5110_s30  ;;  %1445 = vrot.lane.b32.xlu0 %v657_v46, %s5110_s30  ;;  %v660_v58 = vsel %vm656_vm13, %v12223_v52, %v12222_v19  ;;  %v659_v1 = vsel %vm656_vm13, %v12218_v25, %v12223_v52  ;;  %v12225_v31 = vld [vmem:[#allocation97_spill] sm:$0xff]  ;;  %v12226_v46 = vld [vmem:[#allocation94_spill] sm:$0xff] }
 0x39f   : > { %v7240_v11 = vpop.permute.xlu0 %1333 }
 0x3a0   : > { %12220 = vst [vmem:[#allocation88_spill] sm:$0xff] %v7240_v11  ;;  %v7242_v60 = vpop.permute.xlu1 %1327  ;;  %v662_v11 = vsel %vm656_vm13, %v12226_v46, %v12225_v31 }
 0x3a1   : > { %12221 = vst [vmem:[#allocation89_spill] sm:$0xff] %v7242_v60  ;;  %1451 = vrot.lane.b32.xlu1 %v660_v58, %s5110_s30  ;;  %1449 = vrot.lane.b32.xlu0 %v659_v1, %s5110_s30  ;;  %v661_v60 = vsel %vm656_vm13, %v12222_v19, %v12226_v46  ;;  %v12228_v1 = vld [vmem:[#allocation96_spill] sm:$0xff] }
 0x3a2   : > { %v663_v25 = vsel %vm656_vm13, %v12225_v31, %v12228_v1 }
 0x3a3   : > { %v7252_v22 = vpop.permute.xlu0 %1337 }
 0x3a4   : > { %v7254_v20 = vpop.permute.xlu1 %1331 }
 0x3a5   : > { %12224 = vst [vmem:[#allocation91_spill] sm:$0xff] %v7254_v20  ;;  %1455 = vrot.lane.b32.xlu1 %v662_v11, %s5110_s30  ;;  %1453 = vrot.lane.b32.xlu0 %v661_v60, %s5110_s30  ;;  %v12230_v11 = vld [vmem:[#allocation98_spill] sm:$0xff]  ;;  %v12231_v60 = vld [vmem:[#allocation99_spill] sm:$0xff] }
 0x3a6   : > { %v684_v46 = vsel %vm683_vm14, %v12231_v60, %v12230_v11 }
 0x3a7   : > { %v7264_v52 = vpop.permute.xlu0 %1341 }
 0x3a8   : > { %12227 = vst [vmem:[#allocation93_spill] sm:$0xff] %v7264_v52  ;;  %v7266_v58 = vpop.permute.xlu1 %1335 }
 0x3a9   : > { %1459 = vrot.lane.b32.xlu1 %v12228_v1, %s5110_s30  ;;  %1457 = vrot.lane.b32.xlu0 %v663_v25, %s5110_s30  ;;  %v12234_v1 = vld [vmem:[#allocation100_spill] sm:$0xff] }
 0x3aa   : > { %v686_v25 = vsel %vm683_vm14, %v12235_v17, %v12234_v1 }
 0x3ab   : > { %v7274_v20 = vpop.permute.xlu0 %1345 }
 0x3ac   : > { %12229 = vst [vmem:[#allocation90_spill] sm:$0xff] %v7274_v20  ;;  %v7276_v19 = vpop.permute.xlu1 %1339  ;;  %v685_v20 = vsel %vm683_vm14, %v12230_v11, %v12235_v17 }
 0x3ad   : > { %1463 = vrot.lane.b32.xlu1 %v684_v46, %s5110_s30  ;;  %1461 = vrot.lane.b32.xlu0 %v12231_v60, %s5110_s30  ;;  %v12237_v60 = vld [vmem:[#allocation102_spill] sm:$0xff] }
 0x3af   : > { %v7284_v31 = vpop.permute.xlu0 %1349 }
 0x3b0   : > { %12232 = vst [vmem:[#allocation95_spill] sm:$0xff] %v7284_v31  ;;  %v7286_v18 = vpop.permute.xlu1 %1343  ;;  %v12238_v31 = vld [vmem:[#allocation103_spill] sm:$0xff] }
 0x3b1   : > { %12233 = vst [vmem:[#allocation92_spill] sm:$0xff] %v7286_v18  ;;  %1467 = vrot.lane.b32.xlu1 %v686_v25, %s5110_s30  ;;  %1465 = vrot.lane.b32.xlu0 %v685_v20, %s5110_s30  ;;  %v688_v42 = vsel %vm683_vm14, %v12238_v31, %v12237_v60  ;;  %v687_v59 = vsel %vm683_vm14, %v12234_v1, %v12238_v31  ;;  %v12240_v20 = vld [vmem:[#allocation104_spill] sm:$0xff]  ;;  %v12241_v25 = vld [vmem:[#allocation105_spill] sm:$0xff] }
 0x3b2   : > { %v689_v13 = vsel %vm683_vm14, %v12237_v60, %v12241_v25 }
 0x3b3   : > { %v7296_v46 = vpop.permute.xlu0 %1353 }
 0x3b4   : > { %v7298_v47 = vpop.permute.xlu1 %1347 }
 0x3b5   : > { %12236 = vst [vmem:[#allocation97_spill] sm:$0xff] %v7298_v47  ;;  %1471 = vrot.lane.b32.xlu1 %v688_v42, %s5110_s30  ;;  %1469 = vrot.lane.b32.xlu0 %v687_v59, %s5110_s30  ;;  %v690_v47 = vsel %vm683_vm14, %v12241_v25, %v12240_v20  ;;  %v12243_v42 = vld [vmem:[#allocation107_spill] sm:$0xff] }
 0x3b6   : > { %v691_v59 = vsel %vm683_vm14, %v12240_v20, %v12243_v42 }
 0x3b7   : > { %v7308_v17 = vpop.permute.xlu0 %1357 }
 0x3b8   : > { %v7310_v11 = vpop.permute.xlu1 %1351 }
 0x3b9   : > { %12239 = vst [vmem:[#allocation94_spill] sm:$0xff] %v7310_v11  ;;  %1475 = vrot.lane.b32.xlu1 %v690_v47, %s5110_s30  ;;  %1473 = vrot.lane.b32.xlu0 %v689_v13, %s5110_s30  ;;  %v12244_v11 = vld [vmem:[#allocation106_spill] sm:$0xff]  ;;  %v12246_v47 = vld [vmem:[#allocation108_spill] sm:$0xff]  ;;  %v12247_v13 = vld [vmem:[#allocation109_spill] sm:$0xff] }
 0x3ba   : > { %v712_v25 = vsel %vm710_vm15, %v12247_v13, %v12246_v47  ;;  %v711_v20 = vsel %vm710_vm15, %v12244_v11, %v12247_v13 }
 0x3bb   : > { %v7320_v31 = vpop.permute.xlu0 %1361 }
 0x3bc   : > { %12242 = vst [vmem:[#allocation96_spill] sm:$0xff] %v7320_v31  ;;  %v7325_v1 = vpop.permute.xlu1 %1355 }
 0x3bd   : > { %1479 = vrot.lane.b32.xlu1 %v12244_v11, %s5110_s30  ;;  %1477 = vrot.lane.b32.xlu0 %v691_v59, %s5110_s30 }
 0x3bf   : > { %v7330_v62 = vpop.permute.xlu0 %1365 }
 0x3c0   : > { %12245 = vst [vmem:[#allocation98_spill] sm:$0xff] %v7330_v62  ;;  %v7332_v60 = vpop.permute.xlu1 %1359  ;;  %v12251_v62 = vld [vmem:[#allocation111_spill] sm:$0xff] }
 0x3c1   : > { %1483 = vrot.lane.b32.xlu1 %v712_v25, %s5110_s30  ;;  %1481 = vrot.lane.b32.xlu0 %v711_v20, %s5110_s30  ;;  %v714_v55 = vsel %vm710_vm15, %v12251_v62, %v12250_v56  ;;  %v713_v50 = vsel %vm710_vm15, %v12246_v47, %v12251_v62  ;;  %v12253_v25 = vld [vmem:[#allocation112_spill] sm:$0xff]  ;;  %v12254_v20 = vld [vmem:[#allocation113_spill] sm:$0xff]  ;;  %v12256_v47 = vld [vmem:[#allocation115_spill] sm:$0xff] }
 0x3c2   : > { %v717_v29 = vsel %vm710_vm15, %v12253_v25, %v12256_v47 }
 0x3c3   : > { %v7342_v42 = vpop.permute.xlu0 %1369 }
 0x3c4   : > { %12248 = vst [vmem:[#allocation99_spill] sm:$0xff] %v7342_v42  ;;  %v7344_v59 = vpop.permute.xlu1 %1363  ;;  %v716_v42 = vsel %vm710_vm15, %v12254_v20, %v12253_v25 }
 0x3c5   : > { %12249 = vst [vmem:[#allocation100_spill] sm:$0xff] %v7344_v59  ;;  %1487 = vrot.lane.b32.xlu1 %v714_v55, %s5110_s30  ;;  %1485 = vrot.lane.b32.xlu0 %v713_v50, %s5110_s30  ;;  %v715_v59 = vsel %vm710_vm15, %v12250_v56, %v12254_v20  ;;  %v12255_v50 = vld [vmem:[#allocation114_spill] sm:$0xff] }
 0x3c7   : > { %v7354_v11 = vpop.permute.xlu0 %1373 }
 0x3c8   : > { %v7356_v13 = vpop.permute.xlu1 %1367 }
 0x3c9   : > { %12252 = vst [vmem:[#allocation101_spill] sm:$0xff] %v7356_v13  ;;  %1491 = vrot.lane.b32.xlu1 %v716_v42, %s5110_s30  ;;  %1489 = vrot.lane.b32.xlu0 %v715_v59, %s5110_s30  ;;  %v718_v13 = vsel %vm710_vm15, %v12256_v47, %v12255_v50  ;;  %v1116_v59 = vsel %vm1115_vm10, %v6329_v39, %v6327_v45 }
 0x3cb   : > { %v7366_v62 = vpop.permute.xlu0 %1377 }
 0x3cc   : > { %v7368_v55 = vpop.permute.xlu1 %1371 }
 0x3cd   : > { %1495 = vrot.lane.b32.xlu1 %v718_v13, %s5110_s30  ;;  %1493 = vrot.lane.b32.xlu0 %v717_v29, %s5110_s30  ;;  %v1118_v29 = vsel %vm1115_vm10, %v6341_v38, %v6339_v37  ;;  %v1117_v13 = vsel %vm1115_vm10, %v6327_v45, %v6341_v38 }
 0x3cf   : > { %v7378_v56 = vpop.permute.xlu0 %1381 }
 0x3d0   : > { %12257 = vst [vmem:[#allocation102_spill] sm:$0xff] %v7378_v56  ;;  %v7380_v42 = vpop.permute.xlu1 %1375 }
 0x3d1   : > { %1499 = vrot.lane.b32.xlu1 %v1116_v59, %s5110_s30  ;;  %1497 = vrot.lane.b32.xlu0 %v6329_v39, %s5110_s30  ;;  %v1120_v39 = vsel %vm1115_vm10, %v6353_v3, %v6351_v34  ;;  %v1119_v59 = vsel %vm1115_vm10, %v6339_v37, %v6353_v3  ;;  %v1123_v3 = vsel %vm1115_vm10, %v6361_v16, %v6375_v0 }
 0x3d3   : > { %v7388_v20 = vpop.permute.xlu0 %1385 }
 0x3d4   : > { %12258 = vst [vmem:[#allocation103_spill] sm:$0xff] %v7388_v20  ;;  %v7390_v25 = vpop.permute.xlu1 %1379 }
 0x3d5   : > { %12259 = vst [vmem:[#allocation104_spill] sm:$0xff] %v7390_v25  ;;  %1503 = vrot.lane.b32.xlu1 %v1118_v29, %s5110_s30  ;;  %1501 = vrot.lane.b32.xlu0 %v1117_v13, %s5110_s30  ;;  %v1122_v29 = vsel %vm1115_vm10, %v6363_v36, %v6361_v16  ;;  %v1121_v13 = vsel %vm1115_vm10, %v6351_v34, %v6363_v36 }
 0x3d6   : > { %v1125_v36 = vsel %vm1115_vm10, %v6387_v4, %v6385_v23 }
 0x3d7   : > { %v7400_v50 = vpop.permute.xlu0 %1389 }
 0x3d8   : > { %v7402_v47 = vpop.permute.xlu1 %1383 }
 0x3d9   : > { %12260 = vst [vmem:[#allocation105_spill] sm:$0xff] %v7402_v47  ;;  %1507 = vrot.lane.b32.xlu1 %v1120_v39, %s5110_s30  ;;  %1505 = vrot.lane.b32.xlu0 %v1119_v59, %s5110_s30  ;;  %v12285_v47 = vld [vmem:[#allocation125_spill] sm:$0xff] }
 0x3db   : > { %v7412_v45 = vpop.permute.xlu0 %1393 }
 0x3dc   : > { %v7414_v38 = vpop.permute.xlu1 %1387 }
 0x3dd   : > { %12261 = vst [vmem:[#allocation107_spill] sm:$0xff] %v7414_v38  ;;  %1511 = vrot.lane.b32.xlu1 %v1122_v29, %s5110_s30  ;;  %1509 = vrot.lane.b32.xlu0 %v1121_v13, %s5110_s30  ;;  %v1124_v29 = vsel %vm1115_vm10, %v6373_v8, %v6387_v4  ;;  %v1127_v13 = vsel %vm1115_vm10, %v6399_v61, %v6397_v32 }
 0x3df   : > { %v7424_v37 = vpop.permute.xlu0 %1397 }
 0x3e0   : > { %12262 = vst [vmem:[#allocation106_spill] sm:$0xff] %v7424_v37  ;;  %v7429_v39 = vpop.permute.xlu1 %1391 }
 0x3e1   : > { %1515 = vrot.lane.b32.xlu1 %v6373_v8, %s5110_s30  ;;  %1513 = vrot.lane.b32.xlu0 %v1123_v3, %s5110_s30  ;;  %v1126_v3 = vsel %vm1115_vm10, %v6385_v23, %v6399_v61 }
 0x3e3   : > { %v7434_v59 = vpop.permute.xlu0 %1401 }
 0x3e4   : > { %12263 = vst [vmem:[#allocation108_spill] sm:$0xff] %v7434_v59  ;;  %v7436_v34 = vpop.permute.xlu1 %1395 }
 0x3e5   : > { %1519 = vrot.lane.b32.xlu1 %v1125_v36, %s5110_s30  ;;  %1517 = vrot.lane.b32.xlu0 %v1124_v29, %s5110_s30  ;;  %v1129_v36 = vsel %vm1115_vm10, %v6409_v30, %v6407_v44  ;;  %v1128_v29 = vsel %vm1115_vm10, %v6397_v32, %v6409_v30 }
 0x3e7   : > { %v7446_v16 = vpop.permute.xlu0 %1405 }
 0x3e8   : > { %12264 = vst [vmem:[#allocation109_spill] sm:$0xff] %v7446_v16  ;;  %v7448_v0 = vpop.permute.xlu1 %1399 }
 0x3e9   : > { %12265 = vst [vmem:[#allocation110_spill] sm:$0xff] %v7448_v0  ;;  %1523 = vrot.lane.b32.xlu1 %v1127_v13, %s5110_s30  ;;  %1521 = vrot.lane.b32.xlu0 %v1126_v3, %s5110_s30  ;;  %v1131_v13 = vsel %vm1115_vm10, %v6421_v14, %v6419_v28  ;;  %v1130_v3 = vsel %vm1115_vm10, %v6407_v44, %v6421_v14 }
 0x3ea   : > { %v1134_v14 = vsel %vm1115_vm10, %v6445_v26, %v6443_v27 }
 0x3eb   : > { %v7458_v8 = vpop.permute.xlu0 %1409 }
 0x3ec   : > { %v7460_v4 = vpop.permute.xlu1 %1403 }
 0x3ed   : > { %12266 = vst [vmem:[#allocation111_spill] sm:$0xff] %v7460_v4  ;;  %1527 = vrot.lane.b32.xlu1 %v1129_v36, %s5110_s30  ;;  %1525 = vrot.lane.b32.xlu0 %v1128_v29, %s5110_s30  ;;  %v1132_v36 = vsel %vm1115_vm10, %v6433_v15, %v6431_v2  ;;  %v1133_v29 = vsel %vm1115_vm10, %v6431_v2, %v6445_v26 }
 0x3ef   : > { %v7470_v23 = vpop.permute.xlu0 %1413 }
 0x3f0   : > { %v7472_v61 = vpop.permute.xlu1 %1407 }
 0x3f1   : > { %1531 = vrot.lane.b32.xlu1 %v1131_v13, %s5110_s30  ;;  %1529 = vrot.lane.b32.xlu0 %v1130_v3, %s5110_s30 }
 0x3f3   : > { %v7482_v32 = vpop.permute.xlu0 %1417 }
 0x3f4   : > { %12267 = vst [vmem:[#allocation112_spill] sm:$0xff] %v7482_v32  ;;  %v7484_v30 = vpop.permute.xlu1 %1411 }
 0x3f5   : > { %1535 = vrot.lane.b32.xlu1 %v1132_v36, %s5110_s30  ;;  %1533 = vrot.lane.b32.xlu0 %v6433_v15, %s5110_s30  ;;  %v12271_v15 = vld [vmem:[#allocation116_spill] sm:$0xff]  ;;  %v12272_v36 = vld [vmem:[#allocation117_spill] sm:$0xff] }
 0x3f6   : > { %v1136_v20 = vsel %vm1115_vm10, %v12272_v36, %v12271_v15  ;;  %v1135_v38 = vsel %vm1115_vm10, %v6443_v27, %v12272_v36 }
 0x3f7   : > { %v7492_v28 = vpop.permute.xlu0 %1421 }
 0x3f8   : > { %12268 = vst [vmem:[#allocation113_spill] sm:$0xff] %v7492_v28  ;;  %v7494_v44 = vpop.permute.xlu1 %1415  ;;  %v12278_v28 = vld [vmem:[#allocation120_spill] sm:$0xff] }
 0x3f9   : > { %12269 = vst [vmem:[#allocation114_spill] sm:$0xff] %v7494_v44  ;;  %1539 = vrot.lane.b32.xlu1 %v1134_v14, %s5110_s30  ;;  %1537 = vrot.lane.b32.xlu0 %v1133_v29, %s5110_s30  ;;  %v12274_v14 = vld [vmem:[#allocation118_spill] sm:$0xff]  ;;  %v12275_v29 = vld [vmem:[#allocation119_spill] sm:$0xff] }
 0x3fa   : > { %v1138_v4 = vsel %vm1115_vm10, %v12275_v29, %v12274_v14  ;;  %v1137_v16 = vsel %vm1115_vm10, %v12271_v15, %v12275_v29  ;;  %v12281_v29 = vld [vmem:[#allocation123_spill] sm:$0xff] }
 0x3fb   : > { %v7504_v13 = vpop.permute.xlu0 %1425  ;;  %v1140_v56 = vsel %vm1115_vm10, %v12278_v28, %v12281_v29 }
 0x3fc   : > { %v7506_v3 = vpop.permute.xlu1 %1419 }
 0x3fd   : > { %12270 = vst [vmem:[#allocation115_spill] sm:$0xff] %v7506_v3  ;;  %1543 = vrot.lane.b32.xlu1 %v1136_v20, %s5110_s30  ;;  %1541 = vrot.lane.b32.xlu0 %v1135_v38, %s5110_s30  ;;  %v12277_v20 = vld [vmem:[#allocation121_spill] sm:$0xff] }
 0x3fe   : > { %v1139_v38 = vsel %vm1115_vm10, %v12274_v14, %v12277_v20 }
 0x3ff   : > { %v7516_v2 = vpop.permute.xlu0 %1429 }
 0x400   : > { %v7518_v26 = vpop.permute.xlu1 %1423 }
 0x401   : > { %12273 = vst [vmem:[#allocation116_spill] sm:$0xff] %v7518_v26  ;;  %1547 = vrot.lane.b32.xlu1 %v1138_v4, %s5110_s30  ;;  %1545 = vrot.lane.b32.xlu0 %v1137_v16, %s5110_s30  ;;  %v12280_v4 = vld [vmem:[#allocation122_spill] sm:$0xff] }
 0x402   : > { %v1141_v16 = vsel %vm1115_vm10, %v12281_v29, %v12280_v4  ;;  %v1142_v59 = vsel %vm1115_vm10, %v12280_v4, %v12285_v47  ;;  %v12290_v4 = vld [vmem:[#allocation129_spill] sm:$0xff] }
 0x403   : > { %v7528_v27 = vpop.permute.xlu0 %1433 }
 0x404   : > { %12276 = vst [vmem:[#allocation117_spill] sm:$0xff] %v7528_v27  ;;  %v7533_v36 = vpop.permute.xlu1 %1427 }
 0x405   : > { %1551 = vrot.lane.b32.xlu1 %v12278_v28, %s5110_s30  ;;  %1549 = vrot.lane.b32.xlu0 %v1139_v38, %s5110_s30  ;;  %v12284_v38 = vld [vmem:[#allocation124_spill] sm:$0xff] }
 0x406   : > { %v1143_v0 = vsel %vm1115_vm10, %v12285_v47, %v12284_v38 }
 0x407   : > { %v7538_v26 = vpop.permute.xlu0 %1437 }
 0x408   : > { %12279 = vst [vmem:[#allocation118_spill] sm:$0xff] %v7538_v26  ;;  %v7540_v15 = vpop.permute.xlu1 %1431 }
 0x409   : > { %1555 = vrot.lane.b32.xlu1 %v1141_v16, %s5110_s30  ;;  %1553 = vrot.lane.b32.xlu0 %v1140_v56, %s5110_s30  ;;  %v12287_v56 = vld [vmem:[#allocation126_spill] sm:$0xff]  ;;  %v12288_v16 = vld [vmem:[#allocation127_spill] sm:$0xff] }
 0x40a   : > { %v1144_v32 = vsel %vm1115_vm10, %v12284_v38, %v12288_v16  ;;  %v1146_v3 = vsel %vm1115_vm10, %v12287_v56, %v12290_v4 }
 0x40b   : > { %v7550_v14 = vpop.permute.xlu0 %1441 }
 0x40c   : > { %12282 = vst [vmem:[#allocation119_spill] sm:$0xff] %v7550_v14  ;;  %v7552_v20 = vpop.permute.xlu1 %1435  ;;  %v1145_v14 = vsel %vm1115_vm10, %v12288_v16, %v12287_v56  ;;  %v12293_v16 = vld [vmem:[#allocation131_spill] sm:$0xff] }
 0x40d   : > { %12283 = vst [vmem:[#allocation121_spill] sm:$0xff] %v7552_v20  ;;  %1559 = vrot.lane.b32.xlu1 %v1143_v0, %s5110_s30  ;;  %1557 = vrot.lane.b32.xlu0 %v1142_v59, %s5110_s30  ;;  %v12289_v59 = vld [vmem:[#allocation128_spill] sm:$0xff] }
 0x40f   : > { %v7562_v28 = vpop.permute.xlu0 %1445 }
 0x410   : > { %v7564_v29 = vpop.permute.xlu1 %1439 }
 0x411   : > { %12286 = vst [vmem:[#allocation120_spill] sm:$0xff] %v7564_v29  ;;  %1563 = vrot.lane.b32.xlu1 %v1145_v14, %s5110_s30  ;;  %1561 = vrot.lane.b32.xlu0 %v1144_v32, %s5110_s30  ;;  %v1147_v29 = vsel %vm1115_vm10, %v12290_v4, %v12289_v59  ;;  %v12292_v32 = vld [vmem:[#allocation130_spill] sm:$0xff]  ;;  %v12296_v4 = vld [vmem:[#allocation133_spill] sm:$0xff] }
 0x412   : > { %v1148_v20 = vsel %vm1115_vm10, %v12293_v16, %v12292_v32  ;;  %v1149_v26 = vsel %vm1115_vm10, %v12292_v32, %v12296_v4 }
 0x413   : > { %v7574_v47 = vpop.permute.xlu0 %1449 }
 0x414   : > { %v7576_v0 = vpop.permute.xlu1 %1443 }
 0x415   : > { %1567 = vrot.lane.b32.xlu1 %v1147_v29, %s5110_s30  ;;  %1565 = vrot.lane.b32.xlu0 %v1146_v3, %s5110_s30  ;;  %v12295_v29 = vld [vmem:[#allocation132_spill] sm:$0xff] }
 0x416   : > { %v1150_v3 = vsel %vm1115_vm10, %v12296_v4, %v12295_v29  ;;  %v1151_v63 = vsel %vm1115_vm10, %v12295_v29, %v12299_v54 }
 0x417   : > { %v7586_v38 = vpop.permute.xlu0 %1453 }
 0x418   : > { %12291 = vst [vmem:[#allocation122_spill] sm:$0xff] %v7586_v38  ;;  %v7588_v14 = vpop.permute.xlu1 %1447 }
 0x419   : > { %1571 = vrot.lane.b32.xlu1 %v1148_v20, %s5110_s30  ;;  %1569 = vrot.lane.b32.xlu0 %v12293_v16, %s5110_s30  ;;  %v12298_v16 = vld [vmem:[#allocation134_spill] sm:$0xff] }
 0x41b   : > { %v7596_v59 = vpop.permute.xlu0 %1457 }
 0x41c   : > { %12294 = vst [vmem:[#allocation123_spill] sm:$0xff] %v7596_v59  ;;  %v7598_v56 = vpop.permute.xlu1 %1451  ;;  %v1152_v59 = vsel %vm1115_vm10, %v12299_v54, %v12298_v16 }
 0x41d   : > { %1575 = vrot.lane.b32.xlu1 %v1150_v3, %s5110_s30  ;;  %1573 = vrot.lane.b32.xlu0 %v1149_v26, %s5110_s30  ;;  %v12301_v26 = vld [vmem:[#allocation136_spill] sm:$0xff]  ;;  %v12302_v3 = vld [vmem:[#allocation137_spill] sm:$0xff] }
 0x41e   : > { %v1153_v52 = vsel %vm1115_vm10, %v12298_v16, %v12302_v3  ;;  %v12306_v16 = vld [vmem:[#allocation140_spill] sm:$0xff] }
 0x41f   : > { %v1462_v20 = vpop.permute.xlu0 %1461 }
 0x420   : > { %v7608_v38 = vpop.permute.xlu1 %1455 }
 0x421   : > { %12297 = vst [vmem:[#allocation124_spill] sm:$0xff] %v7608_v38  ;;  %1579 = vrot.lane.b32.xlu1 %v1152_v59, %s5110_s30  ;;  %1577 = vrot.lane.b32.xlu0 %v1151_v63, %s5110_s30  ;;  %v1154_v38 = vsel %vm1115_vm10, %v12302_v3, %v12301_v26  ;;  %v12303_v59 = vld [vmem:[#allocation139_spill] sm:$0xff] }
 0x422   : > { %v1155_v63 = vsel %vm1115_vm10, %v12301_v26, %v12303_v59  ;;  %v12308_v59 = vld [vmem:[#allocation141_spill] sm:$0xff] }
 0x423   : > { %v7618_v32 = vpop.permute.xlu0 %1465 }
 0x424   : > { %v7620_v4 = vpop.permute.xlu1 %1459 }
 0x425   : > { %12300 = vst [vmem:[#allocation125_spill] sm:$0xff] %v7620_v4  ;;  %1583 = vrot.lane.b32.xlu1 %v1154_v38, %s5110_s30  ;;  %1581 = vrot.lane.b32.xlu0 %v1153_v52, %s5110_s30  ;;  %v12304_v4 = vld [vmem:[#allocation138_spill] sm:$0xff]  ;;  %v1157_v52 = vsel %vm1115_vm10, %v6628_v41, %v12306_v16 }
 0x426   : > { %v1156_v38 = vsel %vm1115_vm10, %v12304_v4, %v6628_v41 }
 0x427   : > { %v7630_v54 = vpop.permute.xlu0 %1469 }
 0x428   : > { %v1464_v29 = vpop.permute.xlu1 %1463 }
 0x429   : > { %1587 = vrot.lane.b32.xlu1 %v12304_v4, %s5110_s30  ;;  %1585 = vrot.lane.b32.xlu0 %v1155_v63, %s5110_s30  ;;  %v12309_v63 = vld [vmem:[#allocation142_spill] sm:$0xff] }
 0x42a   : > { %v1158_v49 = vsel %vm1115_vm10, %v12306_v16, %v12309_v63 }
 0x42b   : > { %v7638_v18 = vpop.permute.xlu0 %1473 }
 0x42c   : > { %12305 = vst [vmem:[#allocation126_spill] sm:$0xff] %v7638_v18  ;;  %v7640_v21 = vpop.permute.xlu1 %1467  ;;  %v1159_v18 = vsel %vm1115_vm10, %v12309_v63, %v12308_v59 }
 0x42d   : > { %1591 = vrot.lane.b32.xlu1 %v1157_v52, %s5110_s30  ;;  %1589 = vrot.lane.b32.xlu0 %v1156_v38, %s5110_s30  ;;  %v1161_v52 = vsel %vm1115_vm10, %v6644_v43, %v6642_v48  ;;  %v1160_v38 = vsel %vm1115_vm10, %v12308_v59, %v6644_v43  ;;  %v1164_v59 = vsel %vm1115_vm10, %v6662_v40, %v6660_v24 }
 0x42f   : > { %v7650_v26 = vpop.permute.xlu0 %1477 }
 0x430   : > { %12307 = vst [vmem:[#allocation127_spill] sm:$0xff] %v7650_v26  ;;  %v7652_v3 = vpop.permute.xlu1 %1471 }
 0x431   : > { %1595 = vrot.lane.b32.xlu1 %v1159_v18, %s5110_s30  ;;  %1593 = vrot.lane.b32.xlu0 %v1158_v49, %s5110_s30  ;;  %v1163_v18 = vsel %vm1115_vm10, %v6654_v35, %v6652_v57  ;;  %v1162_v49 = vsel %vm1115_vm10, %v6642_v48, %v6654_v35 }
 0x433   : > { %v1482_v41 = vpop.permute.xlu0 %1481 }
 0x434   : > { %v7662_v4 = vpop.permute.xlu1 %1475 }
 0x435   : > { %12310 = vst [vmem:[#allocation128_spill] sm:$0xff] %v7662_v4  ;;  %1599 = vrot.lane.b32.xlu1 %v1161_v52, %s5110_s30  ;;  %1597 = vrot.lane.b32.xlu0 %v1160_v38, %s5110_s30  ;;  %v1809_v52 = vsel %vm1695_vm11, %v1464_v29, %v7618_v32 }
 0x437   : > { %v1486_v16 = vpop.permute.xlu0 %1485 }
 0x438   : > { %v1480_v63 = vpop.permute.xlu1 %1479 }
 0x439   : > { %1603 = vrot.lane.b32.xlu1 %v1163_v18, %s5110_s30  ;;  %1601 = vrot.lane.b32.xlu0 %v1162_v49, %s5110_s30  ;;  %v1816_v35 = vsel %vm1695_vm11, %v1480_v63, %v1482_v41  ;;  %v1166_v18 = vsel %vm1115_vm10, %v6670_v12, %v6668_v10  ;;  %v1801_v49 = vsel %vm1695_vm11, %v7562_v28, %v7588_v14 }
 0x43b   : > { %v7680_v4 = vpop.permute.xlu0 %1489 }
 0x43c   : > { %v1484_v43 = vpop.permute.xlu1 %1483 }
 0x43d   : > { %1607 = vrot.lane.b32.xlu1 %v1164_v59, %s5110_s30  ;;  %1605 = vrot.lane.b32.xlu0 %v6662_v40, %s5110_s30  ;;  %v1817_v57 = vsel %vm1695_vm11, %v1482_v41, %v1484_v43  ;;  %v1165_v40 = vsel %vm1115_vm10, %v6660_v24, %v6670_v12  ;;  %v1808_v41 = vsel %vm1695_vm11, %v1462_v20, %v1464_v29 }
 0x43e   : > { %2132 = vmatprep.subr.mxu0 %v1817_v57  ;;  %v1818_v59 = vsel %vm1695_vm11, %v1484_v43, %v1486_v16  ;;  %v1800_v24 = vsel %vm1695_vm11, %v7576_v0, %v7562_v28  ;;  %v1811_v20 = vsel %vm1695_vm11, %v7640_v21, %v7630_v54  ;;  %v1793_v57 = vsel %vm1695_vm11, %v7533_v36, %v7516_v2 }
 0x43f   : > { %2133 = vmatpush1.msra.mxu0 %v1816_v35  ;;  %v7690_v48 = vpop.permute.xlu0 %1493  ;;  %v1167_v28 = vsel %vm1115_vm10, %v6668_v10, %v6678_v7  ;;  %v1792_v0 = vsel %vm1695_vm11, %v7504_v13, %v7533_v36  ;;  %v1810_v43 = vsel %vm1695_vm11, %v7618_v32, %v7640_v21  ;;  %v1785_v35 = vsel %vm1695_vm11, %v7458_v8, %v7484_v30 }
 0x440   : > { %12311 = vst [vmem:[#allocation129_spill] sm:$0xff] %v7690_v48  ;;  %v7694_v38 = vpop.permute.xlu1 %1487  ;;  %2134 = vmatprep.subr.mxu0 %v1809_v52  ;;  %v1803_v10 = vsel %vm1695_vm11, %v7574_v47, %v7598_v56  ;;  %v1802_v21 = vsel %vm1695_vm11, %v7588_v14, %v7574_v47  ;;  %v1777_v32 = vsel %vm1695_vm11, %v7429_v39, %v7412_v45 }
 0x441   : > { %1611 = vrot.lane.b32.xlu1 %v1166_v18, %s5110_s30  ;;  %1609 = vrot.lane.b32.xlu0 %v1165_v40, %s5110_s30  ;;  %v1819_v63 = vsel %vm1695_vm11, %v1486_v16, %v7694_v38  ;;  %v1168_v16 = vsel %vm1115_vm10, %v6678_v7, %v6676_v33  ;;  %v1784_v7 = vsel %vm1695_vm11, %v7472_v61, %v7458_v8 }
 0x442   : > { %2135 = vmatpush1.msra.mxu0 %v1808_v41  ;;  %2203 = vmatprep.subr.mxu1 %v1819_v63  ;;  %v1795_v8 = vsel %vm1695_vm11, %v7540_v15, %v7528_v27  ;;  %v1170_v61 = vsel %vm1115_vm10, %v6686_v9, %v6684_v6  ;;  %v1169_v47 = vsel %vm1115_vm10, %v6676_v33, %v6686_v9  ;;  %v12313_v41 = vld [vmem:[#allocation144_spill] sm:$0xff] }
 0x443   : > { %2136 = vmatprep.subr.mxu0 %v1801_v49  ;;  %2204 = vmatpush1.msra.mxu1 %v1818_v59  ;;  %v7714_v12 = vpop.permute.xlu0 %1497  ;;  %v1776_v14 = vsel %vm1695_vm11, %v7400_v50, %v7429_v39  ;;  %v1794_v52 = vsel %vm1695_vm11, %v7516_v2, %v7540_v15  ;;  %v1769_v18 = vsel %vm1695_vm11, %v7354_v11, %v7380_v42 }
 0x444   : > { %2137 = vmatpush1.msra.mxu0 %v1800_v24  ;;  %v7719_v29 = vpop.permute.xlu1 %1491  ;;  %2205 = vmatprep.subr.mxu1 %v1811_v20  ;;  %v1787_v33 = vsel %vm1695_vm11, %v7470_v23, %v7494_v44  ;;  %v1768_v9 = vsel %vm1695_vm11, %v7368_v55, %v7354_v11  ;;  %v1786_v39 = vsel %vm1695_vm11, %v7484_v30, %v7470_v23  ;;  %v12314_v55 = vld [vmem:[#allocation143_spill] sm:$0xff]  ;;  %v12316_v24 = vld [vmem:[#allocation145_spill] sm:$0xff]  ;;  %v12317_v20 = vld [vmem:[#allocation146_spill] sm:$0xff] }
 0x445   : > { %2138 = vmatprep.subr.mxu0 %v1793_v57  ;;  %1615 = vrot.lane.b32.xlu1 %v1168_v16, %s5110_s30  ;;  %v1761_v2 = vsel %vm1695_vm11, %v7325_v1, %v7308_v17  ;;  %v1779_v15 = vsel %vm1695_vm11, %v7436_v34, %v7424_v37  ;;  %v1171_v11 = vsel %vm1115_vm10, %v6684_v6, %v12313_v41  ;;  %v12333_v41 = vld [vmem:[#allocation153_spill] sm:$0xff] }
 0x446   : > { %1613 = vrot.lane.b32.xlu0 %v1167_v28, %s5110_s30  ;;  %2139 = vmatpush1.msra.mxu0 %v1792_v0  ;;  %v1760_v23 = vsel %vm1695_vm11, %v7296_v46, %v7325_v1  ;;  %v1778_v63 = vsel %vm1695_vm11, %v7412_v45, %v7436_v34  ;;  %v1753_v6 = vsel %vm1695_vm11, %v7252_v22, %v7276_v19  ;;  %v12320_v28 = vld [vmem:[#allocation161_spill] sm:$0xff]  ;;  %v12321_v0 = vld [vmem:[#allocation76_spill] sm:$0xff] }
 0x447   : > { %2206 = vmatpush1.msra.mxu1 %v1810_v43  ;;  %2140 = vmatprep.subr.mxu0 %v1785_v35  ;;  %v7747_v13 = vpop.permute.xlu0 %1501  ;;  %v1771_v46 = vsel %vm1695_vm11, %v7366_v62, %v7390_v25  ;;  %v1752_v1 = vsel %vm1695_vm11, %v7266_v58, %v7252_v22  ;;  %v1770_v45 = vsel %vm1695_vm11, %v7380_v42, %v7366_v62  ;;  %v12322_v35 = vld [vmem:[#allocation92_spill] sm:$0xff] }
 0x448   : > { %2207 = vmatprep.subr.mxu1 %v1803_v10  ;;  %2141 = vmatpush1.msra.mxu0 %v1784_v7  ;;  %v7752_v36 = vpop.permute.xlu1 %1495  ;;  %v1745_v34 = vsel %vm1695_vm11, %v7222_v51, %v7208_v53  ;;  %v1763_v59 = vsel %vm1695_vm11, %v7332_v60, %v7320_v31  ;;  %v1173_v22 = vsel %vm1115_vm10, %v12317_v20, %v12316_v24  ;;  %v12323_v10 = vld [vmem:[#allocation93_spill] sm:$0xff] }
 0x449   : > { %12312 = vst [vmem:[#allocation130_spill] sm:$0xff] %v7752_v36  ;;  %2208 = vmatpush1.msra.mxu1 %v1802_v21  ;;  %2142 = vmatprep.subr.mxu0 %v1777_v32  ;;  %v1172_v62 = vsel %vm1115_vm10, %v12314_v55, %v12317_v20  ;;  %v1744_v42 = vsel %vm1695_vm11, %v7196_v5, %v7222_v51  ;;  %v12324_v5 = vld [vmem:[#allocation79_spill] sm:$0xff]  ;;  %v12326_v21 = vld [vmem:[#allocation72_spill] sm:$0xff] }
 0x44a   : > { %2209 = vmatprep.subr.mxu1 %v1795_v8  ;;  %1619 = vrot.lane.b32.xlu1 %v1170_v61, %s5110_s30  ;;  %v1762_v16 = vsel %vm1695_vm11, %v7308_v17, %v7332_v60  ;;  %v1737_v43 = vsel %vm1695_vm11, %v12321_v0, %v12320_v28  ;;  %v1755_v7 = vsel %vm1695_vm11, %v12323_v10, %v12322_v35  ;;  %v12325_v60 = vld [vmem:[#allocation157_spill] sm:$0xff] }
 0x44b   : > { %1617 = vrot.lane.b32.xlu0 %v1169_v47, %s5110_s30  ;;  %2143 = vmatpush1.msra.mxu0 %v1776_v14  ;;  %v7777_v40 = vpop.permute.xlu0 %1505  ;;  %v1736_v51 = vsel %vm1695_vm11, %v12324_v5, %v12321_v0  ;;  %v1754_v17 = vsel %vm1695_vm11, %v7276_v19, %v12323_v10  ;;  %v1729_v32 = vsel %vm1695_vm11, %v12326_v21, %v12325_v60  ;;  %v12327_v61 = vld [vmem:[#allocation85_spill] sm:$0xff]  ;;  %v12328_v47 = vld [vmem:[#allocation87_spill] sm:$0xff]  ;;  %v12344_v10 = vld [vmem:[#allocation62_spill] sm:$0xff] }
 0x44c   : > { %2210 = vmatpush1.msra.mxu1 %v1794_v52  ;;  %2144 = vmatprep.subr.mxu0 %v1769_v18  ;;  %v7785_v50 = vpop.permute.xlu1 %1499  ;;  %v1747_v14 = vsel %vm1695_vm11, %v12328_v47, %v12327_v61  ;;  %v12329_v52 = vld [vmem:[#allocation12_spill] sm:$0xff]  ;;  %v12330_v18 = vld [vmem:[#allocation13_spill] sm:$0xff]  ;;  %v12343_v0 = vld [vmem:[#allocation15_spill] sm:$0xff] }
 0x44d   : > { %2211 = vmatprep.subr.mxu1 %v1787_v33  ;;  %2145 = vmatpush1.msra.mxu0 %v1768_v9  ;;  %v1175_v33 = vsel %vm1115_vm10, %v12330_v18, %v12329_v52  ;;  %v1174_v19 = vsel %vm1115_vm10, %v12316_v24, %v12330_v18  ;;  %v12350_v18 = vld [vmem:[#allocation56_spill] sm:$0xff] }
 0x44e   : > { %2212 = vmatpush1.msra.mxu1 %v1786_v39  ;;  %2146 = vmatprep.subr.mxu0 %v1761_v2  ;;  %v12332_v39 = vld [vmem:[#allocation155_spill] sm:$0xff] }
 0x44f   : > { %2213 = vmatprep.subr.mxu1 %v1779_v15  ;;  %1623 = vrot.lane.b32.xlu1 %v12314_v55, %s5110_s30  ;;  %v7804_v30 = vpop.permute.xlu0 %1509  ;;  %v1728_v2 = vsel %vm1695_vm11, %v12332_v39, %v12326_v21  ;;  %v1746_v15 = vsel %vm1695_vm11, %v7208_v53, %v12328_v47  ;;  %v12348_v47 = vld [vmem:[#allocation154_spill] sm:$0xff] }
 0x450   : > { %12315 = vst [vmem:[#allocation131_spill] sm:$0xff] %v7804_v30  ;;  %1621 = vrot.lane.b32.xlu0 %v1171_v11, %s5110_s30  ;;  %2147 = vmatpush1.msra.mxu0 %v1760_v23  ;;  %v7813_v49 = vpop.permute.xlu1 %1503  ;;  %v12334_v11 = vld [vmem:[#allocation148_spill] sm:$0xff]  ;;  %v12335_v23 = vld [vmem:[#allocation83_spill] sm:$0xff]  ;;  %v12351_v39 = vld [vmem:[#allocation42_spill] sm:$0xff] }
 0x451   : > { %2214 = vmatpush1.msra.mxu1 %v1778_v63  ;;  %2148 = vmatprep.subr.mxu0 %v1753_v6  ;;  %v1721_v55 = vsel %vm1695_vm11, %v12334_v11, %v12333_v41  ;;  %v12336_v63 = vld [vmem:[#allocation78_spill] sm:$0xff] }
 0x452   : > { %2215 = vmatprep.subr.mxu1 %v1771_v46  ;;  %2149 = vmatpush1.msra.mxu0 %v1752_v1  ;;  %v1739_v6 = vsel %vm1695_vm11, %v12336_v63, %v12335_v23  ;;  %v12337_v46 = vld [vmem:[#allocation151_spill] sm:$0xff]  ;;  %v1738_v53 = vsel %vm1695_vm11, %v12320_v28, %v12336_v63  ;;  %v1176_v28 = vsel %vm1115_vm10, %v12329_v52, %v12343_v0 }
 0x453   : > { %2216 = vmatpush1.msra.mxu1 %v1770_v45  ;;  %2150 = vmatprep.subr.mxu0 %v1745_v34  ;;  %v7833_v58 = vpop.permute.xlu0 %1513  ;;  %v1720_v1 = vsel %vm1695_vm11, %v12337_v46, %v12334_v11  ;;  %v12338_v34 = vld [vmem:[#allocation60_spill] sm:$0xff]  ;;  %v12353_v11 = vld [vmem:[#allocation65_spill] sm:$0xff] }
 0x454   : > { %12318 = vst [vmem:[#allocation132_spill] sm:$0xff] %v7833_v58  ;;  %2217 = vmatprep.subr.mxu1 %v1763_v59  ;;  %1627 = vrot.lane.b32.xlu1 %v1173_v22, %s5110_s30  ;;  %v7842_v57 = vpop.permute.xlu1 %1507  ;;  %v12339_v59 = vld [vmem:[#allocation66_spill] sm:$0xff]  ;;  %v12340_v22 = vld [vmem:[#allocation159_spill] sm:$0xff]  ;;  %v12356_v46 = vld [vmem:[#allocation17_spill] sm:$0xff] }
 0x455   : > { %12319 = vst [vmem:[#allocation133_spill] sm:$0xff] %v7842_v57  ;;  %1625 = vrot.lane.b32.xlu0 %v1172_v62, %s5110_s30  ;;  %2151 = vmatpush1.msra.mxu0 %v1744_v42  ;;  %v1713_v24 = vsel %vm1695_vm11, %v12339_v59, %v12338_v34  ;;  %v12341_v62 = vld [vmem:[#allocation160_spill] sm:$0xff]  ;;  %v12392_v58 = vld [vmem:[#allocation33_spill] sm:$0xff] }
 0x456   : > { %2218 = vmatpush1.msra.mxu1 %v1762_v16  ;;  %2152 = vmatprep.subr.mxu0 %v1737_v43  ;;  %v1731_v42 = vsel %vm1695_vm11, %v12341_v62, %v12340_v22  ;;  %v12342_v16 = vld [vmem:[#allocation14_spill] sm:$0xff]  ;;  %v1730_v5 = vsel %vm1695_vm11, %v12325_v60, %v12341_v62 }
 0x457   : > { %2219 = vmatprep.subr.mxu1 %v1755_v7  ;;  %2153 = vmatpush1.msra.mxu0 %v1736_v51  ;;  %v7863_v8 = vpop.permute.xlu0 %1517  ;;  %v1177_v43 = vsel %vm1115_vm10, %v12343_v0, %v12342_v16  ;;  %v1712_v7 = vsel %vm1695_vm11, %v12344_v10, %v12339_v59  ;;  %v12345_v51 = vld [vmem:[#allocation58_spill] sm:$0xff]  ;;  %v12359_v0 = vld [vmem:[#allocation61_spill] sm:$0xff] }
 0x458   : > { %2220 = vmatpush1.msra.mxu1 %v1754_v17  ;;  %2154 = vmatprep.subr.mxu0 %v1729_v32  ;;  %v7871_v9 = vpop.permute.xlu1 %1511  ;;  %v12346_v17 = vld [vmem:[#allocation53_spill] sm:$0xff]  ;;  %v12361_v10 = vld [vmem:[#allocation18_spill] sm:$0xff] }
 0x459   : > { %12331 = vst [vmem:[#allocation134_spill] sm:$0xff] %v7871_v9  ;;  %2221 = vmatprep.subr.mxu1 %v1747_v14  ;;  %1631 = vrot.lane.b32.xlu1 %v1175_v33, %s5110_s30  ;;  %v1705_v21 = vsel %vm1695_vm11, %v12346_v17, %v12345_v51  ;;  %v12349_v14 = vld [vmem:[#allocation150_spill] sm:$0xff]  ;;  %v1704_v33 = vsel %vm1695_vm11, %v12350_v18, %v12346_v17  ;;  %v12363_v17 = vld [vmem:[#allocation47_spill] sm:$0xff]  ;;  %v12366_v18 = vld [vmem:[#allocation20_spill] sm:$0xff] }
 0x45a   : > { %1629 = vrot.lane.b32.xlu0 %v1174_v19, %s5110_s30  ;;  %2155 = vmatpush1.msra.mxu0 %v1728_v2  ;;  %v1723_v52 = vsel %vm1695_vm11, %v12349_v14, %v12348_v47  ;;  %v1722_v60 = vsel %vm1695_vm11, %v12333_v41, %v12349_v14  ;;  %v12352_v2 = vld [vmem:[#allocation48_spill] sm:$0xff]  ;;  %v1178_v41 = vsel %vm1115_vm10, %v12342_v16, %v12356_v46 }
 0x45b   : > { %2222 = vmatpush1.msra.mxu1 %v1746_v15  ;;  %2156 = vmatprep.subr.mxu0 %v1721_v55  ;;  %v7893_v45 = vpop.permute.xlu0 %1521  ;;  %v1697_v15 = vsel %vm1695_vm11, %v12352_v2, %v12351_v39  ;;  %v12354_v55 = vld [vmem:[#allocation68_spill] sm:$0xff] }
 0x45c   : > { %2223 = vmatprep.subr.mxu1 %v1739_v6  ;;  %2157 = vmatpush1.msra.mxu0 %v1720_v1  ;;  %v7901_v20 = vpop.permute.xlu1 %1515  ;;  %v1715_v63 = vsel %vm1695_vm11, %v12354_v55, %v12353_v11  ;;  %v12355_v6 = vld [vmem:[#allocation16_spill] sm:$0xff]  ;;  %v1714_v62 = vsel %vm1695_vm11, %v12338_v34, %v12354_v55 }
 0x45d   : > { %2224 = vmatpush1.msra.mxu1 %v1738_v53  ;;  %2158 = vmatprep.subr.mxu0 %v1713_v24  ;;  %v1179_v1 = vsel %vm1115_vm10, %v12356_v46, %v12355_v6  ;;  %v12357_v53 = vld [vmem:[#allocation44_spill] sm:$0xff] }
 0x45e   : > { %2225 = vmatprep.subr.mxu1 %v1731_v42  ;;  %1635 = vrot.lane.b32.xlu1 %v1177_v43, %s5110_s30  ;;  %v1696_v59 = vsel %vm1695_vm11, %v12357_v53, %v12352_v2  ;;  %v12360_v43 = vld [vmem:[#allocation55_spill] sm:$0xff]  ;;  %v12371_v53 = vld [vmem:[#allocation25_spill] sm:$0xff] }
 0x45f   : > { %1633 = vrot.lane.b32.xlu0 %v1176_v28, %s5110_s30  ;;  %2159 = vmatpush1.msra.mxu0 %v1712_v7  ;;  %v7923_v32 = vpop.permute.xlu0 %1525  ;;  %v1707_v16 = vsel %vm1695_vm11, %v12360_v43, %v12359_v0  ;;  %v1706_v28 = vsel %vm1695_vm11, %v12345_v51, %v12360_v43  ;;  %v12362_v7 = vld [vmem:[#allocation19_spill] sm:$0xff] }
 0x460   : > { %12347 = vst [vmem:[#allocation135_spill] sm:$0xff] %v7923_v32  ;;  %2226 = vmatpush1.msra.mxu1 %v1730_v5  ;;  %2160 = vmatprep.subr.mxu0 %v1705_v21  ;;  %v7931_v19 = vpop.permute.xlu1 %1519  ;;  %v1180_v5 = vsel %vm1115_vm10, %v12362_v7, %v12361_v10  ;;  %v12364_v21 = vld [vmem:[#allocation50_spill] sm:$0xff] }
 0x461   : > { %2227 = vmatprep.subr.mxu1 %v1723_v52  ;;  %2161 = vmatpush1.msra.mxu0 %v1704_v33  ;;  %v1699_v34 = vsel %vm1695_vm11, %v12364_v21, %v12363_v17  ;;  %v1698_v51 = vsel %vm1695_vm11, %v12351_v39, %v12364_v21  ;;  %v12367_v33 = vld [vmem:[#allocation21_spill] sm:$0xff]  ;;  %v12369_v39 = vld [vmem:[#allocation22_spill] sm:$0xff]  ;;  %v12376_v21 = vld [vmem:[#allocation27_spill] sm:$0xff] }
 0x462   : > { %2228 = vmatpush1.msra.mxu1 %v1722_v60  ;;  %2162 = vmatprep.subr.mxu0 %v1697_v15  ;;  %v1182_v60 = vsel %vm1115_vm10, %v12367_v33, %v12366_v18  ;;  %v1181_v2 = vsel %vm1115_vm10, %v12361_v10, %v12367_v33  ;;  %v12374_v10 = vld [vmem:[#allocation36_spill] sm:$0xff]  ;;  %v12379_v33 = vld [vmem:[#allocation37_spill] sm:$0xff] }
 0x463   : > { %2229 = vmatprep.subr.mxu1 %v1715_v63  ;;  %1639 = vrot.lane.b32.xlu1 %v1179_v1, %s5110_s30  ;;  %v7952_v24 = vpop.permute.xlu0 %1529  ;;  %v12370_v63 = vld [vmem:[#allocation23_spill] sm:$0xff] }
 0x464   : > { %12358 = vst [vmem:[#allocation136_spill] sm:$0xff] %v7952_v24  ;;  %1637 = vrot.lane.b32.xlu0 %v1178_v41, %s5110_s30  ;;  %2163 = vmatpush1.msra.mxu0 %v1696_v59  ;;  %v7958_v42 = vpop.permute.xlu1 %1523  ;;  %v1184_v6 = vsel %vm1115_vm10, %v12370_v63, %v12369_v39  ;;  %v1183_v46 = vsel %vm1115_vm10, %v12366_v18, %v12370_v63  ;;  %v12372_v59 = vld [vmem:[#allocation147_spill] sm:$0xff]  ;;  %v12381_v63 = vld [vmem:[#allocation24_spill] sm:$0xff] }
 0x465   : > { %2230 = vmatpush1.msra.mxu1 %v1714_v62  ;;  %v1186_v62 = vsel %vm1115_vm10, %v12372_v59, %v12371_v53  ;;  %v1185_v43 = vsel %vm1115_vm10, %v12369_v39, %v12372_v59 }
 0x466   : > { %2231 = vmatprep.subr.mxu1 %v1707_v16 }
 0x467   : > { %2232 = vmatpush1.msra.mxu1 %v1706_v28  ;;  %1643 = vrot.lane.b32.xlu1 %v1180_v5, %s5110_s30  ;;  %v7973_v14 = vpop.permute.xlu0 %1533 }
 0x468   : > { %2233 = vmatprep.subr.mxu1 %v1699_v34  ;;  %1641 = vrot.lane.b32.xlu0 %v12362_v7, %s5110_s30  ;;  %v7980_v52 = vpop.permute.xlu1 %1527  ;;  %v12375_v7 = vld [vmem:[#allocation35_spill] sm:$0xff]  ;;  %v1187_v34 = vsel %vm1115_vm10, %v12371_v53, %v12376_v21  ;;  %v12383_v53 = vld [vmem:[#allocation26_spill] sm:$0xff] }
 0x469   : > { %12365 = vst [vmem:[#allocation137_spill] sm:$0xff] %v7980_v52  ;;  %2234 = vmatpush1.msra.mxu1 %v1698_v51  ;;  %v1196_v5 = vsel %vm1115_vm10, %v12375_v7, %v12374_v10 }
 0x46b   : > { %1647 = vrot.lane.b32.xlu1 %v1182_v60, %s5110_s30  ;;  %v7989_v15 = vpop.permute.xlu0 %1537  ;;  %v1197_v60 = vsel %vm1115_vm10, %v12374_v10, %v12379_v33  ;;  %v12384_v10 = vld [vmem:[#allocation39_spill] sm:$0xff] }
 0x46c   : > { %1645 = vrot.lane.b32.xlu0 %v1181_v2, %s5110_s30  ;;  %v7992_v55 = vpop.permute.xlu1 %1531 }
 0x46d   : > { %12368 = vst [vmem:[#allocation139_spill] sm:$0xff] %v7992_v55  ;;  %v8092_v55 = vld [vmem:[%s11422_s2 + $0x8] sm:$0xff] }
 0x46e   : > { %12394 = vst [vmem:[#allocation146_spill] sm:$0xff] %v8092_v55  ;;  %4783 = vmatprep.mubr.msk.f32.mxu0 %vm2128_vm12, %v8092_v55  ;;  %4784 = vmatprep.mubr.msk.f32.mxu1 %vm2128_vm12, %v8092_v55 }
 0x46f   : > { %1651 = vrot.lane.b32.xlu1 %v1184_v6, %s5110_s30  ;;  %v8001_v1 = vpop.permute.xlu0 %1541  ;;  %v12382_v6 = vld [vmem:[#allocation28_spill] sm:$0xff] }
 0x470   : > { %1649 = vrot.lane.b32.xlu0 %v1183_v46, %s5110_s30  ;;  %v8004_v41 = vpop.permute.xlu1 %1535  ;;  %v1189_v46 = vsel %vm1115_vm10, %v12382_v6, %v12381_v63  ;;  %v1188_v59 = vsel %vm1115_vm10, %v12383_v53, %v12382_v6  ;;  %v12387_v6 = vld [vmem:[#allocation38_spill] sm:$0xff] }
 0x473   : > { %1655 = vrot.lane.b32.xlu1 %v1186_v62, %s5110_s30  ;;  %v8013_v16 = vpop.permute.xlu0 %1545 }
 0x474   : > { %12373 = vst [vmem:[#allocation138_spill] sm:$0xff] %v8013_v16  ;;  %1653 = vrot.lane.b32.xlu0 %v1185_v43, %s5110_s30  ;;  %v8016_v28 = vpop.permute.xlu1 %1539 }
 0x477   : > { %1679 = vrot.lane.b32.xlu1 %v1196_v5, %s5110_s30  ;;  %v8025_v51 = vpop.permute.xlu0 %1549 }
 0x478   : > { %12377 = vst [vmem:[#allocation140_spill] sm:$0xff] %v8025_v51  ;;  %1657 = vrot.lane.b32.xlu0 %v1187_v34, %s5110_s30  ;;  %v8028_v18 = vpop.permute.xlu1 %1543  ;;  %v12386_v34 = vld [vmem:[#allocation30_spill] sm:$0xff]  ;;  %v12398_v51 = vld [vmem:[#allocation45_spill] sm:$0xff] }
 0x479   : > { %12378 = vst [vmem:[#allocation141_spill] sm:$0xff] %v8028_v18 }
 0x47b   : > { %1677 = vrot.lane.b32.xlu1 %v12375_v7, %s5110_s30  ;;  %v8035_v2 = vpop.permute.xlu0 %1553  ;;  %v1198_v7 = vsel %vm1115_vm10, %v12379_v33, %v12384_v10 }
 0x47c   : > { %1681 = vrot.lane.b32.xlu0 %v1197_v60, %s5110_s30  ;;  %v8038_v39 = vpop.permute.xlu1 %1547  ;;  %v1190_v60 = vsel %vm1115_vm10, %v12381_v63, %v12386_v34 }
 0x47d   : > { %12380 = vst [vmem:[#allocation142_spill] sm:$0xff] %v8038_v39  ;;  %v12397_v39 = vld [vmem:[#allocation34_spill] sm:$0xff] }
 0x47f   : > { %1663 = vrot.lane.b32.xlu1 %v1189_v46, %s5110_s30  ;;  %v8047_v62 = vpop.permute.xlu0 %1557  ;;  %v1199_v46 = vsel %vm1115_vm10, %v12384_v10, %v12387_v6 }
 0x480   : > { %1661 = vrot.lane.b32.xlu0 %v1188_v59, %s5110_s30  ;;  %v8050_v43 = vpop.permute.xlu1 %1551 }
 0x483   : > { %1683 = vrot.lane.b32.xlu1 %v1198_v7, %s5110_s30  ;;  %v8056_v5 = vpop.permute.xlu0 %1561  ;;  %v12389_v7 = vld [vmem:[#allocation32_spill] sm:$0xff] }
 0x484   : > { %12385 = vst [vmem:[#allocation144_spill] sm:$0xff] %v8056_v5  ;;  %1659 = vrot.lane.b32.xlu0 %v12383_v53, %s5110_s30  ;;  %v8060_v21 = vpop.permute.xlu1 %1555  ;;  %v12390_v53 = vld [vmem:[#allocation29_spill] sm:$0xff] }
 0x485   : > { %v1192_v9 = vsel %vm1115_vm10, %v12390_v53, %v12389_v7  ;;  %v1191_v63 = vsel %vm1115_vm10, %v12386_v34, %v12390_v53 }
 0x487   : > { %1665 = vrot.lane.b32.xlu1 %v1190_v60, %s5110_s30  ;;  %v8069_v33 = vpop.permute.xlu0 %1565 }
 0x488   : > { %12388 = vst [vmem:[#allocation143_spill] sm:$0xff] %v8069_v33  ;;  %1685 = vrot.lane.b32.xlu0 %v1199_v46, %s5110_s30  ;;  %v8072_v59 = vpop.permute.xlu1 %1559  ;;  %v12393_v46 = vld [vmem:[#allocation31_spill] sm:$0xff]  ;;  %v12399_v33 = vld [vmem:[#allocation40_spill] sm:$0xff] }
 0x489   : > { %v1194_v24 = vsel %vm1115_vm10, %v12393_v46, %v12392_v58 }
 0x48b   : > { %1669 = vrot.lane.b32.xlu1 %v1192_v9, %s5110_s30  ;;  %v8081_v60 = vpop.permute.xlu0 %1569  ;;  %v1193_v9 = vsel %vm1115_vm10, %v12389_v7, %v12393_v46  ;;  %v1195_v7 = vsel %vm1115_vm10, %v12392_v58, %v12397_v39  ;;  %v12401_v39 = vld [vmem:[#allocation43_spill] sm:$0xff] }
 0x48c   : > { %1667 = vrot.lane.b32.xlu0 %v1191_v63, %s5110_s30  ;;  %v8084_v10 = vpop.permute.xlu1 %1563  ;;  %v12396_v63 = vld [vmem:[#allocation41_spill] sm:$0xff] }
 0x48d   : > { %12391 = vst [vmem:[#allocation145_spill] sm:$0xff] %v8084_v10 }
 0x48f   : > { %1673 = vrot.lane.b32.xlu1 %v1194_v24, %s5110_s30  ;;  %v8098_v34 = vpop.permute.xlu0 %1573  ;;  %v1200_v24 = vsel %vm1115_vm10, %v12387_v6, %v12396_v63  ;;  %v1201_v6 = vsel %vm1115_vm10, %v12396_v63, %v12399_v33 }
 0x490   : > { %1671 = vrot.lane.b32.xlu0 %v1193_v9, %s5110_s30  ;;  %v8103_v53 = vpop.permute.xlu1 %1567 }
 0x491   : > { %12395 = vst [vmem:[#allocation161_spill] sm:$0xff] %v8103_v53  ;;  %v1202_v53 = vsel %vm1115_vm10, %v12399_v33, %v12398_v51 }
 0x493   : > { %1687 = vrot.lane.b32.xlu1 %v1200_v24, %s5110_s30  ;;  %v8114_v46 = vpop.permute.xlu0 %1577 }
 0x494   : > { %1675 = vrot.lane.b32.xlu0 %v1195_v7, %s5110_s30  ;;  %v8117_v9 = vpop.permute.xlu1 %1571  ;;  %v1203_v7 = vsel %vm1115_vm10, %v12398_v51, %v12401_v39 }
 0x497   : > { %1691 = vrot.lane.b32.xlu1 %v1202_v53, %s5110_s30  ;;  %v8126_v24 = vpop.permute.xlu0 %1581 }
 0x498   : > { %12400 = vst [vmem:[#allocation76_spill] sm:$0xff] %v8126_v24  ;;  %1689 = vrot.lane.b32.xlu0 %v1201_v6, %s5110_s30  ;;  %v8129_v58 = vpop.permute.xlu1 %1575 }
 0x49b   : > { %v8134_v55 = vpop.permute.xlu0 %1585 }
 0x49c   : > { %12402 = vst [vmem:[#allocation93_spill] sm:$0xff] %v8134_v55  ;;  %1693 = vrot.lane.b32.xlu0 %v1203_v7, %s5110_s30  ;;  %v8137_v57 = vpop.permute.xlu1 %1579 }
 0x49d   : > { %12403 = vst [vmem:[#allocation79_spill] sm:$0xff] %v8137_v57 }
 0x49f   : > { %v8139_v53 = vpop.permute.xlu0 %1589 }
 0x4a0   : > { %v8141_v30 = vpop.permute.xlu1 %1583 }
 0x4a1   : > { %12404 = vst [vmem:[#allocation157_spill] sm:$0xff] %v8141_v30 }
 0x4a3   : > { %v8143_v33 = vpop.permute.xlu0 %1593 }
 0x4a4   : > { %v8145_v63 = vpop.permute.xlu1 %1587 }
 0x4a7   : > { %v8147_v6 = vpop.permute.xlu0 %1597 }
 0x4a8   : > { %12405 = vst [vmem:[#allocation72_spill] sm:$0xff] %v8147_v6  ;;  %v8149_v32 = vpop.permute.xlu1 %1591 }
 0x4ab   : > { %v8151_v52 = vpop.permute.xlu0 %1601 }
 0x4ac   : > { %12406 = vst [vmem:[#allocation87_spill] sm:$0xff] %v8151_v52  ;;  %v8153_v51 = vpop.permute.xlu1 %1595 }
 0x4af   : > { %v1606_v39 = vpop.permute.xlu0 %1605 }
 0x4b0   : > { %v8155_v7 = vpop.permute.xlu1 %1599 }
 0x4b1   : > { %12407 = vst [vmem:[#allocation12_spill] sm:$0xff] %v8155_v7 }
 0x4b3   : > { %v8157_v55 = vpop.permute.xlu0 %1609 }
 0x4b4   : > { %v8159_v18 = vpop.permute.xlu1 %1603 }
 0x4b5   : > { %12408 = vst [vmem:[#allocation13_spill] sm:$0xff] %v8159_v18 }
 0x4b8   : > { %v8161_v30 = vpop.permute.xlu0 %1613  ;;  %v1608_v16 = vpop.permute.xlu1 %1607 }
 0x4bc   : > { %v8163_v5 = vpop.permute.xlu1 %1611 }
 0x4bd   : > { %v8165_v10 = vpop.permute.xlu0 %1617 }
 0x4be   : > { %12409 = vst [vmem:[#allocation155_spill] sm:$0xff] %v8165_v10 }
 0x4c0   : > { %v8167_v57 = vpop.permute.xlu1 %1615 }
 0x4c1   : > { %12410 = vst [vmem:[#allocation153_spill] sm:$0xff] %v8167_v57 }
 0x4c2   : > { %v8169_v24 = vpop.permute.xlu0 %1621 }
 0x4c3   : > { %12411 = vst [vmem:[#allocation148_spill] sm:$0xff] %v8169_v24 }
 0x4c4   : > { %v8171_v52 = vpop.permute.xlu1 %1619 }
 0x4c5   : > { %12412 = vst [vmem:[#allocation78_spill] sm:$0xff] %v8171_v52 }
 0x4c7   : > { %v1626_v6 = vpop.permute.xlu0 %1625 }
 0x4c8   : > { %v1624_v17 = vpop.permute.xlu1 %1623 }
 0x4cc   : > { %v8173_v7 = vpop.permute.xlu0 %1629  ;;  %v8175_v0 = vpop.permute.xlu1 %1627 }
 0x4d0   : > { %v8177_v18 = vpop.permute.xlu1 %1631 }
 0x4d1   : > { %v8179_v11 = vpop.permute.xlu0 %1633 }
 0x4d2   : > { %12413 = vst [vmem:[#allocation151_spill] sm:$0xff] %v8179_v11 }
 0x4d4   : > { %v8181_v47 = vpop.permute.xlu1 %1635 }
 0x4d5   : > { %12414 = vst [vmem:[#allocation60_spill] sm:$0xff] %v8181_v47 }
 0x4d6   : > { %v8183_v22 = vpop.permute.xlu0 %1637 }
 0x4d7   : > { %12415 = vst [vmem:[#allocation66_spill] sm:$0xff] %v8183_v22 }
 0x4d8   : > { %v8185_v10 = vpop.permute.xlu1 %1639 }
 0x4d9   : > { %12416 = vst [vmem:[#allocation160_spill] sm:$0xff] %v8185_v10 }
 0x4da   : > { %v1642_v57 = vpop.permute.xlu0 %1641 }
 0x4dc   : > { %v1644_v24 = vpop.permute.xlu1 %1643 }
 0x4dd   : > { %v1888_v27 = vsel %vm1695_vm11, %v1642_v57, %v1644_v24 }
 0x4de   : > { %v1646_v23 = vpop.permute.xlu0 %1645 }
 0x4e0   : > { %v1648_v52 = vpop.permute.xlu1 %1647 }
 0x4e2   : > { %v8187_v61 = vpop.permute.xlu0 %1649 }
 0x4e4   : > { %v8189_v35 = vpop.permute.xlu1 %1651 }
 0x4e5   : > { %12417 = vst [vmem:[#allocation14_spill] sm:$0xff] %v8189_v35 }
 0x4e6   : > { %v8191_v31 = vpop.permute.xlu0 %1653 }
 0x4e7   : > { %12418 = vst [vmem:[#allocation15_spill] sm:$0xff] %v8191_v31 }
 0x4e8   : > { %v8193_v25 = vpop.permute.xlu1 %1655 }
 0x4e9   : > { %12419 = vst [vmem:[#allocation62_spill] sm:$0xff] %v8193_v25 }
 0x4ea   : > { %v8195_v37 = vpop.permute.xlu0 %1657 }
 0x4eb   : > { %12420 = vst [vmem:[#allocation58_spill] sm:$0xff] %v8195_v37  ;;  %v1889_v37 = vsel %vm1695_vm11, %v1644_v24, %v1646_v23  ;;  %v1890_v24 = vsel %vm1695_vm11, %v1646_v23, %v1648_v52  ;;  %v1882_v23 = vsel %vm1695_vm11, %v8175_v0, %v8173_v7 }
 0x4ec   : > { %v1680_v11 = vpop.permute.xlu1 %1679 }
 0x4ee   : > { %v1682_v47 = vpop.permute.xlu0 %1681 }
 0x4ef   : > { %v1905_v22 = vsel %vm1695_vm11, %v1680_v11, %v1682_v47 }
 0x4f0   : > { %2174 = vmatprep.subr.mxu0 %v1905_v22  ;;  %v1678_v10 = vpop.permute.xlu1 %1677 }
 0x4f1   : > { %v1904_v26 = vsel %vm1695_vm11, %v1678_v10, %v1680_v11  ;;  %v1891_v10 = vsel %vm1695_vm11, %v1648_v52, %v8187_v61  ;;  %v1841_v52 = vsel %vm1695_vm11, %v8004_v41, %v7989_v15 }
 0x4f2   : > { %v1662_v44 = vpop.permute.xlu0 %1661  ;;  %2175 = vmatpush2.msra.mxu0 %v1904_v26  ;;  %v1881_v26 = vsel %vm1695_vm11, %v1626_v6, %v8175_v0  ;;  %v1874_v0 = vsel %vm1695_vm11, %v8157_v55, %v8163_v5 }
 0x4f4   : > { %v1664_v48 = vpop.permute.xlu1 %1663 }
 0x4f5   : > { %v1897_v36 = vsel %vm1695_vm11, %v1662_v44, %v1664_v48 }
 0x4f6   : > { %v1660_v35 = vpop.permute.xlu0 %1659  ;;  %2176 = vmatprep.subr.mxu0 %v1897_v36 }
 0x4f7   : > { %v1896_v31 = vsel %vm1695_vm11, %v1660_v35, %v1662_v44  ;;  %v1865_v35 = vsel %vm1695_vm11, %v8139_v53, %v8149_v32 }
 0x4f8   : > { %2177 = vmatpush2.msra.mxu0 %v1896_v31  ;;  %v1684_v25 = vpop.permute.xlu1 %1683  ;;  %v1880_v31 = vsel %vm1695_vm11, %v1624_v17, %v1626_v6  ;;  %v1864_v17 = vsel %vm1695_vm11, %v8145_v63, %v8139_v53  ;;  %v1849_v53 = vsel %vm1695_vm11, %v8035_v2, %v8060_v21  ;;  %v1883_v63 = vsel %vm1695_vm11, %v8173_v7, %v8177_v18 }
 0x4f9   : > { %2178 = vmatprep.subr.mxu0 %v1889_v37  ;;  %v1906_v11 = vsel %vm1695_vm11, %v1682_v47, %v1684_v25  ;;  %v1873_v37 = vsel %vm1695_vm11, %v1608_v16, %v8157_v55  ;;  %v1848_v6 = vsel %vm1695_vm11, %v8050_v43, %v8035_v2  ;;  %v1840_v2 = vsel %vm1695_vm11, %v7973_v14, %v8004_v41 }
 0x4fa   : > { %v8203_v22 = vpop.permute.xlu0 %1685  ;;  %2179 = vmatpush2.msra.mxu0 %v1888_v27  ;;  %v1872_v27 = vsel %vm1695_vm11, %v1606_v39, %v1608_v16  ;;  %v1857_v16 = vsel %vm1695_vm11, %v8117_v9, %v8098_v34  ;;  %v1833_v43 = vsel %vm1695_vm11, %v7863_v8, %v7931_v19  ;;  %v1832_v14 = vsel %vm1695_vm11, %v7901_v20, %v7863_v8 }
 0x4fb   : > { %2180 = vmatprep.subr.mxu0 %v1881_v26  ;;  %v1907_v36 = vsel %vm1695_vm11, %v1684_v25, %v8203_v22  ;;  %v1866_v55 = vsel %vm1695_vm11, %v8149_v32, %v8143_v33  ;;  %v1825_v41 = vsel %vm1695_vm11, %v7785_v50, %v7747_v13  ;;  %v1859_v8 = vsel %vm1695_vm11, %v8129_v58, %v8114_v46  ;;  %v12423_v26 = vld [vmem:[#allocation122_spill] sm:$0xff] }
 0x4fc   : > { %2245 = vmatprep.subr.mxu1 %v1907_v36  ;;  %2181 = vmatpush2.msra.mxu0 %v1880_v31  ;;  %v1666_v44 = vpop.permute.xlu1 %1665  ;;  %v1824_v20 = vsel %vm1695_vm11, %v7714_v12, %v7785_v50  ;;  %v1858_v32 = vsel %vm1695_vm11, %v8098_v34, %v8129_v58  ;;  %v1821_v39 = vsel %vm1695_vm11, %v7680_v4, %v7719_v29  ;;  %v12421_v58 = vld [vmem:[#allocation126_spill] sm:$0xff]  ;;  %v12425_v36 = vld [vmem:[#allocation121_spill] sm:$0xff] }
 0x4fd   : > { %2246 = vmatpush2.msra.mxu1 %v1906_v11  ;;  %2182 = vmatprep.subr.mxu0 %v1873_v37  ;;  %v1898_v25 = vsel %vm1695_vm11, %v1664_v48, %v1666_v44  ;;  %v1856_v48 = vsel %vm1695_vm11, %v8081_v60, %v8117_v9  ;;  %v1875_v60 = vsel %vm1695_vm11, %v8163_v5, %v8161_v30  ;;  %v8276_v5 = vld [vmem:[%s11422_s2] sm:$0xff]  ;;  %v12428_v37 = vld [vmem:[#allocation112_spill] sm:$0xff] }
 0x4fe   : > { %v8214_v57 = vpop.permute.xlu0 %1667  ;;  %2183 = vmatpush2.msra.mxu0 %v1872_v27  ;;  %v1867_v9 = vsel %vm1695_vm11, %v8143_v33, %v8153_v51  ;;  %v1851_v33 = vsel %vm1695_vm11, %v8047_v62, %v8072_v59  ;;  %v1850_v12 = vsel %vm1695_vm11, %v8060_v21, %v8047_v62  ;;  %v1820_v50 = vsel %vm1695_vm11, %v7694_v38, %v7680_v4  ;;  %v12422_v21 = vld [vmem:[#allocation124_spill] sm:$0xff] }
 0x4ff   : > { %2184 = vmatprep.subr.mxu0 %v1865_v35  ;;  %v1899_v47 = vsel %vm1695_vm11, %v1666_v44, %v8214_v57  ;;  %v1843_v34 = vsel %vm1695_vm11, %v8016_v28, %v8001_v1  ;;  %v1813_v7 = vsel %vm1695_vm11, %v7652_v3, %v12421_v58  ;;  %v1842_v62 = vsel %vm1695_vm11, %v7989_v15, %v8016_v28  ;;  %v12424_v28 = vld [vmem:[#allocation118_spill] sm:$0xff]  ;;  %v12427_v44 = vld [vmem:[#allocation115_spill] sm:$0xff] }
 0x500   : > { %2247 = vmatprep.subr.mxu1 %v1899_v47  ;;  %2185 = vmatpush2.msra.mxu0 %v1864_v17  ;;  %v1812_v4 = vsel %vm1695_vm11, %v7630_v54, %v7652_v3  ;;  %v1835_v38 = vsel %vm1695_vm11, %v7893_v45, %v7958_v42  ;;  %v1805_v11 = vsel %vm1695_vm11, %v12423_v26, %v12422_v21  ;;  %v12429_v35 = vld [vmem:[#allocation130_spill] sm:$0xff] }
 0x501   : > { %2248 = vmatpush2.msra.mxu1 %v1898_v25  ;;  %2186 = vmatprep.subr.mxu0 %v1857_v16  ;;  %v1834_v15 = vsel %vm1695_vm11, %v7931_v19, %v7893_v45  ;;  %v1804_v54 = vsel %vm1695_vm11, %v7598_v56, %v12423_v26  ;;  %v1827_v3 = vsel %vm1695_vm11, %v7813_v49, %v7777_v40  ;;  %v12426_v19 = vld [vmem:[#allocation117_spill] sm:$0xff]  ;;  %v12431_v17 = vld [vmem:[#allocation114_spill] sm:$0xff]  ;;  %v12432_v16 = vld [vmem:[#allocation108_spill] sm:$0xff] }
 0x502   : > { %2249 = vmatprep.subr.mxu1 %v1891_v10  ;;  %2187 = vmatpush2.msra.mxu0 %v1856_v48  ;;  %v1797_v31 = vsel %vm1695_vm11, %v12425_v36, %v12424_v28  ;;  %v1826_v45 = vsel %vm1695_vm11, %v7747_v13, %v7813_v49  ;;  %v1796_v56 = vsel %vm1695_vm11, %v12426_v19, %v12425_v36  ;;  %v12430_v25 = vld [vmem:[#allocation129_spill] sm:$0xff]  ;;  %v12433_v10 = vld [vmem:[#allocation110_spill] sm:$0xff] }
 0x503   : > { %2250 = vmatpush2.msra.mxu1 %v1890_v24  ;;  %2188 = vmatprep.subr.mxu0 %v1849_v53  ;;  %v1789_v27 = vsel %vm1695_vm11, %v12428_v37, %v12427_v44  ;;  %v1823_v47 = vsel %vm1695_vm11, %v12430_v25, %v12429_v35  ;;  %v1788_v13 = vsel %vm1695_vm11, %v12431_v17, %v12428_v37  ;;  %v12434_v24 = vld [vmem:[#allocation127_spill] sm:$0xff]  ;;  %v12435_v53 = vld [vmem:[#allocation128_spill] sm:$0xff]  ;;  %v12450_v26 = vld [vmem:[#allocation113_spill] sm:$0xff] }
 0x504   : > { %2251 = vmatprep.subr.mxu1 %v1883_v63  ;;  %2189 = vmatpush2.msra.mxu0 %v1848_v6  ;;  %v1822_v49 = vsel %vm1695_vm11, %v7719_v29, %v12430_v25  ;;  %v1781_v48 = vsel %vm1695_vm11, %v12433_v10, %v12432_v16  ;;  %v1815_v63 = vsel %vm1695_vm11, %v12435_v53, %v12434_v24  ;;  %v12436_v6 = vld [vmem:[#allocation106_spill] sm:$0xff]  ;;  %v12453_v36 = vld [vmem:[#allocation89_spill] sm:$0xff]  ;;  %v12457_v25 = vld [vmem:[#allocation80_spill] sm:$0xff] }
 0x505   : > { %2252 = vmatpush2.msra.mxu1 %v1882_v23  ;;  %2190 = vmatprep.subr.mxu0 %v1841_v52  ;;  %v1780_v23 = vsel %vm1695_vm11, %v12436_v6, %v12433_v10  ;;  %v1814_v29 = vsel %vm1695_vm11, %v12421_v58, %v12435_v53  ;;  %v12437_v52 = vld [vmem:[#allocation105_spill] sm:$0xff] }
 0x506   : > { %2253 = vmatprep.subr.mxu1 %v1875_v60  ;;  %2191 = vmatpush2.msra.mxu0 %v1840_v2  ;;  %v12438_v60 = vld [vmem:[#allocation102_spill] sm:$0xff]  ;;  %v12454_v19 = vld [vmem:[#allocation109_spill] sm:$0xff] }
 0x507   : > { %2254 = vmatpush2.msra.mxu1 %v1874_v0  ;;  %2192 = vmatprep.subr.mxu0 %v1833_v43  ;;  %v1773_v2 = vsel %vm1695_vm11, %v12438_v60, %v12437_v52  ;;  %v12439_v0 = vld [vmem:[#allocation125_spill] sm:$0xff]  ;;  %v12440_v43 = vld [vmem:[#allocation123_spill] sm:$0xff] }
 0x508   : > { %2255 = vmatprep.subr.mxu1 %v1867_v9  ;;  %2193 = vmatpush2.msra.mxu0 %v1832_v14  ;;  %v1807_v9 = vsel %vm1695_vm11, %v12440_v43, %v12439_v0  ;;  %v12441_v14 = vld [vmem:[#allocation104_spill] sm:$0xff]  ;;  %v12462_v53 = vld [vmem:[#allocation73_spill] sm:$0xff]  ;;  %v12466_v0 = vld [vmem:[#allocation159_spill] sm:$0xff] }
 0x509   : > { %2256 = vmatpush2.msra.mxu1 %v1866_v55  ;;  %2194 = vmatprep.subr.mxu0 %v1825_v41  ;;  %v1772_v55 = vsel %vm1695_vm11, %v12441_v14, %v12438_v60  ;;  %v1806_v41 = vsel %vm1695_vm11, %v12422_v21, %v12440_v43  ;;  %v12449_v21 = vld [vmem:[#allocation116_spill] sm:$0xff]  ;;  %v12465_v60 = vld [vmem:[#allocation101_spill] sm:$0xff] }
 0x50a   : > { %2257 = vmatprep.subr.mxu1 %v1859_v8  ;;  %2195 = vmatpush2.msra.mxu0 %v1824_v20  ;;  %v12442_v8 = vld [vmem:[#allocation98_spill] sm:$0xff]  ;;  %v12443_v20 = vld [vmem:[#allocation100_spill] sm:$0xff] }
 0x50b   : > { %2258 = vmatpush2.msra.mxu1 %v1858_v32  ;;  %2197 = vmatmul.mubr.f32.vlgmr.msra.gmra.mxu0 %v8276_v5  ;;  %v1765_v32 = vsel %vm1695_vm11, %v12443_v20, %v12442_v8  ;;  %v12468_v14 = vld [vmem:[#allocation152_spill] sm:$0xff] }
 0x50c   : > { %2259 = vmatprep.subr.mxu1 %v1851_v33  ;;  %2274 = vmatprep.subr.mxu0 %v1821_v39  ;;  %v12444_v33 = vld [vmem:[#allocation119_spill] sm:$0xff]  ;;  %v12445_v39 = vld [vmem:[#allocation120_spill] sm:$0xff] }
 0x50d   : > { %2260 = vmatpush2.msra.mxu1 %v1850_v12  ;;  %2275 = vmatpush1.msra.mxu0 %v1820_v50  ;;  %v1799_v12 = vsel %vm1695_vm11, %v12445_v39, %v12444_v33  ;;  %v12446_v50 = vld [vmem:[#allocation96_spill] sm:$0xff]  ;;  %v1798_v58 = vsel %vm1695_vm11, %v12424_v28, %v12445_v39  ;;  %v12452_v28 = vld [vmem:[#allocation86_spill] sm:$0xff] }
 0x50e   : > { %2261 = vmatprep.subr.mxu1 %v1843_v34  ;;  %2276 = vmatprep.subr.mxu0 %v1813_v7  ;;  %v1764_v34 = vsel %vm1695_vm11, %v12446_v50, %v12443_v20  ;;  %v12447_v7 = vld [vmem:[#allocation97_spill] sm:$0xff]  ;;  %v12469_v20 = vld [vmem:[#allocation94_spill] sm:$0xff]  ;;  %v12472_v50 = vld [vmem:[#allocation67_spill] sm:$0xff] }
 0x50f   : > { %2262 = vmatpush2.msra.mxu1 %v1842_v62  ;;  %2277 = vmatpush1.msra.mxu0 %v1812_v4  ;;  %v12448_v62 = vld [vmem:[#allocation90_spill] sm:$0xff] }
 0x510   : > { %2263 = vmatprep.subr.mxu1 %v1835_v38  ;;  %2278 = vmatprep.subr.mxu0 %v1805_v11  ;;  %v1757_v4 = vsel %vm1695_vm11, %v12448_v62, %v12447_v7  ;;  %v8388_v38 = vpop.permute.xlu1 %1669  ;;  %v1791_v11 = vsel %vm1695_vm11, %v12450_v26, %v12449_v21  ;;  %v12471_v39 = vld [vmem:[#allocation154_spill] sm:$0xff] }
 0x511   : > { %2264 = vmatpush2.msra.mxu1 %v1834_v15  ;;  %2279 = vmatpush1.msra.mxu0 %v1804_v54  ;;  %v12451_v15 = vld [vmem:[#allocation92_spill] sm:$0xff] }
 0x512   : > { %2265 = vmatprep.subr.mxu1 %v1827_v3  ;;  %2280 = vmatprep.subr.mxu0 %v1797_v31  ;;  %v1756_v54 = vsel %vm1695_vm11, %v12451_v15, %v12448_v62  ;;  %v1790_v3 = vsel %vm1695_vm11, %v12427_v44, %v12450_v26  ;;  %v1749_v31 = vsel %vm1695_vm11, %v12453_v36, %v12452_v28  ;;  %v12474_v62 = vld [vmem:[#allocation88_spill] sm:$0xff]  ;;  %v12476_v26 = vld [vmem:[#allocation65_spill] sm:$0xff]  ;;  %v12477_v15 = vld [vmem:[#allocation63_spill] sm:$0xff] }
 0x513   : > { %2266 = vmatpush2.msra.mxu1 %v1826_v45  ;;  %2281 = vmatpush1.msra.mxu0 %v1796_v56  ;;  %v8402_v45 = vpop.permute.xlu0 %1671  ;;  %v12455_v56 = vld [vmem:[#allocation111_spill] sm:$0xff] }
 0x514   : > { %2268 = vmatmul.mubr.f32.vlgmr.msra.gmra.mxu1 %v8276_v5  ;;  %2282 = vmatprep.subr.mxu0 %v1789_v27  ;;  %v1783_v37 = vsel %vm1695_vm11, %v12455_v56, %v12454_v19  ;;  %v12456_v27 = vld [vmem:[#allocation85_spill] sm:$0xff]  ;;  %v1782_v44 = vsel %vm1695_vm11, %v12432_v16, %v12455_v56  ;;  %v12480_v19 = vld [vmem:[#allocation82_spill] sm:$0xff] }
 0x515   : > { %2345 = vmatprep.subr.mxu1 %v1823_v47  ;;  %2283 = vmatpush1.msra.mxu0 %v1788_v13  ;;  %v1748_v35 = vsel %vm1695_vm11, %v12456_v27, %v12453_v36  ;;  %v12458_v47 = vld [vmem:[#allocation81_spill] sm:$0xff]  ;;  %v12459_v13 = vld [vmem:[#allocation107_spill] sm:$0xff] }
 0x516   : > { %2346 = vmatpush1.msra.mxu1 %v1822_v49  ;;  %2284 = vmatprep.subr.mxu0 %v1781_v48  ;;  %v1741_v17 = vsel %vm1695_vm11, %v12458_v47, %v12457_v25  ;;  %v12460_v49 = vld [vmem:[#allocation103_spill] sm:$0xff] }
 0x517   : > { %2347 = vmatprep.subr.mxu1 %v1815_v63  ;;  %2285 = vmatpush1.msra.mxu0 %v1780_v23  ;;  %v1775_v10 = vsel %vm1695_vm11, %v12460_v49, %v12459_v13  ;;  %v12461_v48 = vld [vmem:[#allocation83_spill] sm:$0xff]  ;;  %v1774_v16 = vsel %vm1695_vm11, %v12437_v52, %v12460_v49  ;;  %v8428_v23 = vpop.permute.xlu1 %1673  ;;  %v1766_v52 = vsel %vm1695_vm11, %v12442_v8, %v12465_v60  ;;  %v12484_v13 = vld [vmem:[#allocation74_spill] sm:$0xff]  ;;  %v12485_v49 = vld [vmem:[#allocation77_spill] sm:$0xff] }
 0x518   : > { %2348 = vmatpush1.msra.mxu1 %v1814_v29  ;;  %2286 = vmatprep.subr.mxu0 %v1773_v2  ;;  %v1740_v24 = vsel %vm1695_vm11, %v12461_v48, %v12458_v47  ;;  %v12463_v63 = vld [vmem:[#allocation75_spill] sm:$0xff] }
 0x519   : > { %2349 = vmatprep.subr.mxu1 %v1807_v9  ;;  %2287 = vmatpush1.msra.mxu0 %v1772_v55  ;;  %v1733_v6 = vsel %vm1695_vm11, %v12463_v63, %v12462_v53  ;;  %v12464_v29 = vld [vmem:[#allocation99_spill] sm:$0xff]  ;;  %v1732_v43 = vsel %vm1695_vm11, %v12466_v0, %v12463_v63  ;;  %v12467_v9 = vld [vmem:[#allocation156_spill] sm:$0xff]  ;;  %v12487_v63 = vld [vmem:[#allocation158_spill] sm:$0xff] }
 0x51a   : > { %2350 = vmatpush1.msra.mxu1 %v1806_v41  ;;  %2288 = vmatprep.subr.mxu0 %v1765_v32  ;;  %v1767_v2 = vsel %vm1695_vm11, %v12465_v60, %v12464_v29  ;;  %v1725_v55 = vsel %vm1695_vm11, %v12468_v14, %v12467_v9  ;;  %v8442_v41 = vpop.permute.xlu0 %1675  ;;  %v12470_v32 = vld [vmem:[#allocation95_spill] sm:$0xff]  ;;  %v12489_v0 = vld [vmem:[#allocation69_spill] sm:$0xff] }
 0x51b   : > { %2351 = vmatprep.subr.mxu1 %v1799_v12  ;;  %2289 = vmatpush1.msra.mxu0 %v1764_v34  ;;  %v1759_v33 = vsel %vm1695_vm11, %v12470_v32, %v12469_v20  ;;  %v1724_v12 = vsel %vm1695_vm11, %v12471_v39, %v12468_v14  ;;  %v1758_v8 = vsel %vm1695_vm11, %v12447_v7, %v12470_v32  ;;  %v12473_v34 = vld [vmem:[#allocation70_spill] sm:$0xff]  ;;  %v1688_v36 = vpop.permute.xlu1 %1687  ;;  %v12486_v48 = vld [vmem:[#allocation47_spill] sm:$0xff]  ;;  %v12493_v32 = vld [vmem:[#allocation64_spill] sm:$0xff] }
 0x51c   : > { %2352 = vmatpush1.msra.mxu1 %v1798_v58  ;;  %2290 = vmatprep.subr.mxu0 %v1757_v4  ;;  %v1717_v58 = vsel %vm1695_vm11, %v12473_v34, %v12472_v50  ;;  %v12475_v4 = vld [vmem:[#allocation91_spill] sm:$0xff]  ;;  %v1908_v60 = vsel %vm1695_vm11, %v8203_v22, %v1688_v36  ;;  %v1900_v22 = vsel %vm1695_vm11, %v8214_v57, %v8388_v38 }
 0x51d   : > { %2353 = vmatprep.subr.mxu1 %v1791_v11  ;;  %2291 = vmatpush1.msra.mxu0 %v1756_v54  ;;  %v1751_v21 = vsel %vm1695_vm11, %v12475_v4, %v12474_v62  ;;  %v1716_v11 = vsel %vm1695_vm11, %v12476_v26, %v12473_v34  ;;  %v1750_v7 = vsel %vm1695_vm11, %v12452_v28, %v12475_v4  ;;  %v12478_v54 = vld [vmem:[#allocation57_spill] sm:$0xff]  ;;  %v12491_v14 = vld [vmem:[#allocation15_spill] sm:$0xff]  ;;  %v12498_v62 = vld [vmem:[#allocation54_spill] sm:$0xff] }
 0x51e   : > { %2354 = vmatpush1.msra.mxu1 %v1790_v3  ;;  %2292 = vmatprep.subr.mxu0 %v1749_v31  ;;  %v1709_v3 = vsel %vm1695_vm11, %v12478_v54, %v12477_v15  ;;  %v12479_v31 = vld [vmem:[#allocation84_spill] sm:$0xff]  ;;  %v1742_v28 = vsel %vm1695_vm11, %v12457_v25, %v12480_v19  ;;  %v1734_v25 = vsel %vm1695_vm11, %v12462_v53, %v12485_v49 }
 0x51f   : > { %2355 = vmatprep.subr.mxu1 %v1783_v37  ;;  %2293 = vmatpush1.msra.mxu0 %v1748_v35  ;;  %v1743_v56 = vsel %vm1695_vm11, %v12480_v19, %v12479_v31  ;;  %v12481_v37 = vld [vmem:[#allocation61_spill] sm:$0xff]  ;;  %v1901_v53 = vsel %vm1695_vm11, %v8388_v38, %v8402_v45  ;;  %v1692_v38 = vpop.permute.xlu1 %1691  ;;  %v12502_v31 = vld [vmem:[#allocation72_spill] sm:$0xff] }
 0x520   : > { %2356 = vmatpush1.msra.mxu1 %v1782_v44  ;;  %2294 = vmatprep.subr.mxu0 %v1741_v17  ;;  %v1708_v27 = vsel %vm1695_vm11, %v12481_v37, %v12478_v54  ;;  %v12482_v35 = vld [vmem:[#allocation49_spill] sm:$0xff]  ;;  %v12483_v44 = vld [vmem:[#allocation52_spill] sm:$0xff]  ;;  %v1690_v17 = vpop.permute.xlu0 %1689  ;;  %v1868_v37 = vsel %vm1695_vm11, %v8153_v51, %v12502_v31 }
 0x521   : > { %2357 = vmatprep.subr.mxu1 %v1775_v10  ;;  %2295 = vmatpush1.msra.mxu0 %v1740_v24  ;;  %v1701_v47 = vsel %vm1695_vm11, %v12483_v44, %v12482_v35  ;;  %v1735_v10 = vsel %vm1695_vm11, %v12485_v49, %v12484_v13  ;;  %v1700_v24 = vsel %vm1695_vm11, %v12486_v48, %v12483_v44  ;;  %v12505_v44 = vld [vmem:[#allocation58_spill] sm:$0xff]  ;;  %v12509_v49 = vld [vmem:[#allocation160_spill] sm:$0xff] }
 0x522   : > { %2358 = vmatpush1.msra.mxu1 %v1774_v16  ;;  %2296 = vmatprep.subr.mxu0 %v1733_v6  ;;  %v1909_v16 = vsel %vm1695_vm11, %v1688_v36, %v1690_v17  ;;  %v12488_v6 = vld [vmem:[#allocation71_spill] sm:$0xff]  ;;  %v1702_v26 = vsel %vm1695_vm11, %v12482_v35, %v12498_v62  ;;  %v12501_v36 = vld [vmem:[#allocation12_spill] sm:$0xff] }
 0x523   : > { %2359 = vmatprep.subr.mxu1 %v1767_v2  ;;  %2297 = vmatpush1.msra.mxu0 %v1732_v43  ;;  %v1727_v29 = vsel %vm1695_vm11, %v12488_v6, %v12487_v63  ;;  %v1726_v2 = vsel %vm1695_vm11, %v12467_v9, %v12488_v6  ;;  %v12490_v43 = vld [vmem:[#allocation149_spill] sm:$0xff]  ;;  %v1869_v19 = vsel %vm1695_vm11, %v12502_v31, %v12501_v36  ;;  %v12513_v6 = vld [vmem:[#allocation148_spill] sm:$0xff] }
 0x524   : > { %2360 = vmatpush1.msra.mxu1 %v1766_v52  ;;  %2298 = vmatprep.subr.mxu0 %v1725_v55  ;;  %v1719_v52 = vsel %vm1695_vm11, %v12490_v43, %v12489_v0  ;;  %v1718_v9 = vsel %vm1695_vm11, %v12472_v50, %v12490_v43  ;;  %v12492_v55 = vld [vmem:[#allocation14_spill] sm:$0xff]  ;;  %v12496_v50 = vld [vmem:[#allocation151_spill] sm:$0xff] }
 0x525   : > { %2361 = vmatprep.subr.mxu1 %v1759_v33  ;;  %2299 = vmatpush1.msra.mxu0 %v1724_v12  ;;  %v1893_v20 = vsel %vm1695_vm11, %v12492_v55, %v12491_v14  ;;  %v12494_v33 = vld [vmem:[#allocation59_spill] sm:$0xff]  ;;  %v1892_v57 = vsel %vm1695_vm11, %v8187_v61, %v12492_v55  ;;  %v1884_v61 = vsel %vm1695_vm11, %v8177_v18, %v12496_v50 }
 0x526   : > { %2362 = vmatpush1.msra.mxu1 %v1758_v8  ;;  %2300 = vmatprep.subr.mxu0 %v1717_v58  ;;  %v1711_v39 = vsel %vm1695_vm11, %v12494_v33, %v12493_v32  ;;  %v1710_v12 = vsel %vm1695_vm11, %v12477_v15, %v12494_v33  ;;  %v12495_v8 = vld [vmem:[#allocation60_spill] sm:$0xff]  ;;  %v12497_v58 = vld [vmem:[#allocation51_spill] sm:$0xff]  ;;  %v1910_v18 = vsel %vm1695_vm11, %v1690_v17, %v1692_v38  ;;  %v12521_v33 = vld [vmem:[#allocation93_spill] sm:$0xff] }
 0x527   : > { %2363 = vmatprep.subr.mxu1 %v1751_v21  ;;  %2301 = vmatpush1.msra.mxu0 %v1716_v11  ;;  %v1885_v34 = vsel %vm1695_vm11, %v12496_v50, %v12495_v8  ;;  %v1703_v4 = vsel %vm1695_vm11, %v12498_v62, %v12497_v58  ;;  %v1694_v21 = vpop.permute.xlu0 %1693  ;;  %v12499_v11 = vld [vmem:[#allocation155_spill] sm:$0xff]  ;;  %v12508_v17 = vld [vmem:[#allocation144_spill] sm:$0xff]  ;;  %v12527_v62 = vld [vmem:[#allocation142_spill] sm:$0xff] }
 0x528   : > { %2364 = vmatpush1.msra.mxu1 %v1750_v7  ;;  %2302 = vmatprep.subr.mxu0 %v1709_v3  ;;  %v12500_v7 = vld [vmem:[#allocation153_spill] sm:$0xff]  ;;  %v1911_v54 = vsel %vm1695_vm11, %v1692_v38, %v1694_v21  ;;  %v12516_v0 = vld [vmem:[#allocation135_spill] sm:$0xff]  ;;  %v12526_v58 = vld [vmem:[#allocation140_spill] sm:$0xff] }
 0x529   : > { %2365 = vmatprep.subr.mxu1 %v1743_v56  ;;  %2303 = vmatpush1.msra.mxu0 %v1708_v27  ;;  %v1877_v15 = vsel %vm1695_vm11, %v12500_v7, %v12499_v11  ;;  %v1876_v3 = vsel %vm1695_vm11, %v8161_v30, %v12500_v7  ;;  %v1903_v56 = vsel %vm1695_vm11, %v8428_v23, %v8442_v41  ;;  %v12503_v27 = vld [vmem:[#allocation76_spill] sm:$0xff]  ;;  %v12519_v55 = vld [vmem:[#allocation131_spill] sm:$0xff] }
 0x52a   : > { %2366 = vmatpush1.msra.mxu1 %v1742_v28  ;;  %2304 = vmatprep.subr.mxu0 %v1701_v47  ;;  %v1902_v30 = vsel %vm1695_vm11, %v8402_v45, %v8428_v23  ;;  %v12504_v28 = vld [vmem:[#allocation79_spill] sm:$0xff]  ;;  %v12506_v47 = vld [vmem:[#allocation62_spill] sm:$0xff]  ;;  %v12507_v23 = vld [vmem:[#allocation145_spill] sm:$0xff] }
 0x52b   : > { %2367 = vmatprep.subr.mxu1 %v1735_v10  ;;  %2305 = vmatpush1.msra.mxu0 %v1700_v24  ;;  %v1861_v35 = vsel %vm1695_vm11, %v12504_v28, %v12503_v27  ;;  %v1895_v41 = vsel %vm1695_vm11, %v12506_v47, %v12505_v44  ;;  %v1860_v51 = vsel %vm1695_vm11, %v8114_v46, %v12504_v28  ;;  %v12510_v10 = vld [vmem:[#allocation66_spill] sm:$0xff]  ;;  %v12525_v50 = vld [vmem:[#allocation143_spill] sm:$0xff] }
 0x52c   : > { %2368 = vmatpush1.msra.mxu1 %v1734_v25  ;;  %2316 = vmatprep.subr.mxu0 %v1909_v16  ;;  %v1894_v45 = vsel %vm1695_vm11, %v12491_v14, %v12506_v47  ;;  %v1853_v13 = vsel %vm1695_vm11, %v12508_v17, %v12507_v23  ;;  %v1887_v48 = vsel %vm1695_vm11, %v12510_v10, %v12509_v49  ;;  %v12511_v25 = vld [vmem:[#allocation138_spill] sm:$0xff]  ;;  %v12512_v16 = vld [vmem:[#allocation141_spill] sm:$0xff]  ;;  %v12528_v21 = vld [vmem:[#allocation139_spill] sm:$0xff] }
 0x52d   : > { %2369 = vmatprep.subr.mxu1 %v1727_v29  ;;  %2317 = vmatpush2.msra.mxu0 %v1908_v60  ;;  %v1852_v46 = vsel %vm1695_vm11, %v8072_v59, %v12508_v17  ;;  %v1886_v24 = vsel %vm1695_vm11, %v12495_v8, %v12510_v10  ;;  %v1845_v63 = vsel %vm1695_vm11, %v12512_v16, %v12511_v25  ;;  %v12514_v29 = vld [vmem:[#allocation78_spill] sm:$0xff]  ;;  %v12524_v8 = vld [vmem:[#allocation161_spill] sm:$0xff] }
 0x52e   : > { %2370 = vmatpush1.msra.mxu1 %v1726_v2  ;;  %2318 = vmatprep.subr.mxu0 %v1901_v53  ;;  %v1879_v60 = vsel %vm1695_vm11, %v12514_v29, %v12513_v6  ;;  %v1844_v59 = vsel %vm1695_vm11, %v8001_v1, %v12512_v16  ;;  %v1878_v2 = vsel %vm1695_vm11, %v12499_v11, %v12514_v29  ;;  %v12515_v53 = vld [vmem:[#allocation137_spill] sm:$0xff]  ;;  %v12532_v44 = vld [vmem:[#allocation46_spill] sm:$0xff] }
 0x52f   : > { %2371 = vmatprep.subr.mxu1 %v1719_v52  ;;  %2319 = vmatpush2.msra.mxu0 %v1900_v22  ;;  %v1837_v43 = vsel %vm1695_vm11, %v12516_v0, %v12515_v53  ;;  %v12517_v52 = vld [vmem:[#allocation13_spill] sm:$0xff]  ;;  %v12518_v22 = vld [vmem:[#allocation87_spill] sm:$0xff]  ;;  %v1836_v1 = vsel %vm1695_vm11, %v7958_v42, %v12516_v0 }
 0x530   : > { %2372 = vmatpush1.msra.mxu1 %v1718_v9  ;;  %2320 = vmatprep.subr.mxu0 %v1893_v20  ;;  %v1871_v9 = vsel %vm1695_vm11, %v12518_v22, %v12517_v52  ;;  %v1870_v14 = vsel %vm1695_vm11, %v12501_v36, %v12518_v22  ;;  %v12520_v20 = vld [vmem:[#allocation133_spill] sm:$0xff]  ;;  %v2417_v36 = vlaneseq }
 0x531   : > { %2373 = vmatprep.subr.mxu1 %v1711_v39  ;;  %2321 = vmatpush2.msra.mxu0 %v1892_v57  ;;  %v1829_v32 = vsel %vm1695_vm11, %v12520_v20, %v12519_v55  ;;  %v12522_v39 = vld [vmem:[#allocation157_spill] sm:$0xff]  ;;  %v1828_v42 = vsel %vm1695_vm11, %v7777_v40, %v12520_v20  ;;  %v1854_v40 = vsel %vm1695_vm11, %v12507_v23, %v12525_v50 }
 0x532   : > { %2374 = vmatpush1.msra.mxu1 %v1710_v12  ;;  %2322 = vmatprep.subr.mxu0 %v1885_v34  ;;  %v1863_v57 = vsel %vm1695_vm11, %v12522_v39, %v12521_v33  ;;  %v1862_v38 = vsel %vm1695_vm11, %v12503_v27, %v12522_v39  ;;  %v12523_v12 = vld [vmem:[#allocation146_spill] sm:$0xff]  ;;  %v1855_v34 = vsel %vm1695_vm11, %v12525_v50, %v12524_v8  ;;  %v293_v27 = vld [vmem:[#allocation5] sm:$0xff] }
 0x533   : > { %2375 = vmatprep.subr.mxu1 %v1703_v4  ;;  %2323 = vmatpush2.msra.mxu0 %v1884_v61  ;;  %v1847_v4 = vsel %vm1695_vm11, %v12527_v62, %v12526_v58  ;;  %v1846_v61 = vsel %vm1695_vm11, %v12511_v25, %v12527_v62 }
 0x534   : > { %2376 = vmatpush1.msra.mxu1 %v1702_v26  ;;  %2324 = vmatprep.subr.mxu0 %v1877_v15  ;;  %v12529_v26 = vld [vmem:[#allocation136_spill] sm:$0xff] }
 0x535   : > { %2387 = vmatprep.subr.mxu1 %v1911_v54  ;;  %2325 = vmatpush2.msra.mxu0 %v1876_v3  ;;  %v1839_v11 = vsel %vm1695_vm11, %v12529_v26, %v12528_v21  ;;  %v1838_v7 = vsel %vm1695_vm11, %v12515_v53, %v12529_v26  ;;  %v12530_v15 = vld [vmem:[#allocation132_spill] sm:$0xff]  ;;  %v12531_v54 = vld [vmem:[#allocation134_spill] sm:$0xff] }
 0x536   : > { %2388 = vmatpush2.msra.mxu1 %v1910_v18  ;;  %2326 = vmatprep.subr.mxu0 %v1869_v19  ;;  %v1831_v3 = vsel %vm1695_vm11, %v12531_v54, %v12530_v15  ;;  %v1830_v18 = vsel %vm1695_vm11, %v12519_v55, %v12531_v54  ;;  %v2418_v19 = vshrl.u32 %v2417_v36, 7 }
 0x537   : > { %2389 = vmatprep.subr.mxu1 %v1903_v56  ;;  %2327 = vmatpush2.msra.mxu0 %v1868_v37 }
 0x538   : > { %2390 = vmatpush2.msra.mxu1 %v1902_v30  ;;  %2328 = vmatprep.subr.mxu0 %v1861_v35  ;;  %v2423_v56 = vsub.s32 1, %v2418_v19  ;;  %v2419_v37 = vsub.s32 0, %v2418_v19  ;;  %v2427_v28 = vsub.s32 2, %v2418_v19  ;;  %v2431_v17 = vsub.s32 3, %v2418_v19 }
 0x539   : > { %2391 = vmatprep.subr.mxu1 %v1895_v41  ;;  %2329 = vmatpush2.msra.mxu0 %v1860_v51  ;;  %v2435_v10 = vsub.s32 4, %v2418_v19  ;;  %v2439_v6 = vsub.s32 5, %v2418_v19  ;;  %v2443_v22 = vsub.s32 6, %v2418_v19 }
 0x53a   : > { %2392 = vmatpush2.msra.mxu1 %v1894_v45  ;;  %2330 = vmatprep.subr.mxu0 %v1853_v13  ;;  %v8645_v41 = vrot.slane %v293_v27, %v2423_v56  ;;  %v8647_v51 = vrot.slane %v293_v27, %v2419_v37  ;;  %v8657_v25 = vrot.slane %v293_v27, %v2431_v17 }
 0x53b   : > { %2393 = vmatprep.subr.mxu1 %v1887_v48  ;;  %2331 = vmatpush2.msra.mxu0 %v1852_v46  ;;  %v8665_v52 = vrot.slane %v293_v27, %v2439_v6  ;;  %v8668_v20 = vrot.slane %v293_v27, %v2443_v22 }
 0x53c   : > { %2394 = vmatpush2.msra.mxu1 %v1886_v24  ;;  %2332 = vmatprep.subr.mxu0 %v1845_v63  ;;  %12533 = vst [vmem:[#allocation53_spill] sm:$0xff] %v8645_v41  ;;  %12534 = vst [vmem:[#allocation150_spill] sm:$0xff] %v8647_v51  ;;  %v8659_v63 = vrot.slane %v293_v27, %v2435_v10 }
 0x53d   : > { %2395 = vmatprep.subr.mxu1 %v1879_v60  ;;  %2333 = vmatpush2.msra.mxu0 %v1844_v59  ;;  %12536 = vst [vmem:[#allocation42_spill] sm:$0xff] %v8657_v25  ;;  %12538 = vst [vmem:[#allocation68_spill] sm:$0xff] %v8665_v52 }
 0x53e   : > { %2396 = vmatpush2.msra.mxu1 %v1878_v2  ;;  %2334 = vmatprep.subr.mxu0 %v1837_v43  ;;  %12537 = vst [vmem:[#allocation48_spill] sm:$0xff] %v8659_v63  ;;  %12539 = vst [vmem:[#allocation16_spill] sm:$0xff] %v8668_v20 }
 0x53f   : > { %2397 = vmatprep.subr.mxu1 %v1871_v9  ;;  %2335 = vmatpush2.msra.mxu0 %v1836_v1  ;;  %v2447_v1 = vsub.s32 7, %v2418_v19 }
 0x540   : > { %2398 = vmatpush2.msra.mxu1 %v1870_v14  ;;  %2336 = vmatprep.subr.mxu0 %v1829_v32 }
 0x541   : > { %2399 = vmatprep.subr.mxu1 %v1863_v57  ;;  %2337 = vmatpush2.msra.mxu0 %v1828_v42  ;;  %v8671_v39 = vrot.slane %v293_v27, %v2447_v1 }
 0x542   : > { %4785 = vmatprep.mubr.msk.f32.mxu0 %vm2128_vm12, %v12523_v12  ;;  %2400 = vmatpush2.msra.mxu1 %v1862_v38 }
 0x543   : > { %2339 = vmatmul.mubr.f32.vlgmr.msra.gmra.mxu0 %v8276_v5  ;;  %2401 = vmatprep.subr.mxu1 %v1855_v34  ;;  %12540 = vst [vmem:[#allocation17_spill] sm:$0xff] %v8671_v39 }
 0x544   : > { %2402 = vmatpush2.msra.mxu1 %v1854_v40  ;;  %4786 = vmatprep.mubr.msk.f32.mxu1 %vm2128_vm12, %v12523_v12 }
 0x545   : > { %2403 = vmatprep.subr.mxu1 %v1847_v4 }
 0x546   : > { %2404 = vmatpush2.msra.mxu1 %v1846_v61 }
 0x547   : > { %2405 = vmatprep.subr.mxu1 %v1839_v11 }
 0x548   : > { %2406 = vmatpush2.msra.mxu1 %v1838_v7 }
 0x549   : > { %2407 = vmatprep.subr.mxu1 %v1831_v3 }
 0x54a   : > { %2408 = vmatpush2.msra.mxu1 %v1830_v18 }
 0x54b   : > { %2410 = vmatmul.mubr.f32.vlgmr.msra.gmra.mxu1 %v8276_v5  ;;  %v8651_v5 = vrot.slane %v293_v27, %v2427_v28 }
 0x54d   : > { %12535 = vst [vmem:[#allocation56_spill] sm:$0xff] %v8651_v5 }
 0x5cb   : > { %v2198_v31 = vpop.f32.mrf.mxu0 }
 0x5cc   : > { %v2199_v45 = vadd.f32 %v2198_v31, %v12532_v44 }
 0x5cd   : > { %v2200_v30 = vpop.f32.mrf.mxu0 }
 0x5ce   : > { %v2201_v47 = vadd.f32 %v2200_v30, %v12532_v44  ;;  %v2457_v48 = vmul.f32 %v8647_v51, %v2199_v45 }
 0x5d0   : > { %v2458_v49 = vmul.f32 %v8645_v41, %v2201_v47 }
 0x5d2   : > { %v2465_v16 = vadd.f32 %v2458_v49, %v2457_v48 }
 0x5d4   : > { %v2269_v35 = vpop.f32.mrf.mxu1 }
 0x5d5   : > { %v2270_v23 = vadd.f32 %v2269_v35, %v12532_v44 }
 0x5d6   : > { %v2271_v13 = vpop.f32.mrf.mxu1 }
 0x5d7   : > { %v2459_v46 = vmul.f32 %v8651_v5, %v2270_v23  ;;  %v2272_v24 = vadd.f32 %v2271_v13, %v12532_v44 }
 0x5d9   : > { %v2466_v60 = vadd.f32 %v2465_v16, %v2459_v46  ;;  %v2460_v59 = vmul.f32 %v8657_v25, %v2272_v24  ;;  %v11720_v16 = vmov 0.0  }
 0x5db   : > { %v2467_v9 = vadd.f32 %v2466_v60, %v2460_v59 }
 0x603   : > { %v2340_v29 = vpop.f32.mrf.mxu0 }
 0x604   : > { %v2341_v2 = vadd.f32 %v2340_v29, %v12532_v44 }
 0x605   : > { %v2342_v53 = vpop.f32.mrf.mxu0 }
 0x606   : > { %v2461_v0 = vmul.f32 %v8659_v63, %v2341_v2  ;;  %v2343_v43 = vadd.f32 %v2342_v53, %v12532_v44 }
 0x608   : > { %v2468_v14 = vadd.f32 %v2467_v9, %v2461_v0  ;;  %v2462_v55 = vmul.f32 %v8665_v52, %v2343_v43 }
 0x60a   : > { %v2469_v42 = vadd.f32 %v2468_v14, %v2462_v55 }
 0x60b   : > { %v2411_v32 = vpop.f32.mrf.mxu1 }
 0x60c   : > { %v2412_v33 = vadd.f32 %v2411_v32, %v12532_v44 }
 0x60d   : > { %v2413_v57 = vpop.f32.mrf.mxu1 }
 0x60e   : > { %v2463_v38 = vmul.f32 %v8668_v20, %v2412_v33  ;;  %v2414_v12 = vadd.f32 %v2413_v57, %v12532_v44 }
 0x610   : > { %v2470_v8 = vadd.f32 %v2469_v42, %v2463_v38  ;;  %v2464_v50 = vmul.f32 %v8671_v39, %v2414_v12 }
 0x612   : > { %v2471_v34 = vadd.f32 %v2470_v8, %v2464_v50 }
 0x614   : > { %2472 = vadd.xlane.f32.xlu1 %v2471_v34 }
 0x69d   : > { %v2473_v40 = vpop.xlane.xlu1 %2472 }
 0x69e   : > { %v2474_v58 = vmul.f32 0.001953125, %v2473_v40 }
 0x6a0   : > { %v2475_v62 = vsub.f32 %v2457_v48, %v2474_v58  ;;  %v2476_v4 = vsub.f32 %v2458_v49, %v2474_v58  ;;  %v2477_v61 = vsub.f32 %v2459_v46, %v2474_v58  ;;  %v2478_v21 = vsub.f32 %v2460_v59, %v2474_v58 }
 0x6a1   : > { %v2479_v26 = vsub.f32 %v2461_v0, %v2474_v58  ;;  %v2480_v54 = vsub.f32 %v2462_v55, %v2474_v58  ;;  %v2481_v31 = vsub.f32 %v2463_v38, %v2474_v58  ;;  %v2482_v30 = vsub.f32 %v2464_v50, %v2474_v58 }
 0x6a2   : > { %v2483_v11 = vmul.f32 %v2475_v62, %v8647_v51  ;;  %v2484_v7 = vmul.f32 %v2476_v4, %v8645_v41  ;;  %v2485_v15 = vmul.f32 %v2477_v61, %v8651_v5  ;;  %v2486_v3 = vmul.f32 %v2478_v21, %v8657_v25 }
 0x6a3   : > { %v2487_v19 = vmul.f32 %v2479_v26, %v8659_v63  ;;  %v2488_v27 = vmul.f32 %v2480_v54, %v8665_v52  ;;  %v2489_v44 = vmul.f32 %v2481_v31, %v8668_v20  ;;  %v2490_v23 = vmul.f32 %v2482_v30, %v8671_v39 }
 0x6a4   : > { %v2491_v18 = vmul.f32 %v2483_v11, %v2483_v11  ;;  %v2492_v36 = vmul.f32 %v2484_v7, %v2484_v7  ;;  %v2493_v56 = vmul.f32 %v2485_v15, %v2485_v15  ;;  %v2494_v28 = vmul.f32 %v2486_v3, %v2486_v3 }
 0x6a5   : > { %v2495_v47 = vmul.f32 %v2487_v19, %v2487_v19  ;;  %v2496_v17 = vmul.f32 %v2488_v27, %v2488_v27  ;;  %v2497_v49 = vmul.f32 %v2489_v44, %v2489_v44  ;;  %v2498_v48 = vmul.f32 %v2490_v23, %v2490_v23 }
 0x6a6   : > { %v2499_v37 = vadd.f32 %v2492_v36, %v2491_v18 }
 0x6a8   : > { %v2500_v35 = vadd.f32 %v2499_v37, %v2493_v56 }
 0x6aa   : > { %v2501_v45 = vadd.f32 %v2500_v35, %v2494_v28 }
 0x6ac   : > { %v2502_v13 = vadd.f32 %v2501_v45, %v2495_v47 }
 0x6ae   : > { %v2503_v10 = vadd.f32 %v2502_v13, %v2496_v17 }
 0x6b0   : > { %v2504_v46 = vadd.f32 %v2503_v10, %v2497_v49 }
 0x6b2   : > { %v2505_v24 = vadd.f32 %v2504_v46, %v2498_v48 }
 0x6b4   : > { %2506 = vadd.xlane.f32.xlu0 %v2505_v24 }
 0x6ca   : > { %2531 = vrot.lane.b32.xlu0 %v11720_v16, %s5086_s1 }
 0x73d   : > { %v2507_v6 = vpop.xlane.xlu0 %2506 }
 0x73e   : > { %v2508_v29 = vmul.f32 0.001953125, %v2507_v6 }
 0x740   : > { %v2509_v60 = vadd.f32 1e-05, %v2508_v29 }
 0x741   : > { %v8814_v55 = vpop.permute.xlu0 %2531 }
 0x742   : > { %4920 = vrsqrt.f32 %v2509_v60  ;;  %12549 = vst [vmem:[#allocation23_spill] sm:$0xff] %v8814_v55 }
 0x74f   : > { %v4921_v59 = vpop.eup %4920 }
 0x750   : > { %v8686_v2 = vmul.f32 %v4921_v59, %v2483_v11  ;;  %v8688_v53 = vmul.f32 %v4921_v59, %v2485_v15  ;;  %v8694_v0 = vmul.f32 %v4921_v59, %v2484_v7  ;;  %v8696_v43 = vmul.f32 %v4921_v59, %v2487_v19 }
 0x751   : > { %v8702_v22 = vmul.f32 %v4921_v59, %v2486_v3  ;;  %v8704_v9 = vmul.f32 %v4921_v59, %v2489_v44  ;;  %v8710_v1 = vmul.f32 %v4921_v59, %v2488_v27  ;;  %v8716_v14 = vmul.f32 %v4921_v59, %v2490_v23 }
 0x752   : > { %12541 = vst [vmem:[#allocation44_spill] sm:$0xff] %v8686_v2  ;;  %12542 = vst [vmem:[#allocation55_spill] sm:$0xff] %v8688_v53  ;;  %2537 = vrot.lane.b32.xlu0 %v8688_v53, %s5086_s1  ;;  %2533 = vrot.lane.b32.xlu1 %v8686_v2, %s5086_s1 }
 0x753   : > { %12543 = vst [vmem:[#allocation18_spill] sm:$0xff] %v8694_v0  ;;  %12544 = vst [vmem:[#allocation19_spill] sm:$0xff] %v8696_v43 }
 0x754   : > { %12545 = vst [vmem:[#allocation50_spill] sm:$0xff] %v8702_v22  ;;  %12546 = vst [vmem:[#allocation20_spill] sm:$0xff] %v8704_v9 }
 0x755   : > { %12547 = vst [vmem:[#allocation21_spill] sm:$0xff] %v8710_v1  ;;  %12548 = vst [vmem:[#allocation22_spill] sm:$0xff] %v8716_v14 }
 0x756   : > { %2541 = vrot.lane.b32.xlu0 %v8696_v43, %s5086_s1  ;;  %2535 = vrot.lane.b32.xlu1 %v8694_v0, %s5086_s1 }
 0x75a   : > { %2545 = vrot.lane.b32.xlu0 %v8704_v9, %s5086_s1  ;;  %2539 = vrot.lane.b32.xlu1 %v8702_v22, %s5086_s1 }
 0x75e   : > { %2557 = vrot.lane.b32.xlu0 %v11720_v16, %s5087_s27  ;;  %2543 = vrot.lane.b32.xlu1 %v8710_v1, %s5086_s1 }
 0x762   : > { %2561 = vrot.lane.b32.xlu0 %v8694_v0, %s5087_s27  ;;  %2547 = vrot.lane.b32.xlu1 %v8716_v14, %s5086_s1  ;;  %s12576_s1 = smov 26  }
 0x766   : > { %2565 = vrot.lane.b32.xlu0 %v8702_v22, %s5087_s27  ;;  %2559 = vrot.lane.b32.xlu1 %v8686_v2, %s5087_s27 }
 0x76a   : > { %2569 = vrot.lane.b32.xlu0 %v8710_v1, %s5087_s27  ;;  %2563 = vrot.lane.b32.xlu1 %v8688_v53, %s5087_s27 }
 0x76e   : > { %2573 = vrot.lane.b32.xlu0 %v8716_v14, %s5087_s27  ;;  %2567 = vrot.lane.b32.xlu1 %v8696_v43, %s5087_s27 }
 0x772   : > { %2585 = vrot.lane.b32.xlu0 %v8686_v2, %s5088_s29  ;;  %2571 = vrot.lane.b32.xlu1 %v8704_v9, %s5087_s27  ;;  %s12585_s27 = smov 18  }
 0x776   : > { %2589 = vrot.lane.b32.xlu0 %v8688_v53, %s5088_s29  ;;  %2583 = vrot.lane.b32.xlu1 %v11720_v16, %s5088_s29 }
 0x77a   : > { %2593 = vrot.lane.b32.xlu0 %v8696_v43, %s5088_s29  ;;  %2587 = vrot.lane.b32.xlu1 %v8694_v0, %s5088_s29 }
 0x77e   : > { %2597 = vrot.lane.b32.xlu0 %v8704_v9, %s5088_s29  ;;  %2591 = vrot.lane.b32.xlu1 %v8702_v22, %s5088_s29 }
 0x782   : > { %2609 = vrot.lane.b32.xlu0 %v11720_v16, %s5089_s10  ;;  %2595 = vrot.lane.b32.xlu1 %v8710_v1, %s5088_s29 }
 0x786   : > { %2613 = vrot.lane.b32.xlu0 %v8694_v0, %s5089_s10  ;;  %2599 = vrot.lane.b32.xlu1 %v8716_v14, %s5088_s29  ;;  %s12596_s29 = smov 17  }
 0x78a   : > { %2617 = vrot.lane.b32.xlu0 %v8702_v22, %s5089_s10  ;;  %2611 = vrot.lane.b32.xlu1 %v8686_v2, %s5089_s10 }
 0x78e   : > { %2621 = vrot.lane.b32.xlu0 %v8710_v1, %s5089_s10  ;;  %2615 = vrot.lane.b32.xlu1 %v8688_v53, %s5089_s10 }
 0x792   : > { %2625 = vrot.lane.b32.xlu0 %v8716_v14, %s5089_s10  ;;  %2619 = vrot.lane.b32.xlu1 %v8696_v43, %s5089_s10 }
 0x796   : > { %2637 = vrot.lane.b32.xlu0 %v8686_v2, %s5090_s13  ;;  %2623 = vrot.lane.b32.xlu1 %v8704_v9, %s5089_s10  ;;  %s12605_s10 = smov 16  }
 0x79a   : > { %2641 = vrot.lane.b32.xlu0 %v8688_v53, %s5090_s13  ;;  %2635 = vrot.lane.b32.xlu1 %v11720_v16, %s5090_s13 }
 0x79e   : > { %2645 = vrot.lane.b32.xlu0 %v8696_v43, %s5090_s13  ;;  %2639 = vrot.lane.b32.xlu1 %v8694_v0, %s5090_s13 }
 0x7a2   : > { %2649 = vrot.lane.b32.xlu0 %v8704_v9, %s5090_s13  ;;  %2643 = vrot.lane.b32.xlu1 %v8702_v22, %s5090_s13 }
 0x7a6   : > { %2661 = vrot.lane.b32.xlu0 %v11720_v16, %s5091_s15  ;;  %2647 = vrot.lane.b32.xlu1 %v8710_v1, %s5090_s13 }
 0x7aa   : > { %2665 = vrot.lane.b32.xlu0 %v8694_v0, %s5091_s15  ;;  %2651 = vrot.lane.b32.xlu1 %v8716_v14, %s5090_s13  ;;  %s12614_s13 = smov 8  }
 0x7ae   : > { %2669 = vrot.lane.b32.xlu0 %v8702_v22, %s5091_s15  ;;  %2663 = vrot.lane.b32.xlu1 %v8686_v2, %s5091_s15 }
 0x7b2   : > { %2673 = vrot.lane.b32.xlu0 %v8710_v1, %s5091_s15  ;;  %2667 = vrot.lane.b32.xlu1 %v8688_v53, %s5091_s15 }
 0x7b6   : > { %2677 = vrot.lane.b32.xlu0 %v8716_v14, %s5091_s15  ;;  %2671 = vrot.lane.b32.xlu1 %v8696_v43, %s5091_s15 }
 0x7ba   : > { %2689 = vrot.lane.b32.xlu0 %v8686_v2, %s5092_s16  ;;  %2675 = vrot.lane.b32.xlu1 %v8704_v9, %s5091_s15  ;;  %s12622_s15 = smov 49  }
 0x7be   : > { %2693 = vrot.lane.b32.xlu0 %v8688_v53, %s5092_s16  ;;  %2687 = vrot.lane.b32.xlu1 %v11720_v16, %s5092_s16 }
 0x7c2   : > { %2697 = vrot.lane.b32.xlu0 %v8696_v43, %s5092_s16  ;;  %2691 = vrot.lane.b32.xlu1 %v8694_v0, %s5092_s16 }
 0x7c4   : > { %v8820_v32 = vpop.permute.xlu1 %2533  ;;  %v8822_v33 = vpop.permute.xlu0 %2537 }
 0x7c5   : > { %12550 = vst [vmem:[#allocation25_spill] sm:$0xff] %v8820_v32 }
 0x7c6   : > { %2701 = vrot.lane.b32.xlu0 %v8704_v9, %s5092_s16  ;;  %2695 = vrot.lane.b32.xlu1 %v8702_v22, %s5092_s16 }
 0x7c8   : > { %v8828_v57 = vpop.permute.xlu1 %2535  ;;  %v8830_v42 = vpop.permute.xlu0 %2541 }
 0x7ca   : > { %2713 = vrot.lane.b32.xlu0 %v11720_v16, %s5093_s12  ;;  %2699 = vrot.lane.b32.xlu1 %v8710_v1, %s5092_s16 }
 0x7cc   : > { %v8836_v38 = vpop.permute.xlu1 %2539  ;;  %v8838_v12 = vpop.permute.xlu0 %2545 }
 0x7ce   : > { %2717 = vrot.lane.b32.xlu0 %v8694_v0, %s5093_s12  ;;  %2703 = vrot.lane.b32.xlu1 %v8716_v14, %s5092_s16  ;;  %s12626_s16 = smov 48  }
 0x7d0   : > { %v8844_v8 = vpop.permute.xlu1 %2543  ;;  %v8846_v50 = vpop.permute.xlu0 %2557 }
 0x7d1   : > { %12551 = vst [vmem:[#allocation147_spill] sm:$0xff] %v8846_v50 }
 0x7d2   : > { %2721 = vrot.lane.b32.xlu0 %v8702_v22, %s5093_s12  ;;  %2715 = vrot.lane.b32.xlu1 %v8686_v2, %s5093_s12 }
 0x7d4   : > { %v8852_v34 = vpop.permute.xlu1 %2547  ;;  %v8854_v40 = vpop.permute.xlu0 %2561 }
 0x7d5   : > { %12552 = vst [vmem:[#allocation36_spill] sm:$0xff] %v8852_v34  ;;  %12553 = vst [vmem:[#allocation35_spill] sm:$0xff] %v8854_v40 }
 0x7d6   : > { %2725 = vrot.lane.b32.xlu0 %v8710_v1, %s5093_s12  ;;  %2719 = vrot.lane.b32.xlu1 %v8688_v53, %s5093_s12 }
 0x7d8   : > { %v8860_v58 = vpop.permute.xlu1 %2559  ;;  %v8862_v62 = vpop.permute.xlu0 %2565 }
 0x7d9   : > { %12554 = vst [vmem:[#allocation27_spill] sm:$0xff] %v8860_v58  ;;  %12555 = vst [vmem:[#allocation37_spill] sm:$0xff] %v8862_v62 }
 0x7da   : > { %2729 = vrot.lane.b32.xlu0 %v8716_v14, %s5093_s12  ;;  %2723 = vrot.lane.b32.xlu1 %v8696_v43, %s5093_s12 }
 0x7dc   : > { %v8868_v4 = vpop.permute.xlu1 %2563  ;;  %v8870_v61 = vpop.permute.xlu0 %2569 }
 0x7dd   : > { %12556 = vst [vmem:[#allocation24_spill] sm:$0xff] %v8868_v4  ;;  %12557 = vst [vmem:[#allocation28_spill] sm:$0xff] %v8870_v61 }
 0x7de   : > { %2741 = vrot.lane.b32.xlu0 %v8686_v2, %s5094_s8  ;;  %2727 = vrot.lane.b32.xlu1 %v8704_v9, %s5093_s12  ;;  %s12631_s12 = smov 47  }
 0x7e0   : > { %v8876_v21 = vpop.permute.xlu1 %2567  ;;  %v8878_v26 = vpop.permute.xlu0 %2573 }
 0x7e1   : > { %12558 = vst [vmem:[#allocation26_spill] sm:$0xff] %v8876_v21  ;;  %12559 = vst [vmem:[#allocation39_spill] sm:$0xff] %v8878_v26 }
 0x7e2   : > { %2745 = vrot.lane.b32.xlu0 %v8688_v53, %s5094_s8  ;;  %2739 = vrot.lane.b32.xlu1 %v11720_v16, %s5094_s8 }
 0x7e4   : > { %v8884_v11 = vpop.permute.xlu1 %2571  ;;  %v8886_v7 = vpop.permute.xlu0 %2585 }
 0x7e5   : > { %12560 = vst [vmem:[#allocation30_spill] sm:$0xff] %v8884_v11  ;;  %12561 = vst [vmem:[#allocation38_spill] sm:$0xff] %v8886_v7 }
 0x7e6   : > { %2749 = vrot.lane.b32.xlu0 %v8696_v43, %s5094_s8  ;;  %2743 = vrot.lane.b32.xlu1 %v8694_v0, %s5094_s8 }
 0x7e8   : > { %v8892_v15 = vpop.permute.xlu1 %2583  ;;  %v8894_v54 = vpop.permute.xlu0 %2589 }
 0x7e9   : > { %12562 = vst [vmem:[#allocation32_spill] sm:$0xff] %v8892_v15  ;;  %12563 = vst [vmem:[#allocation29_spill] sm:$0xff] %v8894_v54 }
 0x7ea   : > { %2753 = vrot.lane.b32.xlu0 %v8704_v9, %s5094_s8  ;;  %2747 = vrot.lane.b32.xlu1 %v8702_v22, %s5094_s8 }
 0x7ec   : > { %v8900_v3 = vpop.permute.xlu1 %2587  ;;  %v8902_v18 = vpop.permute.xlu0 %2593 }
 0x7ed   : > { %12564 = vst [vmem:[#allocation33_spill] sm:$0xff] %v8900_v3  ;;  %12565 = vst [vmem:[#allocation31_spill] sm:$0xff] %v8902_v18 }
 0x7ee   : > { %2765 = vrot.lane.b32.xlu0 %v11720_v16, %s5095_s7  ;;  %2751 = vrot.lane.b32.xlu1 %v8710_v1, %s5094_s8 }
 0x7f0   : > { %v8908_v36 = vpop.permute.xlu1 %2591  ;;  %v8910_v31 = vpop.permute.xlu0 %2597 }
 0x7f1   : > { %12566 = vst [vmem:[#allocation41_spill] sm:$0xff] %v8908_v36  ;;  %12567 = vst [vmem:[#allocation34_spill] sm:$0xff] %v8910_v31 }
 0x7f2   : > { %2769 = vrot.lane.b32.xlu0 %v8694_v0, %s5095_s7  ;;  %2755 = vrot.lane.b32.xlu1 %v8716_v14, %s5094_s8  ;;  %s12637_s8 = smov 39  }
 0x7f4   : > { %v8916_v19 = vpop.permute.xlu1 %2595  ;;  %v8918_v56 = vpop.permute.xlu0 %2609 }
 0x7f5   : > { %12568 = vst [vmem:[#allocation45_spill] sm:$0xff] %v8916_v19  ;;  %12569 = vst [vmem:[#allocation40_spill] sm:$0xff] %v8918_v56 }
 0x7f6   : > { %2773 = vrot.lane.b32.xlu0 %v8702_v22, %s5095_s7  ;;  %2767 = vrot.lane.b32.xlu1 %v8686_v2, %s5095_s7 }
 0x7f8   : > { %v8924_v37 = vpop.permute.xlu1 %2599  ;;  %v8926_v30 = vpop.permute.xlu0 %2613 }
 0x7f9   : > { %12570 = vst [vmem:[#allocation43_spill] sm:$0xff] %v8924_v37  ;;  %12571 = vst [vmem:[#allocation126_spill] sm:$0xff] %v8926_v30 }
 0x7fa   : > { %2777 = vrot.lane.b32.xlu0 %v8710_v1, %s5095_s7  ;;  %2771 = vrot.lane.b32.xlu1 %v8688_v53, %s5095_s7 }
 0x7fc   : > { %v8932_v27 = vpop.permute.xlu1 %2611  ;;  %v8934_v28 = vpop.permute.xlu0 %2617 }
 0x7fd   : > { %12572 = vst [vmem:[#allocation124_spill] sm:$0xff] %v8932_v27  ;;  %12573 = vst [vmem:[#allocation122_spill] sm:$0xff] %v8934_v28 }
 0x7fe   : > { %2781 = vrot.lane.b32.xlu0 %v8716_v14, %s5095_s7  ;;  %2775 = vrot.lane.b32.xlu1 %v8696_v43, %s5095_s7 }
 0x800   : > { %v8940_v35 = vpop.permute.xlu1 %2615  ;;  %v8942_v44 = vpop.permute.xlu0 %2621 }
 0x801   : > { %12574 = vst [vmem:[#allocation118_spill] sm:$0xff] %v8940_v35  ;;  %12575 = vst [vmem:[#allocation121_spill] sm:$0xff] %v8942_v44 }
 0x802   : > { %2793 = vrot.lane.b32.xlu0 %v8686_v2, %s12576_s1  ;;  %2779 = vrot.lane.b32.xlu1 %v8704_v9, %s5095_s7  ;;  %s12644_s7 = smov 38  }
 0x804   : > { %v8948_v47 = vpop.permute.xlu1 %2619  ;;  %v8950_v45 = vpop.permute.xlu0 %2625 }
 0x805   : > { %12577 = vst [vmem:[#allocation117_spill] sm:$0xff] %v8948_v47  ;;  %12578 = vst [vmem:[#allocation115_spill] sm:$0xff] %v8950_v45 }
 0x806   : > { %2797 = vrot.lane.b32.xlu0 %v8688_v53, %s12576_s1  ;;  %2791 = vrot.lane.b32.xlu1 %v11720_v16, %s12576_s1 }
 0x808   : > { %v8956_v23 = vpop.permute.xlu1 %2623  ;;  %v8958_v17 = vpop.permute.xlu0 %2637 }
 0x809   : > { %12579 = vst [vmem:[#allocation112_spill] sm:$0xff] %v8956_v23  ;;  %12580 = vst [vmem:[#allocation130_spill] sm:$0xff] %v8958_v17 }
 0x80a   : > { %2801 = vrot.lane.b32.xlu0 %v8696_v43, %s12576_s1  ;;  %2795 = vrot.lane.b32.xlu1 %v8694_v0, %s12576_s1 }
 0x80c   : > { %v8964_v13 = vpop.permute.xlu1 %2635  ;;  %v8966_v49 = vpop.permute.xlu0 %2641 }
 0x80d   : > { %12581 = vst [vmem:[#allocation129_spill] sm:$0xff] %v8964_v13  ;;  %12582 = vst [vmem:[#allocation114_spill] sm:$0xff] %v8966_v49 }
 0x80e   : > { %2805 = vrot.lane.b32.xlu0 %v8704_v9, %s12576_s1  ;;  %2799 = vrot.lane.b32.xlu1 %v8702_v22, %s12576_s1 }
 0x810   : > { %v8972_v10 = vpop.permute.xlu1 %2639  ;;  %v8974_v48 = vpop.permute.xlu0 %2645 }
 0x811   : > { %12583 = vst [vmem:[#allocation108_spill] sm:$0xff] %v8972_v10  ;;  %12584 = vst [vmem:[#allocation110_spill] sm:$0xff] %v8974_v48 }
 0x812   : > { %2803 = vrot.lane.b32.xlu1 %v8710_v1, %s12576_s1  ;;  %2817 = vrot.lane.b32.xlu0 %v11720_v16, %s12585_s27 }
 0x814   : > { %v8980_v46 = vpop.permute.xlu1 %2643  ;;  %v8982_v24 = vpop.permute.xlu0 %2649 }
 0x815   : > { %12586 = vst [vmem:[#allocation127_spill] sm:$0xff] %v8980_v46  ;;  %12587 = vst [vmem:[#allocation128_spill] sm:$0xff] %v8982_v24  ;;  %v12617_v24 = vmov 0.0  }
 0x816   : > { %2807 = vrot.lane.b32.xlu1 %v8716_v14, %s12576_s1  ;;  %2821 = vrot.lane.b32.xlu0 %v8694_v0, %s12585_s27  ;;  %s4796_s1 = sshll.u32 %s5169_s25, 10  ;;  %s4670_s25 = scalar_lea.sflag [#allocation4], %s5266_s17 }
 0x818   : > { %v8988_v6 = vpop.permute.xlu1 %2647  ;;  %v8990_v29 = vpop.permute.xlu0 %2661 }
 0x819   : > { %12588 = vst [vmem:[#allocation106_spill] sm:$0xff] %v8988_v6  ;;  %12589 = vst [vmem:[#allocation105_spill] sm:$0xff] %v8990_v29 }
 0x81a   : > { %2819 = vrot.lane.b32.xlu1 %v8686_v2, %s12585_s27  ;;  %2825 = vrot.lane.b32.xlu0 %v8702_v22, %s12585_s27 }
 0x81c   : > { %v8996_v60 = vpop.permute.xlu1 %2651  ;;  %v8998_v59 = vpop.permute.xlu0 %2665 }
 0x81d   : > { %12590 = vst [vmem:[#allocation102_spill] sm:$0xff] %v8996_v60  ;;  %12591 = vst [vmem:[#allocation125_spill] sm:$0xff] %v8998_v59 }
 0x81e   : > { %2823 = vrot.lane.b32.xlu1 %v8688_v53, %s12585_s27  ;;  %2829 = vrot.lane.b32.xlu0 %v8710_v1, %s12585_s27 }
 0x820   : > { %v9004_v16 = vpop.permute.xlu1 %2663  ;;  %v9006_v39 = vpop.permute.xlu0 %2669 }
 0x821   : > { %12592 = vst [vmem:[#allocation123_spill] sm:$0xff] %v9004_v16  ;;  %12593 = vst [vmem:[#allocation104_spill] sm:$0xff] %v9006_v39 }
 0x822   : > { %2827 = vrot.lane.b32.xlu1 %v8696_v43, %s12585_s27  ;;  %2833 = vrot.lane.b32.xlu0 %v8716_v14, %s12585_s27 }
 0x824   : > { %v9012_v20 = vpop.permute.xlu1 %2667  ;;  %v9014_v52 = vpop.permute.xlu0 %2673 }
 0x825   : > { %12594 = vst [vmem:[#allocation98_spill] sm:$0xff] %v9012_v20  ;;  %12595 = vst [vmem:[#allocation100_spill] sm:$0xff] %v9014_v52 }
 0x826   : > { %2831 = vrot.lane.b32.xlu1 %v8704_v9, %s12585_s27  ;;  %2845 = vrot.lane.b32.xlu0 %v8694_v0, %s12596_s29 }
 0x828   : > { %v9020_v63 = vpop.permute.xlu1 %2671  ;;  %v9022_v25 = vpop.permute.xlu0 %2677 }
 0x829   : > { %12597 = vst [vmem:[#allocation119_spill] sm:$0xff] %v9020_v63  ;;  %12598 = vst [vmem:[#allocation120_spill] sm:$0xff] %v9022_v25 }
 0x82a   : > { %2843 = vrot.lane.b32.xlu1 %v8686_v2, %s12596_s29  ;;  %2849 = vrot.lane.b32.xlu0 %v8702_v22, %s12596_s29 }
 0x82c   : > { %v9028_v5 = vpop.permute.xlu1 %2675  ;;  %v9030_v41 = vpop.permute.xlu0 %2689 }
 0x82d   : > { %12599 = vst [vmem:[#allocation96_spill] sm:$0xff] %v9028_v5  ;;  %12600 = vst [vmem:[#allocation97_spill] sm:$0xff] %v9030_v41 }
 0x82e   : > { %2847 = vrot.lane.b32.xlu1 %v8688_v53, %s12596_s29  ;;  %2853 = vrot.lane.b32.xlu0 %v8710_v1, %s12596_s29 }
 0x830   : > { %v9036_v51 = vpop.permute.xlu1 %2687  ;;  %v9038_v26 = vpop.permute.xlu0 %2693 }
 0x831   : > { %12601 = vst [vmem:[#allocation90_spill] sm:$0xff] %v9036_v51  ;;  %12602 = vst [vmem:[#allocation116_spill] sm:$0xff] %v9038_v26 }
 0x832   : > { %2851 = vrot.lane.b32.xlu1 %v8696_v43, %s12596_s29  ;;  %2857 = vrot.lane.b32.xlu0 %v8716_v14, %s12596_s29 }
 0x834   : > { %v9044_v37 = vpop.permute.xlu1 %2691  ;;  %v9046_v45 = vpop.permute.xlu0 %2697 }
 0x835   : > { %12603 = vst [vmem:[#allocation113_spill] sm:$0xff] %v9044_v37  ;;  %12604 = vst [vmem:[#allocation92_spill] sm:$0xff] %v9046_v45 }
 0x836   : > { %2855 = vrot.lane.b32.xlu1 %v8704_v9, %s12596_s29  ;;  %2868 = vrot.lane.b32.xlu0 %v8694_v0, %s12605_s10 }
 0x838   : > { %v9052_v61 = vpop.permute.xlu1 %2695  ;;  %v9054_v11 = vpop.permute.xlu0 %2701 }
 0x839   : > { %12606 = vst [vmem:[#allocation86_spill] sm:$0xff] %v9052_v61  ;;  %12607 = vst [vmem:[#allocation89_spill] sm:$0xff] %v9054_v11 }
 0x83a   : > { %2866 = vrot.lane.b32.xlu1 %v8686_v2, %s12605_s10  ;;  %2872 = vrot.lane.b32.xlu0 %v8702_v22, %s12605_s10 }
 0x83c   : > { %v9060_v60 = vpop.permute.xlu1 %2699  ;;  %v9062_v19 = vpop.permute.xlu0 %2713 }
 0x83d   : > { %12608 = vst [vmem:[#allocation109_spill] sm:$0xff] %v9060_v60  ;;  %12609 = vst [vmem:[#allocation111_spill] sm:$0xff] %v9062_v19 }
 0x83e   : > { %2870 = vrot.lane.b32.xlu1 %v8688_v53, %s12605_s10  ;;  %2876 = vrot.lane.b32.xlu0 %v8710_v1, %s12605_s10 }
 0x840   : > { %v9068_v31 = vpop.permute.xlu1 %2703  ;;  %v9070_v25 = vpop.permute.xlu0 %2717 }
 0x841   : > { %12610 = vst [vmem:[#allocation85_spill] sm:$0xff] %v9068_v31  ;;  %12611 = vst [vmem:[#allocation80_spill] sm:$0xff] %v9070_v25 }
 0x842   : > { %2874 = vrot.lane.b32.xlu1 %v8696_v43, %s12605_s10  ;;  %2880 = vrot.lane.b32.xlu0 %v8716_v14, %s12605_s10 }
 0x844   : > { %v9076_v44 = vpop.permute.xlu1 %2715  ;;  %v9078_v23 = vpop.permute.xlu0 %2721 }
 0x845   : > { %12612 = vst [vmem:[#allocation81_spill] sm:$0xff] %v9076_v44  ;;  %12613 = vst [vmem:[#allocation107_spill] sm:$0xff] %v9078_v23 }
 0x846   : > { %2878 = vrot.lane.b32.xlu1 %v8704_v9, %s12605_s10  ;;  %2892 = vrot.lane.b32.xlu0 %v8686_v2, %s12614_s13 }
 0x848   : > { %v9084_v6 = vpop.permute.xlu1 %2719  ;;  %v9086_v31 = vpop.permute.xlu0 %2725 }
 0x849   : > { %12615 = vst [vmem:[#allocation103_spill] sm:$0xff] %v9084_v6  ;;  %12616 = vst [vmem:[#allocation83_spill] sm:$0xff] %v9086_v31 }
 0x84a   : > { %2882 = vrot.lane.b32.xlu1 %v12617_v24, %s12605_s10  ;;  %2896 = vrot.lane.b32.xlu0 %v8688_v53, %s12614_s13 }
 0x84c   : > { %v9092_v52 = vpop.permute.xlu1 %2723  ;;  %v9094_v5 = vpop.permute.xlu0 %2729 }
 0x84d   : > { %12618 = vst [vmem:[#allocation73_spill] sm:$0xff] %v9092_v52  ;;  %12619 = vst [vmem:[#allocation75_spill] sm:$0xff] %v9094_v5 }
 0x84e   : > { %2894 = vrot.lane.b32.xlu1 %v8694_v0, %s12614_s13  ;;  %2900 = vrot.lane.b32.xlu0 %v8696_v43, %s12614_s13 }
 0x850   : > { %v9100_v60 = vpop.permute.xlu1 %2727  ;;  %v9102_v11 = vpop.permute.xlu0 %2741 }
 0x851   : > { %12620 = vst [vmem:[#allocation99_spill] sm:$0xff] %v9100_v60 }
 0x852   : > { %2898 = vrot.lane.b32.xlu1 %v8702_v22, %s12614_s13  ;;  %2904 = vrot.lane.b32.xlu0 %v8704_v9, %s12614_s13 }
 0x854   : > { %v9108_v31 = vpop.permute.xlu1 %2739  ;;  %v9110_v21 = vpop.permute.xlu0 %2745 }
 0x855   : > { %12621 = vst [vmem:[#allocation101_spill] sm:$0xff] %v9108_v31 }
 0x856   : > { %2902 = vrot.lane.b32.xlu1 %v8710_v1, %s12614_s13  ;;  %2908 = vrot.lane.b32.xlu0 %v12617_v24, %s12614_s13 }
 0x858   : > { %v9116_v5 = vpop.permute.xlu1 %2743  ;;  %v9118_v60 = vpop.permute.xlu0 %2749 }
 0x85a   : > { %2906 = vrot.lane.b32.xlu1 %v8716_v14, %s12614_s13  ;;  %2921 = vrot.lane.b32.xlu0 %v8694_v0, %s12622_s15 }
 0x85c   : > { %v9124_v62 = vpop.permute.xlu1 %2747  ;;  %v9126_v36 = vpop.permute.xlu0 %2753 }
 0x85d   : > { %12623 = vst [vmem:[#allocation159_spill] sm:$0xff] %v9126_v36 }
 0x85e   : > { %2919 = vrot.lane.b32.xlu1 %v8686_v2, %s12622_s15  ;;  %2925 = vrot.lane.b32.xlu0 %v8702_v22, %s12622_s15 }
 0x860   : > { %v9132_v18 = vpop.permute.xlu1 %2751  ;;  %v9134_v50 = vpop.permute.xlu0 %2765 }
 0x861   : > { %12624 = vst [vmem:[#allocation156_spill] sm:$0xff] %v9134_v50 }
 0x862   : > { %2923 = vrot.lane.b32.xlu1 %v8688_v53, %s12622_s15  ;;  %2929 = vrot.lane.b32.xlu0 %v8710_v1, %s12622_s15 }
 0x864   : > { %v9140_v47 = vpop.permute.xlu1 %2755  ;;  %v9142_v4 = vpop.permute.xlu0 %2769 }
 0x865   : > { %12625 = vst [vmem:[#allocation152_spill] sm:$0xff] %v9140_v47 }
 0x866   : > { %2927 = vrot.lane.b32.xlu1 %v8696_v43, %s12622_s15  ;;  %2933 = vrot.lane.b32.xlu0 %v8716_v14, %s12622_s15 }
 0x868   : > { %v9148_v36 = vpop.permute.xlu1 %2767  ;;  %v9150_v28 = vpop.permute.xlu0 %2773 }
 0x86a   : > { %2931 = vrot.lane.b32.xlu1 %v8704_v9, %s12622_s15  ;;  %2945 = vrot.lane.b32.xlu0 %v8686_v2, %s12626_s16 }
 0x86c   : > { %v9156_v15 = vpop.permute.xlu1 %2771  ;;  %v9158_v47 = vpop.permute.xlu0 %2777 }
 0x86e   : > { %2935 = vrot.lane.b32.xlu1 %v12617_v24, %s12622_s15  ;;  %2949 = vrot.lane.b32.xlu0 %v8688_v53, %s12626_s16  ;;  %s11377_s15 = scalar_lea.hbm %s11426_s6, %s4796_s1 }
 0x870   : > { %v9164_v58 = vpop.permute.xlu1 %2775  ;;  %v9166_v40 = vpop.permute.xlu0 %2781 }
 0x871   : > { %12627 = vst [vmem:[#allocation94_spill] sm:$0xff] %v9166_v40 }
 0x872   : > { %2947 = vrot.lane.b32.xlu1 %v8694_v0, %s12626_s16  ;;  %2953 = vrot.lane.b32.xlu0 %v8696_v43, %s12626_s16 }
 0x874   : > { %v9172_v46 = vpop.permute.xlu1 %2779  ;;  %v9174_v48 = vpop.permute.xlu0 %2793 }
 0x875   : > { %12628 = vst [vmem:[#allocation95_spill] sm:$0xff] %v9172_v46 }
 0x876   : > { %2951 = vrot.lane.b32.xlu1 %v8702_v22, %s12626_s16  ;;  %2957 = vrot.lane.b32.xlu0 %v8704_v9, %s12626_s16 }
 0x878   : > { %v9180_v7 = vpop.permute.xlu1 %2791  ;;  %v9182_v3 = vpop.permute.xlu0 %2797 }
 0x879   : > { %12629 = vst [vmem:[#allocation154_spill] sm:$0xff] %v9180_v7 }
 0x87a   : > { %2955 = vrot.lane.b32.xlu1 %v8710_v1, %s12626_s16  ;;  %2961 = vrot.lane.b32.xlu0 %v12617_v24, %s12626_s16 }
 0x87c   : > { %v9188_v40 = vpop.permute.xlu1 %2795  ;;  %v9190_v46 = vpop.permute.xlu0 %2801 }
 0x87d   : > { %12630 = vst [vmem:[#allocation67_spill] sm:$0xff] %v9190_v46 }
 0x87e   : > { %2959 = vrot.lane.b32.xlu1 %v8716_v14, %s12626_s16  ;;  %2973 = vrot.lane.b32.xlu0 %v8694_v0, %s12631_s12 }
 0x880   : > { %v9196_v54 = vpop.permute.xlu1 %2799  ;;  %v9198_v63 = vpop.permute.xlu0 %2805 }
 0x881   : > { %12632 = vst [vmem:[#allocation70_spill] sm:$0xff] %v9196_v54  ;;  %12633 = vst [vmem:[#allocation88_spill] sm:$0xff] %v9198_v63 }
 0x882   : > { %2971 = vrot.lane.b32.xlu1 %v8686_v2, %s12631_s12  ;;  %2977 = vrot.lane.b32.xlu0 %v8702_v22, %s12631_s12 }
 0x884   : > { %v9204_v56 = vpop.permute.xlu1 %2803  ;;  %v9206_v35 = vpop.permute.xlu0 %2817 }
 0x885   : > { %12634 = vst [vmem:[#allocation91_spill] sm:$0xff] %v9204_v56 }
 0x886   : > { %2975 = vrot.lane.b32.xlu1 %v8688_v53, %s12631_s12  ;;  %2981 = vrot.lane.b32.xlu0 %v8710_v1, %s12631_s12 }
 0x888   : > { %v9212_v39 = vpop.permute.xlu1 %2807  ;;  %v9214_v13 = vpop.permute.xlu0 %2821 }
 0x889   : > { %12635 = vst [vmem:[#allocation65_spill] sm:$0xff] %v9212_v39 }
 0x88a   : > { %2979 = vrot.lane.b32.xlu1 %v8696_v43, %s12631_s12  ;;  %2985 = vrot.lane.b32.xlu0 %v8716_v14, %s12631_s12 }
 0x88c   : > { %v9220_v63 = vpop.permute.xlu1 %2819  ;;  %v9222_v56 = vpop.permute.xlu0 %2825 }
 0x88d   : > { %12636 = vst [vmem:[#allocation63_spill] sm:$0xff] %v9222_v56 }
 0x88e   : > { %2983 = vrot.lane.b32.xlu1 %v8704_v9, %s12631_s12  ;;  %2997 = vrot.lane.b32.xlu0 %v8686_v2, %s12637_s8 }
 0x890   : > { %v9228_v27 = vpop.permute.xlu1 %2823  ;;  %v9230_v39 = vpop.permute.xlu0 %2829 }
 0x891   : > { %12638 = vst [vmem:[#allocation57_spill] sm:$0xff] %v9230_v39 }
 0x892   : > { %2987 = vrot.lane.b32.xlu1 %v12617_v24, %s12631_s12  ;;  %3001 = vrot.lane.b32.xlu0 %v8688_v53, %s12637_s8  ;;  %s5112_s12 = smov [#allocation8]  }
 0x894   : > { %v9236_v30 = vpop.permute.xlu1 %2827  ;;  %v9238_v61 = vpop.permute.xlu0 %2833 }
 0x895   : > { %12639 = vst [vmem:[#allocation84_spill] sm:$0xff] %v9236_v30  ;;  %12640 = vst [vmem:[#allocation82_spill] sm:$0xff] %v9238_v61 }
 0x896   : > { %2999 = vrot.lane.b32.xlu1 %v8694_v0, %s12637_s8  ;;  %3005 = vrot.lane.b32.xlu0 %v8696_v43, %s12637_s8 }
 0x898   : > { %v9244_v45 = vpop.permute.xlu1 %2831  ;;  %v9246_v17 = vpop.permute.xlu0 %2845 }
 0x899   : > { %12641 = vst [vmem:[#allocation61_spill] sm:$0xff] %v9244_v45 }
 0x89a   : > { %3003 = vrot.lane.b32.xlu1 %v8702_v22, %s12637_s8  ;;  %3009 = vrot.lane.b32.xlu0 %v8704_v9, %s12637_s8 }
 0x89c   : > { %v9252_v39 = vpop.permute.xlu1 %2843  ;;  %v9254_v10 = vpop.permute.xlu0 %2849 }
 0x89d   : > { %12642 = vst [vmem:[#allocation49_spill] sm:$0xff] %v9254_v10  ;;  %v9449_v10 = vsel %vm334_vm0, %v8830_v42, %v8844_v8 }
 0x89e   : > { %3007 = vrot.lane.b32.xlu1 %v8710_v1, %s12637_s8  ;;  %3013 = vrot.lane.b32.xlu0 %v12617_v24, %s12637_s8  ;;  %12665 = vst [vmem:[#allocation72_spill] sm:$0xff] %v9449_v10 }
 0x8a0   : > { %v9260_v61 = vpop.permute.xlu1 %2847  ;;  %v9262_v45 = vpop.permute.xlu0 %2853 }
 0x8a1   : > { %12643 = vst [vmem:[#allocation52_spill] sm:$0xff] %v9262_v45 }
 0x8a2   : > { %3011 = vrot.lane.b32.xlu1 %v8716_v14, %s12637_s8  ;;  %3025 = vrot.lane.b32.xlu0 %v8694_v0, %s12644_s7  ;;  %s5017_s8 = sshll.u32 %s5112_s12, 4  ;;  %s5018_s8 = int_to_ptr.vmem [resolvable:$false] %s5017_s8 }
 0x8a4   : > { %v9268_v49 = vpop.permute.xlu1 %2851  ;;  %v9270_v52 = vpop.permute.xlu0 %2857 }
 0x8a5   : > { %12645 = vst [vmem:[#allocation74_spill] sm:$0xff] %v9268_v49  ;;  %12646 = vst [vmem:[#allocation77_spill] sm:$0xff] %v9270_v52 }
 0x8a6   : > { %3023 = vrot.lane.b32.xlu1 %v8686_v2, %s12644_s7  ;;  %3029 = vrot.lane.b32.xlu0 %v8702_v22, %s12644_s7 }
 0x8a8   : > { %v9276_v29 = vpop.permute.xlu1 %2855  ;;  %v9278_v20 = vpop.permute.xlu0 %2868 }
 0x8a9   : > { %12647 = vst [vmem:[#allocation47_spill] sm:$0xff] %v9276_v29 }
 0x8aa   : > { %3027 = vrot.lane.b32.xlu1 %v8688_v53, %s12644_s7  ;;  %3033 = vrot.lane.b32.xlu0 %v8710_v1, %s12644_s7 }
 0x8ac   : > { %v9284_v45 = vpop.permute.xlu1 %2866  ;;  %v9286_v23 = vpop.permute.xlu0 %2872 }
 0x8ae   : > { %3031 = vrot.lane.b32.xlu1 %v8696_v43, %s12644_s7  ;;  %3037 = vrot.lane.b32.xlu0 %v8716_v14, %s12644_s7 }
 0x8b0   : > { %v9292_v52 = vpop.permute.xlu1 %2870  ;;  %v9294_v29 = vpop.permute.xlu0 %2876 }
 0x8b1   : > { %12648 = vst [vmem:[#allocation158_spill] sm:$0xff] %v9294_v29 }
 0x8b2   : > { %3035 = vrot.lane.b32.xlu1 %v8704_v9, %s12644_s7  ;;  %3049 = vrot.lane.b32.xlu0 %v8686_v2, %s12649_s14 }
 0x8b4   : > { %v9300_v51 = vpop.permute.xlu1 %2874  ;;  %v9302_v16 = vpop.permute.xlu0 %2880 }
 0x8b5   : > { %12650 = vst [vmem:[#allocation71_spill] sm:$0xff] %v9300_v51  ;;  %12651 = vst [vmem:[#allocation69_spill] sm:$0xff] %v9302_v16 }
 0x8b6   : > { %3039 = vrot.lane.b32.xlu1 %v12617_v24, %s12644_s7  ;;  %3053 = vrot.lane.b32.xlu0 %v8688_v53, %s12649_s14  ;;  %s5019_s7 = scalar_lea.vmem %s5018_s8, 2048 }
 0x8b8   : > { %v9308_v59 = vpop.permute.xlu1 %2878  ;;  %v9310_v41 = vpop.permute.xlu0 %2892 }
 0x8b9   : > { %12652 = vst [vmem:[#allocation149_spill] sm:$0xff] %v9308_v59 }
 0x8ba   : > { %3051 = vrot.lane.b32.xlu1 %v8694_v0, %s12649_s14  ;;  %3057 = vrot.lane.b32.xlu0 %v8696_v43, %s12649_s14 }
 0x8bc   : > { %v9316_v29 = vpop.permute.xlu1 %2882  ;;  %v9318_v37 = vpop.permute.xlu0 %2896 }
 0x8bd   : > { %12653 = vst [vmem:[#allocation15_spill] sm:$0xff] %v9316_v29 }
 0x8be   : > { %3055 = vrot.lane.b32.xlu1 %v8702_v22, %s12649_s14  ;;  %3061 = vrot.lane.b32.xlu0 %v8704_v9, %s12649_s14 }
 0x8c0   : > { %v9324_v16 = vpop.permute.xlu1 %2894  ;;  %v9326_v59 = vpop.permute.xlu0 %2900 }
 0x8c1   : > { %12654 = vst [vmem:[#allocation14_spill] sm:$0xff] %v9326_v59 }
 0x8c2   : > { %3059 = vrot.lane.b32.xlu1 %v8710_v1, %s12649_s14  ;;  %3065 = vrot.lane.b32.xlu0 %v12617_v24, %s12649_s14 }
 0x8c4   : > { %v9332_v26 = vpop.permute.xlu1 %2898  ;;  %v9334_v29 = vpop.permute.xlu0 %2904 }
 0x8c5   : > { %12655 = vst [vmem:[#allocation64_spill] sm:$0xff] %v9334_v29 }
 0x8c6   : > { %3063 = vrot.lane.b32.xlu1 %v8716_v14, %s12649_s14  ;;  %3077 = vrot.lane.b32.xlu0 %v8694_v0, %s12656_s19 }
 0x8c8   : > { %v9340_v19 = vpop.permute.xlu1 %2902  ;;  %v9342_v6 = vpop.permute.xlu0 %2908 }
 0x8c9   : > { %12657 = vst [vmem:[#allocation59_spill] sm:$0xff] %v9340_v19  ;;  %12658 = vst [vmem:[#allocation60_spill] sm:$0xff] %v9342_v6 }
 0x8ca   : > { %3075 = vrot.lane.b32.xlu1 %v8686_v2, %s12656_s19  ;;  %3081 = vrot.lane.b32.xlu0 %v8702_v22, %s12656_s19 }
 0x8cc   : > { %v9348_v31 = vpop.permute.xlu1 %2906  ;;  %v2922_v44 = vpop.permute.xlu0 %2921 }
 0x8cd   : > { %12659 = vst [vmem:[#allocation151_spill] sm:$0xff] %v9348_v31 }
 0x8ce   : > { %3079 = vrot.lane.b32.xlu1 %v8688_v53, %s12656_s19  ;;  %3085 = vrot.lane.b32.xlu0 %v8710_v1, %s12656_s19 }
 0x8d0   : > { %v2920_v29 = vpop.permute.xlu1 %2919  ;;  %v2926_v25 = vpop.permute.xlu0 %2925 }
 0x8d2   : > { %3083 = vrot.lane.b32.xlu1 %v8696_v43, %s12656_s19  ;;  %3089 = vrot.lane.b32.xlu0 %v8716_v14, %s12656_s19 }
 0x8d4   : > { %v2924_v6 = vpop.permute.xlu1 %2923  ;;  %v9358_v19 = vpop.permute.xlu0 %2929 }
 0x8d6   : > { %3087 = vrot.lane.b32.xlu1 %v8704_v9, %s12656_s19  ;;  %3103 = vrot.lane.b32.xlu0 %v8686_v2, %s5108_s18 }
 0x8d8   : > { %v2928_v31 = vpop.permute.xlu1 %2927  ;;  %v9364_v54 = vpop.permute.xlu0 %2933 }
 0x8da   : > { %3091 = vrot.lane.b32.xlu1 %v12617_v24, %s12656_s19  ;;  %3107 = vrot.lane.b32.xlu0 %v8688_v53, %s5108_s18  ;;  %v4894_v53 = vpack.i.bf16 %v8814_v55, %v12617_v24  ;;  %v9420_v24 = vsel %vm334_vm0, %v8836_v38, %v8830_v42  ;;  %v2938_v42 = vsel %vm740_vm1, %v2922_v44, %v2924_v6 }
 0x8db   : > { %12662 = vst [vmem:[#allocation155_spill] sm:$0xff] %v9420_v24 }
 0x8dc   : > { %v9370_v46 = vpop.permute.xlu1 %2931  ;;  %v9372_v30 = vpop.permute.xlu0 %2945 }
 0x8de   : > { %3105 = vrot.lane.b32.xlu1 %v8694_v0, %s5108_s18  ;;  %3111 = vrot.lane.b32.xlu0 %v8696_v43, %s5108_s18 }
 0x8e0   : > { %v9378_v2 = vpop.permute.xlu1 %2935  ;;  %v9380_v50 = vpop.permute.xlu0 %2949 }
 0x8e2   : > { %3109 = vrot.lane.b32.xlu1 %v8702_v22, %s5108_s18  ;;  %3115 = vrot.lane.b32.xlu0 %v8704_v9, %s5108_s18  ;;  %v9402_v9 = vsel %vm334_vm0, %v8828_v57, %v8822_v33 }
 0x8e3   : > { %12660 = vst [vmem:[#allocation51_spill] sm:$0xff] %v9402_v9 }
 0x8e4   : > { %v9388_v56 = vpop.permute.xlu1 %2947  ;;  %v9390_v7 = vpop.permute.xlu0 %2953 }
 0x8e6   : > { %3113 = vrot.lane.b32.xlu1 %v8710_v1, %s5108_s18  ;;  %4895 = vrot.lane.b32.xlu0 %v4894_v53, %s5108_s18  ;;  %v9415_v53 = vsel %vm334_vm0, %v8820_v32, %v8828_v57  ;;  %v9433_v57 = vsel %vm334_vm0, %v8822_v33, %v8836_v38  ;;  %v9438_v32 = vsel %vm334_vm0, %v8844_v8, %v8838_v12 }
 0x8e7   : > { %12661 = vst [vmem:[#allocation54_spill] sm:$0xff] %v9415_v53  ;;  %12663 = vst [vmem:[#allocation153_spill] sm:$0xff] %v9433_v57  ;;  %v2918_v33 = vsel %vm334_vm0, %v8852_v34, %v8814_v55  ;;  %v2940_v55 = vsel %vm740_vm1, %v2926_v25, %v2928_v31 }
 0x8e8   : > { %v9395_v43 = vpop.permute.xlu1 %2951  ;;  %v9397_v0 = vpop.permute.xlu0 %2957  ;;  %12664 = vst [vmem:[#allocation12_spill] sm:$0xff] %v9438_v32 }
 0x8ea   : > { %3117 = vrot.lane.b32.xlu1 %v8716_v14, %s5108_s18  ;;  %3123 = vrot.lane.b32.xlu0 %v9402_v9, %s5108_s18 }
 0x8ec   : > { %v9408_v22 = vpop.permute.xlu1 %2955  ;;  %v9410_v1 = vpop.permute.xlu0 %2961 }
 0x8ee   : > { %3121 = vrot.lane.b32.xlu1 %v9415_v53, %s5108_s18  ;;  %3127 = vrot.lane.b32.xlu0 %v9420_v24, %s5108_s18 }
 0x8f0   : > { %v9426_v14 = vpop.permute.xlu1 %2959  ;;  %v9428_v9 = vpop.permute.xlu0 %2973 }
 0x8f2   : > { %3125 = vrot.lane.b32.xlu1 %v9433_v57, %s5108_s18  ;;  %3131 = vrot.lane.b32.xlu0 %v9438_v32, %s5108_s18  ;;  %v9464_v57 = vsel %vm334_vm0, %v8838_v12, %v8852_v34 }
 0x8f3   : > { %12666 = vst [vmem:[#allocation76_spill] sm:$0xff] %v9464_v57 }
 0x8f4   : > { %v2972_v24 = vpop.permute.xlu1 %2971  ;;  %v9444_v53 = vpop.permute.xlu0 %2977 }
 0x8f6   : > { %3129 = vrot.lane.b32.xlu1 %v9449_v10, %s5108_s18  ;;  %3135 = vrot.lane.b32.xlu0 %v2918_v33, %s5108_s18  ;;  %v2937_v33 = vsel %vm740_vm1, %v2920_v29, %v2922_v44 }
 0x8f8   : > { %v9457_v38 = vpop.permute.xlu1 %2975  ;;  %v9459_v32 = vpop.permute.xlu0 %2981 }
 0x8fa   : > { %3133 = vrot.lane.b32.xlu1 %v9464_v57, %s5108_s18  ;;  %3141 = vrot.lane.b32.xlu0 %v2938_v42, %s5108_s18  ;;  %v2939_v57 = vsel %vm740_vm1, %v2924_v6, %v2926_v25  ;;  %v2942_v42 = vsel %vm740_vm1, %v9358_v19, %v9370_v46 }
 0x8fc   : > { %v9470_v8 = vpop.permute.xlu1 %2979  ;;  %v9472_v10 = vpop.permute.xlu0 %2985 }
 0x8fe   : > { %3139 = vrot.lane.b32.xlu1 %v2937_v33, %s5108_s18  ;;  %3145 = vrot.lane.b32.xlu0 %v2940_v55, %s5108_s18  ;;  %v2941_v55 = vsel %vm740_vm1, %v2928_v31, %v9358_v19  ;;  %v2944_v33 = vsel %vm740_vm1, %v9364_v54, %v9378_v2  ;;  %v2963_v31 = vsel %vm767_vm2, %v9372_v30, %v9388_v56 }
 0x8ff   : > { %v4899_v19 = vpack.i.bf16 %v9410_v1, %v9378_v2  ;;  %v2964_v2 = vsel %vm767_vm2, %v9388_v56, %v9380_v50 }
 0x900   : > { %v9478_v12 = vpop.permute.xlu1 %2983  ;;  %v9480_v34 = vpop.permute.xlu0 %2997 }
 0x902   : > { %3143 = vrot.lane.b32.xlu1 %v2939_v57, %s5108_s18  ;;  %3149 = vrot.lane.b32.xlu0 %v2942_v42, %s5108_s18  ;;  %v2943_v57 = vsel %vm740_vm1, %v9370_v46, %v9364_v54  ;;  %v2967_v46 = vsel %vm767_vm2, %v9390_v7, %v9408_v22  ;;  %vm12701_vm1 = vcmask 146432  }
 0x904   : > { %v9488_v44 = vpop.permute.xlu1 %2987  ;;  %v9490_v29 = vpop.permute.xlu0 %3001 }
 0x906   : > { %3147 = vrot.lane.b32.xlu1 %v2941_v55, %s5108_s18  ;;  %3153 = vrot.lane.b32.xlu0 %v2944_v33, %s5108_s18  ;;  %v2965_v33 = vsel %vm767_vm2, %v9380_v50, %v9395_v43 }
 0x908   : > { %v9499_v25 = vpop.permute.xlu1 %2999  ;;  %v9501_v6 = vpop.permute.xlu0 %3005 }
 0x90a   : > { %3151 = vrot.lane.b32.xlu1 %v2943_v57, %s5108_s18  ;;  %3157 = vrot.lane.b32.xlu0 %v2963_v31, %s5108_s18 }
 0x90c   : > { %v3004_v42 = vpop.permute.xlu1 %3003  ;;  %v9513_v55 = vpop.permute.xlu0 %3009 }
 0x90e   : > { %3161 = vrot.lane.b32.xlu0 %v2965_v33, %s5108_s18  ;;  %4900 = vrot.lane.b32.xlu1 %v4899_v19, %s5108_s18  ;;  %v2969_v19 = vsel %vm767_vm2, %v9397_v0, %v9426_v14  ;;  %v2966_v33 = vsel %vm767_vm2, %v9395_v43, %v9390_v7 }
 0x910   : > { %v9520_v54 = vpop.permute.xlu1 %3007  ;;  %v9522_v30 = vpop.permute.xlu0 %3013 }
 0x912   : > { %3165 = vrot.lane.b32.xlu0 %v2967_v46, %s5108_s18  ;;  %3159 = vrot.lane.b32.xlu1 %v2964_v2, %s5108_s18  ;;  %v2989_v46 = vsel %vm794_vm3, %v2972_v24, %v9428_v9  ;;  %v2968_v2 = vsel %vm767_vm2, %v9408_v22, %v9397_v0  ;;  %v2991_v24 = vsel %vm794_vm3, %v9457_v38, %v9444_v53 }
 0x914   : > { %v9532_v57 = vpop.permute.xlu1 %3011  ;;  %v9534_v31 = vpop.permute.xlu0 %3025 }
 0x916   : > { %3169 = vrot.lane.b32.xlu0 %v2969_v19, %s5108_s18  ;;  %3163 = vrot.lane.b32.xlu1 %v2966_v33, %s5108_s18  ;;  %v2970_v19 = vsel %vm767_vm2, %v9426_v14, %v9410_v1  ;;  %v2990_v33 = vsel %vm794_vm3, %v9428_v9, %v9457_v38  ;;  %v2993_v1 = vsel %vm794_vm3, %v9470_v8, %v9459_v32  ;;  %vm12704_vm2 = vmmov %vm12701_vm1 }
 0x917   : > { %v2995_v9 = vsel %vm794_vm3, %v9478_v12, %v9472_v10  ;;  %v4904_v38 = vpack.i.bf16 %v9522_v30, %v9488_v44 }
 0x918   : > { %v9544_v50 = vpop.permute.xlu1 %3023  ;;  %v9546_v56 = vpop.permute.xlu0 %3029 }
 0x91a   : > { %3167 = vrot.lane.b32.xlu1 %v2968_v2, %s5108_s18  ;;  %3175 = vrot.lane.b32.xlu0 %v2989_v46, %s5108_s18  ;;  %v2992_v2 = vsel %vm794_vm3, %v9444_v53, %v9470_v8 }
 0x91c   : > { %v9555_v43 = vpop.permute.xlu1 %3027  ;;  %v9557_v7 = vpop.permute.xlu0 %3033 }
 0x91e   : > { %3171 = vrot.lane.b32.xlu1 %v2970_v19, %s5108_s18  ;;  %3179 = vrot.lane.b32.xlu0 %v2991_v24, %s5108_s18 }
 0x920   : > { %v9567_v0 = vpop.permute.xlu1 %3031  ;;  %v9569_v22 = vpop.permute.xlu0 %3037 }
 0x922   : > { %3177 = vrot.lane.b32.xlu1 %v2990_v33, %s5108_s18  ;;  %3183 = vrot.lane.b32.xlu0 %v2993_v1, %s5108_s18  ;;  %v2994_v33 = vsel %vm794_vm3, %v9459_v32, %v9478_v12  ;;  %v2996_v1 = vsel %vm794_vm3, %v9472_v10, %v9488_v44  ;;  %vm12705_vm3 = vmmov %vm12701_vm1 }
 0x924   : > { %v9579_v14 = vpop.permute.xlu1 %3035  ;;  %v9581_v46 = vpop.permute.xlu0 %3049 }
 0x926   : > { %3181 = vrot.lane.b32.xlu1 %v2992_v2, %s5108_s18  ;;  %3187 = vrot.lane.b32.xlu0 %v2995_v9, %s5108_s18  ;;  %v3016_v2 = vsel %vm821_vm4, %v9499_v25, %v9490_v29  ;;  %v3015_v9 = vsel %vm821_vm4, %v9480_v34, %v9499_v25 }
 0x928   : > { %v9593_v19 = vpop.permute.xlu1 %3039  ;;  %v9595_v24 = vpop.permute.xlu0 %3053 }
 0x92a   : > { %3185 = vrot.lane.b32.xlu1 %v2994_v33, %s5108_s18  ;;  %4905 = vrot.lane.b32.xlu0 %v4904_v38, %s5108_s18  ;;  %v3018_v38 = vsel %vm821_vm4, %v3004_v42, %v9501_v6  ;;  %v3017_v33 = vsel %vm821_vm4, %v9490_v29, %v3004_v42 }
 0x92c   : > { %v9602_v53 = vpop.permute.xlu1 %3051  ;;  %v9604_v8 = vpop.permute.xlu0 %3057 }
 0x92e   : > { %3189 = vrot.lane.b32.xlu1 %v2996_v1, %s5108_s18  ;;  %3195 = vrot.lane.b32.xlu0 %v3016_v2, %s5108_s18  ;;  %v3020_v1 = vsel %vm821_vm4, %v9520_v54, %v9513_v55  ;;  %v3019_v2 = vsel %vm821_vm4, %v9501_v6, %v9520_v54 }
 0x930   : > { %v9614_v32 = vpop.permute.xlu1 %3055  ;;  %v9616_v12 = vpop.permute.xlu0 %3061 }
 0x932   : > { %3193 = vrot.lane.b32.xlu1 %v3015_v9, %s5108_s18  ;;  %3199 = vrot.lane.b32.xlu0 %v3018_v38, %s5108_s18  ;;  %v3022_v9 = vsel %vm821_vm4, %v9532_v57, %v9522_v30  ;;  %v3021_v38 = vsel %vm821_vm4, %v9513_v55, %v9532_v57  ;;  %v3041_v30 = vsel %vm848_vm5, %v9544_v50, %v9534_v31  ;;  %vm12707_vm4 = vcmask 211968  }
 0x934   : > { %v9625_v10 = vpop.permute.xlu1 %3059  ;;  %v9627_v44 = vpop.permute.xlu0 %3065 }
 0x936   : > { %3197 = vrot.lane.b32.xlu1 %v3017_v33, %s5108_s18  ;;  %3203 = vrot.lane.b32.xlu0 %v3020_v1, %s5108_s18  ;;  %v3042_v33 = vsel %vm848_vm5, %v9534_v31, %v9555_v43  ;;  %v3044_v1 = vsel %vm848_vm5, %v9546_v56, %v9567_v0  ;;  %v3046_v31 = vsel %vm848_vm5, %v9557_v7, %v9579_v14 }
 0x938   : > { %v9636_v34 = vpop.permute.xlu1 %3063  ;;  %v3078_v25 = vpop.permute.xlu0 %3077 }
 0x93a   : > { %3201 = vrot.lane.b32.xlu1 %v3019_v2, %s5108_s18  ;;  %3207 = vrot.lane.b32.xlu0 %v3022_v9, %s5108_s18  ;;  %v3043_v2 = vsel %vm848_vm5, %v9555_v43, %v9546_v56  ;;  %v3048_v56 = vsel %vm848_vm5, %v9569_v22, %v9593_v19 }
 0x93c   : > { %v3076_v29 = vpop.permute.xlu1 %3075  ;;  %v9646_v42 = vpop.permute.xlu0 %3081 }
 0x93e   : > { %3205 = vrot.lane.b32.xlu1 %v3021_v38, %s5108_s18  ;;  %3213 = vrot.lane.b32.xlu0 %v3042_v33, %s5108_s18  ;;  %v3045_v38 = vsel %vm848_vm5, %v9567_v0, %v9557_v7  ;;  %v3047_v7 = vsel %vm848_vm5, %v9579_v14, %v9569_v22  ;;  %vm12710_vm5 = vmmov %vm12707_vm4 }
 0x940   : > { %v3080_v6 = vpop.permute.xlu1 %3079  ;;  %v9656_v54 = vpop.permute.xlu0 %3085 }
 0x942   : > { %3211 = vrot.lane.b32.xlu1 %v3041_v30, %s5108_s18  ;;  %3217 = vrot.lane.b32.xlu0 %v3044_v1, %s5108_s18  ;;  %v9697_v30 = vsel %vm577_vm9, %v9142_v4, %v9156_v15 }
 0x944   : > { %v9666_v55 = vpop.permute.xlu1 %3083  ;;  %v9668_v57 = vpop.permute.xlu0 %3089 }
 0x946   : > { %3215 = vrot.lane.b32.xlu1 %v3043_v2, %s5108_s18  ;;  %3221 = vrot.lane.b32.xlu0 %v3046_v31, %s5108_s18  ;;  %v9712_v2 = vsel %vm550_vm8, %v9102_v11, %v9116_v5  ;;  %v9717_v31 = vsel %vm577_vm9, %v9148_v36, %v9142_v4  ;;  %v9735_v4 = vsel %vm577_vm9, %v9156_v15, %v9150_v28 }
 0x948   : > { %v9678_v50 = vpop.permute.xlu1 %3087  ;;  %v9680_v9 = vpop.permute.xlu0 %3103 }
 0x949   : > { %12667 = vst [vmem:[#allocation79_spill] sm:$0xff] %v9680_v9  ;;  %v12767_v9 = vld [vmem:[#allocation126_spill] sm:$0xff] }
 0x94a   : > { %3219 = vrot.lane.b32.xlu1 %v3045_v38, %s5108_s18  ;;  %3225 = vrot.lane.b32.xlu0 %v3048_v56, %s5108_s18  ;;  %v9730_v38 = vsel %vm550_vm8, %v9110_v21, %v9124_v62 }
 0x94c   : > { %v9690_v43 = vpop.permute.xlu1 %3091  ;;  %v9692_v33 = vpop.permute.xlu0 %3107 }
 0x94d   : > { %12668 = vst [vmem:[#allocation58_spill] sm:$0xff] %v9692_v33  ;;  %v12763_v33 = vld [vmem:[#allocation92_spill] sm:$0xff] }
 0x94e   : > { %3285 = vrot.lane.b32.xlu0 %v9697_v30, %s5108_s18  ;;  %3223 = vrot.lane.b32.xlu1 %v3047_v7, %s5108_s18 }
 0x950   : > { %v9705_v0 = vpop.permute.xlu1 %3105  ;;  %v9707_v1 = vpop.permute.xlu0 %3111 }
 0x951   : > { %12669 = vst [vmem:[#allocation62_spill] sm:$0xff] %v9705_v0  ;;  %12670 = vst [vmem:[#allocation145_spill] sm:$0xff] %v9707_v1  ;;  %v12768_v0 = vld [vmem:[#allocation124_spill] sm:$0xff] }
 0x952   : > { %3265 = vrot.lane.b32.xlu0 %v9712_v2, %s5108_s18  ;;  %3283 = vrot.lane.b32.xlu1 %v9717_v31, %s5108_s18 }
 0x954   : > { %v9723_v22 = vpop.permute.xlu1 %3109  ;;  %v9725_v14 = vpop.permute.xlu0 %3115 }
 0x955   : > { %12671 = vst [vmem:[#allocation144_spill] sm:$0xff] %v9723_v22  ;;  %12672 = vst [vmem:[#allocation160_spill] sm:$0xff] %v9725_v14  ;;  %v9748_v14 = vsel %vm550_vm8, %v9116_v5, %v9110_v21  ;;  %v3094_v22 = vsel %vm902_vm7, %v3078_v25, %v3080_v6 }
 0x956   : > { %3269 = vrot.lane.b32.xlu0 %v9730_v38, %s5108_s18  ;;  %3287 = vrot.lane.b32.xlu1 %v9735_v4, %s5108_s18 }
 0x958   : > { %v9741_v56 = vpop.permute.xlu1 %3113  ;;  %v9743_v7 = vpop.permute.xlu0 %4895 }
 0x959   : > { %12673 = vst [vmem:[#allocation66_spill] sm:$0xff] %v9741_v56  ;;  %12674 = vst [vmem:[#allocation138_spill] sm:$0xff] %v9743_v7  ;;  %v3093_v56 = vsel %vm902_vm7, %v3076_v29, %v3078_v25  ;;  %v9762_v7 = vsel %vm577_vm9, %v9150_v28, %v9164_v58  ;;  %v3095_v25 = vsel %vm902_vm7, %v3080_v6, %v9646_v42 }
 0x95a   : > { %3267 = vrot.lane.b32.xlu1 %v9748_v14, %s5108_s18  ;;  %3249 = vrot.lane.b32.xlu0 %v3094_v22, %s5108_s18  ;;  %v3067_v22 = vsel %vm875_vm6, %v9581_v46, %v9602_v53 }
 0x95c   : > { %v9754_v15 = vpop.permute.xlu1 %3117  ;;  %v9756_v1 = vpop.permute.xlu0 %3123 }
 0x95d   : > { %12675 = vst [vmem:[#allocation141_spill] sm:$0xff] %v9754_v15  ;;  %12676 = vst [vmem:[#allocation148_spill] sm:$0xff] %v9756_v1  ;;  %v9788_v15 = vsel %vm577_vm9, %v9164_v58, %v9158_v47  ;;  %v12775_v1 = vld [vmem:[#allocation40_spill] sm:$0xff] }
 0x95e   : > { %3289 = vrot.lane.b32.xlu0 %v9762_v7, %s5108_s18  ;;  %3247 = vrot.lane.b32.xlu1 %v3093_v56, %s5108_s18  ;;  %v3069_v56 = vsel %vm875_vm6, %v9595_v24, %v9614_v32  ;;  %12681 = vst [vmem:[#allocation87_spill] sm:$0xff] %v9788_v15 }
 0x960   : > { %v9767_v5 = vpop.permute.xlu1 %3121  ;;  %v9769_v21 = vpop.permute.xlu0 %3127 }
 0x961   : > { %12677 = vst [vmem:[#allocation78_spill] sm:$0xff] %v9767_v5  ;;  %12678 = vst [vmem:[#allocation137_spill] sm:$0xff] %v9769_v21 }
 0x962   : > { %3229 = vrot.lane.b32.xlu0 %v3067_v22, %s5108_s18  ;;  %3251 = vrot.lane.b32.xlu1 %v3095_v25, %s5108_s18  ;;  %v9800_v22 = vsel %vm550_vm8, %v9118_v60, %v9132_v18  ;;  %v3068_v25 = vsel %vm875_vm6, %v9602_v53, %v9595_v24 }
 0x963   : > { %12684 = vst [vmem:[#allocation93_spill] sm:$0xff] %v9800_v22 }
 0x964   : > { %v9778_v28 = vpop.permute.xlu1 %3125  ;;  %v9780_v29 = vpop.permute.xlu0 %3131 }
 0x965   : > { %12679 = vst [vmem:[#allocation135_spill] sm:$0xff] %v9778_v28  ;;  %12680 = vst [vmem:[#allocation13_spill] sm:$0xff] %v9780_v29  ;;  %v3097_v29 = vsel %vm902_vm7, %v9666_v55, %v9656_v54  ;;  %v12779_v28 = vld [vmem:[#allocation29_spill] sm:$0xff] }
 0x966   : > { %3233 = vrot.lane.b32.xlu0 %v3069_v56, %s5108_s18  ;;  %3291 = vrot.lane.b32.xlu1 %v9788_v15, %s5108_s18  ;;  %v12741_v15 = vld [vmem:[#allocation113_spill] sm:$0xff] }
 0x968   : > { %v9793_v46 = vpop.permute.xlu1 %3129  ;;  %v9795_v6 = vpop.permute.xlu0 %3135 }
 0x969   : > { %12682 = vst [vmem:[#allocation131_spill] sm:$0xff] %v9793_v46  ;;  %12683 = vst [vmem:[#allocation133_spill] sm:$0xff] %v9795_v6  ;;  %v9815_v6 = vsel %vm550_vm8, %v9124_v62, %v9118_v60  ;;  %v3071_v62 = vsel %vm875_vm6, %v9604_v8, %v9625_v10  ;;  %v12754_v46 = vld [vmem:[#allocation105_spill] sm:$0xff] }
 0x96a   : > { %3273 = vrot.lane.b32.xlu0 %v9800_v22, %s5108_s18  ;;  %3231 = vrot.lane.b32.xlu1 %v3068_v25, %s5108_s18  ;;  %v3096_v25 = vsel %vm902_vm7, %v9646_v42, %v9666_v55  ;;  %v2911_v42 = vsel %vm710_vm15, %v9324_v16, %v9318_v37 }
 0x96c   : > { %v9808_v58 = vpop.permute.xlu1 %3133  ;;  %v9810_v56 = vpop.permute.xlu0 %3141 }
 0x96d   : > { %12685 = vst [vmem:[#allocation157_spill] sm:$0xff] %v9808_v58  ;;  %12686 = vst [vmem:[#allocation146_spill] sm:$0xff] %v9810_v56  ;;  %v12789_v56 = vld [vmem:[#allocation27_spill] sm:$0xff] }
 0x96e   : > { %3271 = vrot.lane.b32.xlu1 %v9815_v6, %s5108_s18  ;;  %3255 = vrot.lane.b32.xlu0 %v3097_v29, %s5108_s18  ;;  %v3070_v29 = vsel %vm875_vm6, %v9614_v32, %v9604_v8  ;;  %v2884_v8 = vsel %vm683_vm14, %v9284_v45, %v9278_v20 }
 0x970   : > { %v9823_v24 = vpop.permute.xlu1 %3139  ;;  %v9825_v53 = vpop.permute.xlu0 %3145 }
 0x971   : > { %12687 = vst [vmem:[#allocation161_spill] sm:$0xff] %v9823_v24  ;;  %12688 = vst [vmem:[#allocation143_spill] sm:$0xff] %v9825_v53  ;;  %v12764_v53 = vld [vmem:[#allocation86_spill] sm:$0xff] }
 0x972   : > { %3253 = vrot.lane.b32.xlu1 %v3096_v25, %s5108_s18  ;;  %3237 = vrot.lane.b32.xlu0 %v3071_v62, %s5108_s18  ;;  %v2910_v62 = vsel %vm710_vm15, %v9310_v41, %v9324_v16 }
 0x974   : > { %v9835_v60 = vpop.permute.xlu1 %3143  ;;  %v9837_v58 = vpop.permute.xlu0 %3149 }
 0x975   : > { %12689 = vst [vmem:[#allocation140_spill] sm:$0xff] %v9835_v60  ;;  %12690 = vst [vmem:[#allocation142_spill] sm:$0xff] %v9837_v58  ;;  %v12784_v60 = vld [vmem:[#allocation110_spill] sm:$0xff] }
 0x976   : > { %3235 = vrot.lane.b32.xlu1 %v3070_v29, %s5108_s18  ;;  %3668 = vrot.lane.b32.xlu0 %v2911_v42, %s5110_s30 }
 0x978   : > { %v9847_v55 = vpop.permute.xlu1 %3147  ;;  %v9849_v25 = vpop.permute.xlu0 %3153 }
 0x979   : > { %12691 = vst [vmem:[#allocation139_spill] sm:$0xff] %v9847_v55  ;;  %12692 = vst [vmem:[#allocation136_spill] sm:$0xff] %v9849_v25  ;;  %v12759_v55 = vld [vmem:[#allocation108_spill] sm:$0xff] }
 0x97a   : > { %3666 = vrot.lane.b32.xlu1 %v2910_v62, %s5110_s30  ;;  %3648 = vrot.lane.b32.xlu0 %v2884_v8, %s5110_s30  ;;  %v2885_v62 = vsel %vm683_vm14, %v9278_v20, %v9292_v52  ;;  %v2860_v8 = vsel %vm656_vm13, %v9246_v17, %v9260_v61  ;;  %v2913_v20 = vsel %vm710_vm15, %v9332_v26, %v9326_v59  ;;  %v12758_v59 = vld [vmem:[#allocation114_spill] sm:$0xff] }
 0x97c   : > { %v9859_v32 = vpop.permute.xlu1 %3151  ;;  %v9861_v29 = vpop.permute.xlu0 %3157 }
 0x97d   : > { %12693 = vst [vmem:[#allocation132_spill] sm:$0xff] %v9859_v32  ;;  %12694 = vst [vmem:[#allocation134_spill] sm:$0xff] %v9861_v29 }
 0x97e   : > { %3664 = vrot.lane.b32.xlu1 %v9310_v41, %s5110_s30  ;;  %3646 = vrot.lane.b32.xlu0 %v9284_v45, %s5110_s30  ;;  %v2859_v45 = vsel %vm656_vm13, %v9252_v39, %v9246_v17  ;;  %v2836_v17 = vsel %vm12701_vm1, %v9220_v63, %v9214_v13  ;;  %vm12716_vm1 = vmmov %vm12707_vm4 }
 0x980   : > { %v9867_v42 = vpop.permute.xlu1 %4900  ;;  %v9869_v16 = vpop.permute.xlu0 %3161 }
 0x981   : > { %12695 = vst [vmem:[#allocation46_spill] sm:$0xff] %v9867_v42  ;;  %12696 = vst [vmem:[#allocation162_spill] sm:$0xff] %v9869_v16  ;;  %v12796_v16 = vld [vmem:[#allocation95_spill] sm:$0xff] }
 0x982   : > { %3650 = vrot.lane.b32.xlu1 %v2885_v62, %s5110_s30  ;;  %3632 = vrot.lane.b32.xlu0 %v2860_v8, %s5110_s30  ;;  %v2912_v8 = vsel %vm710_vm15, %v9318_v37, %v9332_v26 }
 0x984   : > { %v9879_v41 = vpop.permute.xlu1 %3159  ;;  %v9881_v25 = vpop.permute.xlu0 %3165 }
 0x985   : > { %12697 = vst [vmem:[#allocation163_spill] sm:$0xff] %v9879_v41  ;;  %12698 = vst [vmem:[#allocation164_spill] sm:$0xff] %v9881_v25  ;;  %v12771_v25 = vld [vmem:[#allocation104_spill] sm:$0xff] }
 0x986   : > { %3630 = vrot.lane.b32.xlu1 %v2859_v45, %s5110_s30  ;;  %3672 = vrot.lane.b32.xlu0 %v2913_v20, %s5110_s30  ;;  %v2886_v20 = vsel %vm683_vm14, %v9292_v52, %v9286_v23 }
 0x988   : > { %v9891_v42 = vpop.permute.xlu1 %3163  ;;  %v9893_v62 = vpop.permute.xlu0 %3169 }
 0x989   : > { %12699 = vst [vmem:[#allocation165_spill] sm:$0xff] %v9891_v42  ;;  %12700 = vst [vmem:[#allocation166_spill] sm:$0xff] %v9893_v62 }
 0x98a   : > { %3670 = vrot.lane.b32.xlu1 %v2912_v8, %s5110_s30  ;;  %3612 = vrot.lane.b32.xlu0 %v2836_v17, %s5110_s30  ;;  %v2837_v8 = vsel %vm12704_vm2, %v9214_v13, %v9228_v27  ;;  %v2835_v17 = vsel %vm12705_vm3, %v9206_v35, %v9220_v63  ;;  %v2811_v13 = vsel %vm12707_vm4, %v9188_v40, %v9182_v3  ;;  %vm12722_vm3 = vmmov %vm12704_vm2 }
 0x98b   : > { %vm12727_vm4 = vmmov %vm12716_vm1 }
 0x98c   : > { %v9903_v58 = vpop.permute.xlu1 %3167  ;;  %v9905_v45 = vpop.permute.xlu0 %3175 }
 0x98d   : > { %12702 = vst [vmem:[#allocation167_spill] sm:$0xff] %v9903_v58  ;;  %v12717_v58 = vld [vmem:[#allocation63_spill] sm:$0xff] }
 0x98e   : > { %3628 = vrot.lane.b32.xlu1 %v9252_v39, %s5110_s30  ;;  %3652 = vrot.lane.b32.xlu0 %v2886_v20, %s5110_s30  ;;  %v2887_v20 = vsel %vm683_vm14, %v9286_v23, %v9300_v51 }
 0x990   : > { %v9913_v26 = vpop.permute.xlu1 %3171  ;;  %v9915_v37 = vpop.permute.xlu0 %3179 }
 0x991   : > { %12703 = vst [vmem:[#allocation168_spill] sm:$0xff] %v9913_v26 }
 0x992   : > { %3614 = vrot.lane.b32.xlu1 %v2837_v8, %s5110_s30  ;;  %3610 = vrot.lane.b32.xlu0 %v2835_v17, %s5110_s30  ;;  %v2810_v8 = vsel %vm12710_vm5, %v9174_v48, %v9188_v40  ;;  %v12711_v17 = vld [vmem:[#allocation49_spill] sm:$0xff]  ;;  %vm12729_vm5 = vmmov %vm12716_vm1 }
 0x993   : > { %v2862_v23 = vsel %vm656_vm13, %v12711_v17, %v9268_v49 }
 0x994   : > { %v9925_v52 = vpop.permute.xlu1 %3177  ;;  %v9927_v39 = vpop.permute.xlu0 %3183 }
 0x995   : > { %12706 = vst [vmem:[#allocation169_spill] sm:$0xff] %v9927_v39  ;;  %v12780_v39 = vld [vmem:[#allocation33_spill] sm:$0xff] }
 0x996   : > { %3654 = vrot.lane.b32.xlu1 %v2887_v20, %s5110_s30  ;;  %3596 = vrot.lane.b32.xlu0 %v2811_v13, %s5110_s30  ;;  %v2861_v13 = vsel %vm656_vm13, %v9260_v61, %v12711_v17 }
 0x998   : > { %v9937_v63 = vpop.permute.xlu1 %3181  ;;  %v9939_v35 = vpop.permute.xlu0 %3187 }
 0x999   : > { %12708 = vst [vmem:[#allocation170_spill] sm:$0xff] %v9937_v63  ;;  %12709 = vst [vmem:[#allocation171_spill] sm:$0xff] %v9939_v35  ;;  %v12785_v63 = vld [vmem:[#allocation127_spill] sm:$0xff] }
 0x99a   : > { %3594 = vrot.lane.b32.xlu1 %v2810_v8, %s5110_s30  ;;  %3636 = vrot.lane.b32.xlu0 %v2862_v23, %s5110_s30  ;;  %v12715_v8 = vld [vmem:[#allocation154_spill] sm:$0xff] }
 0x99b   : > { %v2809_v23 = vsel %vm12716_vm1, %v12715_v8, %v9174_v48  ;;  %v12721_v8 = vld [vmem:[#allocation84_spill] sm:$0xff]  ;;  %vm12732_vm1 = vcmask 867328  }
 0x99c   : > { %v9949_v26 = vpop.permute.xlu1 %3185  ;;  %v9951_v20 = vpop.permute.xlu0 %4905 }
 0x99d   : > { %12712 = vst [vmem:[#allocation49_spill] sm:$0xff] %v9949_v26  ;;  %12713 = vst [vmem:[#allocation172_spill] sm:$0xff] %v9951_v20  ;;  %v2838_v20 = vsel %vm12704_vm2, %v9228_v27, %v12717_v58  ;;  %v12731_v26 = vld [vmem:[#allocation81_spill] sm:$0xff] }
 0x99e   : > { %3634 = vrot.lane.b32.xlu1 %v2861_v13, %s5110_s30  ;;  %3576 = vrot.lane.b32.xlu0 %v9717_v31, %s5110_s30  ;;  %v12719_v31 = vld [vmem:[#allocation156_spill] sm:$0xff]  ;;  %vm12736_vm2 = vmmov %vm12732_vm1 }
 0x99f   : > { %v2783_v13 = vsel %vm577_vm9, %v12719_v31, %v9148_v36 }
 0x9a0   : > { %v9959_v40 = vpop.permute.xlu1 %3189  ;;  %v9961_v32 = vpop.permute.xlu0 %3195 }
 0x9a1   : > { %12714 = vst [vmem:[#allocation173_spill] sm:$0xff] %v9959_v40  ;;  %v12726_v40 = vld [vmem:[#allocation70_spill] sm:$0xff] }
 0x9a2   : > { %3592 = vrot.lane.b32.xlu1 %v2809_v23, %s5110_s30  ;;  %3616 = vrot.lane.b32.xlu0 %v2838_v20, %s5110_s30  ;;  %v2839_v20 = vsel %vm12722_vm3, %v12717_v58, %v12721_v8  ;;  %vm12738_vm3 = vmmov %vm12732_vm1  ;;  %v12751_v8 = vld [vmem:[#allocation107_spill] sm:$0xff] }
 0x9a4   : > { %v9971_v61 = vpop.permute.xlu1 %3193  ;;  %v9973_v17 = vpop.permute.xlu0 %3199 }
 0x9a5   : > { %12718 = vst [vmem:[#allocation154_spill] sm:$0xff] %v9973_v17 }
 0x9a6   : > { %3578 = vrot.lane.b32.xlu1 %v9697_v30, %s5110_s30  ;;  %3574 = vrot.lane.b32.xlu0 %v2783_v13, %s5110_s30  ;;  %v12725_v30 = vld [vmem:[#allocation67_spill] sm:$0xff] }
 0x9a7   : > { %v2813_v13 = vsel %vm12727_vm4, %v12726_v40, %v12725_v30  ;;  %vm12742_vm4 = vcmask 875520   ;;  %v12747_v30 = vld [vmem:[#allocation123_spill] sm:$0xff] }
 0x9a8   : > { %v9981_v48 = vpop.permute.xlu1 %3197  ;;  %v9983_v27 = vpop.permute.xlu0 %3203 }
 0x9a9   : > { %12720 = vst [vmem:[#allocation63_spill] sm:$0xff] %v9983_v27 }
 0x9aa   : > { %3618 = vrot.lane.b32.xlu1 %v2839_v20, %s5110_s30  ;;  %3560 = vrot.lane.b32.xlu0 %v9748_v14, %s5110_s30  ;;  %v2812_v14 = vsel %vm12729_vm5, %v9182_v3, %v12726_v40  ;;  %v12730_v20 = vld [vmem:[#allocation80_spill] sm:$0xff]  ;;  %vm12745_vm5 = vmmov %vm12742_vm4 }
 0x9ac   : > { %v9991_v23 = vpop.permute.xlu1 %3201  ;;  %v9993_v36 = vpop.permute.xlu0 %3207 }
 0x9ad   : > { %12723 = vst [vmem:[#allocation156_spill] sm:$0xff] %v9991_v23  ;;  %12724 = vst [vmem:[#allocation174_spill] sm:$0xff] %v9993_v36  ;;  %v2732_v36 = vsel %vm12732_vm1, %v12731_v26, %v12730_v20  ;;  %vm12748_vm1 = vcmask 883712  }
 0x9ae   : > { %3558 = vrot.lane.b32.xlu1 %v9712_v2, %s5110_s30  ;;  %3600 = vrot.lane.b32.xlu0 %v2813_v13, %s5110_s30  ;;  %v12733_v13 = vld [vmem:[#allocation101_spill] sm:$0xff] }
 0x9af   : > { %v2757_v27 = vsel %vm550_vm8, %v12733_v13, %v9102_v11 }
 0x9b0   : > { %v10001_v62 = vpop.permute.xlu1 %3205  ;;  %v10003_v58 = vpop.permute.xlu0 %3213 }
 0x9b1   : > { %12728 = vst [vmem:[#allocation70_spill] sm:$0xff] %v10001_v62  ;;  %v12737_v62 = vld [vmem:[#allocation111_spill] sm:$0xff] }
 0x9b2   : > { %3598 = vrot.lane.b32.xlu1 %v2812_v14, %s5110_s30  ;;  %3540 = vrot.lane.b32.xlu0 %v2732_v36, %s5110_s30  ;;  %v12735_v14 = vld [vmem:[#allocation103_spill] sm:$0xff]  ;;  %v2731_v22 = vsel %vm12738_vm3, %v12737_v62, %v12731_v26  ;;  %v12744_v26 = vld [vmem:[#allocation97_spill] sm:$0xff] }
 0x9b3   : > { %v2733_v36 = vsel %vm12736_vm2, %v12730_v20, %v12735_v14  ;;  %vm12750_vm2 = vmmov %vm12742_vm4  ;;  %v2734_v49 = vsel %vm12738_vm3, %v12735_v14, %v12751_v8 }
 0x9b4   : > { %v10013_v35 = vpop.permute.xlu1 %3211  ;;  %v10015_v2 = vpop.permute.xlu0 %3217 }
 0x9b6   : > { %3556 = vrot.lane.b32.xlu1 %v2757_v27, %s5110_s30  ;;  %3580 = vrot.lane.b32.xlu0 %v9735_v4, %s5110_s30  ;;  %v12740_v4 = vld [vmem:[#allocation116_spill] sm:$0xff] }
 0x9b8   : > { %v10023_v3 = vpop.permute.xlu1 %3215  ;;  %v10025_v40 = vpop.permute.xlu0 %3221 }
 0x9b9   : > { %12734 = vst [vmem:[#allocation80_spill] sm:$0xff] %v10025_v40  ;;  %v2707_v40 = vsel %vm12742_vm4, %v12741_v15, %v12740_v4  ;;  %vm12753_vm4 = vmmov %vm12748_vm1 }
 0x9ba   : > { %3542 = vrot.lane.b32.xlu1 %v2733_v36, %s5110_s30  ;;  %3538 = vrot.lane.b32.xlu0 %v2731_v22, %s5110_s30  ;;  %v2706_v22 = vsel %vm12745_vm5, %v12744_v26, %v12741_v15  ;;  %vm12755_vm5 = vmmov %vm12748_vm1 }
 0x9bc   : > { %v10035_v11 = vpop.permute.xlu1 %3219  ;;  %v10037_v27 = vpop.permute.xlu0 %3225 }
 0x9bd   : > { %12739 = vst [vmem:[#allocation81_spill] sm:$0xff] %v10037_v27 }
 0x9be   : > { %3582 = vrot.lane.b32.xlu1 %v9762_v7, %s5110_s30  ;;  %3524 = vrot.lane.b32.xlu0 %v2707_v40, %s5110_s30  ;;  %v12746_v7 = vld [vmem:[#allocation125_spill] sm:$0xff] }
 0x9bf   : > { %v2680_v40 = vsel %vm12748_vm1, %v12747_v30, %v12746_v7  ;;  %vm12757_vm1 = vmmov %vm12738_vm3 }
 0x9c0   : > { %v10045_v20 = vpop.permute.xlu1 %3223  ;;  %v10047_v62 = vpop.permute.xlu0 %3285 }
 0x9c1   : > { %12743 = vst [vmem:[#allocation101_spill] sm:$0xff] %v10045_v20 }
 0x9c2   : > { %3522 = vrot.lane.b32.xlu1 %v2706_v22, %s5110_s30  ;;  %3564 = vrot.lane.b32.xlu0 %v9815_v6, %s5110_s30  ;;  %v12749_v22 = vld [vmem:[#allocation90_spill] sm:$0xff] }
 0x9c3   : > { %v2705_v6 = vsel %vm12750_vm2, %v12749_v22, %v12744_v26  ;;  %v2679_v26 = vsel %vm12755_vm5, %v12754_v46, %v12747_v30  ;;  %vm12760_vm2 = vcmask 949248   ;;  %v12761_v30 = vld [vmem:[#allocation130_spill] sm:$0xff] }
 0x9c4   : > { %v10055_v36 = vpop.permute.xlu1 %3283  ;;  %v10057_v27 = vpop.permute.xlu0 %3265  ;;  %vm12762_vm3 = vmmov %vm12760_vm2 }
 0x9c6   : > { %3562 = vrot.lane.b32.xlu1 %v9730_v38, %s5110_s30  ;;  %3504 = vrot.lane.b32.xlu0 %v2680_v40, %s5110_s30  ;;  %v12752_v40 = vld [vmem:[#allocation98_spill] sm:$0xff] }
 0x9c7   : > { %v2681_v21 = vsel %vm12753_vm4, %v12746_v7, %v12752_v40  ;;  %v2655_v7 = vsel %vm12760_vm2, %v12759_v55, %v12758_v59  ;;  %vm12765_vm4 = vcmask 875520  }
 0x9c8   : > { %v10065_v20 = vpop.permute.xlu1 %3287  ;;  %v10067_v15 = vpop.permute.xlu0 %3269  ;;  %vm12766_vm5 = vmmov %vm12765_vm4 }
 0x9ca   : > { %3520 = vrot.lane.b32.xlu1 %v2705_v6, %s5110_s30  ;;  %3544 = vrot.lane.b32.xlu0 %v2734_v49, %s5110_s30  ;;  %v12756_v49 = vld [vmem:[#allocation73_spill] sm:$0xff] }
 0x9cb   : > { %v2735_v6 = vsel %vm12757_vm1, %v12751_v8, %v12756_v49  ;;  %v2709_v8 = vsel %vm12765_vm4, %v12764_v53, %v12763_v33  ;;  %vm12769_vm1 = vcmask 957440  }
 0x9cc   : > { %v10077_v51 = vpop.permute.xlu1 %3267  ;;  %v10079_v38 = vpop.permute.xlu0 %3249  ;;  %vm12774_vm4 = vmmov %vm12769_vm1 }
 0x9ce   : > { %3506 = vrot.lane.b32.xlu1 %v2681_v21, %s5110_s30  ;;  %3502 = vrot.lane.b32.xlu0 %v2679_v26, %s5110_s30  ;;  %v2654_v26 = vsel %vm12762_vm3, %v12761_v30, %v12759_v55  ;;  %v2628_v55 = vsel %vm12769_vm1, %v12768_v0, %v12767_v9  ;;  %vm12772_vm3 = vcmask 883712  }
 0x9d0   : > { %v10089_v14 = vpop.permute.xlu1 %3247  ;;  %v10091_v22 = vpop.permute.xlu0 %3289 }
 0x9d2   : > { %3546 = vrot.lane.b32.xlu1 %v2735_v6, %s5110_s30  ;;  %3488 = vrot.lane.b32.xlu0 %v2655_v7, %s5110_s30  ;;  %v2708_v7 = vsel %vm12766_vm5, %v12740_v4, %v12764_v53  ;;  %v2682_v53 = vsel %vm12772_vm3, %v12752_v40, %v12771_v25  ;;  %vm12776_vm5 = vmmov %vm12769_vm1 }
 0x9d3   : > { %vm12778_vm1 = vmmov %vm12772_vm3 }
 0x9d4   : > { %v10101_v46 = vpop.permute.xlu1 %3251  ;;  %v10103_v21 = vpop.permute.xlu0 %3229 }
 0x9d6   : > { %3486 = vrot.lane.b32.xlu1 %v2654_v26, %s5110_s30  ;;  %3528 = vrot.lane.b32.xlu0 %v2709_v8, %s5110_s30  ;;  %v12770_v8 = vld [vmem:[#allocation129_spill] sm:$0xff] }
 0x9d7   : > { %v2653_v42 = vsel %vm12760_vm2, %v12770_v8, %v12761_v30  ;;  %v2627_v30 = vsel %vm12776_vm5, %v12775_v1, %v12768_v0  ;;  %v12777_v8 = vld [vmem:[#allocation119_spill] sm:$0xff]  ;;  %vm12781_vm2 = vcmask 965632  }
 0x9d8   : > { %v10113_v49 = vpop.permute.xlu1 %3291  ;;  %v10115_v6 = vpop.permute.xlu0 %3233  ;;  %vm12783_vm3 = vmmov %vm12781_vm2 }
 0x9da   : > { %3526 = vrot.lane.b32.xlu1 %v2708_v7, %s5110_s30  ;;  %3468 = vrot.lane.b32.xlu0 %v2628_v55, %s5110_s30  ;;  %v12773_v55 = vld [vmem:[#allocation118_spill] sm:$0xff] }
 0x9db   : > { %v2629_v5 = vsel %vm12774_vm4, %v12767_v9, %v12773_v55  ;;  %v2603_v9 = vsel %vm12781_vm2, %v12780_v39, %v12779_v28  ;;  %vm12786_vm4 = vcmask 949248  }
 0x9dc   : > { %v10125_v33 = vpop.permute.xlu1 %3231  ;;  %v10127_v26 = vpop.permute.xlu0 %3273  ;;  %v2657_v24 = vsel %vm12786_vm4, %v12785_v63, %v12784_v60  ;;  %vm12787_vm5 = vmmov %vm12786_vm4 }
 0x9de   : > { %3484 = vrot.lane.b32.xlu1 %v2653_v42, %s5110_s30  ;;  %3508 = vrot.lane.b32.xlu0 %v2682_v53, %s5110_s30  ;;  %v2683_v53 = vsel %vm12778_vm1, %v12771_v25, %v12777_v8  ;;  %vm12790_vm1 = vcmask 1031168  }
 0x9df   : > { %vm12795_vm4 = vmmov %vm12790_vm1 }
 0x9e0   : > { %v10137_v4 = vpop.permute.xlu1 %3271  ;;  %v10139_v7 = vpop.permute.xlu0 %3255 }
 0x9e2   : > { %3470 = vrot.lane.b32.xlu1 %v2629_v5, %s5110_s30  ;;  %3466 = vrot.lane.b32.xlu0 %v2627_v30, %s5110_s30  ;;  %v12782_v5 = vld [vmem:[#allocation38_spill] sm:$0xff] }
 0x9e3   : > { %v2602_v30 = vsel %vm12783_vm3, %v12782_v5, %v12780_v39  ;;  %vm12793_vm3 = vcmask 957440  }
 0x9e4   : > { %v10149_v40 = vpop.permute.xlu1 %3253  ;;  %v10151_v42 = vpop.permute.xlu0 %3237 }
 0x9e6   : > { %3510 = vrot.lane.b32.xlu1 %v2683_v53, %s5110_s30  ;;  %3452 = vrot.lane.b32.xlu0 %v2603_v9, %s5110_s30  ;;  %v2656_v53 = vsel %vm12787_vm5, %v12758_v59, %v12785_v63  ;;  %v12788_v9 = vld [vmem:[#allocation35_spill] sm:$0xff]  ;;  %v12792_v59 = vld [vmem:[#allocation122_spill] sm:$0xff]  ;;  %vm12799_vm5 = vmmov %vm12793_vm3 }
 0x9e7   : > { %v2576_v17 = vsel %vm12790_vm1, %v12789_v56, %v12788_v9  ;;  %v2630_v63 = vsel %vm12793_vm3, %v12773_v55, %v12792_v59  ;;  %vm12806_vm3 = vmmov %vm12781_vm2 }
 0x9e8   : > { %v10161_v0 = vpop.permute.xlu1 %3235  ;;  %v3669_v1 = vpop.permute.xlu0 %3668 }
 0x9ea   : > { %3450 = vrot.lane.b32.xlu1 %v2602_v30, %s5110_s30  ;;  %3492 = vrot.lane.b32.xlu0 %v2657_v24, %s5110_s30  ;;  %v12791_v24 = vld [vmem:[#allocation32_spill] sm:$0xff] }
 0x9eb   : > { %v2601_v23 = vsel %vm12781_vm2, %v12791_v24, %v12782_v5  ;;  %v10197_v5 = vsel %vm577_vm9, %v9158_v47, %v12796_v16  ;;  %v12800_v47 = vld [vmem:[#allocation147_spill] sm:$0xff] }
 0x9ec   : > { %v3667_v25 = vpop.permute.xlu1 %3666  ;;  %v3649_v8 = vpop.permute.xlu0 %3648  ;;  %v2575_v24 = vsel %vm12790_vm1, %v12800_v47, %v12789_v56 }
 0x9ed   : > { %v4001_v39 = vsel %vm1695_vm11, %v3667_v25, %v3669_v1 }
 0x9ee   : > { %3490 = vrot.lane.b32.xlu1 %v2656_v53, %s5110_s30  ;;  %3432 = vrot.lane.b32.xlu0 %v2576_v17, %s5110_s30 }
 0x9ef   : > { %4315 = vmatprep.subr.mxu0 %v4001_v39  ;;  %v12794_v39 = vld [vmem:[#allocation24_spill] sm:$0xff] }
 0x9f0   : > { %v3665_v30 = vpop.permute.xlu1 %3664  ;;  %v3647_v60 = vpop.permute.xlu0 %3646  ;;  %v2577_v41 = vsel %vm12795_vm4, %v12788_v9, %v12794_v39  ;;  %v12798_v9 = vld [vmem:[#allocation117_spill] sm:$0xff]  ;;  %vm12815_vm4 = vmmov %vm12790_vm1 }
 0x9f1   : > { %v4000_v29 = vsel %vm1695_vm11, %v3665_v30, %v3667_v25  ;;  %v2631_v30 = vsel %vm12799_vm5, %v12792_v59, %v12798_v9 }
 0x9f2   : > { %3448 = vrot.lane.b32.xlu1 %v2601_v23, %s5110_s30  ;;  %3472 = vrot.lane.b32.xlu0 %v2630_v63, %s5110_s30  ;;  %v12801_v63 = vld [vmem:[#allocation94_spill] sm:$0xff] }
 0x9f3   : > { %4316 = vmatpush1.msra.mxu0 %v4000_v29  ;;  %v3992_v29 = vsel %vm1695_vm11, %v3647_v60, %v3649_v8 }
 0x9f4   : > { %v3651_v53 = vpop.permute.xlu1 %3650  ;;  %v10189_v17 = vpop.permute.xlu0 %3632 }
 0x9f5   : > { %v3993_v25 = vsel %vm1695_vm11, %v3649_v8, %v3651_v53 }
 0x9f6   : > { %3434 = vrot.lane.b32.xlu1 %v2577_v41, %s5110_s30  ;;  %3293 = vrot.lane.b32.xlu0 %v10197_v5, %s5108_s18 }
 0x9f7   : > { %4317 = vmatprep.subr.mxu0 %v3993_v25  ;;  %v10219_v25 = vsel %vm577_vm9, %v12796_v16, %v12801_v63  ;;  %v12804_v16 = vld [vmem:[#allocation41_spill] sm:$0xff] }
 0x9f8   : > { %4318 = vmatpush1.msra.mxu0 %v3992_v29  ;;  %v3631_v23 = vpop.permute.xlu1 %3630  ;;  %v10204_v55 = vpop.permute.xlu0 %3672  ;;  %v12802_v29 = vld [vmem:[#allocation51_spill] sm:$0xff] }
 0x9f9   : > { %12797 = vst [vmem:[#allocation103_spill] sm:$0xff] %v10204_v55  ;;  %v3985_v41 = vsel %vm1695_vm11, %v3631_v23, %v10189_v17 }
 0x9fa   : > { %3474 = vrot.lane.b32.xlu1 %v2631_v30, %s5110_s30  ;;  %3430 = vrot.lane.b32.xlu0 %v2575_v24, %s5110_s30 }
 0x9fb   : > { %4319 = vmatprep.subr.mxu0 %v3985_v41  ;;  %v12803_v41 = vld [vmem:[#allocation31_spill] sm:$0xff] }
 0x9fc   : > { %v3671_v60 = vpop.permute.xlu1 %3670  ;;  %v3613_v8 = vpop.permute.xlu0 %3612  ;;  %v2605_v9 = vsel %vm12781_vm2, %v12804_v16, %v12803_v41 }
 0x9fd   : > { %v4003_v59 = vsel %vm1695_vm11, %v3671_v60, %v10204_v55  ;;  %v4002_v56 = vsel %vm1695_vm11, %v3669_v1, %v3671_v60  ;;  %v12805_v55 = vld [vmem:[#allocation54_spill] sm:$0xff] }
 0x9fe   : > { %3295 = vrot.lane.b32.xlu1 %v10219_v25, %s5108_s18  ;;  %3416 = vrot.lane.b32.xlu0 %v12802_v29, %s5110_s30 }
 0x9ff   : > { %4386 = vmatprep.subr.mxu1 %v4003_v59  ;;  %v2604_v59 = vsel %vm12806_vm3, %v12779_v28, %v12804_v16  ;;  %vm12893_vm3 = vcmask 883712  }
 0xa00   : > { %4387 = vmatpush1.msra.mxu1 %v4002_v56  ;;  %v3629_v30 = vpop.permute.xlu1 %3628  ;;  %v3653_v47 = vpop.permute.xlu0 %3652  ;;  %v12807_v56 = vld [vmem:[#allocation152_spill] sm:$0xff] }
 0xa01   : > { %v3984_v24 = vsel %vm1695_vm11, %v3629_v30, %v3631_v23  ;;  %v12808_v23 = vld [vmem:[#allocation159_spill] sm:$0xff] }
 0xa02   : > { %3414 = vrot.lane.b32.xlu1 %v12805_v55, %s5110_s30  ;;  %3456 = vrot.lane.b32.xlu0 %v2605_v9, %s5110_s30  ;;  %v10242_v30 = vsel %vm550_vm8, %v12808_v23, %v12807_v56  ;;  %v10255_v28 = vsel %vm550_vm8, %v9132_v18, %v12808_v23  ;;  %v12814_v23 = vld [vmem:[#allocation37_spill] sm:$0xff] }
 0xa03   : > { %4320 = vmatpush1.msra.mxu0 %v3984_v24  ;;  %12809 = vst [vmem:[#allocation111_spill] sm:$0xff] %v10242_v30 }
 0xa04   : > { %v3615_v1 = vpop.permute.xlu1 %3614  ;;  %v3611_v60 = vpop.permute.xlu0 %3610 }
 0xa05   : > { %v3976_v29 = vsel %vm1695_vm11, %v3611_v60, %v3613_v8  ;;  %v3977_v41 = vsel %vm1695_vm11, %v3613_v8, %v3615_v1  ;;  %v12811_v8 = vld [vmem:[#allocation44_spill] sm:$0xff] }
 0xa06   : > { %3454 = vrot.lane.b32.xlu1 %v2604_v59, %s5110_s30  ;;  %3277 = vrot.lane.b32.xlu0 %v10242_v30, %s5108_s18  ;;  %v12813_v59 = vld [vmem:[#allocation23_spill] sm:$0xff] }
 0xa07   : > { %4321 = vmatprep.subr.mxu0 %v3977_v41  ;;  %v3994_v41 = vsel %vm1695_vm11, %v3651_v53, %v3653_v47 }
 0xa08   : > { %4322 = vmatpush1.msra.mxu0 %v3976_v29  ;;  %v10248_v55 = vpop.permute.xlu1 %3654  ;;  %v10250_v9 = vpop.permute.xlu0 %3596  ;;  %v12812_v29 = vld [vmem:[#allocation25_spill] sm:$0xff] }
 0xa09   : > { %12810 = vst [vmem:[#allocation116_spill] sm:$0xff] %v10248_v55  ;;  %v3995_v24 = vsel %vm1695_vm11, %v3653_v47, %v10248_v55  ;;  %v2549_v18 = vsel %vm334_vm0, %v12813_v59, %v12812_v29  ;;  %v2578_v55 = vsel %vm12815_vm4, %v12794_v39, %v12814_v23  ;;  %v12817_v59 = vld [vmem:[#allocation26_spill] sm:$0xff]  ;;  %vm12818_vm0 = vmmov %vm12790_vm1  ;;  %vm12888_vm1 = vcmask 875520  }
 0xa0a   : > { %3275 = vrot.lane.b32.xlu1 %v10255_v28, %s5108_s18  ;;  %3396 = vrot.lane.b32.xlu0 %v12811_v8, %s5110_s30  ;;  %vm12890_vm2 = vmmov %vm12888_vm1 }
 0xa0b   : > { %4388 = vmatprep.subr.mxu1 %v3995_v24  ;;  %v3098_v24 = vsel %vm902_vm7, %v9656_v54, %v9678_v50  ;;  %v2579_v54 = vsel %vm12818_vm0, %v12814_v23, %v12817_v59  ;;  %v12819_v23 = vmov 0.0   ;;  %vm12896_vm4 = vmmov %vm12893_vm3 }
 0xa0c   : > { %4389 = vmatpush1.msra.mxu1 %v3994_v41  ;;  %v3595_v16 = vpop.permute.xlu1 %3594  ;;  %v10264_v60 = vpop.permute.xlu0 %3636  ;;  %v12816_v41 = vld [vmem:[#allocation18_spill] sm:$0xff] }
 0xa0d   : > { %v3969_v30 = vsel %vm1695_vm11, %v3595_v16, %v10250_v9 }
 0xa0e   : > { %3412 = vrot.lane.b32.xlu1 %v2549_v18, %s5110_s30  ;;  %3436 = vrot.lane.b32.xlu0 %v2578_v55, %s5110_s30  ;;  %v3102_v18 = vsel %vm577_vm9, %v12801_v63, %v12719_v31 }
 0xa0f   : > { %4323 = vmatprep.subr.mxu0 %v3969_v30 }
 0xa10   : > { %v3635_v53 = vpop.permute.xlu1 %3634  ;;  %v3577_v47 = vpop.permute.xlu0 %3576 }
 0xa11   : > { %v3987_v8 = vsel %vm1695_vm11, %v3635_v53, %v10264_v60  ;;  %v3986_v39 = vsel %vm1695_vm11, %v10189_v17, %v3635_v53 }
 0xa12   : > { %3398 = vrot.lane.b32.xlu1 %v12816_v41, %s5110_s30  ;;  %3257 = vrot.lane.b32.xlu0 %v3098_v24, %s5108_s18 }
 0xa13   : > { %4390 = vmatprep.subr.mxu1 %v3987_v8 }
 0xa14   : > { %4391 = vmatpush1.msra.mxu1 %v3986_v39  ;;  %v3593_v30 = vpop.permute.xlu1 %3592  ;;  %v3617_v55 = vpop.permute.xlu0 %3616  ;;  %v4909_v39 = vpack.i.bf16 %v12733_v13, %v12719_v31  ;;  %v3382_v31 = vsel %vm1115_vm10, %v10047_v62, %v10065_v20 }
 0xa15   : > { %v3968_v29 = vsel %vm1695_vm11, %v3593_v30, %v3595_v16  ;;  %v3099_v16 = vsel %vm902_vm7, %v9678_v50, %v9668_v57  ;;  %v12820_v50 = vld [vmem:[#allocation155_spill] sm:$0xff] }
 0xa16   : > { %3438 = vrot.lane.b32.xlu1 %v2579_v54, %s5110_s30  ;;  %3297 = vrot.lane.b32.xlu0 %v3102_v18, %s5108_s18 }
 0xa17   : > { %4324 = vmatpush1.msra.mxu0 %v3968_v29 }
 0xa18   : > { %v3579_v17 = vpop.permute.xlu1 %3578  ;;  %v3575_v53 = vpop.permute.xlu0 %3574 }
 0xa19   : > { %v3960_v24 = vsel %vm1695_vm11, %v3575_v53, %v3577_v47  ;;  %v3961_v8 = vsel %vm1695_vm11, %v3577_v47, %v3579_v17  ;;  %v3978_v47 = vsel %vm1695_vm11, %v3615_v1, %v3617_v55  ;;  %v3381_v1 = vsel %vm1115_vm10, %v10055_v36, %v10047_v62 }
 0xa1a   : > { %3259 = vrot.lane.b32.xlu1 %v3099_v16, %s5108_s18  ;;  %3394 = vrot.lane.b32.xlu0 %v12819_v23, %s5110_s30 }
 0xa1b   : > { %4325 = vmatprep.subr.mxu0 %v3961_v8 }
 0xa1c   : > { %4326 = vmatpush1.msra.mxu0 %v3960_v24  ;;  %v10305_v41 = vpop.permute.xlu1 %3618  ;;  %v10307_v30 = vpop.permute.xlu0 %3560  ;;  %v12821_v24 = vld [vmem:[#allocation153_spill] sm:$0xff] }
 0xa1d   : > { %v3979_v29 = vsel %vm1695_vm11, %v3617_v55, %v10305_v41  ;;  %v3073_v55 = vsel %vm875_vm6, %v9616_v12, %v9636_v34 }
 0xa1e   : > { %4910 = vrot.lane.b32.xlu1 %v4909_v39, %s5108_s18  ;;  %3420 = vrot.lane.b32.xlu0 %v12820_v50, %s5110_s30 }
 0xa1f   : > { %4392 = vmatprep.subr.mxu1 %v3979_v29 }
 0xa20   : > { %4393 = vmatpush1.msra.mxu1 %v3978_v47  ;;  %v3559_v54 = vpop.permute.xlu1 %3558  ;;  %v10315_v18 = vpop.permute.xlu0 %3600  ;;  %v3072_v47 = vsel %vm875_vm6, %v9625_v10, %v9616_v12  ;;  %v12822_v12 = vld [vmem:[#allocation50_spill] sm:$0xff] }
 0xa21   : > { %v3953_v53 = vsel %vm1695_vm11, %v3559_v54, %v10307_v30 }
 0xa22   : > { %3418 = vrot.lane.b32.xlu1 %v12821_v24, %s5110_s30  ;;  %3866 = vrot.lane.b32.xlu0 %v3382_v31, %s5110_s30  ;;  %v3101_v24 = vsel %vm550_vm8, %v12807_v56, %v12733_v13  ;;  %vm12871_vm8 = vcmask 211968  }
 0xa23   : > { %4327 = vmatprep.subr.mxu0 %v3953_v53  ;;  %vm12873_vm9 = vmmov %vm12871_vm8 }
 0xa24   : > { %v3599_v16 = vpop.permute.xlu1 %3598  ;;  %v3541_v8 = vpop.permute.xlu0 %3540 }
 0xa25   : > { %v3971_v23 = vsel %vm1695_vm11, %v3599_v16, %v10315_v18  ;;  %v3970_v39 = vsel %vm1695_vm11, %v10250_v9, %v3599_v16  ;;  %v3374_v16 = vsel %vm1115_vm10, %v10077_v51, %v10067_v15 }
 0xa26   : > { %3864 = vrot.lane.b32.xlu1 %v3381_v1, %s5110_s30  ;;  %3241 = vrot.lane.b32.xlu0 %v3073_v55, %s5108_s18  ;;  %v4914_v55 = vpack.i.bf16 %v9627_v44, %v9690_v43 }
 0xa27   : > { %4394 = vmatprep.subr.mxu1 %v3971_v23 }
 0xa28   : > { %4395 = vmatpush1.msra.mxu1 %v3970_v39  ;;  %v3557_v29 = vpop.permute.xlu1 %3556  ;;  %v3581_v50 = vpop.permute.xlu0 %3580 }
 0xa29   : > { %v3952_v62 = vsel %vm1695_vm11, %v3557_v29, %v3559_v54  ;;  %v3962_v1 = vsel %vm1695_vm11, %v3579_v17, %v3581_v50  ;;  %v3373_v29 = vsel %vm1115_vm10, %v10057_v27, %v10077_v51 }
 0xa2a   : > { %3239 = vrot.lane.b32.xlu1 %v3072_v47, %s5108_s18  ;;  %3862 = vrot.lane.b32.xlu0 %v10055_v36, %s5110_s30  ;;  %v3100_v47 = vsel %vm902_vm7, %v9668_v57, %v9690_v43  ;;  %v3383_v43 = vsel %vm1115_vm10, %v10065_v20, %v10091_v22 }
 0xa2b   : > { %4328 = vmatpush1.msra.mxu0 %v3952_v62 }
 0xa2c   : > { %v3543_v9 = vpop.permute.xlu1 %3542  ;;  %v3539_v31 = vpop.permute.xlu0 %3538 }
 0xa2d   : > { %v3944_v53 = vsel %vm1695_vm11, %v3539_v31, %v3541_v8  ;;  %v3945_v54 = vsel %vm1695_vm11, %v3541_v8, %v3543_v9  ;;  %v12823_v8 = vld [vmem:[#allocation55_spill] sm:$0xff]  ;;  %v3365_v31 = vsel %vm1115_vm10, %v10089_v14, %v10079_v38 }
 0xa2e   : > { %3279 = vrot.lane.b32.xlu1 %v3101_v24, %s5108_s18  ;;  %3402 = vrot.lane.b32.xlu0 %v12822_v12, %s5110_s30 }
 0xa2f   : > { %4329 = vmatprep.subr.mxu0 %v3945_v54 }
 0xa30   : > { %4330 = vmatpush1.msra.mxu0 %v3944_v53  ;;  %v10352_v10 = vpop.permute.xlu1 %3582  ;;  %v10354_v36 = vpop.permute.xlu0 %3524 }
 0xa31   : > { %v3963_v13 = vsel %vm1695_vm11, %v3581_v50, %v10352_v10 }
 0xa32   : > { %3400 = vrot.lane.b32.xlu1 %v12823_v8, %s5110_s30  ;;  %3848 = vrot.lane.b32.xlu0 %v3374_v16, %s5110_s30  ;;  %v3074_v8 = vsel %vm875_vm6, %v9636_v34, %v9627_v44  ;;  %v3357_v44 = vsel %vm1115_vm10, %v10103_v21, %v10125_v33  ;;  %vm12863_vm6 = vcmask 146432  }
 0xa33   : > { %4396 = vmatprep.subr.mxu1 %v3963_v13  ;;  %v3366_v13 = vsel %vm1115_vm10, %v10079_v38, %v10101_v46  ;;  %v3384_v38 = vsel %vm1115_vm10, %v10091_v22, %v10113_v49  ;;  %v3375_v22 = vsel %vm1115_vm10, %v10067_v15, %v10137_v4  ;;  %vm12867_vm7 = vmmov %vm12863_vm6 }
 0xa34   : > { %4397 = vmatpush1.msra.mxu1 %v3962_v1  ;;  %v3523_v23 = vpop.permute.xlu1 %3522  ;;  %v10367_v39 = vpop.permute.xlu0 %3564 }
 0xa35   : > { %v3937_v62 = vsel %vm1695_vm11, %v3523_v23, %v10354_v36 }
 0xa36   : > { %3846 = vrot.lane.b32.xlu1 %v3373_v29, %s5110_s30  ;;  %4915 = vrot.lane.b32.xlu0 %v4914_v55, %s5108_s18 }
 0xa37   : > { %4331 = vmatprep.subr.mxu0 %v3937_v62 }
 0xa38   : > { %v3563_v17 = vpop.permute.xlu1 %3562  ;;  %v3505_v50 = vpop.permute.xlu0 %3504 }
 0xa39   : > { %v3955_v51 = vsel %vm1695_vm11, %v3563_v17, %v10367_v39  ;;  %v3954_v53 = vsel %vm1695_vm11, %v10307_v30, %v3563_v17 }
 0xa3a   : > { %3261 = vrot.lane.b32.xlu1 %v3100_v47, %s5108_s18  ;;  %3828 = vrot.lane.b32.xlu0 %v3365_v31, %s5110_s30 }
 0xa3b   : > { %4398 = vmatprep.subr.mxu1 %v3955_v51 }
 0xa3c   : > { %4399 = vmatpush1.msra.mxu1 %v3954_v53  ;;  %v3521_v24 = vpop.permute.xlu1 %3520  ;;  %v3545_v54 = vpop.permute.xlu0 %3544  ;;  %v3349_v53 = vsel %vm1115_vm10, %v10013_v35, %v10003_v58 }
 0xa3d   : > { %v3936_v57 = vsel %vm1695_vm11, %v3521_v24, %v3523_v23  ;;  %v3946_v55 = vsel %vm1695_vm11, %v3543_v9, %v3545_v54  ;;  %v3358_v9 = vsel %vm1115_vm10, %v10125_v33, %v10115_v6  ;;  %v3376_v33 = vsel %vm1115_vm10, %v10137_v4, %v10127_v26 }
 0xa3e   : > { %3844 = vrot.lane.b32.xlu1 %v10057_v27, %s5110_s30  ;;  %3868 = vrot.lane.b32.xlu0 %v3383_v43, %s5110_s30 }
 0xa3f   : > { %4332 = vmatpush1.msra.mxu0 %v3936_v57 }
 0xa40   : > { %v3507_v30 = vpop.permute.xlu1 %3506  ;;  %v3503_v12 = vpop.permute.xlu0 %3502 }
 0xa41   : > { %v3928_v16 = vsel %vm1695_vm11, %v3503_v12, %v3505_v50  ;;  %v3929_v20 = vsel %vm1695_vm11, %v3505_v50, %v3507_v30  ;;  %v3350_v12 = vsel %vm1115_vm10, %v10003_v58, %v10023_v3  ;;  %v3342_v58 = vsel %vm1115_vm10, %v9961_v32, %v9981_v48 }
 0xa42   : > { %3830 = vrot.lane.b32.xlu1 %v3366_v13, %s5110_s30  ;;  %3243 = vrot.lane.b32.xlu0 %v3074_v8, %s5108_s18  ;;  %v3368_v8 = vsel %vm1115_vm10, %v10149_v40, %v10139_v7 }
 0xa43   : > { %4333 = vmatprep.subr.mxu0 %v3929_v20 }
 0xa44   : > { %4334 = vmatpush1.msra.mxu0 %v3928_v16  ;;  %v10405_v27 = vpop.permute.xlu1 %3546  ;;  %v10407_v1 = vpop.permute.xlu0 %3488 }
 0xa45   : > { %v3947_v34 = vsel %vm1695_vm11, %v3545_v54, %v10405_v27  ;;  %v3367_v54 = vsel %vm1115_vm10, %v10101_v46, %v10149_v40  ;;  %v3360_v40 = vsel %vm1115_vm10, %v10161_v0, %v10151_v42 }
 0xa46   : > { %3870 = vrot.lane.b32.xlu1 %v3384_v38, %s5110_s30  ;;  %3810 = vrot.lane.b32.xlu0 %v3357_v44, %s5110_s30  ;;  %v3341_v38 = vsel %vm1115_vm10, %v9971_v61, %v9961_v32 }
 0xa47   : > { %4400 = vmatprep.subr.mxu1 %v3947_v34 }
 0xa48   : > { %4401 = vmatpush1.msra.mxu1 %v3946_v55  ;;  %v3487_v23 = vpop.permute.xlu1 %3486  ;;  %v10420_v29 = vpop.permute.xlu0 %3528 }
 0xa49   : > { %v3921_v62 = vsel %vm1695_vm11, %v3487_v23, %v10407_v1 }
 0xa4a   : > { %3826 = vrot.lane.b32.xlu1 %v10089_v14, %s5110_s30  ;;  %3850 = vrot.lane.b32.xlu0 %v3375_v22, %s5110_s30  ;;  %v3359_v22 = vsel %vm1115_vm10, %v10115_v6, %v10161_v0 }
 0xa4b   : > { %4335 = vmatprep.subr.mxu0 %v3921_v62  ;;  %v3333_v62 = vsel %vm1115_vm10, %v9905_v45, %v9925_v52 }
 0xa4c   : > { %v3527_v17 = vpop.permute.xlu1 %3526  ;;  %v3469_v50 = vpop.permute.xlu0 %3468 }
 0xa4d   : > { %v3939_v47 = vsel %vm1695_vm11, %v3527_v17, %v10420_v29  ;;  %v3938_v15 = vsel %vm1695_vm11, %v10354_v36, %v3527_v17 }
 0xa4e   : > { %3812 = vrot.lane.b32.xlu1 %v3358_v9, %s5110_s30  ;;  %3227 = vrot.lane.b32.xlu0 %v9593_v19, %s5108_s18 }
 0xa4f   : > { %4402 = vmatprep.subr.mxu1 %v3939_v47 }
 0xa50   : > { %4403 = vmatpush1.msra.mxu1 %v3938_v15  ;;  %v3485_v14 = vpop.permute.xlu1 %3484  ;;  %v3509_v31 = vpop.permute.xlu0 %3508  ;;  %v3334_v15 = vsel %vm1115_vm10, %v9925_v52, %v9915_v37  ;;  %v3352_v52 = vsel %vm1115_vm10, %v10015_v2, %v10035_v11 }
 0xa51   : > { %v3920_v51 = vsel %vm1695_vm11, %v3485_v14, %v3487_v23 }
 0xa52   : > { %3852 = vrot.lane.b32.xlu1 %v3376_v33, %s5110_s30  ;;  %3792 = vrot.lane.b32.xlu0 %v3349_v53, %s5110_s30  ;;  %v12825_v33 = vld [vmem:[#allocation163_spill] sm:$0xff] }
 0xa53   : > { %4336 = vmatpush1.msra.mxu0 %v3920_v51  ;;  %v12824_v51 = vld [vmem:[#allocation162_spill] sm:$0xff] }
 0xa54   : > { %v3471_v19 = vpop.permute.xlu1 %3470  ;;  %v3467_v36 = vpop.permute.xlu0 %3466  ;;  %v3326_v53 = vsel %vm1115_vm10, %v12825_v33, %v12824_v51 }
 0xa55   : > { %v3912_v24 = vsel %vm1695_vm11, %v3467_v36, %v3469_v50  ;;  %v3913_v57 = vsel %vm1695_vm11, %v3469_v50, %v3471_v19  ;;  %v3351_v50 = vsel %vm1115_vm10, %v10023_v3, %v10015_v2 }
 0xa56   : > { %3808 = vrot.lane.b32.xlu1 %v10103_v21, %s5110_s30  ;;  %3832 = vrot.lane.b32.xlu0 %v3367_v54, %s5110_s30  ;;  %v3930_v21 = vsel %vm1695_vm11, %v3507_v30, %v3509_v31  ;;  %v12827_v54 = vld [vmem:[#allocation156_spill] sm:$0xff] }
 0xa57   : > { %4337 = vmatprep.subr.mxu0 %v3913_v57  ;;  %v12828_v57 = vld [vmem:[#allocation154_spill] sm:$0xff] }
 0xa58   : > { %4338 = vmatpush1.msra.mxu0 %v3912_v24  ;;  %v10457_v4 = vpop.permute.xlu1 %3510  ;;  %v10459_v43 = vpop.permute.xlu0 %3452 }
 0xa59   : > { %v3931_v46 = vsel %vm1695_vm11, %v3509_v31, %v10457_v4 }
 0xa5a   : > { %3794 = vrot.lane.b32.xlu1 %v3350_v12, %s5110_s30  ;;  %3790 = vrot.lane.b32.xlu0 %v10013_v35, %s5110_s30  ;;  %v3344_v12 = vsel %vm1115_vm10, %v12828_v57, %v12827_v54 }
 0xa5b   : > { %4404 = vmatprep.subr.mxu1 %v3931_v46 }
 0xa5c   : > { %4405 = vmatpush1.msra.mxu1 %v3930_v21  ;;  %v3451_v16 = vpop.permute.xlu1 %3450  ;;  %v10470_v13 = vpop.permute.xlu0 %3492 }
 0xa5d   : > { %v3905_v20 = vsel %vm1695_vm11, %v3451_v16, %v10459_v43 }
 0xa5e   : > { %3834 = vrot.lane.b32.xlu1 %v3368_v8, %s5110_s30  ;;  %3776 = vrot.lane.b32.xlu0 %v3342_v58, %s5110_s30  ;;  %v12829_v8 = vld [vmem:[#allocation146_spill] sm:$0xff]  ;;  %v12830_v58 = vld [vmem:[#allocation161_spill] sm:$0xff] }
 0xa5f   : > { %4339 = vmatprep.subr.mxu0 %v3905_v20  ;;  %v3317_v20 = vsel %vm1115_vm10, %v12830_v58, %v12829_v8 }
 0xa60   : > { %v3491_v35 = vpop.permute.xlu1 %3490  ;;  %v3433_v30 = vpop.permute.xlu0 %3432 }
 0xa61   : > { %v3923_v44 = vsel %vm1695_vm11, %v3491_v35, %v10470_v13  ;;  %v3922_v34 = vsel %vm1695_vm11, %v10407_v1, %v3491_v35 }
 0xa62   : > { %3774 = vrot.lane.b32.xlu1 %v3341_v38, %s5110_s30  ;;  %3816 = vrot.lane.b32.xlu0 %v3360_v40, %s5110_s30 }
 0xa63   : > { %4406 = vmatprep.subr.mxu1 %v3923_v44 }
 0xa64   : > { %4407 = vmatpush1.msra.mxu1 %v3922_v34  ;;  %v3449_v55 = vpop.permute.xlu1 %3448  ;;  %v3473_v23 = vpop.permute.xlu0 %3472 }
 0xa65   : > { %v3904_v32 = vsel %vm1695_vm11, %v3449_v55, %v3451_v16  ;;  %v3343_v16 = vsel %vm1115_vm10, %v9981_v48, %v12828_v57  ;;  %v12831_v48 = vld [vmem:[#allocation170_spill] sm:$0xff] }
 0xa66   : > { %3814 = vrot.lane.b32.xlu1 %v3359_v22, %s5110_s30  ;;  %3756 = vrot.lane.b32.xlu0 %v3333_v62, %s5110_s30  ;;  %v3335_v44 = vsel %vm1115_vm10, %v9915_v37, %v12831_v48  ;;  %v12833_v62 = vld [vmem:[#allocation169_spill] sm:$0xff] }
 0xa67   : > { %4340 = vmatpush1.msra.mxu0 %v3904_v32 }
 0xa68   : > { %v10503_v1 = vpop.permute.xlu1 %3434  ;;  %v10505_v17 = vpop.permute.xlu0 %3293 }
 0xa69   : > { %v3897_v6 = vsel %vm1695_vm11, %v3433_v30, %v10503_v1 }
 0xa6a   : > { %3772 = vrot.lane.b32.xlu1 %v9971_v61, %s5110_s30  ;;  %3796 = vrot.lane.b32.xlu0 %v3351_v50, %s5110_s30  ;;  %v3914_v61 = vsel %vm1695_vm11, %v3471_v19, %v3473_v23  ;;  %v12826_v19 = vld [vmem:[#allocation134_spill] sm:$0xff]  ;;  %v3336_v50 = vsel %vm1115_vm10, %v12831_v48, %v12833_v62 }
 0xa6b   : > { %4341 = vmatprep.subr.mxu0 %v3897_v6  ;;  %v3325_v24 = vsel %vm1115_vm10, %v12826_v19, %v12825_v33  ;;  %v12834_v6 = vld [vmem:[#allocation135_spill] sm:$0xff] }
 0xa6c   : > { %v10515_v0 = vpop.permute.xlu1 %3474  ;;  %v3431_v9 = vpop.permute.xlu0 %3430 }
 0xa6d   : > { %v3896_v47 = vsel %vm1695_vm11, %v3431_v9, %v3433_v30  ;;  %v3915_v3 = vsel %vm1695_vm11, %v3473_v23, %v10515_v0  ;;  %v12832_v23 = vld [vmem:[#allocation140_spill] sm:$0xff] }
 0xa6e   : > { %3758 = vrot.lane.b32.xlu1 %v3334_v15, %s5110_s30  ;;  %3754 = vrot.lane.b32.xlu0 %v9905_v45, %s5110_s30  ;;  %v3318_v32 = vsel %vm1115_vm10, %v12829_v8, %v12832_v23  ;;  %v12835_v9 = vld [vmem:[#allocation148_spill] sm:$0xff]  ;;  %v12839_v8 = vld [vmem:[#allocation62_spill] sm:$0xff] }
 0xa6f   : > { %4342 = vmatpush1.msra.mxu0 %v3896_v47  ;;  %4408 = vmatprep.subr.mxu1 %v3915_v3  ;;  %v3310_v47 = vsel %vm1115_vm10, %v12835_v9, %v12834_v6 }
 0xa70   : > { %4409 = vmatpush1.msra.mxu1 %v3914_v61  ;;  %v10527_v14 = vpop.permute.xlu1 %3295  ;;  %v10529_v31 = vpop.permute.xlu0 %3416 }
 0xa72   : > { %3798 = vrot.lane.b32.xlu1 %v3352_v52, %s5110_s30  ;;  %3740 = vrot.lane.b32.xlu0 %v3326_v53, %s5110_s30  ;;  %v12836_v52 = vld [vmem:[#allocation78_spill] sm:$0xff]  ;;  %v12837_v53 = vld [vmem:[#allocation164_spill] sm:$0xff] }
 0xa73   : > { %v3309_v33 = vsel %vm1115_vm10, %v12836_v52, %v12835_v9  ;;  %v12844_v9 = vld [vmem:[#allocation139_spill] sm:$0xff] }
 0xa74   : > { %v3415_v45 = vpop.permute.xlu1 %3414  ;;  %v10539_v36 = vpop.permute.xlu0 %3456 }
 0xa75   : > { %v3889_v2 = vsel %vm1695_vm11, %v3415_v45, %v10529_v31 }
 0xa76   : > { %3738 = vrot.lane.b32.xlu1 %v3325_v24, %s5110_s30  ;;  %3780 = vrot.lane.b32.xlu0 %v3344_v12, %s5110_s30 }
 0xa77   : > { %4343 = vmatprep.subr.mxu0 %v3889_v2 }
 0xa78   : > { %v3455_v46 = vpop.permute.xlu1 %3454  ;;  %v10551_v21 = vpop.permute.xlu0 %3277 }
 0xa79   : > { %v3907_v35 = vsel %vm1695_vm11, %v3455_v46, %v10539_v36  ;;  %v3906_v30 = vsel %vm1695_vm11, %v10459_v43, %v3455_v46 }
 0xa7a   : > { %3778 = vrot.lane.b32.xlu1 %v3343_v16, %s5110_s30  ;;  %3720 = vrot.lane.b32.xlu0 %v3317_v20, %s5110_s30 }
 0xa7b   : > { %4410 = vmatprep.subr.mxu1 %v3907_v35 }
 0xa7c   : > { %4411 = vmatpush1.msra.mxu1 %v3906_v30  ;;  %v10565_v38 = vpop.permute.xlu1 %3275  ;;  %v3397_v40 = vpop.permute.xlu0 %3396  ;;  %v10625_v30 = vld [vmem:[#allocation7 + $0x8] sm:$0xff] }
 0xa7d   : > { %4787 = vmatprep.mubr.msk.f32.mxu0 %vm2128_vm12, %v10625_v30  ;;  %4788 = vmatprep.mubr.msk.f32.mxu1 %vm2128_vm12, %v10625_v30 }
 0xa7e   : > { %3736 = vrot.lane.b32.xlu1 %v12826_v19, %s5110_s30  ;;  %3760 = vrot.lane.b32.xlu0 %v3335_v44, %s5110_s30 }
 0xa80   : > { %v3413_v34 = vpop.permute.xlu1 %3412  ;;  %v3437_v43 = vpop.permute.xlu0 %3436 }
 0xa81   : > { %v3888_v55 = vsel %vm1695_vm11, %v3413_v34, %v3415_v45  ;;  %v12838_v45 = vld [vmem:[#allocation165_spill] sm:$0xff]  ;;  %v3898_v57 = vsel %vm1695_vm11, %v10503_v1, %v3437_v43  ;;  %v12843_v34 = vld [vmem:[#allocation58_spill] sm:$0xff] }
 0xa82   : > { %3722 = vrot.lane.b32.xlu1 %v3318_v32, %s5110_s30  ;;  %3718 = vrot.lane.b32.xlu0 %v12830_v58, %s5110_s30  ;;  %v3328_v19 = vsel %vm1115_vm10, %v12838_v45, %v12837_v53  ;;  %v3327_v16 = vsel %vm1115_vm10, %v12824_v51, %v12838_v45  ;;  %v12840_v58 = vld [vmem:[#allocation79_spill] sm:$0xff] }
 0xa83   : > { %4344 = vmatpush1.msra.mxu0 %v3888_v55  ;;  %v3301_v20 = vsel %vm1115_vm10, %v12840_v58, %v12839_v8 }
 0xa84   : > { %v10580_v37 = vpop.permute.xlu1 %3398  ;;  %v10582_v22 = vpop.permute.xlu0 %3257 }
 0xa85   : > { %v3881_v15 = vsel %vm1695_vm11, %v3397_v40, %v10580_v37 }
 0xa86   : > { %3762 = vrot.lane.b32.xlu1 %v3336_v50, %s5110_s30  ;;  %3704 = vrot.lane.b32.xlu0 %v3310_v47, %s5110_s30 }
 0xa87   : > { %4345 = vmatprep.subr.mxu0 %v3881_v15  ;;  %v12845_v15 = vld [vmem:[#allocation64_spill] sm:$0xff] }
 0xa88   : > { %v10594_v3 = vpop.permute.xlu1 %3438  ;;  %v10596_v61 = vpop.permute.xlu0 %3297 }
 0xa89   : > { %v3899_v24 = vsel %vm1695_vm11, %v3437_v43, %v10594_v3  ;;  %v3302_v43 = vsel %vm1115_vm10, %v12839_v8, %v12843_v34 }
 0xa8a   : > { %3702 = vrot.lane.b32.xlu1 %v3309_v33, %s5110_s30  ;;  %3744 = vrot.lane.b32.xlu0 %v3328_v19, %s5110_s30 }
 0xa8b   : > { %4412 = vmatprep.subr.mxu1 %v3899_v24 }
 0xa8c   : > { %4413 = vmatpush1.msra.mxu1 %v3898_v57  ;;  %v10610_v12 = vpop.permute.xlu1 %3259  ;;  %v3395_v2 = vpop.permute.xlu0 %3394  ;;  %v12847_v57 = vld [vmem:[#allocation14_spill] sm:$0xff] }
 0xa8d   : > { %v3880_v46 = vsel %vm1695_vm11, %v3395_v2, %v3397_v40  ;;  %v12842_v40 = vld [vmem:[#allocation143_spill] sm:$0xff] }
 0xa8e   : > { %3742 = vrot.lane.b32.xlu1 %v3327_v16, %s5110_s30  ;;  %3684 = vrot.lane.b32.xlu0 %v3301_v20, %s5110_s30  ;;  %v3319_v48 = vsel %vm1115_vm10, %v12832_v23, %v12842_v40  ;;  %v3320_v47 = vsel %vm1115_vm10, %v12842_v40, %v12844_v9  ;;  %v12849_v16 = vld [vmem:[#allocation137_spill] sm:$0xff] }
 0xa8f   : > { %4346 = vmatpush1.msra.mxu0 %v3880_v46  ;;  %v12848_v46 = vld [vmem:[#allocation131_spill] sm:$0xff]  ;;  %v3311_v40 = vsel %vm1115_vm10, %v12834_v6, %v12849_v16 }
 0xa90   : > { %v10621_v1 = vpop.permute.xlu1 %4910  ;;  %v10623_v35 = vpop.permute.xlu0 %3420  ;;  %v3312_v8 = vsel %vm1115_vm10, %v12849_v16, %v12848_v46  ;;  %v12856_v16 = vld [vmem:[#allocation47_spill] sm:$0xff] }
 0xa91   : > { %12841 = vst [vmem:[#allocation113_spill] sm:$0xff] %v10623_v35 }
 0xa92   : > { %3700 = vrot.lane.b32.xlu1 %v12836_v52, %s5110_s30  ;;  %3724 = vrot.lane.b32.xlu0 %v3319_v48, %s5110_s30  ;;  %v12846_v52 = vld [vmem:[#allocation59_spill] sm:$0xff]  ;;  %v12851_v48 = vld [vmem:[#allocation149_spill] sm:$0xff] }
 0xa93   : > { %v2915_v33 = vsel %vm710_vm15, %v12846_v52, %v12845_v15  ;;  %v2914_v2 = vsel %vm710_vm15, %v12847_v57, %v12846_v52  ;;  %v12854_v52 = vld [vmem:[#allocation145_spill] sm:$0xff] }
 0xa94   : > { %v3419_v51 = vpop.permute.xlu1 %3418  ;;  %v10637_v44 = vpop.permute.xlu0 %3866 }
 0xa95   : > { %v3891_v55 = vsel %vm1695_vm11, %v3419_v51, %v10623_v35  ;;  %v3890_v23 = vsel %vm1695_vm11, %v10529_v31, %v3419_v51  ;;  %v12852_v51 = vld [vmem:[#allocation158_spill] sm:$0xff] }
 0xa96   : > { %3686 = vrot.lane.b32.xlu1 %v3302_v43, %s5110_s30  ;;  %3682 = vrot.lane.b32.xlu0 %v12840_v58, %s5110_s30  ;;  %v2889_v43 = vsel %vm683_vm14, %v12852_v51, %v12851_v48 }
 0xa97   : > { %4414 = vmatprep.subr.mxu1 %v3891_v55 }
 0xa98   : > { %4415 = vmatpush1.msra.mxu1 %v3890_v23  ;;  %v3865_v32 = vpop.permute.xlu1 %3864  ;;  %v10649_v50 = vpop.permute.xlu0 %3241 }
 0xa99   : > { %v4089_v31 = vsel %vm1695_vm11, %v3865_v32, %v10637_v44 }
 0xa9a   : > { %3726 = vrot.lane.b32.xlu1 %v3320_v47, %s5110_s30  ;;  %3676 = vrot.lane.b32.xlu0 %v2915_v33, %s5110_s30  ;;  %v12855_v33 = vld [vmem:[#allocation144_spill] sm:$0xff] }
 0xa9b   : > { %4357 = vmatprep.subr.mxu0 %v4089_v31  ;;  %v3304_v31 = vsel %vm1115_vm10, %v12855_v33, %v12854_v52 }
 0xa9c   : > { %v10661_v45 = vpop.permute.xlu1 %3239  ;;  %v3863_v19 = vpop.permute.xlu0 %3862 }
 0xa9d   : > { %v4088_v24 = vsel %vm1695_vm11, %v3863_v19, %v3865_v32  ;;  %v12853_v32 = vld [vmem:[#allocation71_spill] sm:$0xff] }
 0xa9e   : > { %3674 = vrot.lane.b32.xlu1 %v2914_v2, %s5110_s30  ;;  %3708 = vrot.lane.b32.xlu0 %v3312_v8, %s5110_s30  ;;  %v2888_v47 = vsel %vm683_vm14, %v12853_v32, %v12852_v51  ;;  %v3303_v2 = vsel %vm1115_vm10, %v12843_v34, %v12855_v33  ;;  %v12857_v8 = vld [vmem:[#allocation52_spill] sm:$0xff] }
 0xa9f   : > { %4358 = vmatpush2.msra.mxu0 %v4088_v24  ;;  %v12859_v34 = vld [vmem:[#allocation60_spill] sm:$0xff] }
 0xaa0   : > { %v10672_v58 = vpop.permute.xlu1 %3279  ;;  %v10674_v20 = vpop.permute.xlu0 %3402 }
 0xaa1   : > { %12850 = vst [vmem:[#allocation97_spill] sm:$0xff] %v10674_v20 }
 0xaa2   : > { %3706 = vrot.lane.b32.xlu1 %v3311_v40, %s5110_s30  ;;  %3658 = vrot.lane.b32.xlu0 %v2889_v43, %s5110_s30  ;;  %v2864_v40 = vsel %vm656_vm13, %v12857_v8, %v12856_v16 }
 0xaa4   : > { %v3401_v55 = vpop.permute.xlu1 %3400  ;;  %v10684_v23 = vpop.permute.xlu0 %3848 }
 0xaa5   : > { %v3883_v6 = vsel %vm1695_vm11, %v3401_v55, %v10674_v20  ;;  %v3882_v19 = vsel %vm1695_vm11, %v10580_v37, %v3401_v55  ;;  %v12858_v55 = vld [vmem:[#allocation74_spill] sm:$0xff]  ;;  %v12870_v20 = vld [vmem:[#allocation91_spill] sm:$0xff] }
 0xaa6   : > { %3656 = vrot.lane.b32.xlu1 %v2888_v47, %s5110_s30  ;;  %3690 = vrot.lane.b32.xlu0 %v3304_v31, %s5110_s30  ;;  %v2863_v32 = vsel %vm656_vm13, %v12858_v55, %v12857_v8  ;;  %v12860_v47 = vld [vmem:[#allocation151_spill] sm:$0xff] }
 0xaa7   : > { %4416 = vmatprep.subr.mxu1 %v3883_v6  ;;  %v2917_v33 = vsel %vm710_vm15, %v12860_v47, %v12859_v34  ;;  %v12864_v34 = vld [vmem:[#allocation15_spill] sm:$0xff] }
 0xaa8   : > { %4417 = vmatpush1.msra.mxu1 %v3882_v19  ;;  %v3847_v24 = vpop.permute.xlu1 %3846  ;;  %v10698_v57 = vpop.permute.xlu0 %4915 }
 0xaa9   : > { %v4081_v37 = vsel %vm1695_vm11, %v3847_v24, %v10684_v23 }
 0xaaa   : > { %3688 = vrot.lane.b32.xlu1 %v3303_v2, %s5110_s30  ;;  %3640 = vrot.lane.b32.xlu0 %v2864_v40, %s5110_s30  ;;  %v2916_v2 = vsel %vm710_vm15, %v12845_v15, %v12860_v47  ;;  %v12861_v40 = vld [vmem:[#allocation61_spill] sm:$0xff]  ;;  %vm12883_vm15 = vcmask 867328  }
 0xaab   : > { %4359 = vmatprep.subr.mxu0 %v4081_v37  ;;  %v12862_v37 = vld [vmem:[#allocation57_spill] sm:$0xff]  ;;  %vm12885_vm5 = vmmov %vm12883_vm15 }
 0xaac   : > { %v10710_v51 = vpop.permute.xlu1 %3261  ;;  %v3829_v43 = vpop.permute.xlu0 %3828  ;;  %v2841_v8 = vsel %vm12863_vm6, %v12862_v37, %v12861_v40  ;;  %vm12899_vm0 = vmmov %vm12885_vm5 }
 0xaae   : > { %3638 = vrot.lane.b32.xlu1 %v2863_v32, %s5110_s30  ;;  %3680 = vrot.lane.b32.xlu0 %v2917_v33, %s5110_s30  ;;  %v12865_v33 = vld [vmem:[#allocation69_spill] sm:$0xff] }
 0xab0   : > { %v3845_v31 = vpop.permute.xlu1 %3844  ;;  %v3869_v6 = vpop.permute.xlu0 %3868 }
 0xab1   : > { %v4080_v19 = vsel %vm1695_vm11, %v3845_v31, %v3847_v24  ;;  %v2891_v24 = vsel %vm683_vm14, %v12865_v33, %v12864_v34  ;;  %v12866_v31 = vld [vmem:[#allocation84_spill] sm:$0xff] }
 0xab2   : > { %3678 = vrot.lane.b32.xlu1 %v2916_v2, %s5110_s30  ;;  %3622 = vrot.lane.b32.xlu0 %v2841_v8, %s5110_s30  ;;  %v2840_v15 = vsel %vm12867_vm7, %v12866_v31, %v12862_v37  ;;  %v2890_v8 = vsel %vm683_vm14, %v12851_v48, %v12865_v33  ;;  %v12869_v34 = vld [vmem:[#allocation88_spill] sm:$0xff]  ;;  %v12872_v33 = vld [vmem:[#allocation67_spill] sm:$0xff]  ;;  %vm12880_vm14 = vmmov %vm12871_vm8 }
 0xab3   : > { %4360 = vmatpush2.msra.mxu0 %v4080_v19  ;;  %v2815_v35 = vsel %vm12871_vm8, %v12870_v20, %v12869_v34  ;;  %vm12906_vm8 = vmmov %vm12888_vm1 }
 0xab4   : > { %v10729_v55 = vpop.permute.xlu1 %3830  ;;  %v10731_v32 = vpop.permute.xlu0 %3243 }
 0xab5   : > { %v4073_v47 = vsel %vm1695_vm11, %v3829_v43, %v10729_v55 }
 0xab6   : > { %3620 = vrot.lane.b32.xlu1 %v2840_v15, %s5110_s30  ;;  %3662 = vrot.lane.b32.xlu0 %v2891_v24, %s5110_s30  ;;  %v4090_v24 = vsel %vm1695_vm11, %v10637_v44, %v3869_v6 }
 0xab7   : > { %4361 = vmatprep.subr.mxu0 %v4073_v47  ;;  %v2814_v47 = vsel %vm12873_vm9, %v12872_v33, %v12870_v20  ;;  %vm12909_vm9 = vcmask 957440  }
 0xab8   : > { %v10743_v19 = vpop.permute.xlu1 %3870  ;;  %v3811_v2 = vpop.permute.xlu0 %3810 }
 0xab9   : > { %12868 = vst [vmem:[#allocation125_spill] sm:$0xff] %v10743_v19  ;;  %v4091_v37 = vsel %vm1695_vm11, %v3869_v6, %v10743_v19  ;;  %v12874_v19 = vld [vmem:[#allocation77_spill] sm:$0xff] }
 0xaba   : > { %3660 = vrot.lane.b32.xlu1 %v2890_v8, %s5110_s30  ;;  %3604 = vrot.lane.b32.xlu0 %v2815_v35, %s5110_s30  ;;  %v2865_v44 = vsel %vm656_vm13, %v12856_v16, %v12874_v19  ;;  %vm12877_vm13 = vmmov %vm12863_vm6  ;;  %vm12902_vm6 = vcmask 949248  }
 0xabb   : > { %4428 = vmatprep.subr.mxu1 %v4091_v37  ;;  %vm12904_vm7 = vmmov %vm12902_vm6 }
 0xabc   : > { %4429 = vmatpush2.msra.mxu1 %v4090_v24  ;;  %v3827_v31 = vpop.permute.xlu1 %3826  ;;  %v3851_v15 = vpop.permute.xlu0 %3850  ;;  %v12875_v24 = vld [vmem:[#allocation87_spill] sm:$0xff] }
 0xabd   : > { %v4072_v48 = vsel %vm1695_vm11, %v3827_v31, %v3829_v43  ;;  %v12876_v31 = vld [vmem:[#allocation82_spill] sm:$0xff]  ;;  %v4082_v16 = vsel %vm1695_vm11, %v10684_v23, %v3851_v15 }
 0xabe   : > { %3602 = vrot.lane.b32.xlu1 %v2814_v47, %s5110_s30  ;;  %3644 = vrot.lane.b32.xlu0 %v12874_v19, %s5110_s30  ;;  %v2842_v33 = vsel %vm12877_vm13, %v12861_v40, %v12876_v31  ;;  %vm12911_vm13 = vmmov %vm12909_vm9 }
 0xabf   : > { %4362 = vmatpush2.msra.mxu0 %v4072_v48 }
 0xac0   : > { %v3813_v35 = vpop.permute.xlu1 %3812  ;;  %v10764_v8 = vpop.permute.xlu0 %3227 }
 0xac1   : > { %v4065_v6 = vsel %vm1695_vm11, %v3811_v2, %v3813_v35 }
 0xac2   : > { %3642 = vrot.lane.b32.xlu1 %v2865_v44, %s5110_s30  ;;  %3586 = vrot.lane.b32.xlu0 %v10197_v5, %s5110_s30 }
 0xac3   : > { %4363 = vmatprep.subr.mxu0 %v4065_v6 }
 0xac4   : > { %v10773_v20 = vpop.permute.xlu1 %3852  ;;  %v3793_v43 = vpop.permute.xlu0 %3792 }
 0xac5   : > { %v4083_v37 = vsel %vm1695_vm11, %v3851_v15, %v10773_v20  ;;  %v12878_v15 = vld [vmem:[#allocation93_spill] sm:$0xff] }
 0xac6   : > { %3584 = vrot.lane.b32.xlu1 %v12875_v24, %s5110_s30  ;;  %3626 = vrot.lane.b32.xlu0 %v12876_v31, %s5110_s30  ;;  %v12881_v24 = vld [vmem:[#allocation99_spill] sm:$0xff] }
 0xac7   : > { %4430 = vmatprep.subr.mxu1 %v4083_v37  ;;  %v12882_v31 = vld [vmem:[#allocation83_spill] sm:$0xff] }
 0xac8   : > { %4431 = vmatpush2.msra.mxu1 %v4082_v16  ;;  %v3809_v19 = vpop.permute.xlu1 %3808  ;;  %v3833_v5 = vpop.permute.xlu0 %3832 }
 0xac9   : > { %v4064_v48 = vsel %vm1695_vm11, %v3809_v19, %v3811_v2  ;;  %v12879_v2 = vld [vmem:[#allocation65_spill] sm:$0xff]  ;;  %v4074_v19 = vsel %vm1695_vm11, %v10729_v55, %v3833_v5 }
 0xaca   : > { %3624 = vrot.lane.b32.xlu1 %v2842_v33, %s5110_s30  ;;  %3568 = vrot.lane.b32.xlu0 %v10255_v28, %s5110_s30  ;;  %v2816_v28 = vsel %vm12880_vm14, %v12869_v34, %v12879_v2  ;;  %v12884_v34 = vld [vmem:[#allocation73_spill] sm:$0xff]  ;;  %vm12913_vm14 = vmmov %vm12893_vm3 }
 0xacb   : > { %4364 = vmatpush2.msra.mxu0 %v4064_v48  ;;  %v12886_v55 = vld [vmem:[#allocation89_spill] sm:$0xff] }
 0xacc   : > { %v3795_v47 = vpop.permute.xlu1 %3794  ;;  %v3791_v44 = vpop.permute.xlu0 %3790 }
 0xacd   : > { %v4056_v6 = vsel %vm1695_vm11, %v3791_v44, %v3793_v43  ;;  %v4057_v23 = vsel %vm1695_vm11, %v3793_v43, %v3795_v47  ;;  %v2737_v43 = vsel %vm12883_vm15, %v12882_v31, %v12881_v24  ;;  %v2736_v44 = vsel %vm12885_vm5, %v12884_v34, %v12882_v31 }
 0xace   : > { %3566 = vrot.lane.b32.xlu1 %v12878_v15, %s5110_s30  ;;  %3608 = vrot.lane.b32.xlu0 %v12879_v2, %s5110_s30  ;;  %vm12916_vm15 = vcmask 965632  }
 0xacf   : > { %4365 = vmatprep.subr.mxu0 %v4057_v23  ;;  %vm12919_vm5 = vmmov %vm12916_vm15 }
 0xad0   : > { %4366 = vmatpush2.msra.mxu0 %v4056_v6  ;;  %v10796_v40 = vpop.permute.xlu1 %3834  ;;  %v10798_v37 = vpop.permute.xlu0 %3776 }
 0xad1   : > { %v4075_v16 = vsel %vm1695_vm11, %v3833_v5, %v10796_v40  ;;  %v12887_v5 = vld [vmem:[#allocation109_spill] sm:$0xff] }
 0xad2   : > { %3606 = vrot.lane.b32.xlu1 %v2816_v28, %s5110_s30  ;;  %3550 = vrot.lane.b32.xlu0 %v2737_v43, %s5110_s30  ;;  %v2711_v2 = vsel %vm12888_vm1, %v12887_v5, %v12886_v55  ;;  %vm12921_vm1 = vmmov %vm12902_vm6 }
 0xad3   : > { %4432 = vmatprep.subr.mxu1 %v4075_v16 }
 0xad4   : > { %4433 = vmatpush2.msra.mxu1 %v4074_v19  ;;  %v3775_v48 = vpop.permute.xlu1 %3774  ;;  %v10812_v33 = vpop.permute.xlu0 %3816  ;;  %v12889_v19 = vld [vmem:[#allocation92_spill] sm:$0xff] }
 0xad5   : > { %v4049_v6 = vsel %vm1695_vm11, %v3775_v48, %v10798_v37  ;;  %v2710_v34 = vsel %vm12890_vm2, %v12889_v19, %v12887_v5  ;;  %vm12924_vm2 = vcmask 1031168  }
 0xad6   : > { %3548 = vrot.lane.b32.xlu1 %v2736_v44, %s5110_s30  ;;  %3590 = vrot.lane.b32.xlu0 %v12801_v63, %s5110_s30 }
 0xad7   : > { %4367 = vmatprep.subr.mxu0 %v4049_v6  ;;  %v12891_v6 = vld [vmem:[#allocation96_spill] sm:$0xff] }
 0xad8   : > { %v3815_v23 = vpop.permute.xlu1 %3814  ;;  %v3757_v15 = vpop.permute.xlu0 %3756 }
 0xad9   : > { %v4067_v28 = vsel %vm1695_vm11, %v3815_v23, %v10812_v33  ;;  %v4066_v31 = vsel %vm1695_vm11, %v3813_v35, %v3815_v23  ;;  %v12892_v23 = vld [vmem:[#allocation100_spill] sm:$0xff] }
 0xada   : > { %3588 = vrot.lane.b32.xlu1 %v10219_v25, %s5110_s30  ;;  %3532 = vrot.lane.b32.xlu0 %v2711_v2, %s5110_s30  ;;  %v2685_v2 = vsel %vm12893_vm3, %v12892_v23, %v12891_v6  ;;  %vm12925_vm3 = vmmov %vm12924_vm2 }
 0xadb   : > { %4434 = vmatprep.subr.mxu1 %v4067_v28  ;;  %v12894_v28 = vld [vmem:[#allocation111_spill] sm:$0xff] }
 0xadc   : > { %4435 = vmatpush2.msra.mxu1 %v4066_v31  ;;  %v3773_v63 = vpop.permute.xlu1 %3772  ;;  %v3797_v43 = vpop.permute.xlu0 %3796  ;;  %v12895_v31 = vld [vmem:[#allocation119_spill] sm:$0xff] }
 0xadd   : > { %v4048_v16 = vsel %vm1695_vm11, %v3773_v63, %v3775_v48  ;;  %v2684_v63 = vsel %vm12896_vm4, %v12895_v31, %v12892_v23  ;;  %v4058_v19 = vsel %vm1695_vm11, %v3795_v47, %v3797_v43  ;;  %v12900_v23 = vld [vmem:[#allocation128_spill] sm:$0xff]  ;;  %v12903_v31 = vld [vmem:[#allocation110_spill] sm:$0xff]  ;;  %vm12927_vm4 = vmmov %vm12909_vm9 }
 0xade   : > { %3530 = vrot.lane.b32.xlu1 %v2710_v34, %s5110_s30  ;;  %3572 = vrot.lane.b32.xlu0 %v12807_v56, %s5110_s30 }
 0xadf   : > { %4368 = vmatpush2.msra.mxu0 %v4048_v16 }
 0xae0   : > { %v3759_v35 = vpop.permute.xlu1 %3758  ;;  %v3755_v25 = vpop.permute.xlu0 %3754 }
 0xae1   : > { %v4040_v44 = vsel %vm1695_vm11, %v3755_v25, %v3757_v15  ;;  %v4041_v48 = vsel %vm1695_vm11, %v3757_v15, %v3759_v35  ;;  %v12897_v15 = vld [vmem:[#allocation75_spill] sm:$0xff] }
 0xae2   : > { %3570 = vrot.lane.b32.xlu1 %v12894_v28, %s5110_s30  ;;  %3514 = vrot.lane.b32.xlu0 %v2685_v2, %s5110_s30  ;;  %v12901_v2 = vld [vmem:[#allocation106_spill] sm:$0xff] }
 0xae3   : > { %4369 = vmatprep.subr.mxu0 %v4041_v48  ;;  %v2659_v48 = vsel %vm12902_vm6, %v12901_v2, %v12900_v23  ;;  %vm12936_vm6 = vmmov %vm12924_vm2 }
 0xae4   : > { %4370 = vmatpush2.msra.mxu0 %v4040_v44  ;;  %v10846_v5 = vpop.permute.xlu1 %3798  ;;  %v10848_v56 = vpop.permute.xlu0 %3740  ;;  %v2738_v44 = vsel %vm12899_vm0, %v12881_v24, %v12897_v15  ;;  %vm12931_vm0 = vmmov %vm12919_vm5 }
 0xae5   : > { %v4059_v16 = vsel %vm1695_vm11, %v3797_v43, %v10846_v5 }
 0xae6   : > { %3512 = vrot.lane.b32.xlu1 %v2684_v63, %s5110_s30  ;;  %3554 = vrot.lane.b32.xlu0 %v12897_v15, %s5110_s30  ;;  %v2658_v63 = vsel %vm12904_vm7, %v12903_v31, %v12901_v2  ;;  %v12905_v15 = vld [vmem:[#allocation85_spill] sm:$0xff] }
 0xae7   : > { %4436 = vmatprep.subr.mxu1 %v4059_v16  ;;  %v2712_v2 = vsel %vm12906_vm8, %v12886_v55, %v12905_v15  ;;  %v12908_v31 = vld [vmem:[#allocation121_spill] sm:$0xff]  ;;  %v12912_v55 = vld [vmem:[#allocation120_spill] sm:$0xff] }
 0xae8   : > { %4437 = vmatpush2.msra.mxu1 %v4058_v19  ;;  %v3739_v34 = vpop.permute.xlu1 %3738  ;;  %v10859_v25 = vpop.permute.xlu0 %3780 }
 0xae9   : > { %12898 = vst [vmem:[#allocation123_spill] sm:$0xff] %v10859_v25  ;;  %v4033_v28 = vsel %vm1695_vm11, %v3739_v34, %v10848_v56 }
 0xaea   : > { %3552 = vrot.lane.b32.xlu1 %v2738_v44, %s5110_s30  ;;  %3496 = vrot.lane.b32.xlu0 %v2659_v48, %s5110_s30 }
 0xaeb   : > { %4371 = vmatprep.subr.mxu0 %v4033_v28  ;;  %v12907_v28 = vld [vmem:[#allocation112_spill] sm:$0xff] }
 0xaec   : > { %v3779_v47 = vpop.permute.xlu1 %3778  ;;  %v3721_v43 = vpop.permute.xlu0 %3720 }
 0xaed   : > { %v4051_v24 = vsel %vm1695_vm11, %v3779_v47, %v10859_v25  ;;  %v4050_v16 = vsel %vm1695_vm11, %v10798_v37, %v3779_v47  ;;  %v2633_v25 = vsel %vm12909_vm9, %v12908_v31, %v12907_v28 }
 0xaee   : > { %3494 = vrot.lane.b32.xlu1 %v2658_v63, %s5110_s30  ;;  %3536 = vrot.lane.b32.xlu0 %v12905_v15, %s5110_s30 }
 0xaef   : > { %4438 = vmatprep.subr.mxu1 %v4051_v24  ;;  %v12910_v24 = vld [vmem:[#allocation117_spill] sm:$0xff] }
 0xaf0   : > { %4439 = vmatpush2.msra.mxu1 %v4050_v16  ;;  %v3737_v19 = vpop.permute.xlu1 %3736  ;;  %v3761_v44 = vpop.permute.xlu0 %3760 }
 0xaf1   : > { %v4032_v48 = vsel %vm1695_vm11, %v3737_v19, %v3739_v34  ;;  %v2632_v34 = vsel %vm12911_vm13, %v12910_v24, %v12908_v31  ;;  %v2686_v19 = vsel %vm12913_vm14, %v12891_v6, %v12912_v55  ;;  %v12918_v6 = vld [vmem:[#allocation31_spill] sm:$0xff] }
 0xaf2   : > { %3534 = vrot.lane.b32.xlu1 %v2712_v2, %s5110_s30  ;;  %3478 = vrot.lane.b32.xlu0 %v2633_v25, %s5110_s30  ;;  %v12915_v2 = vld [vmem:[#allocation45_spill] sm:$0xff] }
 0xaf3   : > { %4372 = vmatpush2.msra.mxu0 %v4032_v48  ;;  %v12914_v48 = vld [vmem:[#allocation34_spill] sm:$0xff] }
 0xaf4   : > { %v3723_v37 = vpop.permute.xlu1 %3722  ;;  %v3719_v47 = vpop.permute.xlu0 %3718  ;;  %v2607_v31 = vsel %vm12916_vm15, %v12915_v2, %v12914_v48 }
 0xaf5   : > { %v4024_v63 = vsel %vm1695_vm11, %v3719_v47, %v3721_v43  ;;  %v4025_v16 = vsel %vm1695_vm11, %v3721_v43, %v3723_v37  ;;  %v4042_v47 = vsel %vm1695_vm11, %v3759_v35, %v3761_v44 }
 0xaf6   : > { %3476 = vrot.lane.b32.xlu1 %v2632_v34, %s5110_s30  ;;  %3518 = vrot.lane.b32.xlu0 %v12912_v55, %s5110_s30  ;;  %v2606_v34 = vsel %vm12919_vm5, %v12918_v6, %v12915_v2  ;;  %v12920_v55 = vld [vmem:[#allocation102_spill] sm:$0xff] }
 0xaf7   : > { %4373 = vmatprep.subr.mxu0 %v4025_v16  ;;  %v2660_v35 = vsel %vm12921_vm1, %v12900_v23, %v12920_v55 }
 0xaf8   : > { %4374 = vmatpush2.msra.mxu0 %v4024_v63  ;;  %v10898_v15 = vpop.permute.xlu1 %3762  ;;  %v10900_v25 = vpop.permute.xlu0 %3704 }
 0xaf9   : > { %v4043_v43 = vsel %vm1695_vm11, %v3761_v44, %v10898_v15  ;;  %v12922_v44 = vld [vmem:[#allocation30_spill] sm:$0xff] }
 0xafa   : > { %3516 = vrot.lane.b32.xlu1 %v2686_v19, %s5110_s30  ;;  %3460 = vrot.lane.b32.xlu0 %v2607_v31, %s5110_s30 }
 0xafb   : > { %4440 = vmatprep.subr.mxu1 %v4043_v43  ;;  %v12923_v43 = vld [vmem:[#allocation28_spill] sm:$0xff] }
 0xafc   : > { %4441 = vmatpush2.msra.mxu1 %v4042_v47  ;;  %v3703_v63 = vpop.permute.xlu1 %3702  ;;  %v10913_v24 = vpop.permute.xlu0 %3744  ;;  %v2581_v47 = vsel %vm12924_vm2, %v12923_v43, %v12922_v44 }
 0xafd   : > { %12917 = vst [vmem:[#allocation90_spill] sm:$0xff] %v10913_v24  ;;  %v4017_v16 = vsel %vm1695_vm11, %v3703_v63, %v10900_v25 }
 0xafe   : > { %3458 = vrot.lane.b32.xlu1 %v2606_v34, %s5110_s30  ;;  %3500 = vrot.lane.b32.xlu0 %v12920_v55, %s5110_s30  ;;  %v2580_v55 = vsel %vm12925_vm3, %v12817_v59, %v12923_v43  ;;  %v12928_v59 = vld [vmem:[#allocation12_spill] sm:$0xff]  ;;  %v10950_v43 = vld [vmem:[#allocation7] sm:$0xff] }
 0xaff   : > { %4375 = vmatprep.subr.mxu0 %v4017_v16 }
 0xb00   : > { %v3743_v19 = vpop.permute.xlu1 %3742  ;;  %v3685_v31 = vpop.permute.xlu0 %3684 }
 0xb01   : > { %v4035_v2 = vsel %vm1695_vm11, %v3743_v19, %v10913_v24  ;;  %v4034_v6 = vsel %vm1695_vm11, %v10848_v56, %v3743_v19  ;;  %v12926_v24 = vld [vmem:[#allocation115_spill] sm:$0xff] }
 0xb02   : > { %3498 = vrot.lane.b32.xlu1 %v2660_v35, %s5110_s30  ;;  %3442 = vrot.lane.b32.xlu0 %v2581_v47, %s5110_s30  ;;  %v2634_v47 = vsel %vm12927_vm4, %v12907_v28, %v12926_v24  ;;  %v12929_v28 = vld [vmem:[#allocation72_spill] sm:$0xff] }
 0xb03   : > { %4442 = vmatprep.subr.mxu1 %v4035_v2 }
 0xb04   : > { %4443 = vmatpush2.msra.mxu1 %v4034_v6  ;;  %v3701_v34 = vpop.permute.xlu1 %3700  ;;  %v3725_v16 = vpop.permute.xlu0 %3724 }
 0xb05   : > { %v4016_v23 = vsel %vm1695_vm11, %v3701_v34, %v3703_v63 }
 0xb06   : > { %3440 = vrot.lane.b32.xlu1 %v2580_v55, %s5110_s30  ;;  %3482 = vrot.lane.b32.xlu0 %v12926_v24, %s5110_s30  ;;  %v12930_v24 = vld [vmem:[#allocation43_spill] sm:$0xff] }
 0xb07   : > { %4376 = vmatpush2.msra.mxu0 %v4016_v23 }
 0xb08   : > { %v3687_v56 = vpop.permute.xlu1 %3686  ;;  %v3683_v19 = vpop.permute.xlu0 %3682 }
 0xb09   : > { %v4008_v35 = vsel %vm1695_vm11, %v3683_v19, %v3685_v31  ;;  %v4009_v63 = vsel %vm1695_vm11, %v3685_v31, %v3687_v56  ;;  %v4026_v31 = vsel %vm1695_vm11, %v3723_v37, %v3725_v16  ;;  %v2608_v19 = vsel %vm12931_vm0, %v12914_v48, %v12930_v24  ;;  %v12933_v37 = vld [vmem:[#allocation21_spill] sm:$0xff] }
 0xb0a   : > { %3480 = vrot.lane.b32.xlu1 %v2634_v47, %s5110_s30  ;;  %3424 = vrot.lane.b32.xlu0 %v12928_v59, %s5110_s30  ;;  %v12932_v47 = vld [vmem:[#allocation103_spill] sm:$0xff] }
 0xb0b   : > { %4377 = vmatprep.subr.mxu0 %v4009_v63 }
 0xb0c   : > { %4378 = vmatpush2.msra.mxu0 %v4008_v35  ;;  %v10952_v2 = vpop.permute.xlu1 %3726  ;;  %v3677_v6 = vpop.permute.xlu0 %3676 }
 0xb0d   : > { %v4027_v34 = vsel %vm1695_vm11, %v3725_v16, %v10952_v2  ;;  %4380 = vmatmul.mubr.f32.vlgmr.msra.gmra.mxu0 %v10950_v43 }
 0xb0e   : > { %3422 = vrot.lane.b32.xlu1 %v12929_v28, %s5110_s30  ;;  %3464 = vrot.lane.b32.xlu0 %v12930_v24, %s5110_s30  ;;  %v12934_v28 = vld [vmem:[#allocation19_spill] sm:$0xff] }
 0xb0f   : > { %4444 = vmatprep.subr.mxu1 %v4027_v34  ;;  %4789 = vmatprep.mubr.msk.f32.mxu0 %vm2128_vm12, %v10625_v30  ;;  %v12935_v24 = vld [vmem:[#allocation39_spill] sm:$0xff] }
 0xb10   : > { %4445 = vmatpush2.msra.mxu1 %v4026_v31  ;;  %v3675_v23 = vpop.permute.xlu1 %3674  ;;  %v10964_v55 = vpop.permute.xlu0 %3708 }
 0xb11   : > { %v4005_v35 = vsel %vm1695_vm11, %v3675_v23, %v3677_v6  ;;  %v4004_v63 = vsel %vm1695_vm11, %v12932_v47, %v3675_v23  ;;  %v12937_v47 = vld [vmem:[#allocation116_spill] sm:$0xff] }
 0xb12   : > { %3462 = vrot.lane.b32.xlu1 %v2608_v19, %s5110_s30  ;;  %3406 = vrot.lane.b32.xlu0 %v12933_v37, %s5110_s30  ;;  %v2582_v19 = vsel %vm12936_vm6, %v12922_v44, %v12935_v24 }
 0xb13   : > { %4457 = vmatprep.subr.mxu0 %v4005_v35 }
 0xb14   : > { %4458 = vmatpush1.msra.mxu0 %v4004_v63  ;;  %v3707_v16 = vpop.permute.xlu1 %3706  ;;  %v3659_v59 = vpop.permute.xlu0 %3658  ;;  %v12938_v63 = vld [vmem:[#allocation36_spill] sm:$0xff] }
 0xb15   : > { %v4019_v34 = vsel %vm1695_vm11, %v3707_v16, %v10964_v55  ;;  %v4018_v48 = vsel %vm1695_vm11, %v10900_v25, %v3707_v16 }
 0xb16   : > { %3404 = vrot.lane.b32.xlu1 %v12934_v28, %s5110_s30  ;;  %3446 = vrot.lane.b32.xlu0 %v12935_v24, %s5110_s30  ;;  %v12939_v28 = vld [vmem:[#allocation76_spill] sm:$0xff] }
 0xb17   : > { %4446 = vmatprep.subr.mxu1 %v4019_v34  ;;  %v3386_v34 = vsel %vm1115_vm10, %v10505_v17, %v10527_v14 }
 0xb18   : > { %4447 = vmatpush2.msra.mxu1 %v4018_v48  ;;  %v3657_v31 = vpop.permute.xlu1 %3656  ;;  %v10983_v23 = vpop.permute.xlu0 %3690 }
 0xb19   : > { %v3997_v35 = vsel %vm1695_vm11, %v3657_v31, %v3659_v59  ;;  %v3996_v25 = vsel %vm1695_vm11, %v12937_v47, %v3657_v31 }
 0xb1a   : > { %3444 = vrot.lane.b32.xlu1 %v2582_v19, %s5110_s30  ;;  %3428 = vrot.lane.b32.xlu0 %v12938_v63, %s5110_s30  ;;  %v3385_v19 = vsel %vm1115_vm10, %v10113_v49, %v10505_v17  ;;  %v3378_v17 = vsel %vm1115_vm10, %v10565_v38, %v10551_v21 }
 0xb1b   : > { %4459 = vmatprep.subr.mxu0 %v3997_v35 }
 0xb1c   : > { %4460 = vmatpush1.msra.mxu0 %v3996_v25  ;;  %v3689_v37 = vpop.permute.xlu1 %3688  ;;  %v10994_v16 = vpop.permute.xlu0 %3640 }
 0xb1d   : > { %v4011_v44 = vsel %vm1695_vm11, %v3689_v37, %v10983_v23  ;;  %v4010_v48 = vsel %vm1695_vm11, %v3687_v56, %v3689_v37  ;;  %v12940_v56 = vld [vmem:[#allocation22_spill] sm:$0xff]  ;;  %v12941_v37 = vld [vmem:[#allocation20_spill] sm:$0xff] }
 0xb1e   : > { %3426 = vrot.lane.b32.xlu1 %v12939_v28, %s5110_s30  ;;  %3874 = vrot.lane.b32.xlu0 %v3386_v34, %s5110_s30  ;;  %v3370_v28 = vsel %vm1115_vm10, %v10582_v22, %v10610_v12 }
 0xb1f   : > { %4448 = vmatprep.subr.mxu1 %v4011_v44  ;;  %v3377_v44 = vsel %vm1115_vm10, %v10127_v26, %v10565_v38  ;;  %v3369_v38 = vsel %vm1115_vm10, %v10139_v7, %v10582_v22  ;;  %v3362_v7 = vsel %vm1115_vm10, %v10661_v45, %v10649_v50 }
 0xb20   : > { %4449 = vmatpush2.msra.mxu1 %v4010_v48  ;;  %v3639_v24 = vpop.permute.xlu1 %3638  ;;  %v3681_v31 = vpop.permute.xlu0 %3680  ;;  %v4912_v48 = vunpack.i.l.bf16 %v10621_v1 }
 0xb21   : > { %v3989_v35 = vsel %vm1695_vm11, %v3639_v24, %v10994_v16  ;;  %v3988_v47 = vsel %vm1695_vm11, %v10264_v60, %v3639_v24  ;;  %4451 = vmatmul.mubr.f32.vlgmr.msra.gmra.mxu1 %v10950_v43 }
 0xb22   : > { %3872 = vrot.lane.b32.xlu1 %v3385_v19, %s5110_s30  ;;  %3410 = vrot.lane.b32.xlu0 %v12940_v56, %s5110_s30  ;;  %v3388_v19 = vsel %vm1115_vm10, %v10596_v61, %v4912_v48 }
 0xb23   : > { %4461 = vmatprep.subr.mxu0 %v3989_v35  ;;  %4790 = vmatprep.mubr.msk.f32.mxu1 %vm2128_vm12, %v10625_v30 }
 0xb24   : > { %4462 = vmatpush1.msra.mxu0 %v3988_v47  ;;  %v3679_v25 = vpop.permute.xlu1 %3678  ;;  %v11018_v49 = vpop.permute.xlu0 %3622 }
 0xb25   : > { %v4007_v60 = vsel %vm1695_vm11, %v3679_v25, %v3681_v31  ;;  %v4006_v63 = vsel %vm1695_vm11, %v3677_v6, %v3679_v25  ;;  %v3387_v25 = vsel %vm1115_vm10, %v10527_v14, %v10596_v61 }
 0xb26   : > { %3408 = vrot.lane.b32.xlu1 %v12941_v37, %s5110_s30  ;;  %3856 = vrot.lane.b32.xlu0 %v3378_v17, %s5110_s30  ;;  %v4913_v17 = vunpack.i.h.bf16 %v10621_v1 }
 0xb27   : > { %4528 = vmatprep.subr.mxu1 %v4007_v60 }
 0xb28   : > { %4529 = vmatpush1.msra.mxu1 %v4006_v63  ;;  %v3621_v30 = vpop.permute.xlu1 %3620  ;;  %v3663_v34 = vpop.permute.xlu0 %3662  ;;  %v3361_v63 = vsel %vm1115_vm10, %v10151_v42, %v10661_v45  ;;  %v3379_v42 = vsel %vm1115_vm10, %v10551_v21, %v10672_v58  ;;  %v12942_v45 = vld [vmem:[#allocation101_spill] sm:$0xff] }
 0xb29   : > { %v3981_v6 = vsel %vm1695_vm11, %v3621_v30, %v11018_v49  ;;  %v3980_v24 = vsel %vm1695_vm11, %v10305_v41, %v3621_v30 }
 0xb2a   : > { %3854 = vrot.lane.b32.xlu1 %v3377_v44, %s5110_s30  ;;  %3838 = vrot.lane.b32.xlu0 %v3370_v28, %s5110_s30  ;;  %v4917_v28 = vunpack.i.l.bf16 %v10698_v57 }
 0xb2b   : > { %4463 = vmatprep.subr.mxu0 %v3981_v6 }
 0xb2c   : > { %4464 = vmatpush1.msra.mxu0 %v3980_v24  ;;  %v3661_v31 = vpop.permute.xlu1 %3660  ;;  %v11041_v26 = vpop.permute.xlu0 %3604 }
 0xb2d   : > { %v3999_v35 = vsel %vm1695_vm11, %v3661_v31, %v3663_v34  ;;  %v3998_v41 = vsel %vm1695_vm11, %v3659_v59, %v3661_v31  ;;  %v12943_v34 = vld [vmem:[#allocation80_spill] sm:$0xff]  ;;  %v3372_v31 = vsel %vm1115_vm10, %v10710_v51, %v4917_v28 }
 0xb2e   : > { %3836 = vrot.lane.b32.xlu1 %v3369_v38, %s5110_s30  ;;  %3878 = vrot.lane.b32.xlu0 %v3388_v19, %s5110_s30  ;;  %v3354_v44 = vsel %vm1115_vm10, %v12943_v34, %v12942_v45 }
 0xb2f   : > { %4530 = vmatprep.subr.mxu1 %v3999_v35 }
 0xb30   : > { %4531 = vmatpush1.msra.mxu1 %v3998_v41  ;;  %v3603_v47 = vpop.permute.xlu1 %3602  ;;  %v3645_v56 = vpop.permute.xlu0 %3644  ;;  %v12944_v41 = vld [vmem:[#allocation70_spill] sm:$0xff] }
 0xb31   : > { %v3973_v22 = vsel %vm1695_vm11, %v3603_v47, %v11041_v26  ;;  %v3972_v59 = vsel %vm1695_vm11, %v10315_v18, %v3603_v47  ;;  %v3380_v18 = vsel %vm1115_vm10, %v10672_v58, %v4913_v17  ;;  %v3353_v58 = vsel %vm1115_vm10, %v10035_v11, %v12943_v34  ;;  %v12945_v47 = vld [vmem:[#allocation63_spill] sm:$0xff] }
 0xb32   : > { %3876 = vrot.lane.b32.xlu1 %v3387_v25, %s5110_s30  ;;  %3820 = vrot.lane.b32.xlu0 %v3362_v7, %s5110_s30  ;;  %v3371_v11 = vsel %vm1115_vm10, %v10610_v12, %v10710_v51  ;;  %v4918_v25 = vunpack.i.h.bf16 %v10698_v57  ;;  %v3345_v51 = vsel %vm1115_vm10, %v12827_v54, %v12945_v47  ;;  %v3363_v54 = vsel %vm1115_vm10, %v10649_v50, %v10731_v32 }
 0xb33   : > { %4465 = vmatprep.subr.mxu0 %v3973_v22 }
 0xb34   : > { %4466 = vmatpush1.msra.mxu0 %v3972_v59  ;;  %v3643_v60 = vpop.permute.xlu1 %3642  ;;  %v11065_v14 = vpop.permute.xlu0 %3586  ;;  %v3364_v59 = vsel %vm1115_vm10, %v10731_v32, %v4918_v25 }
 0xb35   : > { %v3990_v61 = vsel %vm1695_vm11, %v10994_v16, %v3643_v60  ;;  %v3991_v37 = vsel %vm1695_vm11, %v3643_v60, %v3645_v56  ;;  %v3346_v56 = vsel %vm1115_vm10, %v12945_v47, %v12944_v41  ;;  %v12953_v47 = vld [vmem:[#allocation132_spill] sm:$0xff] }
 0xb36   : > { %3818 = vrot.lane.b32.xlu1 %v3361_v63, %s5110_s30  ;;  %3860 = vrot.lane.b32.xlu0 %v3380_v18, %s5110_s30  ;;  %v12947_v63 = vld [vmem:[#allocation49_spill] sm:$0xff] }
 0xb37   : > { %4532 = vmatprep.subr.mxu1 %v3991_v37  ;;  %v3337_v50 = vsel %vm1115_vm10, %v12833_v62, %v12947_v63 }
 0xb38   : > { %4533 = vmatpush1.msra.mxu1 %v3990_v61  ;;  %v3585_v1 = vpop.permute.xlu1 %3584  ;;  %v3627_v30 = vpop.permute.xlu0 %3626  ;;  %v12946_v61 = vld [vmem:[#allocation171_spill] sm:$0xff] }
 0xb39   : > { %v3964_v16 = vsel %vm1695_vm11, %v10352_v10, %v3585_v1  ;;  %v3965_v48 = vsel %vm1695_vm11, %v3585_v1, %v11065_v14  ;;  %v3338_v18 = vsel %vm1115_vm10, %v12947_v63, %v12946_v61  ;;  %v12957_v63 = vld [vmem:[#allocation13_spill] sm:$0xff] }
 0xb3a   : > { %3858 = vrot.lane.b32.xlu1 %v3379_v42, %s5110_s30  ;;  %3802 = vrot.lane.b32.xlu0 %v3354_v44, %s5110_s30 }
 0xb3b   : > { %4467 = vmatprep.subr.mxu0 %v3965_v48  ;;  %v12950_v48 = vld [vmem:[#allocation167_spill] sm:$0xff] }
 0xb3c   : > { %4468 = vmatpush1.msra.mxu0 %v3964_v16  ;;  %v3625_v10 = vpop.permute.xlu1 %3624  ;;  %v11090_v6 = vpop.permute.xlu0 %3568 }
 0xb3d   : > { %v3982_v21 = vsel %vm1695_vm11, %v11018_v49, %v3625_v10  ;;  %v3983_v24 = vsel %vm1695_vm11, %v3625_v10, %v3627_v30  ;;  %v12948_v30 = vld [vmem:[#allocation81_spill] sm:$0xff]  ;;  %v12951_v10 = vld [vmem:[#allocation172_spill] sm:$0xff] }
 0xb3e   : > { %3800 = vrot.lane.b32.xlu1 %v3353_v58, %s5110_s30  ;;  %4534 = vmatprep.subr.mxu1 %v3983_v24  ;;  %v3356_v16 = vsel %vm1115_vm10, %v12948_v30, %v10764_v8  ;;  %v3355_v62 = vsel %vm1115_vm10, %v12942_v45, %v12948_v30  ;;  %v12949_v8 = vld [vmem:[#allocation166_spill] sm:$0xff]  ;;  %v3329_v24 = vsel %vm1115_vm10, %v12837_v53, %v12950_v48 }
 0xb3f   : > { %3842 = vrot.lane.b32.xlu0 %v3372_v31, %s5110_s30  ;;  %4535 = vmatpush1.msra.mxu1 %v3982_v21  ;;  %v3330_v28 = vsel %vm1115_vm10, %v12950_v48, %v12949_v8  ;;  %v4908_v21 = vunpack.i.h.bf16 %v12951_v10  ;;  %v12960_v48 = vld [vmem:[#allocation160_spill] sm:$0xff] }
 0xb40   : > { %v3567_v38 = vpop.permute.xlu1 %3566  ;;  %v3609_v19 = vpop.permute.xlu0 %3608 }
 0xb41   : > { %v3956_v49 = vsel %vm1695_vm11, %v10367_v39, %v3567_v38  ;;  %v3957_v35 = vsel %vm1695_vm11, %v3567_v38, %v11090_v6  ;;  %v12952_v38 = vld [vmem:[#allocation174_spill] sm:$0xff] }
 0xb42   : > { %3840 = vrot.lane.b32.xlu1 %v3371_v11, %s5110_s30  ;;  %4469 = vmatprep.subr.mxu0 %v3957_v35  ;;  %v3347_v53 = vsel %vm1115_vm10, %v12944_v41, %v12952_v38 }
 0xb43   : > { %3784 = vrot.lane.b32.xlu0 %v3346_v56, %s5110_s30  ;;  %4470 = vmatpush1.msra.mxu0 %v3956_v49  ;;  %v12954_v56 = vld [vmem:[#allocation142_spill] sm:$0xff] }
 0xb44   : > { %v3607_v39 = vpop.permute.xlu1 %3606  ;;  %v11115_v7 = vpop.permute.xlu0 %3550  ;;  %v3322_v25 = vsel %vm1115_vm10, %v12954_v56, %v12953_v47 }
 0xb45   : > { %v3974_v12 = vsel %vm1695_vm11, %v11041_v26, %v3607_v39  ;;  %v3975_v22 = vsel %vm1695_vm11, %v3607_v39, %v3609_v19  ;;  %v3348_v19 = vsel %vm1115_vm10, %v12952_v38, %v4908_v21  ;;  %v4907_v39 = vunpack.i.l.bf16 %v12951_v10  ;;  %v12963_v38 = vld [vmem:[#allocation138_spill] sm:$0xff] }
 0xb46   : > { %3782 = vrot.lane.b32.xlu1 %v3345_v51, %s5110_s30  ;;  %4536 = vmatprep.subr.mxu1 %v3975_v22  ;;  %v3321_v51 = vsel %vm1115_vm10, %v12844_v9, %v12954_v56  ;;  %v4897_v56 = vunpack.i.l.bf16 %v12963_v38 }
 0xb47   : > { %3824 = vrot.lane.b32.xlu0 %v3364_v59, %s5110_s30  ;;  %4537 = vmatpush1.msra.mxu1 %v3974_v12  ;;  %v12955_v59 = vld [vmem:[#allocation173_spill] sm:$0xff] }
 0xb48   : > { %v3549_v57 = vpop.permute.xlu1 %3548  ;;  %v3591_v17 = vpop.permute.xlu0 %3590  ;;  %v3339_v9 = vsel %vm1115_vm10, %v12946_v61, %v12955_v59 }
 0xb49   : > { %v3948_v26 = vsel %vm1695_vm11, %v10405_v27, %v3549_v57  ;;  %v3949_v60 = vsel %vm1695_vm11, %v3549_v57, %v11115_v7  ;;  %v3340_v57 = vsel %vm1115_vm10, %v12955_v59, %v4907_v39 }
 0xb4a   : > { %3822 = vrot.lane.b32.xlu1 %v3363_v54, %s5110_s30  ;;  %4471 = vmatprep.subr.mxu0 %v3949_v60  ;;  %v12956_v60 = vld [vmem:[#allocation157_spill] sm:$0xff] }
 0xb4b   : > { %3766 = vrot.lane.b32.xlu0 %v3338_v18, %s5110_s30  ;;  %4472 = vmatpush1.msra.mxu0 %v3948_v26  ;;  %v3314_v18 = vsel %vm1115_vm10, %v12957_v63, %v12956_v60 }
 0xb4c   : > { %v3589_v37 = vpop.permute.xlu1 %3588  ;;  %v11139_v1 = vpop.permute.xlu0 %3532 }
 0xb4d   : > { %v3966_v27 = vsel %vm1695_vm11, %v11065_v14, %v3589_v37  ;;  %v3967_v32 = vsel %vm1695_vm11, %v3589_v37, %v3591_v17  ;;  %v12958_v37 = vld [vmem:[#allocation46_spill] sm:$0xff] }
 0xb4e   : > { %3764 = vrot.lane.b32.xlu1 %v3337_v50, %s5110_s30  ;;  %4538 = vmatprep.subr.mxu1 %v3967_v32  ;;  %v3313_v32 = vsel %vm1115_vm10, %v12848_v46, %v12957_v63 }
 0xb4f   : > { %3806 = vrot.lane.b32.xlu0 %v3356_v16, %s5110_s30  ;;  %4539 = vmatpush1.msra.mxu1 %v3966_v27  ;;  %v4903_v27 = vunpack.i.h.bf16 %v12958_v37  ;;  %v12959_v16 = vld [vmem:[#allocation168_spill] sm:$0xff] }
 0xb50   : > { %v3531_v42 = vpop.permute.xlu1 %3530  ;;  %v3573_v34 = vpop.permute.xlu0 %3572  ;;  %v3331_v46 = vsel %vm1115_vm10, %v12949_v8, %v12959_v16 }
 0xb51   : > { %v3940_v14 = vsel %vm1695_vm11, %v10420_v29, %v3531_v42  ;;  %v3941_v44 = vsel %vm1695_vm11, %v3531_v42, %v11139_v1  ;;  %v3332_v42 = vsel %vm1115_vm10, %v12959_v16, %v4903_v27 }
 0xb52   : > { %3804 = vrot.lane.b32.xlu1 %v3355_v62, %s5110_s30  ;;  %4473 = vmatprep.subr.mxu0 %v3941_v44  ;;  %v4902_v44 = vunpack.i.l.bf16 %v12958_v37 }
 0xb53   : > { %3748 = vrot.lane.b32.xlu0 %v3330_v28, %s5110_s30  ;;  %4474 = vmatpush1.msra.mxu0 %v3940_v14  ;;  %v12961_v28 = vld [vmem:[#allocation66_spill] sm:$0xff] }
 0xb54   : > { %v3571_v29 = vpop.permute.xlu1 %3570  ;;  %v11165_v58 = vpop.permute.xlu0 %3514  ;;  %v3306_v10 = vsel %vm1115_vm10, %v12961_v28, %v12960_v48 }
 0xb55   : > { %v3958_v45 = vsel %vm1695_vm11, %v11090_v6, %v3571_v29  ;;  %v3959_v31 = vsel %vm1695_vm11, %v3571_v29, %v3573_v34  ;;  %v3305_v29 = vsel %vm1115_vm10, %v12854_v52, %v12961_v28 }
 0xb56   : > { %3746 = vrot.lane.b32.xlu1 %v3329_v24, %s5110_s30  ;;  %4540 = vmatprep.subr.mxu1 %v3959_v31  ;;  %v12962_v24 = vld [vmem:[#allocation136_spill] sm:$0xff] }
 0xb57   : > { %3788 = vrot.lane.b32.xlu0 %v3348_v19, %s5110_s30  ;;  %4541 = vmatpush1.msra.mxu1 %v3958_v45  ;;  %v3324_v31 = vsel %vm1115_vm10, %v12962_v24, %v4902_v44  ;;  %v4898_v19 = vunpack.i.h.bf16 %v12963_v38  ;;  %v3323_v52 = vsel %vm1115_vm10, %v12953_v47, %v12962_v24 }
 0xb58   : > { %v3513_v49 = vpop.permute.xlu1 %3512  ;;  %v3555_v11 = vpop.permute.xlu0 %3554 }
 0xb59   : > { %v3932_v6 = vsel %vm1695_vm11, %v10457_v4, %v3513_v49  ;;  %v3933_v35 = vsel %vm1695_vm11, %v3513_v49, %v11165_v58 }
 0xb5a   : > { %3786 = vrot.lane.b32.xlu1 %v3347_v53, %s5110_s30  ;;  %4475 = vmatprep.subr.mxu0 %v3933_v35  ;;  %v12964_v53 = vld [vmem:[#allocation133_spill] sm:$0xff] }
 0xb5b   : > { %3730 = vrot.lane.b32.xlu0 %v3322_v25, %s5110_s30  ;;  %4476 = vmatpush1.msra.mxu0 %v3932_v6  ;;  %v3316_v35 = vsel %vm1115_vm10, %v12964_v53, %v4898_v19  ;;  %v3315_v47 = vsel %vm1115_vm10, %v12956_v60, %v12964_v53 }
 0xb5c   : > { %v3553_v4 = vpop.permute.xlu1 %3552  ;;  %v11190_v12 = vpop.permute.xlu0 %3496 }
 0xb5d   : > { %v3950_v41 = vsel %vm1695_vm11, %v11115_v7, %v3553_v4  ;;  %v3951_v22 = vsel %vm1695_vm11, %v3553_v4, %v3555_v11 }
 0xb5e   : > { %3728 = vrot.lane.b32.xlu1 %v3321_v51, %s5110_s30  ;;  %4542 = vmatprep.subr.mxu1 %v3951_v22 }
 0xb5f   : > { %3770 = vrot.lane.b32.xlu0 %v3340_v57, %s5110_s30  ;;  %4543 = vmatpush1.msra.mxu1 %v3950_v41  ;;  %v12965_v41 = vld [vmem:[#allocation141_spill] sm:$0xff] }
 0xb60   : > { %v3495_v17 = vpop.permute.xlu1 %3494  ;;  %v3537_v26 = vpop.permute.xlu0 %3536  ;;  %v3308_v51 = vsel %vm1115_vm10, %v12965_v41, %v4897_v56  ;;  %v3307_v57 = vsel %vm1115_vm10, %v12960_v48, %v12965_v41 }
 0xb61   : > { %v3924_v7 = vsel %vm1695_vm11, %v10470_v13, %v3495_v17  ;;  %v3925_v54 = vsel %vm1695_vm11, %v3495_v17, %v11190_v12 }
 0xb62   : > { %3768 = vrot.lane.b32.xlu1 %v3339_v9, %s5110_s30  ;;  %4477 = vmatprep.subr.mxu0 %v3925_v54 }
 0xb63   : > { %3712 = vrot.lane.b32.xlu0 %v3314_v18, %s5110_s30  ;;  %4478 = vmatpush1.msra.mxu0 %v3924_v7  ;;  %v12966_v18 = vld [vmem:[#allocation113_spill] sm:$0xff] }
 0xb64   : > { %v3535_v13 = vpop.permute.xlu1 %3534  ;;  %v11215_v50 = vpop.permute.xlu0 %3478 }
 0xb65   : > { %v3942_v61 = vsel %vm1695_vm11, %v11139_v1, %v3535_v13  ;;  %v3943_v30 = vsel %vm1695_vm11, %v3535_v13, %v3537_v26  ;;  %v2521_v26 = vld [vmem:[%s11425_s5] sm:$0xff] }
 0xb66   : > { %3710 = vrot.lane.b32.xlu1 %v3313_v32, %s5110_s30  ;;  %4544 = vmatprep.subr.mxu1 %v3943_v30 }
 0xb67   : > { %3752 = vrot.lane.b32.xlu0 %v3332_v42, %s5110_s30  ;;  %4545 = vmatpush1.msra.mxu1 %v3942_v61  ;;  %v12967_v42 = vld [vmem:[#allocation97_spill] sm:$0xff] }
 0xb68   : > { %v3477_v34 = vpop.permute.xlu1 %3476  ;;  %v3519_v14 = vpop.permute.xlu0 %3518 }
 0xb69   : > { %v3916_v1 = vsel %vm1695_vm11, %v10515_v0, %v3477_v34  ;;  %v3917_v62 = vsel %vm1695_vm11, %v3477_v34, %v11215_v50 }
 0xb6a   : > { %3750 = vrot.lane.b32.xlu1 %v3331_v46, %s5110_s30  ;;  %4479 = vmatprep.subr.mxu0 %v3917_v62 }
 0xb6b   : > { %3694 = vrot.lane.b32.xlu0 %v3306_v10, %s5110_s30  ;;  %4480 = vmatpush1.msra.mxu0 %v3916_v1 }
 0xb6c   : > { %v3517_v0 = vpop.permute.xlu1 %3516  ;;  %v3461_v21 = vpop.permute.xlu0 %3460 }
 0xb6d   : > { %v3934_v8 = vsel %vm1695_vm11, %v11165_v58, %v3517_v0  ;;  %v3935_v45 = vsel %vm1695_vm11, %v3517_v0, %v3519_v14 }
 0xb6e   : > { %3692 = vrot.lane.b32.xlu1 %v3305_v29, %s5110_s30  ;;  %4546 = vmatprep.subr.mxu1 %v3935_v45  ;;  %v12968_v29 = vld [vmem:[#allocation125_spill] sm:$0xff] }
 0xb6f   : > { %3734 = vrot.lane.b32.xlu0 %v3324_v31, %s5110_s30  ;;  %4547 = vmatpush1.msra.mxu1 %v3934_v8 }
 0xb70   : > { %v3459_v49 = vpop.permute.xlu1 %3458  ;;  %v3501_v11 = vpop.permute.xlu0 %3500 }
 0xb71   : > { %v3908_v58 = vsel %vm1695_vm11, %v10539_v36, %v3459_v49  ;;  %v3909_v6 = vsel %vm1695_vm11, %v3459_v49, %v3461_v21 }
 0xb72   : > { %3732 = vrot.lane.b32.xlu1 %v3323_v52, %s5110_s30  ;;  %4481 = vmatprep.subr.mxu0 %v3909_v6 }
 0xb73   : > { %3716 = vrot.lane.b32.xlu0 %v3316_v35, %s5110_s30  ;;  %4482 = vmatpush1.msra.mxu0 %v3908_v58 }
 0xb74   : > { %v3499_v25 = vpop.permute.xlu1 %3498  ;;  %v3443_v39 = vpop.permute.xlu0 %3442 }
 0xb75   : > { %v3926_v36 = vsel %vm1695_vm11, %v11190_v12, %v3499_v25  ;;  %v3927_v4 = vsel %vm1695_vm11, %v3499_v25, %v3501_v11 }
 0xb76   : > { %3714 = vrot.lane.b32.xlu1 %v3315_v47, %s5110_s30  ;;  %4548 = vmatprep.subr.mxu1 %v3927_v4 }
 0xb77   : > { %3698 = vrot.lane.b32.xlu0 %v3308_v51, %s5110_s30  ;;  %4549 = vmatpush1.msra.mxu1 %v3926_v36 }
 0xb78   : > { %v3441_v22 = vpop.permute.xlu1 %3440  ;;  %v3483_v59 = vpop.permute.xlu0 %3482 }
 0xb79   : > { %v3900_v12 = vsel %vm1695_vm11, %v10594_v3, %v3441_v22  ;;  %v3901_v17 = vsel %vm1695_vm11, %v3441_v22, %v3443_v39 }
 0xb7a   : > { %3696 = vrot.lane.b32.xlu1 %v3307_v57, %s5110_s30  ;;  %4483 = vmatprep.subr.mxu0 %v3901_v17  ;;  %s4782_s30 = sshll.u32 %s5266_s17, 6 }
 0xb7b   : > { %4484 = vmatpush1.msra.mxu0 %v3900_v12  ;;  %s292_s27 = scalar_lea.vmem [#allocation8], %s4782_s30 }
 0xb7c   : > { %v3481_v7 = vpop.permute.xlu1 %3480  ;;  %v3425_v9 = vpop.permute.xlu0 %3424  ;;  %s4684_s29 = sshll.u32 %s292_s27, 4  ;;  %s11379_s29 = int_to_ptr.vmem [resolvable:$true] %s4684_s29 }
 0xb7d   : > { %v3918_v54 = vsel %vm1695_vm11, %v11215_v50, %v3481_v7  ;;  %v3919_v3 = vsel %vm1695_vm11, %v3481_v7, %v3483_v59  ;;  %s5013_s16 = scalar_lea.vmem %s11379_s29, 1024  ;;  %p5020_p4 = scmp.lt.s32.totalorder %s11379_s29, %s5018_s8 }
 0xb7e   : > { %3391 = vperm.xlu1 %4893, %v2521_v26   ;;  %4550 = vmatprep.subr.mxu1 %v3919_v3  ;;  %p5014_p13 = scmp.ne.s32.totalorder %s11379_s29, %s5013_s16  ;;  %p5021_p6 = scmp.lt.s32.totalorder %s5019_s7, %s5013_s16 }
 0xb7f   : > { %4551 = vmatpush1.msra.mxu1 %v3918_v54 }
 0xb80   : > { %v3423_v60 = vpop.permute.xlu1 %3422  ;;  %v3465_v63 = vpop.permute.xlu0 %3464  ;;  %p5015_p1 = pnand %p5014_p13, %p12979_p0  ;;  %p5022_p8 = por %p5021_p6, %p5020_p4 }
 0xb81   : > { %v3892_v37 = vsel %vm1695_vm11, %v12966_v18, %v3423_v60  ;;  %v3893_v27 = vsel %vm1695_vm11, %v3423_v60, %v3425_v9  ;;  %v12969_v18 = vld [vmem:[#allocation123_spill] sm:$0xff] }
 0xb82   : > { %4485 = vmatprep.subr.mxu0 %v3893_v27  ;;  %p5016_p2 = pneg %p5015_p1 }
 0xb83   : > { %4486 = vmatpush1.msra.mxu0 %v3892_v37 }
 0xb84   : > { %v3463_v13 = vpop.permute.xlu1 %3462  ;;  %v3407_v61 = vpop.permute.xlu0 %3406  ;;  %p5023_p12 = pnand %p5022_p8, %p5016_p2 }
 0xb85   : > { %v3910_v32 = vsel %vm1695_vm11, %v3461_v21, %v3463_v13  ;;  %v3911_v50 = vsel %vm1695_vm11, %v3463_v13, %v3465_v63 }
 0xb86   : > { %4552 = vmatprep.subr.mxu1 %v3911_v50 }
 0xb87   : > { %4553 = vmatpush1.msra.mxu1 %v3910_v32 }
 0xb88   : > { %v3405_v30 = vpop.permute.xlu1 %3404  ;;  %v3447_v16 = vpop.permute.xlu0 %3446 }
 0xb89   : > { %v3884_v34 = vsel %vm1695_vm11, %v12967_v42, %v3405_v30  ;;  %v3885_v14 = vsel %vm1695_vm11, %v3405_v30, %v3407_v61 }
 0xb8a   : > { %4487 = vmatprep.subr.mxu0 %v3885_v14 }
 0xb8b   : > { %4488 = vmatpush1.msra.mxu0 %v3884_v34 }
 0xb8c   : > { %v3445_v1 = vpop.permute.xlu1 %3444  ;;  %v3429_v46 = vpop.permute.xlu0 %3428 }
 0xb8d   : > { %v3902_v62 = vsel %vm1695_vm11, %v3443_v39, %v3445_v1  ;;  %v3903_v44 = vsel %vm1695_vm11, %v3445_v1, %v3447_v16 }
 0xb8e   : > { %4554 = vmatprep.subr.mxu1 %v3903_v44 }
 0xb8f   : > { %4555 = vmatpush1.msra.mxu1 %v3902_v62 }
 0xb90   : > { %v3427_v48 = vpop.permute.xlu1 %3426  ;;  %v3875_v28 = vpop.permute.xlu0 %3874 }
 0xb91   : > { %v3894_v10 = vsel %vm1695_vm11, %v3425_v9, %v3427_v48  ;;  %v3895_v0 = vsel %vm1695_vm11, %v3427_v48, %v3429_v46  ;;  %v12970_v48 = vld [vmem:[#allocation90_spill] sm:$0xff] }
 0xb92   : > { %4556 = vmatprep.subr.mxu1 %v3895_v0 }
 0xb93   : > { %4557 = vmatpush1.msra.mxu1 %v3894_v10 }
 0xb94   : > { %v3873_v21 = vpop.permute.xlu1 %3872  ;;  %v3411_v8 = vpop.permute.xlu0 %3410 }
 0xb95   : > { %v4092_v45 = vsel %vm1695_vm11, %v12968_v29, %v3873_v21  ;;  %v4093_v24 = vsel %vm1695_vm11, %v3873_v21, %v3875_v28 }
 0xb96   : > { %4499 = vmatprep.subr.mxu0 %v4093_v24 }
 0xb97   : > { %4500 = vmatpush2.msra.mxu0 %v4092_v45 }
 0xb98   : > { %v3409_v31 = vpop.permute.xlu1 %3408  ;;  %v3857_v38 = vpop.permute.xlu0 %3856 }
 0xb99   : > { %v3886_v19 = vsel %vm1695_vm11, %v3407_v61, %v3409_v31  ;;  %v3887_v49 = vsel %vm1695_vm11, %v3409_v31, %v3411_v8 }
 0xb9a   : > { %4558 = vmatprep.subr.mxu1 %v3887_v49 }
 0xb9b   : > { %4559 = vmatpush1.msra.mxu1 %v3886_v19 }
 0xb9c   : > { %v3855_v11 = vpop.permute.xlu1 %3854  ;;  %v3839_v58 = vpop.permute.xlu0 %3838 }
 0xb9d   : > { %v4084_v52 = vsel %vm1695_vm11, %v10773_v20, %v3855_v11  ;;  %v4085_v6 = vsel %vm1695_vm11, %v3855_v11, %v3857_v38 }
 0xb9e   : > { %4501 = vmatprep.subr.mxu0 %v4085_v6 }
 0xb9f   : > { %4502 = vmatpush2.msra.mxu0 %v4084_v52 }
 0xba0   : > { %v3837_v53 = vpop.permute.xlu1 %3836  ;;  %v3879_v35 = vpop.permute.xlu0 %3878 }
 0xba1   : > { %v4076_v56 = vsel %vm1695_vm11, %v10796_v40, %v3837_v53  ;;  %v4077_v25 = vsel %vm1695_vm11, %v3837_v53, %v3839_v58 }
 0xba2   : > { %4503 = vmatprep.subr.mxu0 %v4077_v25 }
 0xba3   : > { %4504 = vmatpush2.msra.mxu0 %v4076_v56 }
 0xba4   : > { %v3877_v39 = vpop.permute.xlu1 %3876  ;;  %v3821_v36 = vpop.permute.xlu0 %3820 }
 0xba5   : > { %v4094_v47 = vsel %vm1695_vm11, %v3875_v28, %v3877_v39  ;;  %v4095_v4 = vsel %vm1695_vm11, %v3877_v39, %v3879_v35 }
 0xba6   : > { %4570 = vmatprep.subr.mxu1 %v4095_v4 }
 0xba7   : > { %4571 = vmatpush2.msra.mxu1 %v4094_v47 }
 0xba8   : > { %v3819_v20 = vpop.permute.xlu1 %3818  ;;  %v3861_v41 = vpop.permute.xlu0 %3860 }
 0xba9   : > { %v4068_v51 = vsel %vm1695_vm11, %v10812_v33, %v3819_v20  ;;  %v4069_v22 = vsel %vm1695_vm11, %v3819_v20, %v3821_v36 }
 0xbaa   : > { %4505 = vmatprep.subr.mxu0 %v4069_v22 }
 0xbab   : > { %4506 = vmatpush2.msra.mxu0 %v4068_v51 }
 0xbac   : > { %v3859_v40 = vpop.permute.xlu1 %3858  ;;  %v3803_v59 = vpop.permute.xlu0 %3802 }
 0xbad   : > { %v4086_v12 = vsel %vm1695_vm11, %v3857_v38, %v3859_v40  ;;  %v4087_v57 = vsel %vm1695_vm11, %v3859_v40, %v3861_v41 }
 0xbae   : > { %4572 = vmatprep.subr.mxu1 %v4087_v57 }
 0xbaf   : > { %4573 = vmatpush2.msra.mxu1 %v4086_v12 }
 0xbb0   : > { %v3801_v17 = vpop.permute.xlu1 %3800 }
 0xbb1   : > { %v4060_v26 = vsel %vm1695_vm11, %v10846_v5, %v3801_v17  ;;  %v3843_v7 = vpop.permute.xlu0 %3842  ;;  %v4061_v9 = vsel %vm1695_vm11, %v3801_v17, %v3803_v59 }
 0xbb2   : > { %4507 = vmatprep.subr.mxu0 %v4061_v9 }
 0xbb3   : > { %4508 = vmatpush2.msra.mxu0 %v4060_v26 }
 0xbb4   : > { %v3841_v33 = vpop.permute.xlu1 %3840 }
 0xbb5   : > { %v4078_v54 = vsel %vm1695_vm11, %v3839_v58, %v3841_v33  ;;  %v3785_v3 = vpop.permute.xlu0 %3784  ;;  %v4079_v60 = vsel %vm1695_vm11, %v3841_v33, %v3843_v7 }
 0xbb6   : > { %4574 = vmatprep.subr.mxu1 %v4079_v60 }
 0xbb7   : > { %4575 = vmatpush2.msra.mxu1 %v4078_v54 }
 0xbb8   : > { %v3783_v63 = vpop.permute.xlu1 %3782 }
 0xbb9   : > { %v4052_v37 = vsel %vm1695_vm11, %v12969_v18, %v3783_v63  ;;  %v3825_v27 = vpop.permute.xlu0 %3824  ;;  %v4053_v5 = vsel %vm1695_vm11, %v3783_v63, %v3785_v3  ;;  %v12971_v63 = vld [vmem:[#allocation150_spill] sm:$0xff] }
 0xbba   : > { %4509 = vmatprep.subr.mxu0 %v4053_v5 }
 0xbbb   : > { %4510 = vmatpush2.msra.mxu0 %v4052_v37  ;;  %v12972_v37 = vld [vmem:[#allocation53_spill] sm:$0xff] }
 0xbbc   : > { %v3823_v13 = vpop.permute.xlu1 %3822 }
 0xbbd   : > { %v4070_v61 = vsel %vm1695_vm11, %v3821_v36, %v3823_v13  ;;  %v3767_v32 = vpop.permute.xlu0 %3766  ;;  %v4071_v50 = vsel %vm1695_vm11, %v3823_v13, %v3825_v27 }
 0xbbe   : > { %4576 = vmatprep.subr.mxu1 %v4071_v50 }
 0xbbf   : > { %4577 = vmatpush2.msra.mxu1 %v4070_v61 }
 0xbc0   : > { %v3765_v30 = vpop.permute.xlu1 %3764 }
 0xbc1   : > { %v4044_v16 = vsel %vm1695_vm11, %v10898_v15, %v3765_v30  ;;  %v3807_v42 = vpop.permute.xlu0 %3806  ;;  %v4045_v34 = vsel %vm1695_vm11, %v3765_v30, %v3767_v32  ;;  %v12973_v30 = vld [vmem:[#allocation56_spill] sm:$0xff] }
 0xbc2   : > { %4511 = vmatprep.subr.mxu0 %v4045_v34 }
 0xbc3   : > { %4512 = vmatpush2.msra.mxu0 %v4044_v16 }
 0xbc4   : > { %v3805_v14 = vpop.permute.xlu1 %3804 }
 0xbc5   : > { %v4062_v1 = vsel %vm1695_vm11, %v3803_v59, %v3805_v14  ;;  %v3749_v46 = vpop.permute.xlu0 %3748  ;;  %v4063_v62 = vsel %vm1695_vm11, %v3805_v14, %v3807_v42  ;;  %v12974_v14 = vld [vmem:[#allocation42_spill] sm:$0xff] }
 0xbc6   : > { %4578 = vmatprep.subr.mxu1 %v4063_v62 }
 0xbc7   : > { %4579 = vmatpush2.msra.mxu1 %v4062_v1 }
 0xbc8   : > { %v3747_v44 = vpop.permute.xlu1 %3746 }
 0xbc9   : > { %v4036_v28 = vsel %vm1695_vm11, %v12970_v48, %v3747_v44  ;;  %v3789_v10 = vpop.permute.xlu0 %3788  ;;  %v4037_v15 = vsel %vm1695_vm11, %v3747_v44, %v3749_v46 }
 0xbca   : > { %4513 = vmatprep.subr.mxu0 %v4037_v15 }
 0xbcb   : > { %4514 = vmatpush2.msra.mxu0 %v4036_v28 }
 0xbcc   : > { %v3787_v0 = vpop.permute.xlu1 %3786 }
 0xbcd   : > { %v4054_v21 = vsel %vm1695_vm11, %v3785_v3, %v3787_v0  ;;  %v3731_v8 = vpop.permute.xlu0 %3730  ;;  %v4055_v29 = vsel %vm1695_vm11, %v3787_v0, %v3789_v10  ;;  %v4381_v7 = vpop.f32.mrf.mxu0  ;;  %v12976_v10 = vld [vmem:[#allocation68_spill] sm:$0xff] }
 0xbce   : > { %4580 = vmatprep.subr.mxu1 %v4055_v29 }
 0xbcf   : > { %4581 = vmatpush2.msra.mxu1 %v4054_v21  ;;  %v4383_v33 = vpop.f32.mrf.mxu0 }
 0xbd0   : > { %v3729_v45 = vpop.permute.xlu1 %3728 }
 0xbd1   : > { %v4028_v24 = vsel %vm1695_vm11, %v10952_v2, %v3729_v45  ;;  %v3771_v31 = vpop.permute.xlu0 %3770  ;;  %v4029_v38 = vsel %vm1695_vm11, %v3729_v45, %v3731_v8  ;;  %v12977_v45 = vld [vmem:[#allocation16_spill] sm:$0xff] }
 0xbd2   : > { %4515 = vmatprep.subr.mxu0 %v4029_v38 }
 0xbd3   : > { %4516 = vmatpush2.msra.mxu0 %v4028_v24 }
 0xbd4   : > { %v3769_v19 = vpop.permute.xlu1 %3768 }
 0xbd5   : > { %v4046_v49 = vsel %vm1695_vm11, %v3767_v32, %v3769_v19  ;;  %v3713_v11 = vpop.permute.xlu0 %3712  ;;  %v4047_v58 = vsel %vm1695_vm11, %v3769_v19, %v3771_v31  ;;  %v12978_v19 = vld [vmem:[#allocation17_spill] sm:$0xff] }
 0xbd6   : > { %4582 = vmatprep.subr.mxu1 %v4047_v58 }
 0xbd7   : > { %4583 = vmatpush2.msra.mxu1 %v4046_v49 }
 0xbd8   : > { %v3711_v52 = vpop.permute.xlu1 %3710 }
 0xbd9   : > { %v4020_v6 = vsel %vm1695_vm11, %v10964_v55, %v3711_v52  ;;  %v3753_v53 = vpop.permute.xlu0 %3752  ;;  %v4021_v2 = vsel %vm1695_vm11, %v3711_v52, %v3713_v11 }
 0xbda   : > { %4517 = vmatprep.subr.mxu0 %v4021_v2 }
 0xbdb   : > { %4518 = vmatpush2.msra.mxu0 %v4020_v6 }
 0xbdc   : > { %v3751_v35 = vpop.permute.xlu1 %3750 }
 0xbdd   : > { %v4038_v56 = vsel %vm1695_vm11, %v3749_v46, %v3751_v35  ;;  %v3695_v25 = vpop.permute.xlu0 %3694  ;;  %v4039_v39 = vsel %vm1695_vm11, %v3751_v35, %v3753_v53  ;;  %v12975_v46 = vld [vmem:[#allocation48_spill] sm:$0xff] }
 0xbde   : > { %4584 = vmatprep.subr.mxu1 %v4039_v39 }
 0xbdf   : > { %4585 = vmatpush2.msra.mxu1 %v4038_v56 }
 0xbe0   : > { %v3693_v36 = vpop.permute.xlu1 %3692 }
 0xbe1   : > { %v4012_v47 = vsel %vm1695_vm11, %v10983_v23, %v3693_v36  ;;  %v3735_v4 = vpop.permute.xlu0 %3734  ;;  %v4013_v55 = vsel %vm1695_vm11, %v3693_v36, %v3695_v25  ;;  %v4452_v60 = vpop.f32.mrf.mxu1 }
 0xbe2   : > { %4519 = vmatprep.subr.mxu0 %v4013_v55 }
 0xbe3   : > { %4520 = vmatpush2.msra.mxu0 %v4012_v47  ;;  %v4454_v13 = vpop.f32.mrf.mxu1 }
 0xbe4   : > { %v3733_v20 = vpop.permute.xlu1 %3732  ;;  %4522 = vmatmul.mubr.f32.vlgmr.msra.gmra.mxu0 %v10950_v43 }
 0xbe5   : > { %v4030_v41 = vsel %vm1695_vm11, %v3731_v8, %v3733_v20  ;;  %v4031_v51 = vsel %vm1695_vm11, %v3733_v20, %v3735_v4  ;;  %v3717_v22 = vpop.permute.xlu0 %3716 }
 0xbe6   : > { %4586 = vmatprep.subr.mxu1 %v4031_v51 }
 0xbe7   : > { %4587 = vmatpush2.msra.mxu1 %v4030_v41 }
 0xbe8   : > { %v3715_v40 = vpop.permute.xlu1 %3714 }
 0xbe9   : > { %v4022_v59 = vsel %vm1695_vm11, %v3713_v11, %v3715_v40  ;;  %v4023_v23 = vsel %vm1695_vm11, %v3715_v40, %v3717_v22  ;;  %v3699_v12 = vpop.permute.xlu0 %3698 }
 0xbea   : > { %4588 = vmatprep.subr.mxu1 %v4023_v23 }
 0xbeb   : > { %4589 = vmatpush2.msra.mxu1 %v4022_v59 }
 0xbec   : > { %v3697_v57 = vpop.permute.xlu1 %3696 }
 0xbed   : > { %v4014_v17 = vsel %vm1695_vm11, %v3695_v25, %v3697_v57  ;;  %v4015_v26 = vsel %vm1695_vm11, %v3697_v57, %v3699_v12 }
 0xbee   : > { %4590 = vmatprep.subr.mxu1 %v4015_v26 }
 0xbef   : > { %4591 = vmatpush2.msra.mxu1 %v4014_v17 }
 0xbf0   : > { %4593 = vmatmul.mubr.f32.vlgmr.msra.gmra.mxu1 %v10950_v43 }
 0xbf9   : > { %v3392_v9 = vpop.permute.xlu1 %3391 }
 0xbfa   : > { %v4382_v54 = vadd.f32 %v4381_v7, %v3392_v9  ;;  %v4384_v3 = vadd.f32 %v4383_v33, %v3392_v9  ;;  %v4453_v5 = vadd.f32 %v4452_v60, %v3392_v9  ;;  %v4455_v50 = vadd.f32 %v4454_v13, %v3392_v9 }
 0xbfc   : > { %v4599_v18 = vmul.f32 %v4382_v54, %v12971_v63  ;;  %v4600_v27 = vmul.f32 %v4384_v3, %v12972_v37  ;;  %v4601_v16 = vmul.f32 %v4453_v5, %v12973_v30  ;;  %v4602_v1 = vmul.f32 %v4455_v50, %v12974_v14 }
 0xbfe   : > { %v4607_v32 = vadd.f32 %v4600_v27, %v4599_v18 }
 0xc00   : > { %v4608_v43 = vadd.f32 %v4607_v32, %v4601_v16 }
 0xc02   : > { %v4609_v48 = vadd.f32 %v4608_v43, %v4602_v1 }
 0xca4   : > { %v4523_v61 = vpop.f32.mrf.mxu0 }
 0xca5   : > { %v4524_v42 = vadd.f32 %v4523_v61, %v3392_v9 }
 0xca6   : > { %v4525_v34 = vpop.f32.mrf.mxu0 }
 0xca7   : > { %v4603_v62 = vmul.f32 %v4524_v42, %v12975_v46  ;;  %v4526_v44 = vadd.f32 %v4525_v34, %v3392_v9 }
 0xca9   : > { %v4610_v28 = vadd.f32 %v4609_v48, %v4603_v62  ;;  %v4604_v15 = vmul.f32 %v4526_v44, %v12976_v10 }
 0xcab   : > { %v4611_v29 = vadd.f32 %v4610_v28, %v4604_v15 }
 0xcb0   : > { %v4594_v0 = vpop.f32.mrf.mxu1 }
 0xcb1   : > { %v4595_v21 = vadd.f32 %v4594_v0, %v3392_v9 }
 0xcb2   : > { %v4596_v8 = vpop.f32.mrf.mxu1 }
 0xcb3   : > { %v4605_v24 = vmul.f32 %v4595_v21, %v12977_v45  ;;  %v4597_v31 = vadd.f32 %v4596_v8, %v3392_v9 }
 0xcb5   : > { %v4612_v38 = vadd.f32 %v4611_v29, %v4605_v24  ;;  %v4606_v49 = vmul.f32 %v4597_v31, %v12978_v19 }
 0xcb7   : > { %v4613_v11 = vadd.f32 %v4612_v38, %v4606_v49 }
 0xcb9   : > { %4614 = vadd.xlane.f32.xlu0 %v4613_v11 }
 0xd42   : > { %v4615_v58 = vpop.xlane.xlu0 %4614 }
 0xd43   : > { %v4616_v52 = vmul.f32 0.001953125, %v4615_v58 }
 0xd45   : > { %v4617_v6 = vsub.f32 %v4599_v18, %v4616_v52  ;;  %v4618_v53 = vsub.f32 %v4600_v27, %v4616_v52  ;;  %v4619_v2 = vsub.f32 %v4601_v16, %v4616_v52  ;;  %v4620_v35 = vsub.f32 %v4602_v1, %v4616_v52 }
 0xd46   : > { %v4621_v56 = vsub.f32 %v4603_v62, %v4616_v52  ;;  %v4622_v47 = vsub.f32 %v4604_v15, %v4616_v52  ;;  %v4623_v41 = vsub.f32 %v4605_v24, %v4616_v52  ;;  %v4624_v59 = vsub.f32 %v4606_v49, %v4616_v52 }
 0xd47   : > { %v4625_v25 = vmul.f32 %v4617_v6, %v12971_v63  ;;  %v4626_v39 = vmul.f32 %v4618_v53, %v12972_v37  ;;  %v4627_v36 = vmul.f32 %v4619_v2, %v12973_v30  ;;  %v4628_v4 = vmul.f32 %v4620_v35, %v12974_v14 }
 0xd48   : > { %v4629_v51 = vmul.f32 %v4621_v56, %v12975_v46  ;;  %v4630_v23 = vmul.f32 %v4622_v47, %v12976_v10  ;;  %v4631_v17 = vmul.f32 %v4623_v41, %v12977_v45  ;;  %v4632_v9 = vmul.f32 %v4624_v59, %v12978_v19 }
 0xd49   : > { %v4633_v55 = vmul.f32 %v4625_v25, %v4625_v25  ;;  %v4634_v20 = vmul.f32 %v4626_v39, %v4626_v39  ;;  %v4635_v22 = vmul.f32 %v4627_v36, %v4627_v36  ;;  %v4636_v12 = vmul.f32 %v4628_v4, %v4628_v4 }
 0xd4a   : > { %v4637_v26 = vmul.f32 %v4629_v51, %v4629_v51  ;;  %v4638_v33 = vmul.f32 %v4630_v23, %v4630_v23  ;;  %v4639_v3 = vmul.f32 %v4631_v17, %v4631_v17  ;;  %v4640_v63 = vmul.f32 %v4632_v9, %v4632_v9 }
 0xd4b   : > { %v4641_v40 = vadd.f32 %v4634_v20, %v4633_v55 }
 0xd4d   : > { %v4642_v57 = vadd.f32 %v4641_v40, %v4635_v22 }
 0xd4f   : > { %v4643_v7 = vadd.f32 %v4642_v57, %v4636_v12 }
 0xd51   : > { %v4644_v54 = vadd.f32 %v4643_v7, %v4637_v26 }
 0xd53   : > { %v4645_v60 = vadd.f32 %v4644_v54, %v4638_v33 }
 0xd55   : > { %v4646_v18 = vadd.f32 %v4645_v60, %v4639_v3 }
 0xd57   : > { %v4647_v37 = vadd.f32 %v4646_v18, %v4640_v63 }
 0xd59   : > { %4648 = vadd.xlane.f32.xlu1 %v4647_v37 }
 0xde2   : > { %v4649_v27 = vpop.xlane.xlu1 %4648 }
 0xde3   : > { %v4650_v5 = vmul.f32 0.001953125, %v4649_v27 }
 0xde5   : > { %v4651_v13 = vadd.f32 1e-05, %v4650_v5 }
 0xde7   : > { %4922 = vrsqrt.f32 %v4651_v13 }
 0xdf4   : > { %v4923_v61 = vpop.eup %4922 }
 0xdf5   : > { %v4653_v32 = vmul.f32 %v4923_v61, %v4625_v25  ;;  %v4654_v50 = vmul.f32 %v4923_v61, %v4626_v39  ;;  %v4655_v30 = vmul.f32 %v4923_v61, %v4627_v36  ;;  %v4656_v16 = vmul.f32 %v4923_v61, %v4628_v4 }
 0xdf6   : > { %v4657_v42 = vmul.f32 %v4923_v61, %v4629_v51  ;;  %v4658_v34 = vmul.f32 %v4923_v61, %v4630_v23  ;;  %v4659_v43 = vmul.f32 %v4923_v61, %v4631_v17  ;;  %v4660_v14 = vmul.f32 %v4923_v61, %v4632_v9 }
 0xdf7   : > { %4661 = vst [vmem:[%s292_s27] sm:$0xff] %v4653_v32  ;;  %4662 = vst [vmem:[%s292_s27 + $0x8] sm:$0xff] %v4654_v50 }
 0xdf8   : > { %4663 = vst [vmem:[%s292_s27 + $0x10] sm:$0xff] %v4655_v30  ;;  %4664 = vst [vmem:[%s292_s27 + $0x18] sm:$0xff] %v4656_v16 }
 0xdf9   : > { %4665 = vst [vmem:[%s292_s27 + $0x20] sm:$0xff] %v4657_v42  ;;  %4666 = vst [vmem:[%s292_s27 + $0x28] sm:$0xff] %v4658_v34 }
 0xdfa   : > { %4667 = vst [vmem:[%s292_s27 + $0x30] sm:$0xff] %v4659_v43  ;;  %4668 = vst [vmem:[%s292_s27 + $0x38] sm:$0xff] %v4660_v14 }
 0xdfb   : > { %5026 = shalt.err (!%p5023_p12)
}
 0xdfc   : > { %s5027_s14 = scalar_lea.hbm %s11377_s15, 1024  ;;  %s5031_s18 = scalar_lea.hbm %s11426_s6, 2048 }
 0xdfd   : > { %p5028_p11 = scmp.ne.s32.totalorder %s11377_s15, %s5027_s14  ;;  %p5032_p5 = scmp.lt.s32.totalorder %s11377_s15, %s11426_s6 }
 0xdfe   : > { %p5033_p9 = scmp.lt.s32.totalorder %s5031_s18, %s5027_s14 }
 0xdff   : > { %p5029_p7 = pnand %p5028_p11, %p12979_p0 }
 0xe00   : > { %p5034_p3 = por %p5033_p9, %p5032_p5 }
 0xe01   : > { %p5030_p10 = pneg %p5029_p7 }
 0xe03   : > { %p5035_p13 = pnand %p5034_p3, %p5030_p10 }
 0xe05   : > { %5038 = shalt.err (!%p5035_p13)
}
 0xe06   : > { %4810 = dma.vmem_to_hbm [thread:$0]  (%p12979_p0), %s11379_s29, 1024, %s11377_s15, %s4670_s25  }
 0xe07 PF: > { %s4696_s1 = sand.u32 1, %s5069_s21   ;;  %p12980_p1 = scmp.ne.s32.totalorder %s11902_s28, 0 }
 0xe08   : > { %p12981_p2 = scmp.ge.s32.totalorder %s5081_s24, 2  ;;  %s4697_s27 = scalar_lea.sflag [#allocation4], %s4696_s1 }
 0xe0a   : > { %p4824_p4 = pnand %p12981_p2, %p12980_p1 }
 0xe0c   : > { %p4825_p6 = pneg %p4824_p4 }
 0xe0e   : > { %5064 = dma.done.wait (%p4825_p6), %s4697_s27, 1024  }
 0xe0f   : > { %5066 = vsyncadd (%p4825_p6), %s4697_s27, 4294966272  ;;  %p20_p8 = scmp.ge.s32.totalorder %s5202_s11, 4   ;;  %s12982_s21 = smov %s5073_s22 }
 0xe10   : > { %s12983_s22 = smov %s5077_s23  ;;  %s12984_s23 = smov %s5229_s20 }
 0xe11   : > { %s12985_s24 = smov %s5202_s11  ;;  %22 = sbr.rel (!%p20_p8) target bundleno = 8 (0x8), region = 97 }
 0xe16   :  { %4702 = vsyncpa [#allocation3], 1 }
 0xe17   :  { %4704 = vsyncpa [#allocation3 + $0x1], 1 }
 0xe18   :  { %4705 = vsyncpa [#allocation6], 1 }
 0xe19   :  { %4706 = vsyncpa [#allocation4], 1 }
 0xe1a   :  { %4708 = vsyncpa [#allocation4 + $0x1], 1 }

</bundles_post_ra>
